<compile_context>
chip_gen: v7x
topology: tpu7x:2x2x1
jax: 0.10.0
libtpu: 0.0.40
codegen_flags: <defaults>
</compile_context>

<pallas_src>
import numpy as np
import jax
import jax.numpy as jnp
from jax.experimental import pallas as pl
from jax.experimental.pallas import tpu as pltpu


def _round_up(x, m):
    return ((x + m - 1) // m) * m


def inception_block_v1(x_nchw, branch_weights, branch_biases):
    """Pallas-TPU forward for Inception_Block_V1.

    branch_weights: list of HWIO arrays [k_i, k_i, Cin, Cout] with k_i = 2i+1.
    branch_biases:  list of [Cout].
    x_nchw: [B, Cin, H, W] (PyTorch NCHW).  Returns [B, Cout, H, W].
    """
    B, Cin, H, W = map(int, x_nchw.shape)
    nk = len(branch_weights)
    K = max(int(w.shape[0]) for w in branch_weights)        # largest kernel size
    Cout = int(branch_weights[0].shape[-1])
    pad = (K - 1) // 2
    Hp, Wp = H + 2 * pad, W + 2 * pad

    # ---- exact branch fusion:  mean_i("same" conv_i(x) + b_i)
    #      == conv(x, mean_i zero-padded-to-KxK w_i) + mean_i b_i -------------
    w_sum = jnp.zeros((K, K, Cin, Cout), jnp.float32)
    for w in branch_weights:
        k = int(w.shape[0])
        off = (K - k) // 2
        w_sum = w_sum + jnp.pad(w.astype(jnp.float32),
                                ((off, off), (off, off), (0, 0), (0, 0)))
    w_mean = w_sum / nk                                      # [K, K, Cin, Cout]
    b_mean = sum(b.astype(jnp.float32) for b in branch_biases) / nk   # [Cout]

    # ---- kernel-side layouts -------------------------------------------------
    Cin_p = _round_up(max(Cin, 8), 8)        # sublane-friendly channel count (zero-padded)

    # per-tap weights [K*K, Cout, Cin_p], bf16 (tap = kh*K + kw)
    w_tap = jnp.transpose(w_mean, (0, 1, 3, 2)).reshape(K * K, Cout, Cin)
    w_tap = jnp.pad(w_tap, ((0, 0), (0, 0), (0, Cin_p - Cin))).astype(jnp.bfloat16)
    b_col = b_mean.reshape(Cout, 1)                          # f32 bias column

    # flat padded image [B, Cin_p, L] bf16 -- the ONLY wrapper data movement.
    JLEN = _round_up(H * Wp, 128)            # lane-dense flat output length
    max_off = (K - 1) * Wp + (K - 1)         # largest tap shift
    L = _round_up(JLEN + max_off, 128)       # flat image length (all tap reads in-bounds)
    xp = jnp.pad(x_nchw.astype(jnp.bfloat16),
                 ((0, 0), (0, Cin_p - Cin), (pad, pad), (pad, pad)))   # [B,Cin_p,Hp,Wp]
    xflat = xp.reshape(B, Cin_p, Hp * Wp)
    xflat = jnp.pad(xflat, ((0, 0), (0, 0), (0, L - Hp * Wp)))         # [B,Cin_p,L]

    # ---- VMEM-aware tile of the flat output axis -----------------------------
    def blocks_bytes(tile_j):
        img = Cin_p * L * 2                                  # bf16, resident per batch
        out = Cout * tile_j * 4                              # f32 output tile
        wgt = (K * K) * max(Cout, 16) * 128 * 2              # lane-padded resident weight
        bias = max(Cout, 8) * 128 * 4
        return 2 * img + 2 * out + wgt + bias                # double-buffered img/out

    try:
        vmem_cap = int(pltpu.get_tpu_info().vmem_capacity_bytes)
    except Exception:
        vmem_cap = 64 * 1024 * 1024                          # conservative (v7x)
    budget = int(0.7 * vmem_cap)

    units = JLEN // 128
    TILE_J = 128
    for d in range(units, 0, -1):                            # largest tile that fits
        if units % d == 0 and blocks_bytes(128 * d) <= budget:
            TILE_J = 128 * d
            break
    n_j = JLEN // TILE_J
    vmem_limit = int(max(32 * 1024 * 1024,
                         min(int(0.9 * vmem_cap), 2 * blocks_bytes(TILE_J))))

    # ---- kernel ---------------------------------------------------------------
    def kernel(x_ref, w_ref, b_ref, o_ref):
        # x_ref: [1, Cin_p, L]       bf16  flat padded image (resident per batch)
        # w_ref: [K*K, Cout, Cin_p]  bf16  pre-averaged per-tap weights (resident)
        # b_ref: [Cout, 1]           f32   pre-averaged bias (resident)
        # o_ref: [1, Cout, TILE_J]   f32   lane-dense output tile (flat padded-width coords)
        if n_j == 1:
            jbase = 0                                        # static slices (common path)
        else:
            jbase = pl.multiple_of(pl.program_id(1) * TILE_J, 128)
        acc = jnp.zeros((Cout, TILE_J), jnp.float32)
        for kh in range(K):                                  # unrolled K*K tap loop
            for kw in range(K):
                off = kh * Wp + kw
                xs = x_ref[0, :, pl.ds(jbase + off, TILE_J)]     # [Cin_p, TILE_J] bf16
                wt = w_ref[kh * K + kw]                          # [Cout, Cin_p]   bf16
                acc = acc + jnp.dot(wt, xs, preferred_element_type=jnp.float32)
        o_ref[0] = acc + b_ref[...]                          # f32 bias add, once

    out_flat = pl.pallas_call(
        kernel,
        out_shape=jax.ShapeDtypeStruct((B, Cout, JLEN), jnp.float32),
        grid=(B, n_j),
        in_specs=[
            pl.BlockSpec((1, Cin_p, L), lambda b, j: (b, 0, 0)),        # whole image / batch
            pl.BlockSpec((K * K, Cout, Cin_p), lambda b, j: (0, 0, 0)),  # resident weights
            pl.BlockSpec((Cout, 1), lambda b, j: (0, 0)),                # resident bias
        ],
        out_specs=pl.BlockSpec((1, Cout, TILE_J), lambda b, j: (b, 0, j)),
        compiler_params=pltpu.CompilerParams(
            dimension_semantics=("parallel", "parallel"),
            vmem_limit_bytes=vmem_limit),
    )(xflat, w_tap, b_col)

    # flat padded-width coords -> NCHW: keep the first H*Wp entries, drop junk columns.
    y = out_flat[:, :, :H * Wp].reshape(B, Cout, H, Wp)[:, :, :, :W]
    return y


def inception_block_v1_reference(x_nchw, branch_weights, branch_biases):
    """Pure-JAX reference matching the PyTorch forward semantics."""
    x = jnp.transpose(x_nchw, (0, 2, 3, 1)).astype(jnp.float32)
    outs = []
    for w, b in zip(branch_weights, branch_biases):
        k = int(w.shape[0])
        p = (k - 1) // 2
        y = jax.lax.conv_general_dilated(
            x, w, window_strides=(1, 1), padding=((p, p), (p, p)),
            dimension_numbers=('NHWC', 'HWIO', 'NHWC'))
        outs.append(y + b[None, None, None, :])
    res = jnp.mean(jnp.stack(outs, axis=-1), axis=-1)
    return jnp.transpose(res, (0, 3, 1, 2))


if __name__ == "__main__":
    B, Cin, Cout, H, W = 2, 4, 8, 16, 16
    num_kernels = 6

    key = jax.random.PRNGKey(0)
    key, kx = jax.random.split(key)
    x = jax.random.normal(kx, (B, Cin, H, W), dtype=jnp.float32)

    # Deterministic Kaiming-normal (mode='fan_out', relu) init; biases = 0,
    # matching the module's _initialize_weights (synthetic weights, no checkpoint).
    branch_weights, branch_biases = [], []
    for i in range(num_kernels):
        k = 2 * i + 1
        key, kw = jax.random.split(key)
        fan_out = Cout * k * k
        std = float(np.sqrt(2.0 / fan_out))
        branch_weights.append(
            std * jax.random.normal(kw, (k, k, Cin, Cout), dtype=jnp.float32))
        branch_biases.append(jnp.zeros((Cout,), dtype=jnp.float32))

    out = inception_block_v1(x, branch_weights, branch_biases)
    out = jax.block_until_ready(out)

    ref = inception_block_v1_reference(x, branch_weights, branch_biases)
    np.testing.assert_allclose(np.asarray(out), np.asarray(ref), rtol=2e-2, atol=2e-2)
    assert out.shape == (B, Cout, H, W)
    print("KERNEL_OK")
</pallas_src>

<mosaic_0001>
module attributes {stable_mosaic.version = 11 : i64} {
  func.func @kernel(%arg0: i32, %arg1: i32, %arg2: memref<1x8x896xbf16, #tpu.memory_space<vmem>>, %arg3: memref<121x8x8xbf16, #tpu.memory_space<vmem>>, %arg4: memref<8x1xf32, #tpu.memory_space<vmem>>, %arg5: memref<1x8x512xf32, #tpu.memory_space<vmem>>) attributes {dimension_semantics = [#tpu.dimension_semantics<parallel>, #tpu.dimension_semantics<parallel>], iteration_bounds = array<i64: 2, 1>, scalar_prefetch = 0 : i64, scratch_operands = 0 : i64, tpu.core_type = #tpu.core_type<tc>, window_params = [{transform_indices = @transform_0, window_bounds = array<i64: 1, 8, 896>}, {pipeline_mode = #tpu.pipeline_mode<synchronous>, transform_indices = @transform_1, window_bounds = array<i64: 121, 8, 8>}, {pipeline_mode = #tpu.pipeline_mode<synchronous>, transform_indices = @transform_2, window_bounds = array<i64: 8, 1>}, {transform_indices = @transform_3, window_bounds = array<i64: 1, 8, 512>}]} {
    %cst = arith.constant 0.000000e+00 : f32
    %0 = vector.broadcast %cst : f32 to vector<8x512xf32>
    %c0 = arith.constant 0 : index
    %c0_0 = arith.constant 0 : index
    %c0_1 = arith.constant 0 : index
    %1 = vector.load %arg2[%c0, %c0_0, %c0_1] : memref<1x8x896xbf16, #tpu.memory_space<vmem>>, vector<1x8x512xbf16>
    %2 = vector.shape_cast %1 : vector<1x8x512xbf16> to vector<8x512xbf16>
    %c0_2 = arith.constant 0 : index
    %c0_3 = arith.constant 0 : index
    %c0_4 = arith.constant 0 : index
    %3 = vector.load %arg3[%c0_2, %c0_3, %c0_4] : memref<121x8x8xbf16, #tpu.memory_space<vmem>>, vector<1x8x8xbf16>
    %4 = vector.shape_cast %3 : vector<1x8x8xbf16> to vector<8x8xbf16>
    %cst_5 = arith.constant dense<0.000000e+00> : vector<8x512xf32>
    %5 = tpu.matmul %4, %2, %cst_5 {dimension_numbers = #tpu.dot_dimension_numbers<[1], [0], [0], [1], [0, 0, 1, 1], [], []>} : vector<8x8xbf16>, vector<8x512xbf16>, vector<8x512xf32> -> vector<8x512xf32>
    %6 = arith.addf %0, %5 : vector<8x512xf32>
    %c0_6 = arith.constant 0 : index
    %c0_7 = arith.constant 0 : index
    %c1 = arith.constant 1 : index
    %7 = vector.load %arg2[%c0_6, %c0_7, %c1] : memref<1x8x896xbf16, #tpu.memory_space<vmem>>, vector<1x8x512xbf16>
    %8 = vector.shape_cast %7 : vector<1x8x512xbf16> to vector<8x512xbf16>
    %c1_8 = arith.constant 1 : index
    %c0_9 = arith.constant 0 : index
    %c0_10 = arith.constant 0 : index
    %9 = vector.load %arg3[%c1_8, %c0_9, %c0_10] : memref<121x8x8xbf16, #tpu.memory_space<vmem>>, vector<1x8x8xbf16>
    %10 = vector.shape_cast %9 : vector<1x8x8xbf16> to vector<8x8xbf16>
    %cst_11 = arith.constant dense<0.000000e+00> : vector<8x512xf32>
    %11 = tpu.matmul %10, %8, %cst_11 {dimension_numbers = #tpu.dot_dimension_numbers<[1], [0], [0], [1], [0, 0, 1, 1], [], []>} : vector<8x8xbf16>, vector<8x512xbf16>, vector<8x512xf32> -> vector<8x512xf32>
    %12 = arith.addf %6, %11 : vector<8x512xf32>
    %c0_12 = arith.constant 0 : index
    %c0_13 = arith.constant 0 : index
    %c2 = arith.constant 2 : index
    %13 = vector.load %arg2[%c0_12, %c0_13, %c2] : memref<1x8x896xbf16, #tpu.memory_space<vmem>>, vector<1x8x512xbf16>
    %14 = vector.shape_cast %13 : vector<1x8x512xbf16> to vector<8x512xbf16>
    %c2_14 = arith.constant 2 : index
    %c0_15 = arith.constant 0 : index
    %c0_16 = arith.constant 0 : index
    %15 = vector.load %arg3[%c2_14, %c0_15, %c0_16] : memref<121x8x8xbf16, #tpu.memory_space<vmem>>, vector<1x8x8xbf16>
    %16 = vector.shape_cast %15 : vector<1x8x8xbf16> to vector<8x8xbf16>
    %cst_17 = arith.constant dense<0.000000e+00> : vector<8x512xf32>
    %17 = tpu.matmul %16, %14, %cst_17 {dimension_numbers = #tpu.dot_dimension_numbers<[1], [0], [0], [1], [0, 0, 1, 1], [], []>} : vector<8x8xbf16>, vector<8x512xbf16>, vector<8x512xf32> -> vector<8x512xf32>
    %18 = arith.addf %12, %17 : vector<8x512xf32>
    %c0_18 = arith.constant 0 : index
    %c0_19 = arith.constant 0 : index
    %c3 = arith.constant 3 : index
    %19 = vector.load %arg2[%c0_18, %c0_19, %c3] : memref<1x8x896xbf16, #tpu.memory_space<vmem>>, vector<1x8x512xbf16>
    %20 = vector.shape_cast %19 : vector<1x8x512xbf16> to vector<8x512xbf16>
    %c3_20 = arith.constant 3 : index
    %c0_21 = arith.constant 0 : index
    %c0_22 = arith.constant 0 : index
    %21 = vector.load %arg3[%c3_20, %c0_21, %c0_22] : memref<121x8x8xbf16, #tpu.memory_space<vmem>>, vector<1x8x8xbf16>
    %22 = vector.shape_cast %21 : vector<1x8x8xbf16> to vector<8x8xbf16>
    %cst_23 = arith.constant dense<0.000000e+00> : vector<8x512xf32>
    %23 = tpu.matmul %22, %20, %cst_23 {dimension_numbers = #tpu.dot_dimension_numbers<[1], [0], [0], [1], [0, 0, 1, 1], [], []>} : vector<8x8xbf16>, vector<8x512xbf16>, vector<8x512xf32> -> vector<8x512xf32>
    %24 = arith.addf %18, %23 : vector<8x512xf32>
    %c0_24 = arith.constant 0 : index
    %c0_25 = arith.constant 0 : index
    %c4 = arith.constant 4 : index
    %25 = vector.load %arg2[%c0_24, %c0_25, %c4] : memref<1x8x896xbf16, #tpu.memory_space<vmem>>, vector<1x8x512xbf16>
    %26 = vector.shape_cast %25 : vector<1x8x512xbf16> to vector<8x512xbf16>
    %c4_26 = arith.constant 4 : index
    %c0_27 = arith.constant 0 : index
    %c0_28 = arith.constant 0 : index
    %27 = vector.load %arg3[%c4_26, %c0_27, %c0_28] : memref<121x8x8xbf16, #tpu.memory_space<vmem>>, vector<1x8x8xbf16>
    %28 = vector.shape_cast %27 : vector<1x8x8xbf16> to vector<8x8xbf16>
    %cst_29 = arith.constant dense<0.000000e+00> : vector<8x512xf32>
    %29 = tpu.matmul %28, %26, %cst_29 {dimension_numbers = #tpu.dot_dimension_numbers<[1], [0], [0], [1], [0, 0, 1, 1], [], []>} : vector<8x8xbf16>, vector<8x512xbf16>, vector<8x512xf32> -> vector<8x512xf32>
    %30 = arith.addf %24, %29 : vector<8x512xf32>
    %c0_30 = arith.constant 0 : index
    %c0_31 = arith.constant 0 : index
    %c5 = arith.constant 5 : index
    %31 = vector.load %arg2[%c0_30, %c0_31, %c5] : memref<1x8x896xbf16, #tpu.memory_space<vmem>>, vector<1x8x512xbf16>
    %32 = vector.shape_cast %31 : vector<1x8x512xbf16> to vector<8x512xbf16>
    %c5_32 = arith.constant 5 : index
    %c0_33 = arith.constant 0 : index
    %c0_34 = arith.constant 0 : index
    %33 = vector.load %arg3[%c5_32, %c0_33, %c0_34] : memref<121x8x8xbf16, #tpu.memory_space<vmem>>, vector<1x8x8xbf16>
    %34 = vector.shape_cast %33 : vector<1x8x8xbf16> to vector<8x8xbf16>
    %cst_35 = arith.constant dense<0.000000e+00> : vector<8x512xf32>
    %35 = tpu.matmul %34, %32, %cst_35 {dimension_numbers = #tpu.dot_dimension_numbers<[1], [0], [0], [1], [0, 0, 1, 1], [], []>} : vector<8x8xbf16>, vector<8x512xbf16>, vector<8x512xf32> -> vector<8x512xf32>
    %36 = arith.addf %30, %35 : vector<8x512xf32>
    %c0_36 = arith.constant 0 : index
    %c0_37 = arith.constant 0 : index
    %c6 = arith.constant 6 : index
    %37 = vector.load %arg2[%c0_36, %c0_37, %c6] : memref<1x8x896xbf16, #tpu.memory_space<vmem>>, vector<1x8x512xbf16>
    %38 = vector.shape_cast %37 : vector<1x8x512xbf16> to vector<8x512xbf16>
    %c6_38 = arith.constant 6 : index
    %c0_39 = arith.constant 0 : index
    %c0_40 = arith.constant 0 : index
    %39 = vector.load %arg3[%c6_38, %c0_39, %c0_40] : memref<121x8x8xbf16, #tpu.memory_space<vmem>>, vector<1x8x8xbf16>
    %40 = vector.shape_cast %39 : vector<1x8x8xbf16> to vector<8x8xbf16>
    %cst_41 = arith.constant dense<0.000000e+00> : vector<8x512xf32>
    %41 = tpu.matmul %40, %38, %cst_41 {dimension_numbers = #tpu.dot_dimension_numbers<[1], [0], [0], [1], [0, 0, 1, 1], [], []>} : vector<8x8xbf16>, vector<8x512xbf16>, vector<8x512xf32> -> vector<8x512xf32>
    %42 = arith.addf %36, %41 : vector<8x512xf32>
    %c0_42 = arith.constant 0 : index
    %c0_43 = arith.constant 0 : index
    %c7 = arith.constant 7 : index
    %43 = vector.load %arg2[%c0_42, %c0_43, %c7] : memref<1x8x896xbf16, #tpu.memory_space<vmem>>, vector<1x8x512xbf16>
    %44 = vector.shape_cast %43 : vector<1x8x512xbf16> to vector<8x512xbf16>
    %c7_44 = arith.constant 7 : index
    %c0_45 = arith.constant 0 : index
    %c0_46 = arith.constant 0 : index
    %45 = vector.load %arg3[%c7_44, %c0_45, %c0_46] : memref<121x8x8xbf16, #tpu.memory_space<vmem>>, vector<1x8x8xbf16>
    %46 = vector.shape_cast %45 : vector<1x8x8xbf16> to vector<8x8xbf16>
    %cst_47 = arith.constant dense<0.000000e+00> : vector<8x512xf32>
    %47 = tpu.matmul %46, %44, %cst_47 {dimension_numbers = #tpu.dot_dimension_numbers<[1], [0], [0], [1], [0, 0, 1, 1], [], []>} : vector<8x8xbf16>, vector<8x512xbf16>, vector<8x512xf32> -> vector<8x512xf32>
    %48 = arith.addf %42, %47 : vector<8x512xf32>
    %c0_48 = arith.constant 0 : index
    %c0_49 = arith.constant 0 : index
    %c8 = arith.constant 8 : index
    %49 = vector.load %arg2[%c0_48, %c0_49, %c8] : memref<1x8x896xbf16, #tpu.memory_space<vmem>>, vector<1x8x512xbf16>
    %50 = vector.shape_cast %49 : vector<1x8x512xbf16> to vector<8x512xbf16>
    %c8_50 = arith.constant 8 : index
    %c0_51 = arith.constant 0 : index
    %c0_52 = arith.constant 0 : index
    %51 = vector.load %arg3[%c8_50, %c0_51, %c0_52] : memref<121x8x8xbf16, #tpu.memory_space<vmem>>, vector<1x8x8xbf16>
    %52 = vector.shape_cast %51 : vector<1x8x8xbf16> to vector<8x8xbf16>
    %cst_53 = arith.constant dense<0.000000e+00> : vector<8x512xf32>
    %53 = tpu.matmul %52, %50, %cst_53 {dimension_numbers = #tpu.dot_dimension_numbers<[1], [0], [0], [1], [0, 0, 1, 1], [], []>} : vector<8x8xbf16>, vector<8x512xbf16>, vector<8x512xf32> -> vector<8x512xf32>
    %54 = arith.addf %48, %53 : vector<8x512xf32>
    %c0_54 = arith.constant 0 : index
    %c0_55 = arith.constant 0 : index
    %c9 = arith.constant 9 : index
    %55 = vector.load %arg2[%c0_54, %c0_55, %c9] : memref<1x8x896xbf16, #tpu.memory_space<vmem>>, vector<1x8x512xbf16>
    %56 = vector.shape_cast %55 : vector<1x8x512xbf16> to vector<8x512xbf16>
    %c9_56 = arith.constant 9 : index
    %c0_57 = arith.constant 0 : index
    %c0_58 = arith.constant 0 : index
    %57 = vector.load %arg3[%c9_56, %c0_57, %c0_58] : memref<121x8x8xbf16, #tpu.memory_space<vmem>>, vector<1x8x8xbf16>
    %58 = vector.shape_cast %57 : vector<1x8x8xbf16> to vector<8x8xbf16>
    %cst_59 = arith.constant dense<0.000000e+00> : vector<8x512xf32>
    %59 = tpu.matmul %58, %56, %cst_59 {dimension_numbers = #tpu.dot_dimension_numbers<[1], [0], [0], [1], [0, 0, 1, 1], [], []>} : vector<8x8xbf16>, vector<8x512xbf16>, vector<8x512xf32> -> vector<8x512xf32>
    %60 = arith.addf %54, %59 : vector<8x512xf32>
    %c0_60 = arith.constant 0 : index
    %c0_61 = arith.constant 0 : index
    %c10 = arith.constant 10 : index
    %61 = vector.load %arg2[%c0_60, %c0_61, %c10] : memref<1x8x896xbf16, #tpu.memory_space<vmem>>, vector<1x8x512xbf16>
    %62 = vector.shape_cast %61 : vector<1x8x512xbf16> to vector<8x512xbf16>
    %c10_62 = arith.constant 10 : index
    %c0_63 = arith.constant 0 : index
    %c0_64 = arith.constant 0 : index
    %63 = vector.load %arg3[%c10_62, %c0_63, %c0_64] : memref<121x8x8xbf16, #tpu.memory_space<vmem>>, vector<1x8x8xbf16>
    %64 = vector.shape_cast %63 : vector<1x8x8xbf16> to vector<8x8xbf16>
    %cst_65 = arith.constant dense<0.000000e+00> : vector<8x512xf32>
    %65 = tpu.matmul %64, %62, %cst_65 {dimension_numbers = #tpu.dot_dimension_numbers<[1], [0], [0], [1], [0, 0, 1, 1], [], []>} : vector<8x8xbf16>, vector<8x512xbf16>, vector<8x512xf32> -> vector<8x512xf32>
    %66 = arith.addf %60, %65 : vector<8x512xf32>
    %c0_66 = arith.constant 0 : index
    %c0_67 = arith.constant 0 : index
    %c26 = arith.constant 26 : index
    %67 = vector.load %arg2[%c0_66, %c0_67, %c26] : memref<1x8x896xbf16, #tpu.memory_space<vmem>>, vector<1x8x512xbf16>
    %68 = vector.shape_cast %67 : vector<1x8x512xbf16> to vector<8x512xbf16>
    %c11 = arith.constant 11 : index
    %c0_68 = arith.constant 0 : index
    %c0_69 = arith.constant 0 : index
    %69 = vector.load %arg3[%c11, %c0_68, %c0_69] : memref<121x8x8xbf16, #tpu.memory_space<vmem>>, vector<1x8x8xbf16>
    %70 = vector.shape_cast %69 : vector<1x8x8xbf16> to vector<8x8xbf16>
    %cst_70 = arith.constant dense<0.000000e+00> : vector<8x512xf32>
    %71 = tpu.matmul %70, %68, %cst_70 {dimension_numbers = #tpu.dot_dimension_numbers<[1], [0], [0], [1], [0, 0, 1, 1], [], []>} : vector<8x8xbf16>, vector<8x512xbf16>, vector<8x512xf32> -> vector<8x512xf32>
    %72 = arith.addf %66, %71 : vector<8x512xf32>
    %c0_71 = arith.constant 0 : index
    %c0_72 = arith.constant 0 : index
    %c27 = arith.constant 27 : index
    %73 = vector.load %arg2[%c0_71, %c0_72, %c27] : memref<1x8x896xbf16, #tpu.memory_space<vmem>>, vector<1x8x512xbf16>
    %74 = vector.shape_cast %73 : vector<1x8x512xbf16> to vector<8x512xbf16>
    %c12 = arith.constant 12 : index
    %c0_73 = arith.constant 0 : index
    %c0_74 = arith.constant 0 : index
    %75 = vector.load %arg3[%c12, %c0_73, %c0_74] : memref<121x8x8xbf16, #tpu.memory_space<vmem>>, vector<1x8x8xbf16>
    %76 = vector.shape_cast %75 : vector<1x8x8xbf16> to vector<8x8xbf16>
    %cst_75 = arith.constant dense<0.000000e+00> : vector<8x512xf32>
    %77 = tpu.matmul %76, %74, %cst_75 {dimension_numbers = #tpu.dot_dimension_numbers<[1], [0], [0], [1], [0, 0, 1, 1], [], []>} : vector<8x8xbf16>, vector<8x512xbf16>, vector<8x512xf32> -> vector<8x512xf32>
    %78 = arith.addf %72, %77 : vector<8x512xf32>
    %c0_76 = arith.constant 0 : index
    %c0_77 = arith.constant 0 : index
    %c28 = arith.constant 28 : index
    %79 = vector.load %arg2[%c0_76, %c0_77, %c28] : memref<1x8x896xbf16, #tpu.memory_space<vmem>>, vector<1x8x512xbf16>
    %80 = vector.shape_cast %79 : vector<1x8x512xbf16> to vector<8x512xbf16>
    %c13 = arith.constant 13 : index
    %c0_78 = arith.constant 0 : index
    %c0_79 = arith.constant 0 : index
    %81 = vector.load %arg3[%c13, %c0_78, %c0_79] : memref<121x8x8xbf16, #tpu.memory_space<vmem>>, vector<1x8x8xbf16>
    %82 = vector.shape_cast %81 : vector<1x8x8xbf16> to vector<8x8xbf16>
    %cst_80 = arith.constant dense<0.000000e+00> : vector<8x512xf32>
    %83 = tpu.matmul %82, %80, %cst_80 {dimension_numbers = #tpu.dot_dimension_numbers<[1], [0], [0], [1], [0, 0, 1, 1], [], []>} : vector<8x8xbf16>, vector<8x512xbf16>, vector<8x512xf32> -> vector<8x512xf32>
    %84 = arith.addf %78, %83 : vector<8x512xf32>
    %c0_81 = arith.constant 0 : index
    %c0_82 = arith.constant 0 : index
    %c29 = arith.constant 29 : index
    %85 = vector.load %arg2[%c0_81, %c0_82, %c29] : memref<1x8x896xbf16, #tpu.memory_space<vmem>>, vector<1x8x512xbf16>
    %86 = vector.shape_cast %85 : vector<1x8x512xbf16> to vector<8x512xbf16>
    %c14 = arith.constant 14 : index
    %c0_83 = arith.constant 0 : index
    %c0_84 = arith.constant 0 : index
    %87 = vector.load %arg3[%c14, %c0_83, %c0_84] : memref<121x8x8xbf16, #tpu.memory_space<vmem>>, vector<1x8x8xbf16>
    %88 = vector.shape_cast %87 : vector<1x8x8xbf16> to vector<8x8xbf16>
    %cst_85 = arith.constant dense<0.000000e+00> : vector<8x512xf32>
    %89 = tpu.matmul %88, %86, %cst_85 {dimension_numbers = #tpu.dot_dimension_numbers<[1], [0], [0], [1], [0, 0, 1, 1], [], []>} : vector<8x8xbf16>, vector<8x512xbf16>, vector<8x512xf32> -> vector<8x512xf32>
    %90 = arith.addf %84, %89 : vector<8x512xf32>
    %c0_86 = arith.constant 0 : index
    %c0_87 = arith.constant 0 : index
    %c30 = arith.constant 30 : index
    %91 = vector.load %arg2[%c0_86, %c0_87, %c30] : memref<1x8x896xbf16, #tpu.memory_space<vmem>>, vector<1x8x512xbf16>
    %92 = vector.shape_cast %91 : vector<1x8x512xbf16> to vector<8x512xbf16>
    %c15 = arith.constant 15 : index
    %c0_88 = arith.constant 0 : index
    %c0_89 = arith.constant 0 : index
    %93 = vector.load %arg3[%c15, %c0_88, %c0_89] : memref<121x8x8xbf16, #tpu.memory_space<vmem>>, vector<1x8x8xbf16>
    %94 = vector.shape_cast %93 : vector<1x8x8xbf16> to vector<8x8xbf16>
    %cst_90 = arith.constant dense<0.000000e+00> : vector<8x512xf32>
    %95 = tpu.matmul %94, %92, %cst_90 {dimension_numbers = #tpu.dot_dimension_numbers<[1], [0], [0], [1], [0, 0, 1, 1], [], []>} : vector<8x8xbf16>, vector<8x512xbf16>, vector<8x512xf32> -> vector<8x512xf32>
    %96 = arith.addf %90, %95 : vector<8x512xf32>
    %c0_91 = arith.constant 0 : index
    %c0_92 = arith.constant 0 : index
    %c31 = arith.constant 31 : index
    %97 = vector.load %arg2[%c0_91, %c0_92, %c31] : memref<1x8x896xbf16, #tpu.memory_space<vmem>>, vector<1x8x512xbf16>
    %98 = vector.shape_cast %97 : vector<1x8x512xbf16> to vector<8x512xbf16>
    %c16 = arith.constant 16 : index
    %c0_93 = arith.constant 0 : index
    %c0_94 = arith.constant 0 : index
    %99 = vector.load %arg3[%c16, %c0_93, %c0_94] : memref<121x8x8xbf16, #tpu.memory_space<vmem>>, vector<1x8x8xbf16>
    %100 = vector.shape_cast %99 : vector<1x8x8xbf16> to vector<8x8xbf16>
    %cst_95 = arith.constant dense<0.000000e+00> : vector<8x512xf32>
    %101 = tpu.matmul %100, %98, %cst_95 {dimension_numbers = #tpu.dot_dimension_numbers<[1], [0], [0], [1], [0, 0, 1, 1], [], []>} : vector<8x8xbf16>, vector<8x512xbf16>, vector<8x512xf32> -> vector<8x512xf32>
    %102 = arith.addf %96, %101 : vector<8x512xf32>
    %c0_96 = arith.constant 0 : index
    %c0_97 = arith.constant 0 : index
    %c32 = arith.constant 32 : index
    %103 = vector.load %arg2[%c0_96, %c0_97, %c32] : memref<1x8x896xbf16, #tpu.memory_space<vmem>>, vector<1x8x512xbf16>
    %104 = vector.shape_cast %103 : vector<1x8x512xbf16> to vector<8x512xbf16>
    %c17 = arith.constant 17 : index
    %c0_98 = arith.constant 0 : index
    %c0_99 = arith.constant 0 : index
    %105 = vector.load %arg3[%c17, %c0_98, %c0_99] : memref<121x8x8xbf16, #tpu.memory_space<vmem>>, vector<1x8x8xbf16>
    %106 = vector.shape_cast %105 : vector<1x8x8xbf16> to vector<8x8xbf16>
    %cst_100 = arith.constant dense<0.000000e+00> : vector<8x512xf32>
    %107 = tpu.matmul %106, %104, %cst_100 {dimension_numbers = #tpu.dot_dimension_numbers<[1], [0], [0], [1], [0, 0, 1, 1], [], []>} : vector<8x8xbf16>, vector<8x512xbf16>, vector<8x512xf32> -> vector<8x512xf32>
    %108 = arith.addf %102, %107 : vector<8x512xf32>
    %c0_101 = arith.constant 0 : index
    %c0_102 = arith.constant 0 : index
    %c33 = arith.constant 33 : index
    %109 = vector.load %arg2[%c0_101, %c0_102, %c33] : memref<1x8x896xbf16, #tpu.memory_space<vmem>>, vector<1x8x512xbf16>
    %110 = vector.shape_cast %109 : vector<1x8x512xbf16> to vector<8x512xbf16>
    %c18 = arith.constant 18 : index
    %c0_103 = arith.constant 0 : index
    %c0_104 = arith.constant 0 : index
    %111 = vector.load %arg3[%c18, %c0_103, %c0_104] : memref<121x8x8xbf16, #tpu.memory_space<vmem>>, vector<1x8x8xbf16>
    %112 = vector.shape_cast %111 : vector<1x8x8xbf16> to vector<8x8xbf16>
    %cst_105 = arith.constant dense<0.000000e+00> : vector<8x512xf32>
    %113 = tpu.matmul %112, %110, %cst_105 {dimension_numbers = #tpu.dot_dimension_numbers<[1], [0], [0], [1], [0, 0, 1, 1], [], []>} : vector<8x8xbf16>, vector<8x512xbf16>, vector<8x512xf32> -> vector<8x512xf32>
    %114 = arith.addf %108, %113 : vector<8x512xf32>
    %c0_106 = arith.constant 0 : index
    %c0_107 = arith.constant 0 : index
    %c34 = arith.constant 34 : index
    %115 = vector.load %arg2[%c0_106, %c0_107, %c34] : memref<1x8x896xbf16, #tpu.memory_space<vmem>>, vector<1x8x512xbf16>
    %116 = vector.shape_cast %115 : vector<1x8x512xbf16> to vector<8x512xbf16>
    %c19 = arith.constant 19 : index
    %c0_108 = arith.constant 0 : index
    %c0_109 = arith.constant 0 : index
    %117 = vector.load %arg3[%c19, %c0_108, %c0_109] : memref<121x8x8xbf16, #tpu.memory_space<vmem>>, vector<1x8x8xbf16>
    %118 = vector.shape_cast %117 : vector<1x8x8xbf16> to vector<8x8xbf16>
    %cst_110 = arith.constant dense<0.000000e+00> : vector<8x512xf32>
    %119 = tpu.matmul %118, %116, %cst_110 {dimension_numbers = #tpu.dot_dimension_numbers<[1], [0], [0], [1], [0, 0, 1, 1], [], []>} : vector<8x8xbf16>, vector<8x512xbf16>, vector<8x512xf32> -> vector<8x512xf32>
    %120 = arith.addf %114, %119 : vector<8x512xf32>
    %c0_111 = arith.constant 0 : index
    %c0_112 = arith.constant 0 : index
    %c35 = arith.constant 35 : index
    %121 = vector.load %arg2[%c0_111, %c0_112, %c35] : memref<1x8x896xbf16, #tpu.memory_space<vmem>>, vector<1x8x512xbf16>
    %122 = vector.shape_cast %121 : vector<1x8x512xbf16> to vector<8x512xbf16>
    %c20 = arith.constant 20 : index
    %c0_113 = arith.constant 0 : index
    %c0_114 = arith.constant 0 : index
    %123 = vector.load %arg3[%c20, %c0_113, %c0_114] : memref<121x8x8xbf16, #tpu.memory_space<vmem>>, vector<1x8x8xbf16>
    %124 = vector.shape_cast %123 : vector<1x8x8xbf16> to vector<8x8xbf16>
    %cst_115 = arith.constant dense<0.000000e+00> : vector<8x512xf32>
    %125 = tpu.matmul %124, %122, %cst_115 {dimension_numbers = #tpu.dot_dimension_numbers<[1], [0], [0], [1], [0, 0, 1, 1], [], []>} : vector<8x8xbf16>, vector<8x512xbf16>, vector<8x512xf32> -> vector<8x512xf32>
    %126 = arith.addf %120, %125 : vector<8x512xf32>
    %c0_116 = arith.constant 0 : index
    %c0_117 = arith.constant 0 : index
    %c36 = arith.constant 36 : index
    %127 = vector.load %arg2[%c0_116, %c0_117, %c36] : memref<1x8x896xbf16, #tpu.memory_space<vmem>>, vector<1x8x512xbf16>
    %128 = vector.shape_cast %127 : vector<1x8x512xbf16> to vector<8x512xbf16>
    %c21 = arith.constant 21 : index
    %c0_118 = arith.constant 0 : index
    %c0_119 = arith.constant 0 : index
    %129 = vector.load %arg3[%c21, %c0_118, %c0_119] : memref<121x8x8xbf16, #tpu.memory_space<vmem>>, vector<1x8x8xbf16>
    %130 = vector.shape_cast %129 : vector<1x8x8xbf16> to vector<8x8xbf16>
    %cst_120 = arith.constant dense<0.000000e+00> : vector<8x512xf32>
    %131 = tpu.matmul %130, %128, %cst_120 {dimension_numbers = #tpu.dot_dimension_numbers<[1], [0], [0], [1], [0, 0, 1, 1], [], []>} : vector<8x8xbf16>, vector<8x512xbf16>, vector<8x512xf32> -> vector<8x512xf32>
    %132 = arith.addf %126, %131 : vector<8x512xf32>
    %c0_121 = arith.constant 0 : index
    %c0_122 = arith.constant 0 : index
    %c52 = arith.constant 52 : index
    %133 = vector.load %arg2[%c0_121, %c0_122, %c52] : memref<1x8x896xbf16, #tpu.memory_space<vmem>>, vector<1x8x512xbf16>
    %134 = vector.shape_cast %133 : vector<1x8x512xbf16> to vector<8x512xbf16>
    %c22 = arith.constant 22 : index
    %c0_123 = arith.constant 0 : index
    %c0_124 = arith.constant 0 : index
    %135 = vector.load %arg3[%c22, %c0_123, %c0_124] : memref<121x8x8xbf16, #tpu.memory_space<vmem>>, vector<1x8x8xbf16>
    %136 = vector.shape_cast %135 : vector<1x8x8xbf16> to vector<8x8xbf16>
    %cst_125 = arith.constant dense<0.000000e+00> : vector<8x512xf32>
    %137 = tpu.matmul %136, %134, %cst_125 {dimension_numbers = #tpu.dot_dimension_numbers<[1], [0], [0], [1], [0, 0, 1, 1], [], []>} : vector<8x8xbf16>, vector<8x512xbf16>, vector<8x512xf32> -> vector<8x512xf32>
    %138 = arith.addf %132, %137 : vector<8x512xf32>
    %c0_126 = arith.constant 0 : index
    %c0_127 = arith.constant 0 : index
    %c53 = arith.constant 53 : index
    %139 = vector.load %arg2[%c0_126, %c0_127, %c53] : memref<1x8x896xbf16, #tpu.memory_space<vmem>>, vector<1x8x512xbf16>
    %140 = vector.shape_cast %139 : vector<1x8x512xbf16> to vector<8x512xbf16>
    %c23 = arith.constant 23 : index
    %c0_128 = arith.constant 0 : index
    %c0_129 = arith.constant 0 : index
    %141 = vector.load %arg3[%c23, %c0_128, %c0_129] : memref<121x8x8xbf16, #tpu.memory_space<vmem>>, vector<1x8x8xbf16>
    %142 = vector.shape_cast %141 : vector<1x8x8xbf16> to vector<8x8xbf16>
    %cst_130 = arith.constant dense<0.000000e+00> : vector<8x512xf32>
    %143 = tpu.matmul %142, %140, %cst_130 {dimension_numbers = #tpu.dot_dimension_numbers<[1], [0], [0], [1], [0, 0, 1, 1], [], []>} : vector<8x8xbf16>, vector<8x512xbf16>, vector<8x512xf32> -> vector<8x512xf32>
    %144 = arith.addf %138, %143 : vector<8x512xf32>
    %c0_131 = arith.constant 0 : index
    %c0_132 = arith.constant 0 : index
    %c54 = arith.constant 54 : index
    %145 = vector.load %arg2[%c0_131, %c0_132, %c54] : memref<1x8x896xbf16, #tpu.memory_space<vmem>>, vector<1x8x512xbf16>
    %146 = vector.shape_cast %145 : vector<1x8x512xbf16> to vector<8x512xbf16>
    %c24 = arith.constant 24 : index
    %c0_133 = arith.constant 0 : index
    %c0_134 = arith.constant 0 : index
    %147 = vector.load %arg3[%c24, %c0_133, %c0_134] : memref<121x8x8xbf16, #tpu.memory_space<vmem>>, vector<1x8x8xbf16>
    %148 = vector.shape_cast %147 : vector<1x8x8xbf16> to vector<8x8xbf16>
    %cst_135 = arith.constant dense<0.000000e+00> : vector<8x512xf32>
    %149 = tpu.matmul %148, %146, %cst_135 {dimension_numbers = #tpu.dot_dimension_numbers<[1], [0], [0], [1], [0, 0, 1, 1], [], []>} : vector<8x8xbf16>, vector<8x512xbf16>, vector<8x512xf32> -> vector<8x512xf32>
    %150 = arith.addf %144, %149 : vector<8x512xf32>
    %c0_136 = arith.constant 0 : index
    %c0_137 = arith.constant 0 : index
    %c55 = arith.constant 55 : index
    %151 = vector.load %arg2[%c0_136, %c0_137, %c55] : memref<1x8x896xbf16, #tpu.memory_space<vmem>>, vector<1x8x512xbf16>
    %152 = vector.shape_cast %151 : vector<1x8x512xbf16> to vector<8x512xbf16>
    %c25 = arith.constant 25 : index
    %c0_138 = arith.constant 0 : index
    %c0_139 = arith.constant 0 : index
    %153 = vector.load %arg3[%c25, %c0_138, %c0_139] : memref<121x8x8xbf16, #tpu.memory_space<vmem>>, vector<1x8x8xbf16>
    %154 = vector.shape_cast %153 : vector<1x8x8xbf16> to vector<8x8xbf16>
    %cst_140 = arith.constant dense<0.000000e+00> : vector<8x512xf32>
    %155 = tpu.matmul %154, %152, %cst_140 {dimension_numbers = #tpu.dot_dimension_numbers<[1], [0], [0], [1], [0, 0, 1, 1], [], []>} : vector<8x8xbf16>, vector<8x512xbf16>, vector<8x512xf32> -> vector<8x512xf32>
    %156 = arith.addf %150, %155 : vector<8x512xf32>
    %c0_141 = arith.constant 0 : index
    %c0_142 = arith.constant 0 : index
    %c56 = arith.constant 56 : index
    %157 = vector.load %arg2[%c0_141, %c0_142, %c56] : memref<1x8x896xbf16, #tpu.memory_space<vmem>>, vector<1x8x512xbf16>
    %158 = vector.shape_cast %157 : vector<1x8x512xbf16> to vector<8x512xbf16>
    %c26_143 = arith.constant 26 : index
    %c0_144 = arith.constant 0 : index
    %c0_145 = arith.constant 0 : index
    %159 = vector.load %arg3[%c26_143, %c0_144, %c0_145] : memref<121x8x8xbf16, #tpu.memory_space<vmem>>, vector<1x8x8xbf16>
    %160 = vector.shape_cast %159 : vector<1x8x8xbf16> to vector<8x8xbf16>
    %cst_146 = arith.constant dense<0.000000e+00> : vector<8x512xf32>
    %161 = tpu.matmul %160, %158, %cst_146 {dimension_numbers = #tpu.dot_dimension_numbers<[1], [0], [0], [1], [0, 0, 1, 1], [], []>} : vector<8x8xbf16>, vector<8x512xbf16>, vector<8x512xf32> -> vector<8x512xf32>
    %162 = arith.addf %156, %161 : vector<8x512xf32>
    %c0_147 = arith.constant 0 : index
    %c0_148 = arith.constant 0 : index
    %c57 = arith.constant 57 : index
    %163 = vector.load %arg2[%c0_147, %c0_148, %c57] : memref<1x8x896xbf16, #tpu.memory_space<vmem>>, vector<1x8x512xbf16>
    %164 = vector.shape_cast %163 : vector<1x8x512xbf16> to vector<8x512xbf16>
    %c27_149 = arith.constant 27 : index
    %c0_150 = arith.constant 0 : index
    %c0_151 = arith.constant 0 : index
    %165 = vector.load %arg3[%c27_149, %c0_150, %c0_151] : memref<121x8x8xbf16, #tpu.memory_space<vmem>>, vector<1x8x8xbf16>
    %166 = vector.shape_cast %165 : vector<1x8x8xbf16> to vector<8x8xbf16>
    %cst_152 = arith.constant dense<0.000000e+00> : vector<8x512xf32>
    %167 = tpu.matmul %166, %164, %cst_152 {dimension_numbers = #tpu.dot_dimension_numbers<[1], [0], [0], [1], [0, 0, 1, 1], [], []>} : vector<8x8xbf16>, vector<8x512xbf16>, vector<8x512xf32> -> vector<8x512xf32>
    %168 = arith.addf %162, %167 : vector<8x512xf32>
    %c0_153 = arith.constant 0 : index
    %c0_154 = arith.constant 0 : index
    %c58 = arith.constant 58 : index
    %169 = vector.load %arg2[%c0_153, %c0_154, %c58] : memref<1x8x896xbf16, #tpu.memory_space<vmem>>, vector<1x8x512xbf16>
    %170 = vector.shape_cast %169 : vector<1x8x512xbf16> to vector<8x512xbf16>
    %c28_155 = arith.constant 28 : index
    %c0_156 = arith.constant 0 : index
    %c0_157 = arith.constant 0 : index
    %171 = vector.load %arg3[%c28_155, %c0_156, %c0_157] : memref<121x8x8xbf16, #tpu.memory_space<vmem>>, vector<1x8x8xbf16>
    %172 = vector.shape_cast %171 : vector<1x8x8xbf16> to vector<8x8xbf16>
    %cst_158 = arith.constant dense<0.000000e+00> : vector<8x512xf32>
    %173 = tpu.matmul %172, %170, %cst_158 {dimension_numbers = #tpu.dot_dimension_numbers<[1], [0], [0], [1], [0, 0, 1, 1], [], []>} : vector<8x8xbf16>, vector<8x512xbf16>, vector<8x512xf32> -> vector<8x512xf32>
    %174 = arith.addf %168, %173 : vector<8x512xf32>
    %c0_159 = arith.constant 0 : index
    %c0_160 = arith.constant 0 : index
    %c59 = arith.constant 59 : index
    %175 = vector.load %arg2[%c0_159, %c0_160, %c59] : memref<1x8x896xbf16, #tpu.memory_space<vmem>>, vector<1x8x512xbf16>
    %176 = vector.shape_cast %175 : vector<1x8x512xbf16> to vector<8x512xbf16>
    %c29_161 = arith.constant 29 : index
    %c0_162 = arith.constant 0 : index
    %c0_163 = arith.constant 0 : index
    %177 = vector.load %arg3[%c29_161, %c0_162, %c0_163] : memref<121x8x8xbf16, #tpu.memory_space<vmem>>, vector<1x8x8xbf16>
    %178 = vector.shape_cast %177 : vector<1x8x8xbf16> to vector<8x8xbf16>
    %cst_164 = arith.constant dense<0.000000e+00> : vector<8x512xf32>
    %179 = tpu.matmul %178, %176, %cst_164 {dimension_numbers = #tpu.dot_dimension_numbers<[1], [0], [0], [1], [0, 0, 1, 1], [], []>} : vector<8x8xbf16>, vector<8x512xbf16>, vector<8x512xf32> -> vector<8x512xf32>
    %180 = arith.addf %174, %179 : vector<8x512xf32>
    %c0_165 = arith.constant 0 : index
    %c0_166 = arith.constant 0 : index
    %c60 = arith.constant 60 : index
    %181 = vector.load %arg2[%c0_165, %c0_166, %c60] : memref<1x8x896xbf16, #tpu.memory_space<vmem>>, vector<1x8x512xbf16>
    %182 = vector.shape_cast %181 : vector<1x8x512xbf16> to vector<8x512xbf16>
    %c30_167 = arith.constant 30 : index
    %c0_168 = arith.constant 0 : index
    %c0_169 = arith.constant 0 : index
    %183 = vector.load %arg3[%c30_167, %c0_168, %c0_169] : memref<121x8x8xbf16, #tpu.memory_space<vmem>>, vector<1x8x8xbf16>
    %184 = vector.shape_cast %183 : vector<1x8x8xbf16> to vector<8x8xbf16>
    %cst_170 = arith.constant dense<0.000000e+00> : vector<8x512xf32>
    %185 = tpu.matmul %184, %182, %cst_170 {dimension_numbers = #tpu.dot_dimension_numbers<[1], [0], [0], [1], [0, 0, 1, 1], [], []>} : vector<8x8xbf16>, vector<8x512xbf16>, vector<8x512xf32> -> vector<8x512xf32>
    %186 = arith.addf %180, %185 : vector<8x512xf32>
    %c0_171 = arith.constant 0 : index
    %c0_172 = arith.constant 0 : index
    %c61 = arith.constant 61 : index
    %187 = vector.load %arg2[%c0_171, %c0_172, %c61] : memref<1x8x896xbf16, #tpu.memory_space<vmem>>, vector<1x8x512xbf16>
    %188 = vector.shape_cast %187 : vector<1x8x512xbf16> to vector<8x512xbf16>
    %c31_173 = arith.constant 31 : index
    %c0_174 = arith.constant 0 : index
    %c0_175 = arith.constant 0 : index
    %189 = vector.load %arg3[%c31_173, %c0_174, %c0_175] : memref<121x8x8xbf16, #tpu.memory_space<vmem>>, vector<1x8x8xbf16>
    %190 = vector.shape_cast %189 : vector<1x8x8xbf16> to vector<8x8xbf16>
    %cst_176 = arith.constant dense<0.000000e+00> : vector<8x512xf32>
    %191 = tpu.matmul %190, %188, %cst_176 {dimension_numbers = #tpu.dot_dimension_numbers<[1], [0], [0], [1], [0, 0, 1, 1], [], []>} : vector<8x8xbf16>, vector<8x512xbf16>, vector<8x512xf32> -> vector<8x512xf32>
    %192 = arith.addf %186, %191 : vector<8x512xf32>
    %c0_177 = arith.constant 0 : index
    %c0_178 = arith.constant 0 : index
    %c62 = arith.constant 62 : index
    %193 = vector.load %arg2[%c0_177, %c0_178, %c62] : memref<1x8x896xbf16, #tpu.memory_space<vmem>>, vector<1x8x512xbf16>
    %194 = vector.shape_cast %193 : vector<1x8x512xbf16> to vector<8x512xbf16>
    %c32_179 = arith.constant 32 : index
    %c0_180 = arith.constant 0 : index
    %c0_181 = arith.constant 0 : index
    %195 = vector.load %arg3[%c32_179, %c0_180, %c0_181] : memref<121x8x8xbf16, #tpu.memory_space<vmem>>, vector<1x8x8xbf16>
    %196 = vector.shape_cast %195 : vector<1x8x8xbf16> to vector<8x8xbf16>
    %cst_182 = arith.constant dense<0.000000e+00> : vector<8x512xf32>
    %197 = tpu.matmul %196, %194, %cst_182 {dimension_numbers = #tpu.dot_dimension_numbers<[1], [0], [0], [1], [0, 0, 1, 1], [], []>} : vector<8x8xbf16>, vector<8x512xbf16>, vector<8x512xf32> -> vector<8x512xf32>
    %198 = arith.addf %192, %197 : vector<8x512xf32>
    %c0_183 = arith.constant 0 : index
    %c0_184 = arith.constant 0 : index
    %c78 = arith.constant 78 : index
    %199 = vector.load %arg2[%c0_183, %c0_184, %c78] : memref<1x8x896xbf16, #tpu.memory_space<vmem>>, vector<1x8x512xbf16>
    %200 = vector.shape_cast %199 : vector<1x8x512xbf16> to vector<8x512xbf16>
    %c33_185 = arith.constant 33 : index
    %c0_186 = arith.constant 0 : index
    %c0_187 = arith.constant 0 : index
    %201 = vector.load %arg3[%c33_185, %c0_186, %c0_187] : memref<121x8x8xbf16, #tpu.memory_space<vmem>>, vector<1x8x8xbf16>
    %202 = vector.shape_cast %201 : vector<1x8x8xbf16> to vector<8x8xbf16>
    %cst_188 = arith.constant dense<0.000000e+00> : vector<8x512xf32>
    %203 = tpu.matmul %202, %200, %cst_188 {dimension_numbers = #tpu.dot_dimension_numbers<[1], [0], [0], [1], [0, 0, 1, 1], [], []>} : vector<8x8xbf16>, vector<8x512xbf16>, vector<8x512xf32> -> vector<8x512xf32>
    %204 = arith.addf %198, %203 : vector<8x512xf32>
    %c0_189 = arith.constant 0 : index
    %c0_190 = arith.constant 0 : index
    %c79 = arith.constant 79 : index
    %205 = vector.load %arg2[%c0_189, %c0_190, %c79] : memref<1x8x896xbf16, #tpu.memory_space<vmem>>, vector<1x8x512xbf16>
    %206 = vector.shape_cast %205 : vector<1x8x512xbf16> to vector<8x512xbf16>
    %c34_191 = arith.constant 34 : index
    %c0_192 = arith.constant 0 : index
    %c0_193 = arith.constant 0 : index
    %207 = vector.load %arg3[%c34_191, %c0_192, %c0_193] : memref<121x8x8xbf16, #tpu.memory_space<vmem>>, vector<1x8x8xbf16>
    %208 = vector.shape_cast %207 : vector<1x8x8xbf16> to vector<8x8xbf16>
    %cst_194 = arith.constant dense<0.000000e+00> : vector<8x512xf32>
    %209 = tpu.matmul %208, %206, %cst_194 {dimension_numbers = #tpu.dot_dimension_numbers<[1], [0], [0], [1], [0, 0, 1, 1], [], []>} : vector<8x8xbf16>, vector<8x512xbf16>, vector<8x512xf32> -> vector<8x512xf32>
    %210 = arith.addf %204, %209 : vector<8x512xf32>
    %c0_195 = arith.constant 0 : index
    %c0_196 = arith.constant 0 : index
    %c80 = arith.constant 80 : index
    %211 = vector.load %arg2[%c0_195, %c0_196, %c80] : memref<1x8x896xbf16, #tpu.memory_space<vmem>>, vector<1x8x512xbf16>
    %212 = vector.shape_cast %211 : vector<1x8x512xbf16> to vector<8x512xbf16>
    %c35_197 = arith.constant 35 : index
    %c0_198 = arith.constant 0 : index
    %c0_199 = arith.constant 0 : index
    %213 = vector.load %arg3[%c35_197, %c0_198, %c0_199] : memref<121x8x8xbf16, #tpu.memory_space<vmem>>, vector<1x8x8xbf16>
    %214 = vector.shape_cast %213 : vector<1x8x8xbf16> to vector<8x8xbf16>
    %cst_200 = arith.constant dense<0.000000e+00> : vector<8x512xf32>
    %215 = tpu.matmul %214, %212, %cst_200 {dimension_numbers = #tpu.dot_dimension_numbers<[1], [0], [0], [1], [0, 0, 1, 1], [], []>} : vector<8x8xbf16>, vector<8x512xbf16>, vector<8x512xf32> -> vector<8x512xf32>
    %216 = arith.addf %210, %215 : vector<8x512xf32>
    %c0_201 = arith.constant 0 : index
    %c0_202 = arith.constant 0 : index
    %c81 = arith.constant 81 : index
    %217 = vector.load %arg2[%c0_201, %c0_202, %c81] : memref<1x8x896xbf16, #tpu.memory_space<vmem>>, vector<1x8x512xbf16>
    %218 = vector.shape_cast %217 : vector<1x8x512xbf16> to vector<8x512xbf16>
    %c36_203 = arith.constant 36 : index
    %c0_204 = arith.constant 0 : index
    %c0_205 = arith.constant 0 : index
    %219 = vector.load %arg3[%c36_203, %c0_204, %c0_205] : memref<121x8x8xbf16, #tpu.memory_space<vmem>>, vector<1x8x8xbf16>
    %220 = vector.shape_cast %219 : vector<1x8x8xbf16> to vector<8x8xbf16>
    %cst_206 = arith.constant dense<0.000000e+00> : vector<8x512xf32>
    %221 = tpu.matmul %220, %218, %cst_206 {dimension_numbers = #tpu.dot_dimension_numbers<[1], [0], [0], [1], [0, 0, 1, 1], [], []>} : vector<8x8xbf16>, vector<8x512xbf16>, vector<8x512xf32> -> vector<8x512xf32>
    %222 = arith.addf %216, %221 : vector<8x512xf32>
    %c0_207 = arith.constant 0 : index
    %c0_208 = arith.constant 0 : index
    %c82 = arith.constant 82 : index
    %223 = vector.load %arg2[%c0_207, %c0_208, %c82] : memref<1x8x896xbf16, #tpu.memory_space<vmem>>, vector<1x8x512xbf16>
    %224 = vector.shape_cast %223 : vector<1x8x512xbf16> to vector<8x512xbf16>
    %c37 = arith.constant 37 : index
    %c0_209 = arith.constant 0 : index
    %c0_210 = arith.constant 0 : index
    %225 = vector.load %arg3[%c37, %c0_209, %c0_210] : memref<121x8x8xbf16, #tpu.memory_space<vmem>>, vector<1x8x8xbf16>
    %226 = vector.shape_cast %225 : vector<1x8x8xbf16> to vector<8x8xbf16>
    %cst_211 = arith.constant dense<0.000000e+00> : vector<8x512xf32>
    %227 = tpu.matmul %226, %224, %cst_211 {dimension_numbers = #tpu.dot_dimension_numbers<[1], [0], [0], [1], [0, 0, 1, 1], [], []>} : vector<8x8xbf16>, vector<8x512xbf16>, vector<8x512xf32> -> vector<8x512xf32>
    %228 = arith.addf %222, %227 : vector<8x512xf32>
    %c0_212 = arith.constant 0 : index
    %c0_213 = arith.constant 0 : index
    %c83 = arith.constant 83 : index
    %229 = vector.load %arg2[%c0_212, %c0_213, %c83] : memref<1x8x896xbf16, #tpu.memory_space<vmem>>, vector<1x8x512xbf16>
    %230 = vector.shape_cast %229 : vector<1x8x512xbf16> to vector<8x512xbf16>
    %c38 = arith.constant 38 : index
    %c0_214 = arith.constant 0 : index
    %c0_215 = arith.constant 0 : index
    %231 = vector.load %arg3[%c38, %c0_214, %c0_215] : memref<121x8x8xbf16, #tpu.memory_space<vmem>>, vector<1x8x8xbf16>
    %232 = vector.shape_cast %231 : vector<1x8x8xbf16> to vector<8x8xbf16>
    %cst_216 = arith.constant dense<0.000000e+00> : vector<8x512xf32>
    %233 = tpu.matmul %232, %230, %cst_216 {dimension_numbers = #tpu.dot_dimension_numbers<[1], [0], [0], [1], [0, 0, 1, 1], [], []>} : vector<8x8xbf16>, vector<8x512xbf16>, vector<8x512xf32> -> vector<8x512xf32>
    %234 = arith.addf %228, %233 : vector<8x512xf32>
    %c0_217 = arith.constant 0 : index
    %c0_218 = arith.constant 0 : index
    %c84 = arith.constant 84 : index
    %235 = vector.load %arg2[%c0_217, %c0_218, %c84] : memref<1x8x896xbf16, #tpu.memory_space<vmem>>, vector<1x8x512xbf16>
    %236 = vector.shape_cast %235 : vector<1x8x512xbf16> to vector<8x512xbf16>
    %c39 = arith.constant 39 : index
    %c0_219 = arith.constant 0 : index
    %c0_220 = arith.constant 0 : index
    %237 = vector.load %arg3[%c39, %c0_219, %c0_220] : memref<121x8x8xbf16, #tpu.memory_space<vmem>>, vector<1x8x8xbf16>
    %238 = vector.shape_cast %237 : vector<1x8x8xbf16> to vector<8x8xbf16>
    %cst_221 = arith.constant dense<0.000000e+00> : vector<8x512xf32>
    %239 = tpu.matmul %238, %236, %cst_221 {dimension_numbers = #tpu.dot_dimension_numbers<[1], [0], [0], [1], [0, 0, 1, 1], [], []>} : vector<8x8xbf16>, vector<8x512xbf16>, vector<8x512xf32> -> vector<8x512xf32>
    %240 = arith.addf %234, %239 : vector<8x512xf32>
    %c0_222 = arith.constant 0 : index
    %c0_223 = arith.constant 0 : index
    %c85 = arith.constant 85 : index
    %241 = vector.load %arg2[%c0_222, %c0_223, %c85] : memref<1x8x896xbf16, #tpu.memory_space<vmem>>, vector<1x8x512xbf16>
    %242 = vector.shape_cast %241 : vector<1x8x512xbf16> to vector<8x512xbf16>
    %c40 = arith.constant 40 : index
    %c0_224 = arith.constant 0 : index
    %c0_225 = arith.constant 0 : index
    %243 = vector.load %arg3[%c40, %c0_224, %c0_225] : memref<121x8x8xbf16, #tpu.memory_space<vmem>>, vector<1x8x8xbf16>
    %244 = vector.shape_cast %243 : vector<1x8x8xbf16> to vector<8x8xbf16>
    %cst_226 = arith.constant dense<0.000000e+00> : vector<8x512xf32>
    %245 = tpu.matmul %244, %242, %cst_226 {dimension_numbers = #tpu.dot_dimension_numbers<[1], [0], [0], [1], [0, 0, 1, 1], [], []>} : vector<8x8xbf16>, vector<8x512xbf16>, vector<8x512xf32> -> vector<8x512xf32>
    %246 = arith.addf %240, %245 : vector<8x512xf32>
    %c0_227 = arith.constant 0 : index
    %c0_228 = arith.constant 0 : index
    %c86 = arith.constant 86 : index
    %247 = vector.load %arg2[%c0_227, %c0_228, %c86] : memref<1x8x896xbf16, #tpu.memory_space<vmem>>, vector<1x8x512xbf16>
    %248 = vector.shape_cast %247 : vector<1x8x512xbf16> to vector<8x512xbf16>
    %c41 = arith.constant 41 : index
    %c0_229 = arith.constant 0 : index
    %c0_230 = arith.constant 0 : index
    %249 = vector.load %arg3[%c41, %c0_229, %c0_230] : memref<121x8x8xbf16, #tpu.memory_space<vmem>>, vector<1x8x8xbf16>
    %250 = vector.shape_cast %249 : vector<1x8x8xbf16> to vector<8x8xbf16>
    %cst_231 = arith.constant dense<0.000000e+00> : vector<8x512xf32>
    %251 = tpu.matmul %250, %248, %cst_231 {dimension_numbers = #tpu.dot_dimension_numbers<[1], [0], [0], [1], [0, 0, 1, 1], [], []>} : vector<8x8xbf16>, vector<8x512xbf16>, vector<8x512xf32> -> vector<8x512xf32>
    %252 = arith.addf %246, %251 : vector<8x512xf32>
    %c0_232 = arith.constant 0 : index
    %c0_233 = arith.constant 0 : index
    %c87 = arith.constant 87 : index
    %253 = vector.load %arg2[%c0_232, %c0_233, %c87] : memref<1x8x896xbf16, #tpu.memory_space<vmem>>, vector<1x8x512xbf16>
    %254 = vector.shape_cast %253 : vector<1x8x512xbf16> to vector<8x512xbf16>
    %c42 = arith.constant 42 : index
    %c0_234 = arith.constant 0 : index
    %c0_235 = arith.constant 0 : index
    %255 = vector.load %arg3[%c42, %c0_234, %c0_235] : memref<121x8x8xbf16, #tpu.memory_space<vmem>>, vector<1x8x8xbf16>
    %256 = vector.shape_cast %255 : vector<1x8x8xbf16> to vector<8x8xbf16>
    %cst_236 = arith.constant dense<0.000000e+00> : vector<8x512xf32>
    %257 = tpu.matmul %256, %254, %cst_236 {dimension_numbers = #tpu.dot_dimension_numbers<[1], [0], [0], [1], [0, 0, 1, 1], [], []>} : vector<8x8xbf16>, vector<8x512xbf16>, vector<8x512xf32> -> vector<8x512xf32>
    %258 = arith.addf %252, %257 : vector<8x512xf32>
    %c0_237 = arith.constant 0 : index
    %c0_238 = arith.constant 0 : index
    %c88 = arith.constant 88 : index
    %259 = vector.load %arg2[%c0_237, %c0_238, %c88] : memref<1x8x896xbf16, #tpu.memory_space<vmem>>, vector<1x8x512xbf16>
    %260 = vector.shape_cast %259 : vector<1x8x512xbf16> to vector<8x512xbf16>
    %c43 = arith.constant 43 : index
    %c0_239 = arith.constant 0 : index
    %c0_240 = arith.constant 0 : index
    %261 = vector.load %arg3[%c43, %c0_239, %c0_240] : memref<121x8x8xbf16, #tpu.memory_space<vmem>>, vector<1x8x8xbf16>
    %262 = vector.shape_cast %261 : vector<1x8x8xbf16> to vector<8x8xbf16>
    %cst_241 = arith.constant dense<0.000000e+00> : vector<8x512xf32>
    %263 = tpu.matmul %262, %260, %cst_241 {dimension_numbers = #tpu.dot_dimension_numbers<[1], [0], [0], [1], [0, 0, 1, 1], [], []>} : vector<8x8xbf16>, vector<8x512xbf16>, vector<8x512xf32> -> vector<8x512xf32>
    %264 = arith.addf %258, %263 : vector<8x512xf32>
    %c0_242 = arith.constant 0 : index
    %c0_243 = arith.constant 0 : index
    %c104 = arith.constant 104 : index
    %265 = vector.load %arg2[%c0_242, %c0_243, %c104] : memref<1x8x896xbf16, #tpu.memory_space<vmem>>, vector<1x8x512xbf16>
    %266 = vector.shape_cast %265 : vector<1x8x512xbf16> to vector<8x512xbf16>
    %c44 = arith.constant 44 : index
    %c0_244 = arith.constant 0 : index
    %c0_245 = arith.constant 0 : index
    %267 = vector.load %arg3[%c44, %c0_244, %c0_245] : memref<121x8x8xbf16, #tpu.memory_space<vmem>>, vector<1x8x8xbf16>
    %268 = vector.shape_cast %267 : vector<1x8x8xbf16> to vector<8x8xbf16>
    %cst_246 = arith.constant dense<0.000000e+00> : vector<8x512xf32>
    %269 = tpu.matmul %268, %266, %cst_246 {dimension_numbers = #tpu.dot_dimension_numbers<[1], [0], [0], [1], [0, 0, 1, 1], [], []>} : vector<8x8xbf16>, vector<8x512xbf16>, vector<8x512xf32> -> vector<8x512xf32>
    %270 = arith.addf %264, %269 : vector<8x512xf32>
    %c0_247 = arith.constant 0 : index
    %c0_248 = arith.constant 0 : index
    %c105 = arith.constant 105 : index
    %271 = vector.load %arg2[%c0_247, %c0_248, %c105] : memref<1x8x896xbf16, #tpu.memory_space<vmem>>, vector<1x8x512xbf16>
    %272 = vector.shape_cast %271 : vector<1x8x512xbf16> to vector<8x512xbf16>
    %c45 = arith.constant 45 : index
    %c0_249 = arith.constant 0 : index
    %c0_250 = arith.constant 0 : index
    %273 = vector.load %arg3[%c45, %c0_249, %c0_250] : memref<121x8x8xbf16, #tpu.memory_space<vmem>>, vector<1x8x8xbf16>
    %274 = vector.shape_cast %273 : vector<1x8x8xbf16> to vector<8x8xbf16>
    %cst_251 = arith.constant dense<0.000000e+00> : vector<8x512xf32>
    %275 = tpu.matmul %274, %272, %cst_251 {dimension_numbers = #tpu.dot_dimension_numbers<[1], [0], [0], [1], [0, 0, 1, 1], [], []>} : vector<8x8xbf16>, vector<8x512xbf16>, vector<8x512xf32> -> vector<8x512xf32>
    %276 = arith.addf %270, %275 : vector<8x512xf32>
    %c0_252 = arith.constant 0 : index
    %c0_253 = arith.constant 0 : index
    %c106 = arith.constant 106 : index
    %277 = vector.load %arg2[%c0_252, %c0_253, %c106] : memref<1x8x896xbf16, #tpu.memory_space<vmem>>, vector<1x8x512xbf16>
    %278 = vector.shape_cast %277 : vector<1x8x512xbf16> to vector<8x512xbf16>
    %c46 = arith.constant 46 : index
    %c0_254 = arith.constant 0 : index
    %c0_255 = arith.constant 0 : index
    %279 = vector.load %arg3[%c46, %c0_254, %c0_255] : memref<121x8x8xbf16, #tpu.memory_space<vmem>>, vector<1x8x8xbf16>
    %280 = vector.shape_cast %279 : vector<1x8x8xbf16> to vector<8x8xbf16>
    %cst_256 = arith.constant dense<0.000000e+00> : vector<8x512xf32>
    %281 = tpu.matmul %280, %278, %cst_256 {dimension_numbers = #tpu.dot_dimension_numbers<[1], [0], [0], [1], [0, 0, 1, 1], [], []>} : vector<8x8xbf16>, vector<8x512xbf16>, vector<8x512xf32> -> vector<8x512xf32>
    %282 = arith.addf %276, %281 : vector<8x512xf32>
    %c0_257 = arith.constant 0 : index
    %c0_258 = arith.constant 0 : index
    %c107 = arith.constant 107 : index
    %283 = vector.load %arg2[%c0_257, %c0_258, %c107] : memref<1x8x896xbf16, #tpu.memory_space<vmem>>, vector<1x8x512xbf16>
    %284 = vector.shape_cast %283 : vector<1x8x512xbf16> to vector<8x512xbf16>
    %c47 = arith.constant 47 : index
    %c0_259 = arith.constant 0 : index
    %c0_260 = arith.constant 0 : index
    %285 = vector.load %arg3[%c47, %c0_259, %c0_260] : memref<121x8x8xbf16, #tpu.memory_space<vmem>>, vector<1x8x8xbf16>
    %286 = vector.shape_cast %285 : vector<1x8x8xbf16> to vector<8x8xbf16>
    %cst_261 = arith.constant dense<0.000000e+00> : vector<8x512xf32>
    %287 = tpu.matmul %286, %284, %cst_261 {dimension_numbers = #tpu.dot_dimension_numbers<[1], [0], [0], [1], [0, 0, 1, 1], [], []>} : vector<8x8xbf16>, vector<8x512xbf16>, vector<8x512xf32> -> vector<8x512xf32>
    %288 = arith.addf %282, %287 : vector<8x512xf32>
    %c0_262 = arith.constant 0 : index
    %c0_263 = arith.constant 0 : index
    %c108 = arith.constant 108 : index
    %289 = vector.load %arg2[%c0_262, %c0_263, %c108] : memref<1x8x896xbf16, #tpu.memory_space<vmem>>, vector<1x8x512xbf16>
    %290 = vector.shape_cast %289 : vector<1x8x512xbf16> to vector<8x512xbf16>
    %c48 = arith.constant 48 : index
    %c0_264 = arith.constant 0 : index
    %c0_265 = arith.constant 0 : index
    %291 = vector.load %arg3[%c48, %c0_264, %c0_265] : memref<121x8x8xbf16, #tpu.memory_space<vmem>>, vector<1x8x8xbf16>
    %292 = vector.shape_cast %291 : vector<1x8x8xbf16> to vector<8x8xbf16>
    %cst_266 = arith.constant dense<0.000000e+00> : vector<8x512xf32>
    %293 = tpu.matmul %292, %290, %cst_266 {dimension_numbers = #tpu.dot_dimension_numbers<[1], [0], [0], [1], [0, 0, 1, 1], [], []>} : vector<8x8xbf16>, vector<8x512xbf16>, vector<8x512xf32> -> vector<8x512xf32>
    %294 = arith.addf %288, %293 : vector<8x512xf32>
    %c0_267 = arith.constant 0 : index
    %c0_268 = arith.constant 0 : index
    %c109 = arith.constant 109 : index
    %295 = vector.load %arg2[%c0_267, %c0_268, %c109] : memref<1x8x896xbf16, #tpu.memory_space<vmem>>, vector<1x8x512xbf16>
    %296 = vector.shape_cast %295 : vector<1x8x512xbf16> to vector<8x512xbf16>
    %c49 = arith.constant 49 : index
    %c0_269 = arith.constant 0 : index
    %c0_270 = arith.constant 0 : index
    %297 = vector.load %arg3[%c49, %c0_269, %c0_270] : memref<121x8x8xbf16, #tpu.memory_space<vmem>>, vector<1x8x8xbf16>
    %298 = vector.shape_cast %297 : vector<1x8x8xbf16> to vector<8x8xbf16>
    %cst_271 = arith.constant dense<0.000000e+00> : vector<8x512xf32>
    %299 = tpu.matmul %298, %296, %cst_271 {dimension_numbers = #tpu.dot_dimension_numbers<[1], [0], [0], [1], [0, 0, 1, 1], [], []>} : vector<8x8xbf16>, vector<8x512xbf16>, vector<8x512xf32> -> vector<8x512xf32>
    %300 = arith.addf %294, %299 : vector<8x512xf32>
    %c0_272 = arith.constant 0 : index
    %c0_273 = arith.constant 0 : index
    %c110 = arith.constant 110 : index
    %301 = vector.load %arg2[%c0_272, %c0_273, %c110] : memref<1x8x896xbf16, #tpu.memory_space<vmem>>, vector<1x8x512xbf16>
    %302 = vector.shape_cast %301 : vector<1x8x512xbf16> to vector<8x512xbf16>
    %c50 = arith.constant 50 : index
    %c0_274 = arith.constant 0 : index
    %c0_275 = arith.constant 0 : index
    %303 = vector.load %arg3[%c50, %c0_274, %c0_275] : memref<121x8x8xbf16, #tpu.memory_space<vmem>>, vector<1x8x8xbf16>
    %304 = vector.shape_cast %303 : vector<1x8x8xbf16> to vector<8x8xbf16>
    %cst_276 = arith.constant dense<0.000000e+00> : vector<8x512xf32>
    %305 = tpu.matmul %304, %302, %cst_276 {dimension_numbers = #tpu.dot_dimension_numbers<[1], [0], [0], [1], [0, 0, 1, 1], [], []>} : vector<8x8xbf16>, vector<8x512xbf16>, vector<8x512xf32> -> vector<8x512xf32>
    %306 = arith.addf %300, %305 : vector<8x512xf32>
    %c0_277 = arith.constant 0 : index
    %c0_278 = arith.constant 0 : index
    %c111 = arith.constant 111 : index
    %307 = vector.load %arg2[%c0_277, %c0_278, %c111] : memref<1x8x896xbf16, #tpu.memory_space<vmem>>, vector<1x8x512xbf16>
    %308 = vector.shape_cast %307 : vector<1x8x512xbf16> to vector<8x512xbf16>
    %c51 = arith.constant 51 : index
    %c0_279 = arith.constant 0 : index
    %c0_280 = arith.constant 0 : index
    %309 = vector.load %arg3[%c51, %c0_279, %c0_280] : memref<121x8x8xbf16, #tpu.memory_space<vmem>>, vector<1x8x8xbf16>
    %310 = vector.shape_cast %309 : vector<1x8x8xbf16> to vector<8x8xbf16>
    %cst_281 = arith.constant dense<0.000000e+00> : vector<8x512xf32>
    %311 = tpu.matmul %310, %308, %cst_281 {dimension_numbers = #tpu.dot_dimension_numbers<[1], [0], [0], [1], [0, 0, 1, 1], [], []>} : vector<8x8xbf16>, vector<8x512xbf16>, vector<8x512xf32> -> vector<8x512xf32>
    %312 = arith.addf %306, %311 : vector<8x512xf32>
    %c0_282 = arith.constant 0 : index
    %c0_283 = arith.constant 0 : index
    %c112 = arith.constant 112 : index
    %313 = vector.load %arg2[%c0_282, %c0_283, %c112] : memref<1x8x896xbf16, #tpu.memory_space<vmem>>, vector<1x8x512xbf16>
    %314 = vector.shape_cast %313 : vector<1x8x512xbf16> to vector<8x512xbf16>
    %c52_284 = arith.constant 52 : index
    %c0_285 = arith.constant 0 : index
    %c0_286 = arith.constant 0 : index
    %315 = vector.load %arg3[%c52_284, %c0_285, %c0_286] : memref<121x8x8xbf16, #tpu.memory_space<vmem>>, vector<1x8x8xbf16>
    %316 = vector.shape_cast %315 : vector<1x8x8xbf16> to vector<8x8xbf16>
    %cst_287 = arith.constant dense<0.000000e+00> : vector<8x512xf32>
    %317 = tpu.matmul %316, %314, %cst_287 {dimension_numbers = #tpu.dot_dimension_numbers<[1], [0], [0], [1], [0, 0, 1, 1], [], []>} : vector<8x8xbf16>, vector<8x512xbf16>, vector<8x512xf32> -> vector<8x512xf32>
    %318 = arith.addf %312, %317 : vector<8x512xf32>
    %c0_288 = arith.constant 0 : index
    %c0_289 = arith.constant 0 : index
    %c113 = arith.constant 113 : index
    %319 = vector.load %arg2[%c0_288, %c0_289, %c113] : memref<1x8x896xbf16, #tpu.memory_space<vmem>>, vector<1x8x512xbf16>
    %320 = vector.shape_cast %319 : vector<1x8x512xbf16> to vector<8x512xbf16>
    %c53_290 = arith.constant 53 : index
    %c0_291 = arith.constant 0 : index
    %c0_292 = arith.constant 0 : index
    %321 = vector.load %arg3[%c53_290, %c0_291, %c0_292] : memref<121x8x8xbf16, #tpu.memory_space<vmem>>, vector<1x8x8xbf16>
    %322 = vector.shape_cast %321 : vector<1x8x8xbf16> to vector<8x8xbf16>
    %cst_293 = arith.constant dense<0.000000e+00> : vector<8x512xf32>
    %323 = tpu.matmul %322, %320, %cst_293 {dimension_numbers = #tpu.dot_dimension_numbers<[1], [0], [0], [1], [0, 0, 1, 1], [], []>} : vector<8x8xbf16>, vector<8x512xbf16>, vector<8x512xf32> -> vector<8x512xf32>
    %324 = arith.addf %318, %323 : vector<8x512xf32>
    %c0_294 = arith.constant 0 : index
    %c0_295 = arith.constant 0 : index
    %c114 = arith.constant 114 : index
    %325 = vector.load %arg2[%c0_294, %c0_295, %c114] : memref<1x8x896xbf16, #tpu.memory_space<vmem>>, vector<1x8x512xbf16>
    %326 = vector.shape_cast %325 : vector<1x8x512xbf16> to vector<8x512xbf16>
    %c54_296 = arith.constant 54 : index
    %c0_297 = arith.constant 0 : index
    %c0_298 = arith.constant 0 : index
    %327 = vector.load %arg3[%c54_296, %c0_297, %c0_298] : memref<121x8x8xbf16, #tpu.memory_space<vmem>>, vector<1x8x8xbf16>
    %328 = vector.shape_cast %327 : vector<1x8x8xbf16> to vector<8x8xbf16>
    %cst_299 = arith.constant dense<0.000000e+00> : vector<8x512xf32>
    %329 = tpu.matmul %328, %326, %cst_299 {dimension_numbers = #tpu.dot_dimension_numbers<[1], [0], [0], [1], [0, 0, 1, 1], [], []>} : vector<8x8xbf16>, vector<8x512xbf16>, vector<8x512xf32> -> vector<8x512xf32>
    %330 = arith.addf %324, %329 : vector<8x512xf32>
    %c0_300 = arith.constant 0 : index
    %c0_301 = arith.constant 0 : index
    %c130 = arith.constant 130 : index
    %331 = vector.load %arg2[%c0_300, %c0_301, %c130] : memref<1x8x896xbf16, #tpu.memory_space<vmem>>, vector<1x8x512xbf16>
    %332 = vector.shape_cast %331 : vector<1x8x512xbf16> to vector<8x512xbf16>
    %c55_302 = arith.constant 55 : index
    %c0_303 = arith.constant 0 : index
    %c0_304 = arith.constant 0 : index
    %333 = vector.load %arg3[%c55_302, %c0_303, %c0_304] : memref<121x8x8xbf16, #tpu.memory_space<vmem>>, vector<1x8x8xbf16>
    %334 = vector.shape_cast %333 : vector<1x8x8xbf16> to vector<8x8xbf16>
    %cst_305 = arith.constant dense<0.000000e+00> : vector<8x512xf32>
    %335 = tpu.matmul %334, %332, %cst_305 {dimension_numbers = #tpu.dot_dimension_numbers<[1], [0], [0], [1], [0, 0, 1, 1], [], []>} : vector<8x8xbf16>, vector<8x512xbf16>, vector<8x512xf32> -> vector<8x512xf32>
    %336 = arith.addf %330, %335 : vector<8x512xf32>
    %c0_306 = arith.constant 0 : index
    %c0_307 = arith.constant 0 : index
    %c131 = arith.constant 131 : index
    %337 = vector.load %arg2[%c0_306, %c0_307, %c131] : memref<1x8x896xbf16, #tpu.memory_space<vmem>>, vector<1x8x512xbf16>
    %338 = vector.shape_cast %337 : vector<1x8x512xbf16> to vector<8x512xbf16>
    %c56_308 = arith.constant 56 : index
    %c0_309 = arith.constant 0 : index
    %c0_310 = arith.constant 0 : index
    %339 = vector.load %arg3[%c56_308, %c0_309, %c0_310] : memref<121x8x8xbf16, #tpu.memory_space<vmem>>, vector<1x8x8xbf16>
    %340 = vector.shape_cast %339 : vector<1x8x8xbf16> to vector<8x8xbf16>
    %cst_311 = arith.constant dense<0.000000e+00> : vector<8x512xf32>
    %341 = tpu.matmul %340, %338, %cst_311 {dimension_numbers = #tpu.dot_dimension_numbers<[1], [0], [0], [1], [0, 0, 1, 1], [], []>} : vector<8x8xbf16>, vector<8x512xbf16>, vector<8x512xf32> -> vector<8x512xf32>
    %342 = arith.addf %336, %341 : vector<8x512xf32>
    %c0_312 = arith.constant 0 : index
    %c0_313 = arith.constant 0 : index
    %c132 = arith.constant 132 : index
    %343 = vector.load %arg2[%c0_312, %c0_313, %c132] : memref<1x8x896xbf16, #tpu.memory_space<vmem>>, vector<1x8x512xbf16>
    %344 = vector.shape_cast %343 : vector<1x8x512xbf16> to vector<8x512xbf16>
    %c57_314 = arith.constant 57 : index
    %c0_315 = arith.constant 0 : index
    %c0_316 = arith.constant 0 : index
    %345 = vector.load %arg3[%c57_314, %c0_315, %c0_316] : memref<121x8x8xbf16, #tpu.memory_space<vmem>>, vector<1x8x8xbf16>
    %346 = vector.shape_cast %345 : vector<1x8x8xbf16> to vector<8x8xbf16>
    %cst_317 = arith.constant dense<0.000000e+00> : vector<8x512xf32>
    %347 = tpu.matmul %346, %344, %cst_317 {dimension_numbers = #tpu.dot_dimension_numbers<[1], [0], [0], [1], [0, 0, 1, 1], [], []>} : vector<8x8xbf16>, vector<8x512xbf16>, vector<8x512xf32> -> vector<8x512xf32>
    %348 = arith.addf %342, %347 : vector<8x512xf32>
    %c0_318 = arith.constant 0 : index
    %c0_319 = arith.constant 0 : index
    %c133 = arith.constant 133 : index
    %349 = vector.load %arg2[%c0_318, %c0_319, %c133] : memref<1x8x896xbf16, #tpu.memory_space<vmem>>, vector<1x8x512xbf16>
    %350 = vector.shape_cast %349 : vector<1x8x512xbf16> to vector<8x512xbf16>
    %c58_320 = arith.constant 58 : index
    %c0_321 = arith.constant 0 : index
    %c0_322 = arith.constant 0 : index
    %351 = vector.load %arg3[%c58_320, %c0_321, %c0_322] : memref<121x8x8xbf16, #tpu.memory_space<vmem>>, vector<1x8x8xbf16>
    %352 = vector.shape_cast %351 : vector<1x8x8xbf16> to vector<8x8xbf16>
    %cst_323 = arith.constant dense<0.000000e+00> : vector<8x512xf32>
    %353 = tpu.matmul %352, %350, %cst_323 {dimension_numbers = #tpu.dot_dimension_numbers<[1], [0], [0], [1], [0, 0, 1, 1], [], []>} : vector<8x8xbf16>, vector<8x512xbf16>, vector<8x512xf32> -> vector<8x512xf32>
    %354 = arith.addf %348, %353 : vector<8x512xf32>
    %c0_324 = arith.constant 0 : index
    %c0_325 = arith.constant 0 : index
    %c134 = arith.constant 134 : index
    %355 = vector.load %arg2[%c0_324, %c0_325, %c134] : memref<1x8x896xbf16, #tpu.memory_space<vmem>>, vector<1x8x512xbf16>
    %356 = vector.shape_cast %355 : vector<1x8x512xbf16> to vector<8x512xbf16>
    %c59_326 = arith.constant 59 : index
    %c0_327 = arith.constant 0 : index
    %c0_328 = arith.constant 0 : index
    %357 = vector.load %arg3[%c59_326, %c0_327, %c0_328] : memref<121x8x8xbf16, #tpu.memory_space<vmem>>, vector<1x8x8xbf16>
    %358 = vector.shape_cast %357 : vector<1x8x8xbf16> to vector<8x8xbf16>
    %cst_329 = arith.constant dense<0.000000e+00> : vector<8x512xf32>
    %359 = tpu.matmul %358, %356, %cst_329 {dimension_numbers = #tpu.dot_dimension_numbers<[1], [0], [0], [1], [0, 0, 1, 1], [], []>} : vector<8x8xbf16>, vector<8x512xbf16>, vector<8x512xf32> -> vector<8x512xf32>
    %360 = arith.addf %354, %359 : vector<8x512xf32>
    %c0_330 = arith.constant 0 : index
    %c0_331 = arith.constant 0 : index
    %c135 = arith.constant 135 : index
    %361 = vector.load %arg2[%c0_330, %c0_331, %c135] : memref<1x8x896xbf16, #tpu.memory_space<vmem>>, vector<1x8x512xbf16>
    %362 = vector.shape_cast %361 : vector<1x8x512xbf16> to vector<8x512xbf16>
    %c60_332 = arith.constant 60 : index
    %c0_333 = arith.constant 0 : index
    %c0_334 = arith.constant 0 : index
    %363 = vector.load %arg3[%c60_332, %c0_333, %c0_334] : memref<121x8x8xbf16, #tpu.memory_space<vmem>>, vector<1x8x8xbf16>
    %364 = vector.shape_cast %363 : vector<1x8x8xbf16> to vector<8x8xbf16>
    %cst_335 = arith.constant dense<0.000000e+00> : vector<8x512xf32>
    %365 = tpu.matmul %364, %362, %cst_335 {dimension_numbers = #tpu.dot_dimension_numbers<[1], [0], [0], [1], [0, 0, 1, 1], [], []>} : vector<8x8xbf16>, vector<8x512xbf16>, vector<8x512xf32> -> vector<8x512xf32>
    %366 = arith.addf %360, %365 : vector<8x512xf32>
    %c0_336 = arith.constant 0 : index
    %c0_337 = arith.constant 0 : index
    %c136 = arith.constant 136 : index
    %367 = vector.load %arg2[%c0_336, %c0_337, %c136] : memref<1x8x896xbf16, #tpu.memory_space<vmem>>, vector<1x8x512xbf16>
    %368 = vector.shape_cast %367 : vector<1x8x512xbf16> to vector<8x512xbf16>
    %c61_338 = arith.constant 61 : index
    %c0_339 = arith.constant 0 : index
    %c0_340 = arith.constant 0 : index
    %369 = vector.load %arg3[%c61_338, %c0_339, %c0_340] : memref<121x8x8xbf16, #tpu.memory_space<vmem>>, vector<1x8x8xbf16>
    %370 = vector.shape_cast %369 : vector<1x8x8xbf16> to vector<8x8xbf16>
    %cst_341 = arith.constant dense<0.000000e+00> : vector<8x512xf32>
    %371 = tpu.matmul %370, %368, %cst_341 {dimension_numbers = #tpu.dot_dimension_numbers<[1], [0], [0], [1], [0, 0, 1, 1], [], []>} : vector<8x8xbf16>, vector<8x512xbf16>, vector<8x512xf32> -> vector<8x512xf32>
    %372 = arith.addf %366, %371 : vector<8x512xf32>
    %c0_342 = arith.constant 0 : index
    %c0_343 = arith.constant 0 : index
    %c137 = arith.constant 137 : index
    %373 = vector.load %arg2[%c0_342, %c0_343, %c137] : memref<1x8x896xbf16, #tpu.memory_space<vmem>>, vector<1x8x512xbf16>
    %374 = vector.shape_cast %373 : vector<1x8x512xbf16> to vector<8x512xbf16>
    %c62_344 = arith.constant 62 : index
    %c0_345 = arith.constant 0 : index
    %c0_346 = arith.constant 0 : index
    %375 = vector.load %arg3[%c62_344, %c0_345, %c0_346] : memref<121x8x8xbf16, #tpu.memory_space<vmem>>, vector<1x8x8xbf16>
    %376 = vector.shape_cast %375 : vector<1x8x8xbf16> to vector<8x8xbf16>
    %cst_347 = arith.constant dense<0.000000e+00> : vector<8x512xf32>
    %377 = tpu.matmul %376, %374, %cst_347 {dimension_numbers = #tpu.dot_dimension_numbers<[1], [0], [0], [1], [0, 0, 1, 1], [], []>} : vector<8x8xbf16>, vector<8x512xbf16>, vector<8x512xf32> -> vector<8x512xf32>
    %378 = arith.addf %372, %377 : vector<8x512xf32>
    %c0_348 = arith.constant 0 : index
    %c0_349 = arith.constant 0 : index
    %c138 = arith.constant 138 : index
    %379 = vector.load %arg2[%c0_348, %c0_349, %c138] : memref<1x8x896xbf16, #tpu.memory_space<vmem>>, vector<1x8x512xbf16>
    %380 = vector.shape_cast %379 : vector<1x8x512xbf16> to vector<8x512xbf16>
    %c63 = arith.constant 63 : index
    %c0_350 = arith.constant 0 : index
    %c0_351 = arith.constant 0 : index
    %381 = vector.load %arg3[%c63, %c0_350, %c0_351] : memref<121x8x8xbf16, #tpu.memory_space<vmem>>, vector<1x8x8xbf16>
    %382 = vector.shape_cast %381 : vector<1x8x8xbf16> to vector<8x8xbf16>
    %cst_352 = arith.constant dense<0.000000e+00> : vector<8x512xf32>
    %383 = tpu.matmul %382, %380, %cst_352 {dimension_numbers = #tpu.dot_dimension_numbers<[1], [0], [0], [1], [0, 0, 1, 1], [], []>} : vector<8x8xbf16>, vector<8x512xbf16>, vector<8x512xf32> -> vector<8x512xf32>
    %384 = arith.addf %378, %383 : vector<8x512xf32>
    %c0_353 = arith.constant 0 : index
    %c0_354 = arith.constant 0 : index
    %c139 = arith.constant 139 : index
    %385 = vector.load %arg2[%c0_353, %c0_354, %c139] : memref<1x8x896xbf16, #tpu.memory_space<vmem>>, vector<1x8x512xbf16>
    %386 = vector.shape_cast %385 : vector<1x8x512xbf16> to vector<8x512xbf16>
    %c64 = arith.constant 64 : index
    %c0_355 = arith.constant 0 : index
    %c0_356 = arith.constant 0 : index
    %387 = vector.load %arg3[%c64, %c0_355, %c0_356] : memref<121x8x8xbf16, #tpu.memory_space<vmem>>, vector<1x8x8xbf16>
    %388 = vector.shape_cast %387 : vector<1x8x8xbf16> to vector<8x8xbf16>
    %cst_357 = arith.constant dense<0.000000e+00> : vector<8x512xf32>
    %389 = tpu.matmul %388, %386, %cst_357 {dimension_numbers = #tpu.dot_dimension_numbers<[1], [0], [0], [1], [0, 0, 1, 1], [], []>} : vector<8x8xbf16>, vector<8x512xbf16>, vector<8x512xf32> -> vector<8x512xf32>
    %390 = arith.addf %384, %389 : vector<8x512xf32>
    %c0_358 = arith.constant 0 : index
    %c0_359 = arith.constant 0 : index
    %c140 = arith.constant 140 : index
    %391 = vector.load %arg2[%c0_358, %c0_359, %c140] : memref<1x8x896xbf16, #tpu.memory_space<vmem>>, vector<1x8x512xbf16>
    %392 = vector.shape_cast %391 : vector<1x8x512xbf16> to vector<8x512xbf16>
    %c65 = arith.constant 65 : index
    %c0_360 = arith.constant 0 : index
    %c0_361 = arith.constant 0 : index
    %393 = vector.load %arg3[%c65, %c0_360, %c0_361] : memref<121x8x8xbf16, #tpu.memory_space<vmem>>, vector<1x8x8xbf16>
    %394 = vector.shape_cast %393 : vector<1x8x8xbf16> to vector<8x8xbf16>
    %cst_362 = arith.constant dense<0.000000e+00> : vector<8x512xf32>
    %395 = tpu.matmul %394, %392, %cst_362 {dimension_numbers = #tpu.dot_dimension_numbers<[1], [0], [0], [1], [0, 0, 1, 1], [], []>} : vector<8x8xbf16>, vector<8x512xbf16>, vector<8x512xf32> -> vector<8x512xf32>
    %396 = arith.addf %390, %395 : vector<8x512xf32>
    %c0_363 = arith.constant 0 : index
    %c0_364 = arith.constant 0 : index
    %c156 = arith.constant 156 : index
    %397 = vector.load %arg2[%c0_363, %c0_364, %c156] : memref<1x8x896xbf16, #tpu.memory_space<vmem>>, vector<1x8x512xbf16>
    %398 = vector.shape_cast %397 : vector<1x8x512xbf16> to vector<8x512xbf16>
    %c66 = arith.constant 66 : index
    %c0_365 = arith.constant 0 : index
    %c0_366 = arith.constant 0 : index
    %399 = vector.load %arg3[%c66, %c0_365, %c0_366] : memref<121x8x8xbf16, #tpu.memory_space<vmem>>, vector<1x8x8xbf16>
    %400 = vector.shape_cast %399 : vector<1x8x8xbf16> to vector<8x8xbf16>
    %cst_367 = arith.constant dense<0.000000e+00> : vector<8x512xf32>
    %401 = tpu.matmul %400, %398, %cst_367 {dimension_numbers = #tpu.dot_dimension_numbers<[1], [0], [0], [1], [0, 0, 1, 1], [], []>} : vector<8x8xbf16>, vector<8x512xbf16>, vector<8x512xf32> -> vector<8x512xf32>
    %402 = arith.addf %396, %401 : vector<8x512xf32>
    %c0_368 = arith.constant 0 : index
    %c0_369 = arith.constant 0 : index
    %c157 = arith.constant 157 : index
    %403 = vector.load %arg2[%c0_368, %c0_369, %c157] : memref<1x8x896xbf16, #tpu.memory_space<vmem>>, vector<1x8x512xbf16>
    %404 = vector.shape_cast %403 : vector<1x8x512xbf16> to vector<8x512xbf16>
    %c67 = arith.constant 67 : index
    %c0_370 = arith.constant 0 : index
    %c0_371 = arith.constant 0 : index
    %405 = vector.load %arg3[%c67, %c0_370, %c0_371] : memref<121x8x8xbf16, #tpu.memory_space<vmem>>, vector<1x8x8xbf16>
    %406 = vector.shape_cast %405 : vector<1x8x8xbf16> to vector<8x8xbf16>
    %cst_372 = arith.constant dense<0.000000e+00> : vector<8x512xf32>
    %407 = tpu.matmul %406, %404, %cst_372 {dimension_numbers = #tpu.dot_dimension_numbers<[1], [0], [0], [1], [0, 0, 1, 1], [], []>} : vector<8x8xbf16>, vector<8x512xbf16>, vector<8x512xf32> -> vector<8x512xf32>
    %408 = arith.addf %402, %407 : vector<8x512xf32>
    %c0_373 = arith.constant 0 : index
    %c0_374 = arith.constant 0 : index
    %c158 = arith.constant 158 : index
    %409 = vector.load %arg2[%c0_373, %c0_374, %c158] : memref<1x8x896xbf16, #tpu.memory_space<vmem>>, vector<1x8x512xbf16>
    %410 = vector.shape_cast %409 : vector<1x8x512xbf16> to vector<8x512xbf16>
    %c68 = arith.constant 68 : index
    %c0_375 = arith.constant 0 : index
    %c0_376 = arith.constant 0 : index
    %411 = vector.load %arg3[%c68, %c0_375, %c0_376] : memref<121x8x8xbf16, #tpu.memory_space<vmem>>, vector<1x8x8xbf16>
    %412 = vector.shape_cast %411 : vector<1x8x8xbf16> to vector<8x8xbf16>
    %cst_377 = arith.constant dense<0.000000e+00> : vector<8x512xf32>
    %413 = tpu.matmul %412, %410, %cst_377 {dimension_numbers = #tpu.dot_dimension_numbers<[1], [0], [0], [1], [0, 0, 1, 1], [], []>} : vector<8x8xbf16>, vector<8x512xbf16>, vector<8x512xf32> -> vector<8x512xf32>
    %414 = arith.addf %408, %413 : vector<8x512xf32>
    %c0_378 = arith.constant 0 : index
    %c0_379 = arith.constant 0 : index
    %c159 = arith.constant 159 : index
    %415 = vector.load %arg2[%c0_378, %c0_379, %c159] : memref<1x8x896xbf16, #tpu.memory_space<vmem>>, vector<1x8x512xbf16>
    %416 = vector.shape_cast %415 : vector<1x8x512xbf16> to vector<8x512xbf16>
    %c69 = arith.constant 69 : index
    %c0_380 = arith.constant 0 : index
    %c0_381 = arith.constant 0 : index
    %417 = vector.load %arg3[%c69, %c0_380, %c0_381] : memref<121x8x8xbf16, #tpu.memory_space<vmem>>, vector<1x8x8xbf16>
    %418 = vector.shape_cast %417 : vector<1x8x8xbf16> to vector<8x8xbf16>
    %cst_382 = arith.constant dense<0.000000e+00> : vector<8x512xf32>
    %419 = tpu.matmul %418, %416, %cst_382 {dimension_numbers = #tpu.dot_dimension_numbers<[1], [0], [0], [1], [0, 0, 1, 1], [], []>} : vector<8x8xbf16>, vector<8x512xbf16>, vector<8x512xf32> -> vector<8x512xf32>
    %420 = arith.addf %414, %419 : vector<8x512xf32>
    %c0_383 = arith.constant 0 : index
    %c0_384 = arith.constant 0 : index
    %c160 = arith.constant 160 : index
    %421 = vector.load %arg2[%c0_383, %c0_384, %c160] : memref<1x8x896xbf16, #tpu.memory_space<vmem>>, vector<1x8x512xbf16>
    %422 = vector.shape_cast %421 : vector<1x8x512xbf16> to vector<8x512xbf16>
    %c70 = arith.constant 70 : index
    %c0_385 = arith.constant 0 : index
    %c0_386 = arith.constant 0 : index
    %423 = vector.load %arg3[%c70, %c0_385, %c0_386] : memref<121x8x8xbf16, #tpu.memory_space<vmem>>, vector<1x8x8xbf16>
    %424 = vector.shape_cast %423 : vector<1x8x8xbf16> to vector<8x8xbf16>
    %cst_387 = arith.constant dense<0.000000e+00> : vector<8x512xf32>
    %425 = tpu.matmul %424, %422, %cst_387 {dimension_numbers = #tpu.dot_dimension_numbers<[1], [0], [0], [1], [0, 0, 1, 1], [], []>} : vector<8x8xbf16>, vector<8x512xbf16>, vector<8x512xf32> -> vector<8x512xf32>
    %426 = arith.addf %420, %425 : vector<8x512xf32>
    %c0_388 = arith.constant 0 : index
    %c0_389 = arith.constant 0 : index
    %c161 = arith.constant 161 : index
    %427 = vector.load %arg2[%c0_388, %c0_389, %c161] : memref<1x8x896xbf16, #tpu.memory_space<vmem>>, vector<1x8x512xbf16>
    %428 = vector.shape_cast %427 : vector<1x8x512xbf16> to vector<8x512xbf16>
    %c71 = arith.constant 71 : index
    %c0_390 = arith.constant 0 : index
    %c0_391 = arith.constant 0 : index
    %429 = vector.load %arg3[%c71, %c0_390, %c0_391] : memref<121x8x8xbf16, #tpu.memory_space<vmem>>, vector<1x8x8xbf16>
    %430 = vector.shape_cast %429 : vector<1x8x8xbf16> to vector<8x8xbf16>
    %cst_392 = arith.constant dense<0.000000e+00> : vector<8x512xf32>
    %431 = tpu.matmul %430, %428, %cst_392 {dimension_numbers = #tpu.dot_dimension_numbers<[1], [0], [0], [1], [0, 0, 1, 1], [], []>} : vector<8x8xbf16>, vector<8x512xbf16>, vector<8x512xf32> -> vector<8x512xf32>
    %432 = arith.addf %426, %431 : vector<8x512xf32>
    %c0_393 = arith.constant 0 : index
    %c0_394 = arith.constant 0 : index
    %c162 = arith.constant 162 : index
    %433 = vector.load %arg2[%c0_393, %c0_394, %c162] : memref<1x8x896xbf16, #tpu.memory_space<vmem>>, vector<1x8x512xbf16>
    %434 = vector.shape_cast %433 : vector<1x8x512xbf16> to vector<8x512xbf16>
    %c72 = arith.constant 72 : index
    %c0_395 = arith.constant 0 : index
    %c0_396 = arith.constant 0 : index
    %435 = vector.load %arg3[%c72, %c0_395, %c0_396] : memref<121x8x8xbf16, #tpu.memory_space<vmem>>, vector<1x8x8xbf16>
    %436 = vector.shape_cast %435 : vector<1x8x8xbf16> to vector<8x8xbf16>
    %cst_397 = arith.constant dense<0.000000e+00> : vector<8x512xf32>
    %437 = tpu.matmul %436, %434, %cst_397 {dimension_numbers = #tpu.dot_dimension_numbers<[1], [0], [0], [1], [0, 0, 1, 1], [], []>} : vector<8x8xbf16>, vector<8x512xbf16>, vector<8x512xf32> -> vector<8x512xf32>
    %438 = arith.addf %432, %437 : vector<8x512xf32>
    %c0_398 = arith.constant 0 : index
    %c0_399 = arith.constant 0 : index
    %c163 = arith.constant 163 : index
    %439 = vector.load %arg2[%c0_398, %c0_399, %c163] : memref<1x8x896xbf16, #tpu.memory_space<vmem>>, vector<1x8x512xbf16>
    %440 = vector.shape_cast %439 : vector<1x8x512xbf16> to vector<8x512xbf16>
    %c73 = arith.constant 73 : index
    %c0_400 = arith.constant 0 : index
    %c0_401 = arith.constant 0 : index
    %441 = vector.load %arg3[%c73, %c0_400, %c0_401] : memref<121x8x8xbf16, #tpu.memory_space<vmem>>, vector<1x8x8xbf16>
    %442 = vector.shape_cast %441 : vector<1x8x8xbf16> to vector<8x8xbf16>
    %cst_402 = arith.constant dense<0.000000e+00> : vector<8x512xf32>
    %443 = tpu.matmul %442, %440, %cst_402 {dimension_numbers = #tpu.dot_dimension_numbers<[1], [0], [0], [1], [0, 0, 1, 1], [], []>} : vector<8x8xbf16>, vector<8x512xbf16>, vector<8x512xf32> -> vector<8x512xf32>
    %444 = arith.addf %438, %443 : vector<8x512xf32>
    %c0_403 = arith.constant 0 : index
    %c0_404 = arith.constant 0 : index
    %c164 = arith.constant 164 : index
    %445 = vector.load %arg2[%c0_403, %c0_404, %c164] : memref<1x8x896xbf16, #tpu.memory_space<vmem>>, vector<1x8x512xbf16>
    %446 = vector.shape_cast %445 : vector<1x8x512xbf16> to vector<8x512xbf16>
    %c74 = arith.constant 74 : index
    %c0_405 = arith.constant 0 : index
    %c0_406 = arith.constant 0 : index
    %447 = vector.load %arg3[%c74, %c0_405, %c0_406] : memref<121x8x8xbf16, #tpu.memory_space<vmem>>, vector<1x8x8xbf16>
    %448 = vector.shape_cast %447 : vector<1x8x8xbf16> to vector<8x8xbf16>
    %cst_407 = arith.constant dense<0.000000e+00> : vector<8x512xf32>
    %449 = tpu.matmul %448, %446, %cst_407 {dimension_numbers = #tpu.dot_dimension_numbers<[1], [0], [0], [1], [0, 0, 1, 1], [], []>} : vector<8x8xbf16>, vector<8x512xbf16>, vector<8x512xf32> -> vector<8x512xf32>
    %450 = arith.addf %444, %449 : vector<8x512xf32>
    %c0_408 = arith.constant 0 : index
    %c0_409 = arith.constant 0 : index
    %c165 = arith.constant 165 : index
    %451 = vector.load %arg2[%c0_408, %c0_409, %c165] : memref<1x8x896xbf16, #tpu.memory_space<vmem>>, vector<1x8x512xbf16>
    %452 = vector.shape_cast %451 : vector<1x8x512xbf16> to vector<8x512xbf16>
    %c75 = arith.constant 75 : index
    %c0_410 = arith.constant 0 : index
    %c0_411 = arith.constant 0 : index
    %453 = vector.load %arg3[%c75, %c0_410, %c0_411] : memref<121x8x8xbf16, #tpu.memory_space<vmem>>, vector<1x8x8xbf16>
    %454 = vector.shape_cast %453 : vector<1x8x8xbf16> to vector<8x8xbf16>
    %cst_412 = arith.constant dense<0.000000e+00> : vector<8x512xf32>
    %455 = tpu.matmul %454, %452, %cst_412 {dimension_numbers = #tpu.dot_dimension_numbers<[1], [0], [0], [1], [0, 0, 1, 1], [], []>} : vector<8x8xbf16>, vector<8x512xbf16>, vector<8x512xf32> -> vector<8x512xf32>
    %456 = arith.addf %450, %455 : vector<8x512xf32>
    %c0_413 = arith.constant 0 : index
    %c0_414 = arith.constant 0 : index
    %c166 = arith.constant 166 : index
    %457 = vector.load %arg2[%c0_413, %c0_414, %c166] : memref<1x8x896xbf16, #tpu.memory_space<vmem>>, vector<1x8x512xbf16>
    %458 = vector.shape_cast %457 : vector<1x8x512xbf16> to vector<8x512xbf16>
    %c76 = arith.constant 76 : index
    %c0_415 = arith.constant 0 : index
    %c0_416 = arith.constant 0 : index
    %459 = vector.load %arg3[%c76, %c0_415, %c0_416] : memref<121x8x8xbf16, #tpu.memory_space<vmem>>, vector<1x8x8xbf16>
    %460 = vector.shape_cast %459 : vector<1x8x8xbf16> to vector<8x8xbf16>
    %cst_417 = arith.constant dense<0.000000e+00> : vector<8x512xf32>
    %461 = tpu.matmul %460, %458, %cst_417 {dimension_numbers = #tpu.dot_dimension_numbers<[1], [0], [0], [1], [0, 0, 1, 1], [], []>} : vector<8x8xbf16>, vector<8x512xbf16>, vector<8x512xf32> -> vector<8x512xf32>
    %462 = arith.addf %456, %461 : vector<8x512xf32>
    %c0_418 = arith.constant 0 : index
    %c0_419 = arith.constant 0 : index
    %c182 = arith.constant 182 : index
    %463 = vector.load %arg2[%c0_418, %c0_419, %c182] : memref<1x8x896xbf16, #tpu.memory_space<vmem>>, vector<1x8x512xbf16>
    %464 = vector.shape_cast %463 : vector<1x8x512xbf16> to vector<8x512xbf16>
    %c77 = arith.constant 77 : index
    %c0_420 = arith.constant 0 : index
    %c0_421 = arith.constant 0 : index
    %465 = vector.load %arg3[%c77, %c0_420, %c0_421] : memref<121x8x8xbf16, #tpu.memory_space<vmem>>, vector<1x8x8xbf16>
    %466 = vector.shape_cast %465 : vector<1x8x8xbf16> to vector<8x8xbf16>
    %cst_422 = arith.constant dense<0.000000e+00> : vector<8x512xf32>
    %467 = tpu.matmul %466, %464, %cst_422 {dimension_numbers = #tpu.dot_dimension_numbers<[1], [0], [0], [1], [0, 0, 1, 1], [], []>} : vector<8x8xbf16>, vector<8x512xbf16>, vector<8x512xf32> -> vector<8x512xf32>
    %468 = arith.addf %462, %467 : vector<8x512xf32>
    %c0_423 = arith.constant 0 : index
    %c0_424 = arith.constant 0 : index
    %c183 = arith.constant 183 : index
    %469 = vector.load %arg2[%c0_423, %c0_424, %c183] : memref<1x8x896xbf16, #tpu.memory_space<vmem>>, vector<1x8x512xbf16>
    %470 = vector.shape_cast %469 : vector<1x8x512xbf16> to vector<8x512xbf16>
    %c78_425 = arith.constant 78 : index
    %c0_426 = arith.constant 0 : index
    %c0_427 = arith.constant 0 : index
    %471 = vector.load %arg3[%c78_425, %c0_426, %c0_427] : memref<121x8x8xbf16, #tpu.memory_space<vmem>>, vector<1x8x8xbf16>
    %472 = vector.shape_cast %471 : vector<1x8x8xbf16> to vector<8x8xbf16>
    %cst_428 = arith.constant dense<0.000000e+00> : vector<8x512xf32>
    %473 = tpu.matmul %472, %470, %cst_428 {dimension_numbers = #tpu.dot_dimension_numbers<[1], [0], [0], [1], [0, 0, 1, 1], [], []>} : vector<8x8xbf16>, vector<8x512xbf16>, vector<8x512xf32> -> vector<8x512xf32>
    %474 = arith.addf %468, %473 : vector<8x512xf32>
    %c0_429 = arith.constant 0 : index
    %c0_430 = arith.constant 0 : index
    %c184 = arith.constant 184 : index
    %475 = vector.load %arg2[%c0_429, %c0_430, %c184] : memref<1x8x896xbf16, #tpu.memory_space<vmem>>, vector<1x8x512xbf16>
    %476 = vector.shape_cast %475 : vector<1x8x512xbf16> to vector<8x512xbf16>
    %c79_431 = arith.constant 79 : index
    %c0_432 = arith.constant 0 : index
    %c0_433 = arith.constant 0 : index
    %477 = vector.load %arg3[%c79_431, %c0_432, %c0_433] : memref<121x8x8xbf16, #tpu.memory_space<vmem>>, vector<1x8x8xbf16>
    %478 = vector.shape_cast %477 : vector<1x8x8xbf16> to vector<8x8xbf16>
    %cst_434 = arith.constant dense<0.000000e+00> : vector<8x512xf32>
    %479 = tpu.matmul %478, %476, %cst_434 {dimension_numbers = #tpu.dot_dimension_numbers<[1], [0], [0], [1], [0, 0, 1, 1], [], []>} : vector<8x8xbf16>, vector<8x512xbf16>, vector<8x512xf32> -> vector<8x512xf32>
    %480 = arith.addf %474, %479 : vector<8x512xf32>
    %c0_435 = arith.constant 0 : index
    %c0_436 = arith.constant 0 : index
    %c185 = arith.constant 185 : index
    %481 = vector.load %arg2[%c0_435, %c0_436, %c185] : memref<1x8x896xbf16, #tpu.memory_space<vmem>>, vector<1x8x512xbf16>
    %482 = vector.shape_cast %481 : vector<1x8x512xbf16> to vector<8x512xbf16>
    %c80_437 = arith.constant 80 : index
    %c0_438 = arith.constant 0 : index
    %c0_439 = arith.constant 0 : index
    %483 = vector.load %arg3[%c80_437, %c0_438, %c0_439] : memref<121x8x8xbf16, #tpu.memory_space<vmem>>, vector<1x8x8xbf16>
    %484 = vector.shape_cast %483 : vector<1x8x8xbf16> to vector<8x8xbf16>
    %cst_440 = arith.constant dense<0.000000e+00> : vector<8x512xf32>
    %485 = tpu.matmul %484, %482, %cst_440 {dimension_numbers = #tpu.dot_dimension_numbers<[1], [0], [0], [1], [0, 0, 1, 1], [], []>} : vector<8x8xbf16>, vector<8x512xbf16>, vector<8x512xf32> -> vector<8x512xf32>
    %486 = arith.addf %480, %485 : vector<8x512xf32>
    %c0_441 = arith.constant 0 : index
    %c0_442 = arith.constant 0 : index
    %c186 = arith.constant 186 : index
    %487 = vector.load %arg2[%c0_441, %c0_442, %c186] : memref<1x8x896xbf16, #tpu.memory_space<vmem>>, vector<1x8x512xbf16>
    %488 = vector.shape_cast %487 : vector<1x8x512xbf16> to vector<8x512xbf16>
    %c81_443 = arith.constant 81 : index
    %c0_444 = arith.constant 0 : index
    %c0_445 = arith.constant 0 : index
    %489 = vector.load %arg3[%c81_443, %c0_444, %c0_445] : memref<121x8x8xbf16, #tpu.memory_space<vmem>>, vector<1x8x8xbf16>
    %490 = vector.shape_cast %489 : vector<1x8x8xbf16> to vector<8x8xbf16>
    %cst_446 = arith.constant dense<0.000000e+00> : vector<8x512xf32>
    %491 = tpu.matmul %490, %488, %cst_446 {dimension_numbers = #tpu.dot_dimension_numbers<[1], [0], [0], [1], [0, 0, 1, 1], [], []>} : vector<8x8xbf16>, vector<8x512xbf16>, vector<8x512xf32> -> vector<8x512xf32>
    %492 = arith.addf %486, %491 : vector<8x512xf32>
    %c0_447 = arith.constant 0 : index
    %c0_448 = arith.constant 0 : index
    %c187 = arith.constant 187 : index
    %493 = vector.load %arg2[%c0_447, %c0_448, %c187] : memref<1x8x896xbf16, #tpu.memory_space<vmem>>, vector<1x8x512xbf16>
    %494 = vector.shape_cast %493 : vector<1x8x512xbf16> to vector<8x512xbf16>
    %c82_449 = arith.constant 82 : index
    %c0_450 = arith.constant 0 : index
    %c0_451 = arith.constant 0 : index
    %495 = vector.load %arg3[%c82_449, %c0_450, %c0_451] : memref<121x8x8xbf16, #tpu.memory_space<vmem>>, vector<1x8x8xbf16>
    %496 = vector.shape_cast %495 : vector<1x8x8xbf16> to vector<8x8xbf16>
    %cst_452 = arith.constant dense<0.000000e+00> : vector<8x512xf32>
    %497 = tpu.matmul %496, %494, %cst_452 {dimension_numbers = #tpu.dot_dimension_numbers<[1], [0], [0], [1], [0, 0, 1, 1], [], []>} : vector<8x8xbf16>, vector<8x512xbf16>, vector<8x512xf32> -> vector<8x512xf32>
    %498 = arith.addf %492, %497 : vector<8x512xf32>
    %c0_453 = arith.constant 0 : index
    %c0_454 = arith.constant 0 : index
    %c188 = arith.constant 188 : index
    %499 = vector.load %arg2[%c0_453, %c0_454, %c188] : memref<1x8x896xbf16, #tpu.memory_space<vmem>>, vector<1x8x512xbf16>
    %500 = vector.shape_cast %499 : vector<1x8x512xbf16> to vector<8x512xbf16>
    %c83_455 = arith.constant 83 : index
    %c0_456 = arith.constant 0 : index
    %c0_457 = arith.constant 0 : index
    %501 = vector.load %arg3[%c83_455, %c0_456, %c0_457] : memref<121x8x8xbf16, #tpu.memory_space<vmem>>, vector<1x8x8xbf16>
    %502 = vector.shape_cast %501 : vector<1x8x8xbf16> to vector<8x8xbf16>
    %cst_458 = arith.constant dense<0.000000e+00> : vector<8x512xf32>
    %503 = tpu.matmul %502, %500, %cst_458 {dimension_numbers = #tpu.dot_dimension_numbers<[1], [0], [0], [1], [0, 0, 1, 1], [], []>} : vector<8x8xbf16>, vector<8x512xbf16>, vector<8x512xf32> -> vector<8x512xf32>
    %504 = arith.addf %498, %503 : vector<8x512xf32>
    %c0_459 = arith.constant 0 : index
    %c0_460 = arith.constant 0 : index
    %c189 = arith.constant 189 : index
    %505 = vector.load %arg2[%c0_459, %c0_460, %c189] : memref<1x8x896xbf16, #tpu.memory_space<vmem>>, vector<1x8x512xbf16>
    %506 = vector.shape_cast %505 : vector<1x8x512xbf16> to vector<8x512xbf16>
    %c84_461 = arith.constant 84 : index
    %c0_462 = arith.constant 0 : index
    %c0_463 = arith.constant 0 : index
    %507 = vector.load %arg3[%c84_461, %c0_462, %c0_463] : memref<121x8x8xbf16, #tpu.memory_space<vmem>>, vector<1x8x8xbf16>
    %508 = vector.shape_cast %507 : vector<1x8x8xbf16> to vector<8x8xbf16>
    %cst_464 = arith.constant dense<0.000000e+00> : vector<8x512xf32>
    %509 = tpu.matmul %508, %506, %cst_464 {dimension_numbers = #tpu.dot_dimension_numbers<[1], [0], [0], [1], [0, 0, 1, 1], [], []>} : vector<8x8xbf16>, vector<8x512xbf16>, vector<8x512xf32> -> vector<8x512xf32>
    %510 = arith.addf %504, %509 : vector<8x512xf32>
    %c0_465 = arith.constant 0 : index
    %c0_466 = arith.constant 0 : index
    %c190 = arith.constant 190 : index
    %511 = vector.load %arg2[%c0_465, %c0_466, %c190] : memref<1x8x896xbf16, #tpu.memory_space<vmem>>, vector<1x8x512xbf16>
    %512 = vector.shape_cast %511 : vector<1x8x512xbf16> to vector<8x512xbf16>
    %c85_467 = arith.constant 85 : index
    %c0_468 = arith.constant 0 : index
    %c0_469 = arith.constant 0 : index
    %513 = vector.load %arg3[%c85_467, %c0_468, %c0_469] : memref<121x8x8xbf16, #tpu.memory_space<vmem>>, vector<1x8x8xbf16>
    %514 = vector.shape_cast %513 : vector<1x8x8xbf16> to vector<8x8xbf16>
    %cst_470 = arith.constant dense<0.000000e+00> : vector<8x512xf32>
    %515 = tpu.matmul %514, %512, %cst_470 {dimension_numbers = #tpu.dot_dimension_numbers<[1], [0], [0], [1], [0, 0, 1, 1], [], []>} : vector<8x8xbf16>, vector<8x512xbf16>, vector<8x512xf32> -> vector<8x512xf32>
    %516 = arith.addf %510, %515 : vector<8x512xf32>
    %c0_471 = arith.constant 0 : index
    %c0_472 = arith.constant 0 : index
    %c191 = arith.constant 191 : index
    %517 = vector.load %arg2[%c0_471, %c0_472, %c191] : memref<1x8x896xbf16, #tpu.memory_space<vmem>>, vector<1x8x512xbf16>
    %518 = vector.shape_cast %517 : vector<1x8x512xbf16> to vector<8x512xbf16>
    %c86_473 = arith.constant 86 : index
    %c0_474 = arith.constant 0 : index
    %c0_475 = arith.constant 0 : index
    %519 = vector.load %arg3[%c86_473, %c0_474, %c0_475] : memref<121x8x8xbf16, #tpu.memory_space<vmem>>, vector<1x8x8xbf16>
    %520 = vector.shape_cast %519 : vector<1x8x8xbf16> to vector<8x8xbf16>
    %cst_476 = arith.constant dense<0.000000e+00> : vector<8x512xf32>
    %521 = tpu.matmul %520, %518, %cst_476 {dimension_numbers = #tpu.dot_dimension_numbers<[1], [0], [0], [1], [0, 0, 1, 1], [], []>} : vector<8x8xbf16>, vector<8x512xbf16>, vector<8x512xf32> -> vector<8x512xf32>
    %522 = arith.addf %516, %521 : vector<8x512xf32>
    %c0_477 = arith.constant 0 : index
    %c0_478 = arith.constant 0 : index
    %c192 = arith.constant 192 : index
    %523 = vector.load %arg2[%c0_477, %c0_478, %c192] : memref<1x8x896xbf16, #tpu.memory_space<vmem>>, vector<1x8x512xbf16>
    %524 = vector.shape_cast %523 : vector<1x8x512xbf16> to vector<8x512xbf16>
    %c87_479 = arith.constant 87 : index
    %c0_480 = arith.constant 0 : index
    %c0_481 = arith.constant 0 : index
    %525 = vector.load %arg3[%c87_479, %c0_480, %c0_481] : memref<121x8x8xbf16, #tpu.memory_space<vmem>>, vector<1x8x8xbf16>
    %526 = vector.shape_cast %525 : vector<1x8x8xbf16> to vector<8x8xbf16>
    %cst_482 = arith.constant dense<0.000000e+00> : vector<8x512xf32>
    %527 = tpu.matmul %526, %524, %cst_482 {dimension_numbers = #tpu.dot_dimension_numbers<[1], [0], [0], [1], [0, 0, 1, 1], [], []>} : vector<8x8xbf16>, vector<8x512xbf16>, vector<8x512xf32> -> vector<8x512xf32>
    %528 = arith.addf %522, %527 : vector<8x512xf32>
    %c0_483 = arith.constant 0 : index
    %c0_484 = arith.constant 0 : index
    %c208 = arith.constant 208 : index
    %529 = vector.load %arg2[%c0_483, %c0_484, %c208] : memref<1x8x896xbf16, #tpu.memory_space<vmem>>, vector<1x8x512xbf16>
    %530 = vector.shape_cast %529 : vector<1x8x512xbf16> to vector<8x512xbf16>
    %c88_485 = arith.constant 88 : index
    %c0_486 = arith.constant 0 : index
    %c0_487 = arith.constant 0 : index
    %531 = vector.load %arg3[%c88_485, %c0_486, %c0_487] : memref<121x8x8xbf16, #tpu.memory_space<vmem>>, vector<1x8x8xbf16>
    %532 = vector.shape_cast %531 : vector<1x8x8xbf16> to vector<8x8xbf16>
    %cst_488 = arith.constant dense<0.000000e+00> : vector<8x512xf32>
    %533 = tpu.matmul %532, %530, %cst_488 {dimension_numbers = #tpu.dot_dimension_numbers<[1], [0], [0], [1], [0, 0, 1, 1], [], []>} : vector<8x8xbf16>, vector<8x512xbf16>, vector<8x512xf32> -> vector<8x512xf32>
    %534 = arith.addf %528, %533 : vector<8x512xf32>
    %c0_489 = arith.constant 0 : index
    %c0_490 = arith.constant 0 : index
    %c209 = arith.constant 209 : index
    %535 = vector.load %arg2[%c0_489, %c0_490, %c209] : memref<1x8x896xbf16, #tpu.memory_space<vmem>>, vector<1x8x512xbf16>
    %536 = vector.shape_cast %535 : vector<1x8x512xbf16> to vector<8x512xbf16>
    %c89 = arith.constant 89 : index
    %c0_491 = arith.constant 0 : index
    %c0_492 = arith.constant 0 : index
    %537 = vector.load %arg3[%c89, %c0_491, %c0_492] : memref<121x8x8xbf16, #tpu.memory_space<vmem>>, vector<1x8x8xbf16>
    %538 = vector.shape_cast %537 : vector<1x8x8xbf16> to vector<8x8xbf16>
    %cst_493 = arith.constant dense<0.000000e+00> : vector<8x512xf32>
    %539 = tpu.matmul %538, %536, %cst_493 {dimension_numbers = #tpu.dot_dimension_numbers<[1], [0], [0], [1], [0, 0, 1, 1], [], []>} : vector<8x8xbf16>, vector<8x512xbf16>, vector<8x512xf32> -> vector<8x512xf32>
    %540 = arith.addf %534, %539 : vector<8x512xf32>
    %c0_494 = arith.constant 0 : index
    %c0_495 = arith.constant 0 : index
    %c210 = arith.constant 210 : index
    %541 = vector.load %arg2[%c0_494, %c0_495, %c210] : memref<1x8x896xbf16, #tpu.memory_space<vmem>>, vector<1x8x512xbf16>
    %542 = vector.shape_cast %541 : vector<1x8x512xbf16> to vector<8x512xbf16>
    %c90 = arith.constant 90 : index
    %c0_496 = arith.constant 0 : index
    %c0_497 = arith.constant 0 : index
    %543 = vector.load %arg3[%c90, %c0_496, %c0_497] : memref<121x8x8xbf16, #tpu.memory_space<vmem>>, vector<1x8x8xbf16>
    %544 = vector.shape_cast %543 : vector<1x8x8xbf16> to vector<8x8xbf16>
    %cst_498 = arith.constant dense<0.000000e+00> : vector<8x512xf32>
    %545 = tpu.matmul %544, %542, %cst_498 {dimension_numbers = #tpu.dot_dimension_numbers<[1], [0], [0], [1], [0, 0, 1, 1], [], []>} : vector<8x8xbf16>, vector<8x512xbf16>, vector<8x512xf32> -> vector<8x512xf32>
    %546 = arith.addf %540, %545 : vector<8x512xf32>
    %c0_499 = arith.constant 0 : index
    %c0_500 = arith.constant 0 : index
    %c211 = arith.constant 211 : index
    %547 = vector.load %arg2[%c0_499, %c0_500, %c211] : memref<1x8x896xbf16, #tpu.memory_space<vmem>>, vector<1x8x512xbf16>
    %548 = vector.shape_cast %547 : vector<1x8x512xbf16> to vector<8x512xbf16>
    %c91 = arith.constant 91 : index
    %c0_501 = arith.constant 0 : index
    %c0_502 = arith.constant 0 : index
    %549 = vector.load %arg3[%c91, %c0_501, %c0_502] : memref<121x8x8xbf16, #tpu.memory_space<vmem>>, vector<1x8x8xbf16>
    %550 = vector.shape_cast %549 : vector<1x8x8xbf16> to vector<8x8xbf16>
    %cst_503 = arith.constant dense<0.000000e+00> : vector<8x512xf32>
    %551 = tpu.matmul %550, %548, %cst_503 {dimension_numbers = #tpu.dot_dimension_numbers<[1], [0], [0], [1], [0, 0, 1, 1], [], []>} : vector<8x8xbf16>, vector<8x512xbf16>, vector<8x512xf32> -> vector<8x512xf32>
    %552 = arith.addf %546, %551 : vector<8x512xf32>
    %c0_504 = arith.constant 0 : index
    %c0_505 = arith.constant 0 : index
    %c212 = arith.constant 212 : index
    %553 = vector.load %arg2[%c0_504, %c0_505, %c212] : memref<1x8x896xbf16, #tpu.memory_space<vmem>>, vector<1x8x512xbf16>
    %554 = vector.shape_cast %553 : vector<1x8x512xbf16> to vector<8x512xbf16>
    %c92 = arith.constant 92 : index
    %c0_506 = arith.constant 0 : index
    %c0_507 = arith.constant 0 : index
    %555 = vector.load %arg3[%c92, %c0_506, %c0_507] : memref<121x8x8xbf16, #tpu.memory_space<vmem>>, vector<1x8x8xbf16>
    %556 = vector.shape_cast %555 : vector<1x8x8xbf16> to vector<8x8xbf16>
    %cst_508 = arith.constant dense<0.000000e+00> : vector<8x512xf32>
    %557 = tpu.matmul %556, %554, %cst_508 {dimension_numbers = #tpu.dot_dimension_numbers<[1], [0], [0], [1], [0, 0, 1, 1], [], []>} : vector<8x8xbf16>, vector<8x512xbf16>, vector<8x512xf32> -> vector<8x512xf32>
    %558 = arith.addf %552, %557 : vector<8x512xf32>
    %c0_509 = arith.constant 0 : index
    %c0_510 = arith.constant 0 : index
    %c213 = arith.constant 213 : index
    %559 = vector.load %arg2[%c0_509, %c0_510, %c213] : memref<1x8x896xbf16, #tpu.memory_space<vmem>>, vector<1x8x512xbf16>
    %560 = vector.shape_cast %559 : vector<1x8x512xbf16> to vector<8x512xbf16>
    %c93 = arith.constant 93 : index
    %c0_511 = arith.constant 0 : index
    %c0_512 = arith.constant 0 : index
    %561 = vector.load %arg3[%c93, %c0_511, %c0_512] : memref<121x8x8xbf16, #tpu.memory_space<vmem>>, vector<1x8x8xbf16>
    %562 = vector.shape_cast %561 : vector<1x8x8xbf16> to vector<8x8xbf16>
    %cst_513 = arith.constant dense<0.000000e+00> : vector<8x512xf32>
    %563 = tpu.matmul %562, %560, %cst_513 {dimension_numbers = #tpu.dot_dimension_numbers<[1], [0], [0], [1], [0, 0, 1, 1], [], []>} : vector<8x8xbf16>, vector<8x512xbf16>, vector<8x512xf32> -> vector<8x512xf32>
    %564 = arith.addf %558, %563 : vector<8x512xf32>
    %c0_514 = arith.constant 0 : index
    %c0_515 = arith.constant 0 : index
    %c214 = arith.constant 214 : index
    %565 = vector.load %arg2[%c0_514, %c0_515, %c214] : memref<1x8x896xbf16, #tpu.memory_space<vmem>>, vector<1x8x512xbf16>
    %566 = vector.shape_cast %565 : vector<1x8x512xbf16> to vector<8x512xbf16>
    %c94 = arith.constant 94 : index
    %c0_516 = arith.constant 0 : index
    %c0_517 = arith.constant 0 : index
    %567 = vector.load %arg3[%c94, %c0_516, %c0_517] : memref<121x8x8xbf16, #tpu.memory_space<vmem>>, vector<1x8x8xbf16>
    %568 = vector.shape_cast %567 : vector<1x8x8xbf16> to vector<8x8xbf16>
    %cst_518 = arith.constant dense<0.000000e+00> : vector<8x512xf32>
    %569 = tpu.matmul %568, %566, %cst_518 {dimension_numbers = #tpu.dot_dimension_numbers<[1], [0], [0], [1], [0, 0, 1, 1], [], []>} : vector<8x8xbf16>, vector<8x512xbf16>, vector<8x512xf32> -> vector<8x512xf32>
    %570 = arith.addf %564, %569 : vector<8x512xf32>
    %c0_519 = arith.constant 0 : index
    %c0_520 = arith.constant 0 : index
    %c215 = arith.constant 215 : index
    %571 = vector.load %arg2[%c0_519, %c0_520, %c215] : memref<1x8x896xbf16, #tpu.memory_space<vmem>>, vector<1x8x512xbf16>
    %572 = vector.shape_cast %571 : vector<1x8x512xbf16> to vector<8x512xbf16>
    %c95 = arith.constant 95 : index
    %c0_521 = arith.constant 0 : index
    %c0_522 = arith.constant 0 : index
    %573 = vector.load %arg3[%c95, %c0_521, %c0_522] : memref<121x8x8xbf16, #tpu.memory_space<vmem>>, vector<1x8x8xbf16>
    %574 = vector.shape_cast %573 : vector<1x8x8xbf16> to vector<8x8xbf16>
    %cst_523 = arith.constant dense<0.000000e+00> : vector<8x512xf32>
    %575 = tpu.matmul %574, %572, %cst_523 {dimension_numbers = #tpu.dot_dimension_numbers<[1], [0], [0], [1], [0, 0, 1, 1], [], []>} : vector<8x8xbf16>, vector<8x512xbf16>, vector<8x512xf32> -> vector<8x512xf32>
    %576 = arith.addf %570, %575 : vector<8x512xf32>
    %c0_524 = arith.constant 0 : index
    %c0_525 = arith.constant 0 : index
    %c216 = arith.constant 216 : index
    %577 = vector.load %arg2[%c0_524, %c0_525, %c216] : memref<1x8x896xbf16, #tpu.memory_space<vmem>>, vector<1x8x512xbf16>
    %578 = vector.shape_cast %577 : vector<1x8x512xbf16> to vector<8x512xbf16>
    %c96 = arith.constant 96 : index
    %c0_526 = arith.constant 0 : index
    %c0_527 = arith.constant 0 : index
    %579 = vector.load %arg3[%c96, %c0_526, %c0_527] : memref<121x8x8xbf16, #tpu.memory_space<vmem>>, vector<1x8x8xbf16>
    %580 = vector.shape_cast %579 : vector<1x8x8xbf16> to vector<8x8xbf16>
    %cst_528 = arith.constant dense<0.000000e+00> : vector<8x512xf32>
    %581 = tpu.matmul %580, %578, %cst_528 {dimension_numbers = #tpu.dot_dimension_numbers<[1], [0], [0], [1], [0, 0, 1, 1], [], []>} : vector<8x8xbf16>, vector<8x512xbf16>, vector<8x512xf32> -> vector<8x512xf32>
    %582 = arith.addf %576, %581 : vector<8x512xf32>
    %c0_529 = arith.constant 0 : index
    %c0_530 = arith.constant 0 : index
    %c217 = arith.constant 217 : index
    %583 = vector.load %arg2[%c0_529, %c0_530, %c217] : memref<1x8x896xbf16, #tpu.memory_space<vmem>>, vector<1x8x512xbf16>
    %584 = vector.shape_cast %583 : vector<1x8x512xbf16> to vector<8x512xbf16>
    %c97 = arith.constant 97 : index
    %c0_531 = arith.constant 0 : index
    %c0_532 = arith.constant 0 : index
    %585 = vector.load %arg3[%c97, %c0_531, %c0_532] : memref<121x8x8xbf16, #tpu.memory_space<vmem>>, vector<1x8x8xbf16>
    %586 = vector.shape_cast %585 : vector<1x8x8xbf16> to vector<8x8xbf16>
    %cst_533 = arith.constant dense<0.000000e+00> : vector<8x512xf32>
    %587 = tpu.matmul %586, %584, %cst_533 {dimension_numbers = #tpu.dot_dimension_numbers<[1], [0], [0], [1], [0, 0, 1, 1], [], []>} : vector<8x8xbf16>, vector<8x512xbf16>, vector<8x512xf32> -> vector<8x512xf32>
    %588 = arith.addf %582, %587 : vector<8x512xf32>
    %c0_534 = arith.constant 0 : index
    %c0_535 = arith.constant 0 : index
    %c218 = arith.constant 218 : index
    %589 = vector.load %arg2[%c0_534, %c0_535, %c218] : memref<1x8x896xbf16, #tpu.memory_space<vmem>>, vector<1x8x512xbf16>
    %590 = vector.shape_cast %589 : vector<1x8x512xbf16> to vector<8x512xbf16>
    %c98 = arith.constant 98 : index
    %c0_536 = arith.constant 0 : index
    %c0_537 = arith.constant 0 : index
    %591 = vector.load %arg3[%c98, %c0_536, %c0_537] : memref<121x8x8xbf16, #tpu.memory_space<vmem>>, vector<1x8x8xbf16>
    %592 = vector.shape_cast %591 : vector<1x8x8xbf16> to vector<8x8xbf16>
    %cst_538 = arith.constant dense<0.000000e+00> : vector<8x512xf32>
    %593 = tpu.matmul %592, %590, %cst_538 {dimension_numbers = #tpu.dot_dimension_numbers<[1], [0], [0], [1], [0, 0, 1, 1], [], []>} : vector<8x8xbf16>, vector<8x512xbf16>, vector<8x512xf32> -> vector<8x512xf32>
    %594 = arith.addf %588, %593 : vector<8x512xf32>
    %c0_539 = arith.constant 0 : index
    %c0_540 = arith.constant 0 : index
    %c234 = arith.constant 234 : index
    %595 = vector.load %arg2[%c0_539, %c0_540, %c234] : memref<1x8x896xbf16, #tpu.memory_space<vmem>>, vector<1x8x512xbf16>
    %596 = vector.shape_cast %595 : vector<1x8x512xbf16> to vector<8x512xbf16>
    %c99 = arith.constant 99 : index
    %c0_541 = arith.constant 0 : index
    %c0_542 = arith.constant 0 : index
    %597 = vector.load %arg3[%c99, %c0_541, %c0_542] : memref<121x8x8xbf16, #tpu.memory_space<vmem>>, vector<1x8x8xbf16>
    %598 = vector.shape_cast %597 : vector<1x8x8xbf16> to vector<8x8xbf16>
    %cst_543 = arith.constant dense<0.000000e+00> : vector<8x512xf32>
    %599 = tpu.matmul %598, %596, %cst_543 {dimension_numbers = #tpu.dot_dimension_numbers<[1], [0], [0], [1], [0, 0, 1, 1], [], []>} : vector<8x8xbf16>, vector<8x512xbf16>, vector<8x512xf32> -> vector<8x512xf32>
    %600 = arith.addf %594, %599 : vector<8x512xf32>
    %c0_544 = arith.constant 0 : index
    %c0_545 = arith.constant 0 : index
    %c235 = arith.constant 235 : index
    %601 = vector.load %arg2[%c0_544, %c0_545, %c235] : memref<1x8x896xbf16, #tpu.memory_space<vmem>>, vector<1x8x512xbf16>
    %602 = vector.shape_cast %601 : vector<1x8x512xbf16> to vector<8x512xbf16>
    %c100 = arith.constant 100 : index
    %c0_546 = arith.constant 0 : index
    %c0_547 = arith.constant 0 : index
    %603 = vector.load %arg3[%c100, %c0_546, %c0_547] : memref<121x8x8xbf16, #tpu.memory_space<vmem>>, vector<1x8x8xbf16>
    %604 = vector.shape_cast %603 : vector<1x8x8xbf16> to vector<8x8xbf16>
    %cst_548 = arith.constant dense<0.000000e+00> : vector<8x512xf32>
    %605 = tpu.matmul %604, %602, %cst_548 {dimension_numbers = #tpu.dot_dimension_numbers<[1], [0], [0], [1], [0, 0, 1, 1], [], []>} : vector<8x8xbf16>, vector<8x512xbf16>, vector<8x512xf32> -> vector<8x512xf32>
    %606 = arith.addf %600, %605 : vector<8x512xf32>
    %c0_549 = arith.constant 0 : index
    %c0_550 = arith.constant 0 : index
    %c236 = arith.constant 236 : index
    %607 = vector.load %arg2[%c0_549, %c0_550, %c236] : memref<1x8x896xbf16, #tpu.memory_space<vmem>>, vector<1x8x512xbf16>
    %608 = vector.shape_cast %607 : vector<1x8x512xbf16> to vector<8x512xbf16>
    %c101 = arith.constant 101 : index
    %c0_551 = arith.constant 0 : index
    %c0_552 = arith.constant 0 : index
    %609 = vector.load %arg3[%c101, %c0_551, %c0_552] : memref<121x8x8xbf16, #tpu.memory_space<vmem>>, vector<1x8x8xbf16>
    %610 = vector.shape_cast %609 : vector<1x8x8xbf16> to vector<8x8xbf16>
    %cst_553 = arith.constant dense<0.000000e+00> : vector<8x512xf32>
    %611 = tpu.matmul %610, %608, %cst_553 {dimension_numbers = #tpu.dot_dimension_numbers<[1], [0], [0], [1], [0, 0, 1, 1], [], []>} : vector<8x8xbf16>, vector<8x512xbf16>, vector<8x512xf32> -> vector<8x512xf32>
    %612 = arith.addf %606, %611 : vector<8x512xf32>
    %c0_554 = arith.constant 0 : index
    %c0_555 = arith.constant 0 : index
    %c237 = arith.constant 237 : index
    %613 = vector.load %arg2[%c0_554, %c0_555, %c237] : memref<1x8x896xbf16, #tpu.memory_space<vmem>>, vector<1x8x512xbf16>
    %614 = vector.shape_cast %613 : vector<1x8x512xbf16> to vector<8x512xbf16>
    %c102 = arith.constant 102 : index
    %c0_556 = arith.constant 0 : index
    %c0_557 = arith.constant 0 : index
    %615 = vector.load %arg3[%c102, %c0_556, %c0_557] : memref<121x8x8xbf16, #tpu.memory_space<vmem>>, vector<1x8x8xbf16>
    %616 = vector.shape_cast %615 : vector<1x8x8xbf16> to vector<8x8xbf16>
    %cst_558 = arith.constant dense<0.000000e+00> : vector<8x512xf32>
    %617 = tpu.matmul %616, %614, %cst_558 {dimension_numbers = #tpu.dot_dimension_numbers<[1], [0], [0], [1], [0, 0, 1, 1], [], []>} : vector<8x8xbf16>, vector<8x512xbf16>, vector<8x512xf32> -> vector<8x512xf32>
    %618 = arith.addf %612, %617 : vector<8x512xf32>
    %c0_559 = arith.constant 0 : index
    %c0_560 = arith.constant 0 : index
    %c238 = arith.constant 238 : index
    %619 = vector.load %arg2[%c0_559, %c0_560, %c238] : memref<1x8x896xbf16, #tpu.memory_space<vmem>>, vector<1x8x512xbf16>
    %620 = vector.shape_cast %619 : vector<1x8x512xbf16> to vector<8x512xbf16>
    %c103 = arith.constant 103 : index
    %c0_561 = arith.constant 0 : index
    %c0_562 = arith.constant 0 : index
    %621 = vector.load %arg3[%c103, %c0_561, %c0_562] : memref<121x8x8xbf16, #tpu.memory_space<vmem>>, vector<1x8x8xbf16>
    %622 = vector.shape_cast %621 : vector<1x8x8xbf16> to vector<8x8xbf16>
    %cst_563 = arith.constant dense<0.000000e+00> : vector<8x512xf32>
    %623 = tpu.matmul %622, %620, %cst_563 {dimension_numbers = #tpu.dot_dimension_numbers<[1], [0], [0], [1], [0, 0, 1, 1], [], []>} : vector<8x8xbf16>, vector<8x512xbf16>, vector<8x512xf32> -> vector<8x512xf32>
    %624 = arith.addf %618, %623 : vector<8x512xf32>
    %c0_564 = arith.constant 0 : index
    %c0_565 = arith.constant 0 : index
    %c239 = arith.constant 239 : index
    %625 = vector.load %arg2[%c0_564, %c0_565, %c239] : memref<1x8x896xbf16, #tpu.memory_space<vmem>>, vector<1x8x512xbf16>
    %626 = vector.shape_cast %625 : vector<1x8x512xbf16> to vector<8x512xbf16>
    %c104_566 = arith.constant 104 : index
    %c0_567 = arith.constant 0 : index
    %c0_568 = arith.constant 0 : index
    %627 = vector.load %arg3[%c104_566, %c0_567, %c0_568] : memref<121x8x8xbf16, #tpu.memory_space<vmem>>, vector<1x8x8xbf16>
    %628 = vector.shape_cast %627 : vector<1x8x8xbf16> to vector<8x8xbf16>
    %cst_569 = arith.constant dense<0.000000e+00> : vector<8x512xf32>
    %629 = tpu.matmul %628, %626, %cst_569 {dimension_numbers = #tpu.dot_dimension_numbers<[1], [0], [0], [1], [0, 0, 1, 1], [], []>} : vector<8x8xbf16>, vector<8x512xbf16>, vector<8x512xf32> -> vector<8x512xf32>
    %630 = arith.addf %624, %629 : vector<8x512xf32>
    %c0_570 = arith.constant 0 : index
    %c0_571 = arith.constant 0 : index
    %c240 = arith.constant 240 : index
    %631 = vector.load %arg2[%c0_570, %c0_571, %c240] : memref<1x8x896xbf16, #tpu.memory_space<vmem>>, vector<1x8x512xbf16>
    %632 = vector.shape_cast %631 : vector<1x8x512xbf16> to vector<8x512xbf16>
    %c105_572 = arith.constant 105 : index
    %c0_573 = arith.constant 0 : index
    %c0_574 = arith.constant 0 : index
    %633 = vector.load %arg3[%c105_572, %c0_573, %c0_574] : memref<121x8x8xbf16, #tpu.memory_space<vmem>>, vector<1x8x8xbf16>
    %634 = vector.shape_cast %633 : vector<1x8x8xbf16> to vector<8x8xbf16>
    %cst_575 = arith.constant dense<0.000000e+00> : vector<8x512xf32>
    %635 = tpu.matmul %634, %632, %cst_575 {dimension_numbers = #tpu.dot_dimension_numbers<[1], [0], [0], [1], [0, 0, 1, 1], [], []>} : vector<8x8xbf16>, vector<8x512xbf16>, vector<8x512xf32> -> vector<8x512xf32>
    %636 = arith.addf %630, %635 : vector<8x512xf32>
    %c0_576 = arith.constant 0 : index
    %c0_577 = arith.constant 0 : index
    %c241 = arith.constant 241 : index
    %637 = vector.load %arg2[%c0_576, %c0_577, %c241] : memref<1x8x896xbf16, #tpu.memory_space<vmem>>, vector<1x8x512xbf16>
    %638 = vector.shape_cast %637 : vector<1x8x512xbf16> to vector<8x512xbf16>
    %c106_578 = arith.constant 106 : index
    %c0_579 = arith.constant 0 : index
    %c0_580 = arith.constant 0 : index
    %639 = vector.load %arg3[%c106_578, %c0_579, %c0_580] : memref<121x8x8xbf16, #tpu.memory_space<vmem>>, vector<1x8x8xbf16>
    %640 = vector.shape_cast %639 : vector<1x8x8xbf16> to vector<8x8xbf16>
    %cst_581 = arith.constant dense<0.000000e+00> : vector<8x512xf32>
    %641 = tpu.matmul %640, %638, %cst_581 {dimension_numbers = #tpu.dot_dimension_numbers<[1], [0], [0], [1], [0, 0, 1, 1], [], []>} : vector<8x8xbf16>, vector<8x512xbf16>, vector<8x512xf32> -> vector<8x512xf32>
    %642 = arith.addf %636, %641 : vector<8x512xf32>
    %c0_582 = arith.constant 0 : index
    %c0_583 = arith.constant 0 : index
    %c242 = arith.constant 242 : index
    %643 = vector.load %arg2[%c0_582, %c0_583, %c242] : memref<1x8x896xbf16, #tpu.memory_space<vmem>>, vector<1x8x512xbf16>
    %644 = vector.shape_cast %643 : vector<1x8x512xbf16> to vector<8x512xbf16>
    %c107_584 = arith.constant 107 : index
    %c0_585 = arith.constant 0 : index
    %c0_586 = arith.constant 0 : index
    %645 = vector.load %arg3[%c107_584, %c0_585, %c0_586] : memref<121x8x8xbf16, #tpu.memory_space<vmem>>, vector<1x8x8xbf16>
    %646 = vector.shape_cast %645 : vector<1x8x8xbf16> to vector<8x8xbf16>
    %cst_587 = arith.constant dense<0.000000e+00> : vector<8x512xf32>
    %647 = tpu.matmul %646, %644, %cst_587 {dimension_numbers = #tpu.dot_dimension_numbers<[1], [0], [0], [1], [0, 0, 1, 1], [], []>} : vector<8x8xbf16>, vector<8x512xbf16>, vector<8x512xf32> -> vector<8x512xf32>
    %648 = arith.addf %642, %647 : vector<8x512xf32>
    %c0_588 = arith.constant 0 : index
    %c0_589 = arith.constant 0 : index
    %c243 = arith.constant 243 : index
    %649 = vector.load %arg2[%c0_588, %c0_589, %c243] : memref<1x8x896xbf16, #tpu.memory_space<vmem>>, vector<1x8x512xbf16>
    %650 = vector.shape_cast %649 : vector<1x8x512xbf16> to vector<8x512xbf16>
    %c108_590 = arith.constant 108 : index
    %c0_591 = arith.constant 0 : index
    %c0_592 = arith.constant 0 : index
    %651 = vector.load %arg3[%c108_590, %c0_591, %c0_592] : memref<121x8x8xbf16, #tpu.memory_space<vmem>>, vector<1x8x8xbf16>
    %652 = vector.shape_cast %651 : vector<1x8x8xbf16> to vector<8x8xbf16>
    %cst_593 = arith.constant dense<0.000000e+00> : vector<8x512xf32>
    %653 = tpu.matmul %652, %650, %cst_593 {dimension_numbers = #tpu.dot_dimension_numbers<[1], [0], [0], [1], [0, 0, 1, 1], [], []>} : vector<8x8xbf16>, vector<8x512xbf16>, vector<8x512xf32> -> vector<8x512xf32>
    %654 = arith.addf %648, %653 : vector<8x512xf32>
    %c0_594 = arith.constant 0 : index
    %c0_595 = arith.constant 0 : index
    %c244 = arith.constant 244 : index
    %655 = vector.load %arg2[%c0_594, %c0_595, %c244] : memref<1x8x896xbf16, #tpu.memory_space<vmem>>, vector<1x8x512xbf16>
    %656 = vector.shape_cast %655 : vector<1x8x512xbf16> to vector<8x512xbf16>
    %c109_596 = arith.constant 109 : index
    %c0_597 = arith.constant 0 : index
    %c0_598 = arith.constant 0 : index
    %657 = vector.load %arg3[%c109_596, %c0_597, %c0_598] : memref<121x8x8xbf16, #tpu.memory_space<vmem>>, vector<1x8x8xbf16>
    %658 = vector.shape_cast %657 : vector<1x8x8xbf16> to vector<8x8xbf16>
    %cst_599 = arith.constant dense<0.000000e+00> : vector<8x512xf32>
    %659 = tpu.matmul %658, %656, %cst_599 {dimension_numbers = #tpu.dot_dimension_numbers<[1], [0], [0], [1], [0, 0, 1, 1], [], []>} : vector<8x8xbf16>, vector<8x512xbf16>, vector<8x512xf32> -> vector<8x512xf32>
    %660 = arith.addf %654, %659 : vector<8x512xf32>
    %c0_600 = arith.constant 0 : index
    %c0_601 = arith.constant 0 : index
    %c260 = arith.constant 260 : index
    %661 = vector.load %arg2[%c0_600, %c0_601, %c260] : memref<1x8x896xbf16, #tpu.memory_space<vmem>>, vector<1x8x512xbf16>
    %662 = vector.shape_cast %661 : vector<1x8x512xbf16> to vector<8x512xbf16>
    %c110_602 = arith.constant 110 : index
    %c0_603 = arith.constant 0 : index
    %c0_604 = arith.constant 0 : index
    %663 = vector.load %arg3[%c110_602, %c0_603, %c0_604] : memref<121x8x8xbf16, #tpu.memory_space<vmem>>, vector<1x8x8xbf16>
    %664 = vector.shape_cast %663 : vector<1x8x8xbf16> to vector<8x8xbf16>
    %cst_605 = arith.constant dense<0.000000e+00> : vector<8x512xf32>
    %665 = tpu.matmul %664, %662, %cst_605 {dimension_numbers = #tpu.dot_dimension_numbers<[1], [0], [0], [1], [0, 0, 1, 1], [], []>} : vector<8x8xbf16>, vector<8x512xbf16>, vector<8x512xf32> -> vector<8x512xf32>
    %666 = arith.addf %660, %665 : vector<8x512xf32>
    %c0_606 = arith.constant 0 : index
    %c0_607 = arith.constant 0 : index
    %c261 = arith.constant 261 : index
    %667 = vector.load %arg2[%c0_606, %c0_607, %c261] : memref<1x8x896xbf16, #tpu.memory_space<vmem>>, vector<1x8x512xbf16>
    %668 = vector.shape_cast %667 : vector<1x8x512xbf16> to vector<8x512xbf16>
    %c111_608 = arith.constant 111 : index
    %c0_609 = arith.constant 0 : index
    %c0_610 = arith.constant 0 : index
    %669 = vector.load %arg3[%c111_608, %c0_609, %c0_610] : memref<121x8x8xbf16, #tpu.memory_space<vmem>>, vector<1x8x8xbf16>
    %670 = vector.shape_cast %669 : vector<1x8x8xbf16> to vector<8x8xbf16>
    %cst_611 = arith.constant dense<0.000000e+00> : vector<8x512xf32>
    %671 = tpu.matmul %670, %668, %cst_611 {dimension_numbers = #tpu.dot_dimension_numbers<[1], [0], [0], [1], [0, 0, 1, 1], [], []>} : vector<8x8xbf16>, vector<8x512xbf16>, vector<8x512xf32> -> vector<8x512xf32>
    %672 = arith.addf %666, %671 : vector<8x512xf32>
    %c0_612 = arith.constant 0 : index
    %c0_613 = arith.constant 0 : index
    %c262 = arith.constant 262 : index
    %673 = vector.load %arg2[%c0_612, %c0_613, %c262] : memref<1x8x896xbf16, #tpu.memory_space<vmem>>, vector<1x8x512xbf16>
    %674 = vector.shape_cast %673 : vector<1x8x512xbf16> to vector<8x512xbf16>
    %c112_614 = arith.constant 112 : index
    %c0_615 = arith.constant 0 : index
    %c0_616 = arith.constant 0 : index
    %675 = vector.load %arg3[%c112_614, %c0_615, %c0_616] : memref<121x8x8xbf16, #tpu.memory_space<vmem>>, vector<1x8x8xbf16>
    %676 = vector.shape_cast %675 : vector<1x8x8xbf16> to vector<8x8xbf16>
    %cst_617 = arith.constant dense<0.000000e+00> : vector<8x512xf32>
    %677 = tpu.matmul %676, %674, %cst_617 {dimension_numbers = #tpu.dot_dimension_numbers<[1], [0], [0], [1], [0, 0, 1, 1], [], []>} : vector<8x8xbf16>, vector<8x512xbf16>, vector<8x512xf32> -> vector<8x512xf32>
    %678 = arith.addf %672, %677 : vector<8x512xf32>
    %c0_618 = arith.constant 0 : index
    %c0_619 = arith.constant 0 : index
    %c263 = arith.constant 263 : index
    %679 = vector.load %arg2[%c0_618, %c0_619, %c263] : memref<1x8x896xbf16, #tpu.memory_space<vmem>>, vector<1x8x512xbf16>
    %680 = vector.shape_cast %679 : vector<1x8x512xbf16> to vector<8x512xbf16>
    %c113_620 = arith.constant 113 : index
    %c0_621 = arith.constant 0 : index
    %c0_622 = arith.constant 0 : index
    %681 = vector.load %arg3[%c113_620, %c0_621, %c0_622] : memref<121x8x8xbf16, #tpu.memory_space<vmem>>, vector<1x8x8xbf16>
    %682 = vector.shape_cast %681 : vector<1x8x8xbf16> to vector<8x8xbf16>
    %cst_623 = arith.constant dense<0.000000e+00> : vector<8x512xf32>
    %683 = tpu.matmul %682, %680, %cst_623 {dimension_numbers = #tpu.dot_dimension_numbers<[1], [0], [0], [1], [0, 0, 1, 1], [], []>} : vector<8x8xbf16>, vector<8x512xbf16>, vector<8x512xf32> -> vector<8x512xf32>
    %684 = arith.addf %678, %683 : vector<8x512xf32>
    %c0_624 = arith.constant 0 : index
    %c0_625 = arith.constant 0 : index
    %c264 = arith.constant 264 : index
    %685 = vector.load %arg2[%c0_624, %c0_625, %c264] : memref<1x8x896xbf16, #tpu.memory_space<vmem>>, vector<1x8x512xbf16>
    %686 = vector.shape_cast %685 : vector<1x8x512xbf16> to vector<8x512xbf16>
    %c114_626 = arith.constant 114 : index
    %c0_627 = arith.constant 0 : index
    %c0_628 = arith.constant 0 : index
    %687 = vector.load %arg3[%c114_626, %c0_627, %c0_628] : memref<121x8x8xbf16, #tpu.memory_space<vmem>>, vector<1x8x8xbf16>
    %688 = vector.shape_cast %687 : vector<1x8x8xbf16> to vector<8x8xbf16>
    %cst_629 = arith.constant dense<0.000000e+00> : vector<8x512xf32>
    %689 = tpu.matmul %688, %686, %cst_629 {dimension_numbers = #tpu.dot_dimension_numbers<[1], [0], [0], [1], [0, 0, 1, 1], [], []>} : vector<8x8xbf16>, vector<8x512xbf16>, vector<8x512xf32> -> vector<8x512xf32>
    %690 = arith.addf %684, %689 : vector<8x512xf32>
    %c0_630 = arith.constant 0 : index
    %c0_631 = arith.constant 0 : index
    %c265 = arith.constant 265 : index
    %691 = vector.load %arg2[%c0_630, %c0_631, %c265] : memref<1x8x896xbf16, #tpu.memory_space<vmem>>, vector<1x8x512xbf16>
    %692 = vector.shape_cast %691 : vector<1x8x512xbf16> to vector<8x512xbf16>
    %c115 = arith.constant 115 : index
    %c0_632 = arith.constant 0 : index
    %c0_633 = arith.constant 0 : index
    %693 = vector.load %arg3[%c115, %c0_632, %c0_633] : memref<121x8x8xbf16, #tpu.memory_space<vmem>>, vector<1x8x8xbf16>
    %694 = vector.shape_cast %693 : vector<1x8x8xbf16> to vector<8x8xbf16>
    %cst_634 = arith.constant dense<0.000000e+00> : vector<8x512xf32>
    %695 = tpu.matmul %694, %692, %cst_634 {dimension_numbers = #tpu.dot_dimension_numbers<[1], [0], [0], [1], [0, 0, 1, 1], [], []>} : vector<8x8xbf16>, vector<8x512xbf16>, vector<8x512xf32> -> vector<8x512xf32>
    %696 = arith.addf %690, %695 : vector<8x512xf32>
    %c0_635 = arith.constant 0 : index
    %c0_636 = arith.constant 0 : index
    %c266 = arith.constant 266 : index
    %697 = vector.load %arg2[%c0_635, %c0_636, %c266] : memref<1x8x896xbf16, #tpu.memory_space<vmem>>, vector<1x8x512xbf16>
    %698 = vector.shape_cast %697 : vector<1x8x512xbf16> to vector<8x512xbf16>
    %c116 = arith.constant 116 : index
    %c0_637 = arith.constant 0 : index
    %c0_638 = arith.constant 0 : index
    %699 = vector.load %arg3[%c116, %c0_637, %c0_638] : memref<121x8x8xbf16, #tpu.memory_space<vmem>>, vector<1x8x8xbf16>
    %700 = vector.shape_cast %699 : vector<1x8x8xbf16> to vector<8x8xbf16>
    %cst_639 = arith.constant dense<0.000000e+00> : vector<8x512xf32>
    %701 = tpu.matmul %700, %698, %cst_639 {dimension_numbers = #tpu.dot_dimension_numbers<[1], [0], [0], [1], [0, 0, 1, 1], [], []>} : vector<8x8xbf16>, vector<8x512xbf16>, vector<8x512xf32> -> vector<8x512xf32>
    %702 = arith.addf %696, %701 : vector<8x512xf32>
    %c0_640 = arith.constant 0 : index
    %c0_641 = arith.constant 0 : index
    %c267 = arith.constant 267 : index
    %703 = vector.load %arg2[%c0_640, %c0_641, %c267] : memref<1x8x896xbf16, #tpu.memory_space<vmem>>, vector<1x8x512xbf16>
    %704 = vector.shape_cast %703 : vector<1x8x512xbf16> to vector<8x512xbf16>
    %c117 = arith.constant 117 : index
    %c0_642 = arith.constant 0 : index
    %c0_643 = arith.constant 0 : index
    %705 = vector.load %arg3[%c117, %c0_642, %c0_643] : memref<121x8x8xbf16, #tpu.memory_space<vmem>>, vector<1x8x8xbf16>
    %706 = vector.shape_cast %705 : vector<1x8x8xbf16> to vector<8x8xbf16>
    %cst_644 = arith.constant dense<0.000000e+00> : vector<8x512xf32>
    %707 = tpu.matmul %706, %704, %cst_644 {dimension_numbers = #tpu.dot_dimension_numbers<[1], [0], [0], [1], [0, 0, 1, 1], [], []>} : vector<8x8xbf16>, vector<8x512xbf16>, vector<8x512xf32> -> vector<8x512xf32>
    %708 = arith.addf %702, %707 : vector<8x512xf32>
    %c0_645 = arith.constant 0 : index
    %c0_646 = arith.constant 0 : index
    %c268 = arith.constant 268 : index
    %709 = vector.load %arg2[%c0_645, %c0_646, %c268] : memref<1x8x896xbf16, #tpu.memory_space<vmem>>, vector<1x8x512xbf16>
    %710 = vector.shape_cast %709 : vector<1x8x512xbf16> to vector<8x512xbf16>
    %c118 = arith.constant 118 : index
    %c0_647 = arith.constant 0 : index
    %c0_648 = arith.constant 0 : index
    %711 = vector.load %arg3[%c118, %c0_647, %c0_648] : memref<121x8x8xbf16, #tpu.memory_space<vmem>>, vector<1x8x8xbf16>
    %712 = vector.shape_cast %711 : vector<1x8x8xbf16> to vector<8x8xbf16>
    %cst_649 = arith.constant dense<0.000000e+00> : vector<8x512xf32>
    %713 = tpu.matmul %712, %710, %cst_649 {dimension_numbers = #tpu.dot_dimension_numbers<[1], [0], [0], [1], [0, 0, 1, 1], [], []>} : vector<8x8xbf16>, vector<8x512xbf16>, vector<8x512xf32> -> vector<8x512xf32>
    %714 = arith.addf %708, %713 : vector<8x512xf32>
    %c0_650 = arith.constant 0 : index
    %c0_651 = arith.constant 0 : index
    %c269 = arith.constant 269 : index
    %715 = vector.load %arg2[%c0_650, %c0_651, %c269] : memref<1x8x896xbf16, #tpu.memory_space<vmem>>, vector<1x8x512xbf16>
    %716 = vector.shape_cast %715 : vector<1x8x512xbf16> to vector<8x512xbf16>
    %c119 = arith.constant 119 : index
    %c0_652 = arith.constant 0 : index
    %c0_653 = arith.constant 0 : index
    %717 = vector.load %arg3[%c119, %c0_652, %c0_653] : memref<121x8x8xbf16, #tpu.memory_space<vmem>>, vector<1x8x8xbf16>
    %718 = vector.shape_cast %717 : vector<1x8x8xbf16> to vector<8x8xbf16>
    %cst_654 = arith.constant dense<0.000000e+00> : vector<8x512xf32>
    %719 = tpu.matmul %718, %716, %cst_654 {dimension_numbers = #tpu.dot_dimension_numbers<[1], [0], [0], [1], [0, 0, 1, 1], [], []>} : vector<8x8xbf16>, vector<8x512xbf16>, vector<8x512xf32> -> vector<8x512xf32>
    %720 = arith.addf %714, %719 : vector<8x512xf32>
    %c0_655 = arith.constant 0 : index
    %c0_656 = arith.constant 0 : index
    %c270 = arith.constant 270 : index
    %721 = vector.load %arg2[%c0_655, %c0_656, %c270] : memref<1x8x896xbf16, #tpu.memory_space<vmem>>, vector<1x8x512xbf16>
    %722 = vector.shape_cast %721 : vector<1x8x512xbf16> to vector<8x512xbf16>
    %c120 = arith.constant 120 : index
    %c0_657 = arith.constant 0 : index
    %c0_658 = arith.constant 0 : index
    %723 = vector.load %arg3[%c120, %c0_657, %c0_658] : memref<121x8x8xbf16, #tpu.memory_space<vmem>>, vector<1x8x8xbf16>
    %724 = vector.shape_cast %723 : vector<1x8x8xbf16> to vector<8x8xbf16>
    %cst_659 = arith.constant dense<0.000000e+00> : vector<8x512xf32>
    %725 = tpu.matmul %724, %722, %cst_659 {dimension_numbers = #tpu.dot_dimension_numbers<[1], [0], [0], [1], [0, 0, 1, 1], [], []>} : vector<8x8xbf16>, vector<8x512xbf16>, vector<8x512xf32> -> vector<8x512xf32>
    %726 = arith.addf %720, %725 : vector<8x512xf32>
    %c0_660 = arith.constant 0 : index
    %c0_661 = arith.constant 0 : index
    %727 = vector.load %arg4[%c0_660, %c0_661] : memref<8x1xf32, #tpu.memory_space<vmem>>, vector<8x1xf32>
    %728 = vector.broadcast %727 : vector<8x1xf32> to vector<8x512xf32>
    %729 = arith.addf %726, %728 : vector<8x512xf32>
    %c0_662 = arith.constant 0 : index
    %c0_663 = arith.constant 0 : index
    %c0_664 = arith.constant 0 : index
    %730 = vector.load %arg5[%c0_662, %c0_663, %c0_664] : memref<1x8x512xf32, #tpu.memory_space<vmem>>, vector<1x8x512xf32>
    %731 = vector.shape_cast %730 : vector<1x8x512xf32> to vector<8x512xf32>
    %732 = vector.shape_cast %729 : vector<8x512xf32> to vector<1x8x512xf32>
    tpu.vector_store %arg5[%c0_662, %c0_663, %c0_664], %732 {strides = array<i32>} : memref<1x8x512xf32, #tpu.memory_space<vmem>>, vector<1x8x512xf32>,
    return
  }
  func.func @transform_0(%arg0: i32, %arg1: i32) -> (i32, i32, i32) {
    %c0_i32 = arith.constant 0 : i32
    %c0_i32_0 = arith.constant 0 : i32
    %c0_i32_1 = arith.constant 0 : i32
    return %arg0, %c0_i32, %c0_i32_0 : i32, i32, i32
  }
  func.func @transform_1(%arg0: i32, %arg1: i32) -> (i32, i32, i32) {
    %c0_i32 = arith.constant 0 : i32
    %c0_i32_0 = arith.constant 0 : i32
    %c0_i32_1 = arith.constant 0 : i32
    %c0_i32_2 = arith.constant 0 : i32
    return %c0_i32, %c0_i32_0, %c0_i32_1 : i32, i32, i32
  }
  func.func @transform_2(%arg0: i32, %arg1: i32) -> (i32, i32) {
    %c0_i32 = arith.constant 0 : i32
    %c0_i32_0 = arith.constant 0 : i32
    %c0_i32_1 = arith.constant 0 : i32
    return %c0_i32, %c0_i32_0 : i32, i32
  }
  func.func @transform_3(%arg0: i32, %arg1: i32) -> (i32, i32, i32) {
    %c0_i32 = arith.constant 0 : i32
    %c0_i32_0 = arith.constant 0 : i32
    return %arg0, %c0_i32, %arg1 : i32, i32, i32
  }
}

</mosaic_0001>

<bundles_post_ra>
// kernel: tpu_custom_call.1
= control target key start
LH: loop header
LB: loop body
LE: loop exit
PB: predicated region body
PF: predicated region fallthrough
CT: control target
= control target key end

     0   :  { %8 = vsyncpa [#allocation3], 0  ;;  %s18631_s0 = inlined_call_operand.vmem [shape: bf16[2,8,896], index: 0, kind: input, shape index: {}]   ;;  %s18632_s1 = inlined_call_operand.vmem [shape: bf16[121,8,8], index: 1, kind: input, shape index: {}]   ;;  %s18633_s2 = inlined_call_operand.vmem [shape: f32[8,1], index: 2, kind: input, shape index: {}]   ;;  %s18634_s3 = inlined_call_operand.hbm [shape: f32[2,8,512], index: 3, kind: output, shape index: {}]  }
   0x1   :  { %10 = vsyncpa [#allocation3 + $0x1], 0  ;;  %s15480_s12 = smov 0   ;;  %s15482_s13 = smov 0  }
   0x2   :  { %s15484_s14 = smov 0   ;;  %s15486_s15 = smov 0  }
   0x3   :  { %s15488_s16 = smov 0   ;;  %s15490_s17 = smov 0  }
   0x4 LB: > { %s14536_s18 = sadd.s32 4294967295, %s15390_s17   ;;  %s14537_s19 = sadd.s32 4294967294, %s15390_s17   ;;  %s15390_s17 = sphi %s15490_s17, %s16_s17   ;;  %s15386_s16 = sphi %s15488_s16, %s18879_s16   ;;  %s15382_s15 = sphi %s15486_s15, %s18878_s15   ;;  %s15378_s14 = sphi %s15484_s14, %s18877_s14   ;;  %s15374_s13 = sphi %s15482_s13, %s18876_s13   ;;  %s15370_s12 = sphi %s15480_s12, %s18875_s12  }
   0x5   : > { %s28_s20 = sadd.s32 1, %s15386_s16  ;;  %s105_s21 = sadd.s32 1, %s15378_s14 }
   0x6   : > { %p30_p0 = scmp.ge.s32.totalorder %s28_s20, 2  ;;  %p115_p1 = scmp.ne.s32.totalorder %s15378_s14, %s15374_s13 }
   0x7   : > { %p116_p2 = scmp.eq.s32.totalorder %s14536_s18, 1  ;;  %p121_p3 = scmp.ne.s32.totalorder %s15374_s13, %s15370_s12 }
   0x8   : > { %s18881_s20 = smov (%p30_p0, %s28_s20), 0  ;;  %p122_p5 = scmp.eq.s32.totalorder %s14537_s19, 1 }
   0x9   : > { %p15520_p4 = por %p116_p2, %p115_p1  ;;  %s100_s23 = ssub.s32 %s15386_s16, %s18881_s20 }
   0xa   : > { %p14540_p6 = scmp.ge.s32.totalorder %s15390_s17, 1  ;;  %p103_p7 = scmp.eq.s32.totalorder %s100_s23, 0 }
   0xb   : > { %p15527_p8 = por %p122_p5, %p121_p3  ;;  %p154_p9 = scmp.lt.s32.totalorder %s15390_s17, 3 }
   0xc   : > { %s15533_s25 = scalar_select %p103_p7, %s15378_s14, %s105_s21  }
   0xd   : > { %p155_p10 = pnand %p14540_p6, %p154_p9 }
   0xe   : > { %p178_p11 = scmp.lt.s32.totalorder (!%p155_p10), %s15382_s15, 1  ;;  %v15392_v0 = vmov (!%p155_p10), 0   ;;  %s15393_s4 = smov (!%p155_p10), 127   ;;  %vm214_vm0 = vcmask (!%p155_p10), 1039360   ;;  %vm223_vm1 = vcmask (!%p155_p10), 1043456   ;;  %vm219_vm2 = vcmask (!%p155_p10), 64512  }
   0xf   : > { %158 = sbr.rel (%p155_p10) target bundleno = 1577 (0x629), region = 32  ;;  %268 = vmatprep.mubr.bf16.mxu0 (!%p155_p10), %v15392_v0  ;;  %309 = vmatprep.mubr.bf16.mxu1 (!%p155_p10), %v15392_v0  ;;  %s15394_s5 = smov (!%p155_p10), 126   ;;  %v14543_v17 = vld [vmem:[%s18632_s1 + $0x4] sm:$0xf] (!%p155_p10)  ;;  %vm427_vm3 = vcmask (!%p155_p10), 1031168   ;;  %vm545_vm4 = vcmask (!%p155_p10), 1022976  }
  0x10   : > { %15291 = vset.pattern.permute.xlu0 (!%p155_p10), %v15392_v0  ;;  %s15395_s6 = smov (!%p155_p10), 125   ;;  %s15396_s7 = smov (!%p155_p10), 124   ;;  %v187_v29 = vld [vmem:[%s18632_s1] sm:$0xf] (!%p155_p10)  ;;  %v14557_v39 = vld [vmem:[%s18632_s1 + $0x8] sm:$0xf] (!%p155_p10) }
  0x11   : > { %s15397_s8 = smov (!%p155_p10), 123   ;;  %s15398_s9 = smov (!%p155_p10), 122   ;;  %vm663_vm5 = vcmask (!%p155_p10), 1014784   ;;  %v14562_v49 = vld [vmem:[%s18632_s1 + $0xc] sm:$0xf] (!%p155_p10)  ;;  %vm781_vm6 = vcmask (!%p155_p10), 1006592  }
  0x12   : > { %s15399_s10 = smov (!%p155_p10), 121   ;;  %s15400_s11 = smov (!%p155_p10), 120   ;;  %v14567_v60 = vld [vmem:[%s18632_s1 + $0x10] sm:$0xf] (!%p155_p10)  ;;  %vm899_vm7 = vcmask (!%p155_p10), 998400   ;;  %vm1017_vm8 = vcmask (!%p155_p10), 990208  }
  0x13   : > { %s15401_s18 = smov (!%p155_p10), 119   ;;  %s15402_s19 = smov (!%p155_p10), 118   ;;  %vm1135_vm9 = vcmask (!%p155_p10), 982016   ;;  %vm1253_vm10 = vcmask (!%p155_p10), 973824   ;;  %vm1371_vm11 = vcmask (!%p155_p10), 965632   ;;  %vm1489_vm12 = vcmask (!%p155_p10), 834560  }
  0x14   : > { %s15403_s21 = smov (!%p155_p10), 102   ;;  %s15404_s23 = smov (!%p155_p10), 101   ;;  %vm1607_vm13 = vcmask (!%p155_p10), 826368   ;;  %vm1725_vm14 = vcmask (!%p155_p10), 818176   ;;  %vm1843_vm15 = vcmask (!%p155_p10), 809984  }
  0x15   : > { %s15406_s29 = smov (!%p155_p10), 99   ;;  %s15407_s28 = smov (!%p155_p10), 98  }
  0x16   : > { %s179_s26 = scalar_select %p178_p11, %s15382_s15, 1 }
  0x18   : > { %s15168_s27 = smul.u32 28, %s179_s26  ;;  %s15405_s26 = smov 100  }
  0x1a   : > { %s15542_s30 = scalar_lea.vmem %s18631_s0, %s15168_s27  ;;  %s18637_s27 = smov 95  }
  0x1b   : > { %v186_v1 = vld [vmem:[%s15542_s30 + $0x8] sm:$0xff]  ;;  %v185_v2 = vld [vmem:[%s15542_s30] sm:$0xff]  ;;  %v15560_v7 = vld [vmem:[%s15542_s30 + $0x10] ss:$0 sps:$4 sm:$0xff]  }
  0x1c   : > { %v15547_v3 = vcombine.low %v186_v1, %v186_v1  ;;  %v15549_v4 = vcombine.low %v185_v2, %v185_v2  ;;  %v15553_v5 = vcombine.high %v186_v1, %v186_v1  ;;  %v15555_v6 = vcombine.high %v185_v2, %v185_v2 }
  0x1e   : > { %208 = vrot.lane.b32.xlu1 %v15547_v3, %s15393_s4  ;;  %204 = vrot.lane.b32.xlu0 %v15549_v4, %s15393_s4  ;;  %v322_v20 = vsel %vm223_vm1, %v15549_v4, 0  ;;  %v328_v25 = vsel %vm223_vm1, %v15547_v3, 0 }
  0x22   : > { %210 = vrot.lane.b32.xlu1 %v15553_v5, %s15393_s4  ;;  %206 = vrot.lane.b32.xlu0 %v15555_v6, %s15393_s4 }
  0x26   : > { %417 = vrot.lane.b32.xlu1 %v15549_v4, %s15394_s5  ;;  %212 = vrot.lane.b32.xlu0 %v15560_v7, %s15393_s4  ;;  %s18671_s4 = smov 47  }
  0x2a   : > { %421 = vrot.lane.b32.xlu1 %v15547_v3, %s15394_s5  ;;  %419 = vrot.lane.b32.xlu0 %v15555_v6, %s15394_s5 }
  0x2e   : > { %425 = vrot.lane.b32.xlu1 %v15560_v7, %s15394_s5  ;;  %423 = vrot.lane.b32.xlu0 %v15553_v5, %s15394_s5 }
  0x32   : > { %537 = vrot.lane.b32.xlu1 %v15555_v6, %s15395_s6  ;;  %535 = vrot.lane.b32.xlu0 %v15549_v4, %s15395_s6 }
  0x36   : > { %541 = vrot.lane.b32.xlu1 %v15553_v5, %s15395_s6  ;;  %539 = vrot.lane.b32.xlu0 %v15547_v3, %s15395_s6 }
  0x3a   : > { %653 = vrot.lane.b32.xlu1 %v15549_v4, %s15396_s7  ;;  %543 = vrot.lane.b32.xlu0 %v15560_v7, %s15395_s6 }
  0x3e   : > { %657 = vrot.lane.b32.xlu1 %v15547_v3, %s15396_s7  ;;  %655 = vrot.lane.b32.xlu0 %v15555_v6, %s15396_s7 }
  0x42   : > { %661 = vrot.lane.b32.xlu1 %v15560_v7, %s15396_s7  ;;  %659 = vrot.lane.b32.xlu0 %v15553_v5, %s15396_s7 }
  0x46   : > { %773 = vrot.lane.b32.xlu1 %v15555_v6, %s15397_s8  ;;  %771 = vrot.lane.b32.xlu0 %v15549_v4, %s15397_s8 }
  0x4a   : > { %777 = vrot.lane.b32.xlu1 %v15553_v5, %s15397_s8  ;;  %775 = vrot.lane.b32.xlu0 %v15547_v3, %s15397_s8 }
  0x4e   : > { %889 = vrot.lane.b32.xlu1 %v15549_v4, %s15398_s9  ;;  %779 = vrot.lane.b32.xlu0 %v15560_v7, %s15397_s8 }
  0x52   : > { %893 = vrot.lane.b32.xlu1 %v15547_v3, %s15398_s9  ;;  %891 = vrot.lane.b32.xlu0 %v15555_v6, %s15398_s9 }
  0x56   : > { %897 = vrot.lane.b32.xlu1 %v15560_v7, %s15398_s9  ;;  %895 = vrot.lane.b32.xlu0 %v15553_v5, %s15398_s9 }
  0x5a   : > { %1009 = vrot.lane.b32.xlu1 %v15555_v6, %s15399_s10  ;;  %1007 = vrot.lane.b32.xlu0 %v15549_v4, %s15399_s10 }
  0x5e   : > { %1013 = vrot.lane.b32.xlu1 %v15553_v5, %s15399_s10  ;;  %1011 = vrot.lane.b32.xlu0 %v15547_v3, %s15399_s10 }
  0x62   : > { %1125 = vrot.lane.b32.xlu1 %v15549_v4, %s15400_s11  ;;  %1015 = vrot.lane.b32.xlu0 %v15560_v7, %s15399_s10 }
  0x66   : > { %1129 = vrot.lane.b32.xlu1 %v15547_v3, %s15400_s11  ;;  %1127 = vrot.lane.b32.xlu0 %v15555_v6, %s15400_s11 }
  0x6a   : > { %1133 = vrot.lane.b32.xlu1 %v15560_v7, %s15400_s11  ;;  %1131 = vrot.lane.b32.xlu0 %v15553_v5, %s15400_s11 }
  0x6e   : > { %1245 = vrot.lane.b32.xlu1 %v15555_v6, %s15401_s18  ;;  %1243 = vrot.lane.b32.xlu0 %v15549_v4, %s15401_s18 }
  0x72   : > { %1249 = vrot.lane.b32.xlu1 %v15553_v5, %s15401_s18  ;;  %1247 = vrot.lane.b32.xlu0 %v15547_v3, %s15401_s18 }
  0x76   : > { %1361 = vrot.lane.b32.xlu1 %v15549_v4, %s15402_s19  ;;  %1251 = vrot.lane.b32.xlu0 %v15560_v7, %s15401_s18 }
  0x7a   : > { %1365 = vrot.lane.b32.xlu1 %v15547_v3, %s15402_s19  ;;  %1363 = vrot.lane.b32.xlu0 %v15555_v6, %s15402_s19 }
  0x7e   : > { %1369 = vrot.lane.b32.xlu1 %v15560_v7, %s15402_s19  ;;  %1367 = vrot.lane.b32.xlu0 %v15553_v5, %s15402_s19 }
  0x82   : > { %1481 = vrot.lane.b32.xlu1 %v15555_v6, %s15403_s21  ;;  %1479 = vrot.lane.b32.xlu0 %v15549_v4, %s15403_s21 }
  0x86   : > { %1485 = vrot.lane.b32.xlu1 %v15553_v5, %s15403_s21  ;;  %1483 = vrot.lane.b32.xlu0 %v15547_v3, %s15403_s21 }
  0x8a   : > { %1597 = vrot.lane.b32.xlu1 %v15549_v4, %s15404_s23  ;;  %1487 = vrot.lane.b32.xlu0 %v15560_v7, %s15403_s21  ;;  %s18639_s21 = smov 96  }
  0x8e   : > { %1601 = vrot.lane.b32.xlu1 %v15547_v3, %s15404_s23  ;;  %1599 = vrot.lane.b32.xlu0 %v15555_v6, %s15404_s23 }
  0x90   : > { %v209_v8 = vpop.permute.xlu1 %208  ;;  %v205_v9 = vpop.permute.xlu0 %204 }
  0x92   : > { %1605 = vrot.lane.b32.xlu1 %v15560_v7, %s15404_s23  ;;  %1603 = vrot.lane.b32.xlu0 %v15553_v5, %s15404_s23  ;;  %s18635_s23 = smov 97  }
  0x94   : > { %v211_v10 = vpop.permute.xlu1 %210  ;;  %v207_v11 = vpop.permute.xlu0 %206 }
  0x95   : > { %v216_v12 = vsel %vm214_vm0, %v207_v11, %v209_v8  ;;  %v215_v13 = vsel %vm214_vm0, %v205_v9, %v207_v11  ;;  %v217_v18 = vsel %vm214_vm0, %v209_v8, %v211_v10  ;;  %v14572_v11 = vld [vmem:[%s18632_s1 + $0x14] sm:$0xf] }
  0x96   : > { %1717 = vrot.lane.b32.xlu1 %v15555_v6, %s15405_s26  ;;  %1715 = vrot.lane.b32.xlu0 %v15549_v4, %s15405_s26  ;;  %v225_v14 = vsel %vm223_vm1, %v215_v13, 0  ;;  %v231_v21 = vsel %vm223_vm1, %v217_v18, 0 }
  0x97   : > { %14549 = vmatprep.subr.msk.bf16.mxu0 %vm223_vm1, %v216_v12 }
  0x98   : > { %237 = vmatpush1.bf16.msra.mxu0 %v225_v14  ;;  %v418_v15 = vpop.permute.xlu1 %417  ;;  %v213_v16 = vpop.permute.xlu0 %212 }
  0x99   : > { %v218_v19 = vsel %vm214_vm0, %v211_v10, %v213_v16  ;;  %14553 = vmatprep.subr.msk.bf16.mxu0 %vm223_vm1, %v15555_v6  ;;  %vm1961_vm0 = vcmask 801792  }
  0x9a   : > { %1721 = vrot.lane.b32.xlu1 %v15553_v5, %s15405_s26  ;;  %1719 = vrot.lane.b32.xlu0 %v15547_v3, %s15405_s26 }
  0x9b   : > { %14550 = vmatmul.mubr.msk.bf16.vlgmr.msra.gmra.mrb[0].mxu0 %vm219_vm2, %v14543_v17  ;;  %14551 = vmatprep.subr.msk.bf16.mxu1 %vm223_vm1, %v218_v19 }
  0x9c   : > { %278 = vmatpush1.bf16.msra.mxu1 %v231_v21  ;;  %v422_v22 = vpop.permute.xlu1 %421  ;;  %v420_v23 = vpop.permute.xlu0 %419  ;;  %334 = vmatpush1.bf16.msra.mxu0 %v322_v20  ;;  %v14577_v21 = vld [vmem:[%s18632_s1 + $0x18] sm:$0xf] }
  0x9d   : > { %v429_v24 = vsel %vm427_vm3, %v420_v23, %v422_v22  ;;  %14555 = vmatprep.subr.msk.bf16.mxu1 %vm223_vm1, %v15553_v5  ;;  %365 = vmatprep.mubr.bf16.mxu0 %v15392_v0  ;;  %v428_v26 = vsel %vm427_vm3, %v418_v15, %v420_v23 }
  0x9e   : > { %1833 = vrot.lane.b32.xlu1 %v15549_v4, %s15406_s29  ;;  %1723 = vrot.lane.b32.xlu0 %v15560_v7, %s15405_s26  ;;  %v436_v31 = vsel %vm223_vm1, %v428_v26, 0 }
  0x9f   : > { %14552 = vmatmul.mubr.msk.bf16.vlgmr.msra.gmra.mrb[0].mxu1 %vm219_vm2, %v14543_v17  ;;  %14558 = vmatprep.subr.msk.bf16.mxu0 %vm223_vm1, %v429_v24 }
  0xa0   : > { %v426_v27 = vpop.permute.xlu1 %425  ;;  %v424_v28 = vpop.permute.xlu0 %423  ;;  %375 = vmatpush1.bf16.msra.mxu1 %v328_v25  ;;  %406 = vmatprep.mubr.bf16.mxu1 %v15392_v0 }
  0xa1   : > { %v431_v30 = vsel %vm427_vm3, %v424_v28, %v426_v27  ;;  %v430_v32 = vsel %vm427_vm3, %v422_v22, %v424_v28 }
  0xa2   : > { %1837 = vrot.lane.b32.xlu1 %v15547_v3, %s15406_s29  ;;  %1835 = vrot.lane.b32.xlu0 %v15555_v6, %s15406_s29  ;;  %v442_v35 = vsel %vm223_vm1, %v430_v32, 0 }
  0xa3   : > { %14554 = vmatmul.mubr.msk.bf16.vlgmr.msra.gmra.mrb[4].mxu0 %vm219_vm2, %v187_v29  ;;  %14560 = vmatprep.subr.msk.bf16.mxu1 %vm223_vm1, %v431_v30 }
  0xa4   : > { %448 = vmatpush1.bf16.msra.mxu0 %v436_v31  ;;  %v538_v33 = vpop.permute.xlu1 %537  ;;  %v536_v34 = vpop.permute.xlu0 %535  ;;  %479 = vmatprep.mubr.bf16.mxu0 %v15392_v0 }
  0xa5   : > { %v546_v36 = vsel %vm545_vm4, %v536_v34, %v538_v33 }
  0xa6   : > { %1841 = vrot.lane.b32.xlu1 %v15560_v7, %s15406_s29  ;;  %1839 = vrot.lane.b32.xlu0 %v15553_v5, %s15406_s29  ;;  %v554_v41 = vsel %vm223_vm1, %v546_v36, 0 }
  0xa7   : > { %14556 = vmatmul.mubr.msk.bf16.vlgmr.msra.gmra.mrb[4].mxu1 %vm219_vm2, %v187_v29 }
  0xa8   : > { %489 = vmatpush1.bf16.msra.mxu1 %v442_v35  ;;  %v542_v37 = vpop.permute.xlu1 %541  ;;  %v540_v38 = vpop.permute.xlu0 %539  ;;  %520 = vmatprep.mubr.bf16.mxu1 %v15392_v0  ;;  %v14582_v35 = vld [vmem:[%s18632_s1 + $0x1c] sm:$0xf] }
  0xa9   : > { %v547_v40 = vsel %vm545_vm4, %v538_v33, %v540_v38  ;;  %v548_v42 = vsel %vm545_vm4, %v540_v38, %v542_v37 }
  0xaa   : > { %1953 = vrot.lane.b32.xlu1 %v15555_v6, %s15407_s28  ;;  %1951 = vrot.lane.b32.xlu0 %v15549_v4, %s15407_s28  ;;  %v560_v46 = vsel %vm223_vm1, %v548_v42, 0 }
  0xab   : > { %14563 = vmatprep.subr.msk.bf16.mxu0 %vm223_vm1, %v547_v40  ;;  %14559 = vmatmul.mubr.msk.bf16.vlgmr.msra.gmra.mrb[8].mxu0 %vm219_vm2, %v14557_v39 }
  0xac   : > { %566 = vmatpush1.bf16.msra.mxu0 %v554_v41  ;;  %v654_v43 = vpop.permute.xlu1 %653  ;;  %v544_v44 = vpop.permute.xlu0 %543  ;;  %597 = vmatprep.mubr.bf16.mxu0 %v15392_v0 }
  0xad   : > { %v549_v45 = vsel %vm545_vm4, %v542_v37, %v544_v44 }
  0xae   : > { %1957 = vrot.lane.b32.xlu1 %v15553_v5, %s15407_s28  ;;  %1955 = vrot.lane.b32.xlu0 %v15547_v3, %s15407_s28 }
  0xaf   : > { %14565 = vmatprep.subr.msk.bf16.mxu1 %vm223_vm1, %v549_v45  ;;  %14561 = vmatmul.mubr.msk.bf16.vlgmr.msra.gmra.mrb[8].mxu1 %vm219_vm2, %v14557_v39  ;;  %v14587_v45 = vld [vmem:[%s18632_s1 + $0x20] sm:$0xf] }
  0xb0   : > { %607 = vmatpush1.bf16.msra.mxu1 %v560_v46  ;;  %v658_v47 = vpop.permute.xlu1 %657  ;;  %v656_v48 = vpop.permute.xlu0 %655  ;;  %638 = vmatprep.mubr.bf16.mxu1 %v15392_v0 }
  0xb1   : > { %v664_v50 = vsel %vm663_vm5, %v654_v43, %v656_v48  ;;  %v665_v51 = vsel %vm663_vm5, %v656_v48, %v658_v47 }
  0xb2   : > { %2069 = vrot.lane.b32.xlu1 %v15549_v4, %s18635_s23  ;;  %1959 = vrot.lane.b32.xlu0 %v15560_v7, %s15407_s28  ;;  %v672_v52 = vsel %vm223_vm1, %v664_v50, 0 }
  0xb3   : > { %14568 = vmatprep.subr.msk.bf16.mxu0 %vm223_vm1, %v665_v51  ;;  %14564 = vmatmul.mubr.msk.bf16.vlgmr.msra.gmra.mrb[12].mxu0 %vm219_vm2, %v14562_v49 }
  0xb4   : > { %684 = vmatpush1.bf16.msra.mxu0 %v672_v52  ;;  %v662_v53 = vpop.permute.xlu1 %661  ;;  %v660_v54 = vpop.permute.xlu0 %659  ;;  %715 = vmatprep.mubr.bf16.mxu0 %v15392_v0 }
  0xb5   : > { %v666_v55 = vsel %vm663_vm5, %v658_v47, %v660_v54  ;;  %v667_v56 = vsel %vm663_vm5, %v660_v54, %v662_v53 }
  0xb6   : > { %2073 = vrot.lane.b32.xlu1 %v15547_v3, %s18635_s23  ;;  %2071 = vrot.lane.b32.xlu0 %v15555_v6, %s18635_s23  ;;  %v678_v57 = vsel %vm223_vm1, %v666_v55, 0 }
  0xb7   : > { %14570 = vmatprep.subr.msk.bf16.mxu1 %vm223_vm1, %v667_v56  ;;  %14566 = vmatmul.mubr.msk.bf16.vlgmr.msra.gmra.mrb[12].mxu1 %vm219_vm2, %v14562_v49 }
  0xb8   : > { %725 = vmatpush1.bf16.msra.mxu1 %v678_v57  ;;  %v774_v58 = vpop.permute.xlu1 %773  ;;  %v772_v59 = vpop.permute.xlu0 %771  ;;  %756 = vmatprep.mubr.bf16.mxu1 %v15392_v0 }
  0xb9   : > { %v782_v61 = vsel %vm781_vm6, %v772_v59, %v774_v58  ;;  %v14592_v59 = vld [vmem:[%s18632_s1 + $0x24] sm:$0xf] }
  0xba   : > { %2077 = vrot.lane.b32.xlu1 %v15560_v7, %s18635_s23  ;;  %2075 = vrot.lane.b32.xlu0 %v15553_v5, %s18635_s23  ;;  %v790_v2 = vsel %vm223_vm1, %v782_v61, 0  ;;  %s18643_s23 = smov 94  }
  0xbb   : > { %14569 = vmatmul.mubr.msk.bf16.vlgmr.msra.gmra.mrb[16].mxu0 %vm219_vm2, %v14567_v60 }
  0xbc   : > { %v778_v62 = vpop.permute.xlu1 %777  ;;  %v776_v63 = vpop.permute.xlu0 %775  ;;  %833 = vmatprep.mubr.bf16.mxu0 %v15392_v0 }
  0xbd   : > { %v783_v1 = vsel %vm781_vm6, %v774_v58, %v776_v63  ;;  %v784_v8 = vsel %vm781_vm6, %v776_v63, %v778_v62 }
  0xbe   : > { %2189 = vrot.lane.b32.xlu1 %v15555_v6, %s18639_s21  ;;  %2187 = vrot.lane.b32.xlu0 %v15549_v4, %s18639_s21  ;;  %v796_v13 = vsel %vm223_vm1, %v784_v8, 0 }
  0xbf   : > { %14573 = vmatprep.subr.msk.bf16.mxu0 %vm223_vm1, %v783_v1  ;;  %14571 = vmatmul.mubr.msk.bf16.vlgmr.msra.gmra.mrb[16].mxu1 %vm219_vm2, %v14567_v60 }
  0xc0   : > { %802 = vmatpush1.bf16.msra.mxu0 %v790_v2  ;;  %v890_v9 = vpop.permute.xlu1 %889  ;;  %v780_v10 = vpop.permute.xlu0 %779  ;;  %874 = vmatprep.mubr.bf16.mxu1 %v15392_v0 }
  0xc1   : > { %v785_v12 = vsel %vm781_vm6, %v778_v62, %v780_v10 }
  0xc2   : > { %2193 = vrot.lane.b32.xlu1 %v15553_v5, %s18639_s21  ;;  %2191 = vrot.lane.b32.xlu0 %v15547_v3, %s18639_s21 }
  0xc3   : > { %14575 = vmatprep.subr.msk.bf16.mxu1 %vm223_vm1, %v785_v12  ;;  %14574 = vmatmul.mubr.msk.bf16.vlgmr.msra.gmra.mrb[20].mxu0 %vm219_vm2, %v14572_v11 }
  0xc4   : > { %843 = vmatpush1.bf16.msra.mxu1 %v796_v13  ;;  %v894_v14 = vpop.permute.xlu1 %893  ;;  %v892_v15 = vpop.permute.xlu0 %891  ;;  %951 = vmatprep.mubr.bf16.mxu0 %v15392_v0 }
  0xc5   : > { %v900_v16 = vsel %vm899_vm7, %v890_v9, %v892_v15  ;;  %v901_v17 = vsel %vm899_vm7, %v892_v15, %v894_v14 }
  0xc6   : > { %2305 = vrot.lane.b32.xlu1 %v15549_v4, %s18637_s27  ;;  %2195 = vrot.lane.b32.xlu0 %v15560_v7, %s18639_s21  ;;  %v908_v18 = vsel %vm223_vm1, %v900_v16, 0  ;;  %s18645_s21 = smov 92  }
  0xc7   : > { %14578 = vmatprep.subr.msk.bf16.mxu0 %vm223_vm1, %v901_v17  ;;  %14576 = vmatmul.mubr.msk.bf16.vlgmr.msra.gmra.mrb[20].mxu1 %vm219_vm2, %v14572_v11  ;;  %v14597_v11 = vld [vmem:[%s18632_s1 + $0x28] sm:$0xf] }
  0xc8   : > { %920 = vmatpush1.bf16.msra.mxu0 %v908_v18  ;;  %v898_v19 = vpop.permute.xlu1 %897  ;;  %v896_v20 = vpop.permute.xlu0 %895  ;;  %992 = vmatprep.mubr.bf16.mxu1 %v15392_v0 }
  0xc9   : > { %v902_v22 = vsel %vm899_vm7, %v894_v14, %v896_v20  ;;  %v903_v23 = vsel %vm899_vm7, %v896_v20, %v898_v19 }
  0xca   : > { %2309 = vrot.lane.b32.xlu1 %v15547_v3, %s18637_s27  ;;  %2307 = vrot.lane.b32.xlu0 %v15555_v6, %s18637_s27  ;;  %v914_v24 = vsel %vm223_vm1, %v902_v22, 0 }
  0xcb   : > { %14580 = vmatprep.subr.msk.bf16.mxu1 %vm223_vm1, %v903_v23  ;;  %14579 = vmatmul.mubr.msk.bf16.vlgmr.msra.gmra.mrb[24].mxu0 %vm219_vm2, %v14577_v21 }
  0xcc   : > { %961 = vmatpush1.bf16.msra.mxu1 %v914_v24  ;;  %v1010_v25 = vpop.permute.xlu1 %1009  ;;  %v1008_v26 = vpop.permute.xlu0 %1007  ;;  %1069 = vmatprep.mubr.bf16.mxu0 %v15392_v0 }
  0xcd   : > { %v1018_v27 = vsel %vm1017_vm8, %v1008_v26, %v1010_v25 }
  0xce   : > { %2313 = vrot.lane.b32.xlu1 %v15560_v7, %s18637_s27  ;;  %2311 = vrot.lane.b32.xlu0 %v15553_v5, %s18637_s27  ;;  %v1026_v31 = vsel %vm223_vm1, %v1018_v27, 0  ;;  %s18641_s27 = smov 93  }
  0xcf   : > { %14581 = vmatmul.mubr.msk.bf16.vlgmr.msra.gmra.mrb[24].mxu1 %vm219_vm2, %v14577_v21 }
  0xd0   : > { %v1014_v28 = vpop.permute.xlu1 %1013  ;;  %v1012_v29 = vpop.permute.xlu0 %1011  ;;  %1110 = vmatprep.mubr.bf16.mxu1 %v15392_v0 }
  0xd1   : > { %v1019_v30 = vsel %vm1017_vm8, %v1010_v25, %v1012_v29  ;;  %v1020_v32 = vsel %vm1017_vm8, %v1012_v29, %v1014_v28  ;;  %v14602_v25 = vld [vmem:[%s18632_s1 + $0x2c] sm:$0xf] }
  0xd2   : > { %2425 = vrot.lane.b32.xlu1 %v15555_v6, %s18643_s23  ;;  %2423 = vrot.lane.b32.xlu0 %v15549_v4, %s18643_s23  ;;  %v1032_v37 = vsel %vm223_vm1, %v1020_v32, 0 }
  0xd3   : > { %14583 = vmatprep.subr.msk.bf16.mxu0 %vm223_vm1, %v1019_v30 }
  0xd4   : > { %1038 = vmatpush1.bf16.msra.mxu0 %v1026_v31  ;;  %v1126_v33 = vpop.permute.xlu1 %1125  ;;  %v1016_v34 = vpop.permute.xlu0 %1015 }
  0xd5   : > { %v1021_v36 = vsel %vm1017_vm8, %v1014_v28, %v1016_v34 }
  0xd6   : > { %2429 = vrot.lane.b32.xlu1 %v15553_v5, %s18643_s23  ;;  %2427 = vrot.lane.b32.xlu0 %v15547_v3, %s18643_s23 }
  0xd7   : > { %14585 = vmatprep.subr.msk.bf16.mxu1 %vm223_vm1, %v1021_v36  ;;  %14584 = vmatmul.mubr.msk.bf16.vlgmr.msra.gmra.mrb[28].mxu0 %vm219_vm2, %v14582_v35 }
  0xd8   : > { %1079 = vmatpush1.bf16.msra.mxu1 %v1032_v37  ;;  %v1130_v38 = vpop.permute.xlu1 %1129  ;;  %v1128_v39 = vpop.permute.xlu0 %1127  ;;  %1187 = vmatprep.mubr.bf16.mxu0 %v15392_v0 }
  0xd9   : > { %v1136_v40 = vsel %vm1135_vm9, %v1126_v33, %v1128_v39  ;;  %v1137_v41 = vsel %vm1135_vm9, %v1128_v39, %v1130_v38 }
  0xda   : > { %2541 = vrot.lane.b32.xlu1 %v15549_v4, %s18641_s27  ;;  %2431 = vrot.lane.b32.xlu0 %v15560_v7, %s18643_s23  ;;  %v1144_v42 = vsel %vm223_vm1, %v1136_v40, 0  ;;  %s15415_s23 = smov 75  }
  0xdb   : > { %14588 = vmatprep.subr.msk.bf16.mxu0 %vm223_vm1, %v1137_v41  ;;  %14586 = vmatmul.mubr.msk.bf16.vlgmr.msra.gmra.mrb[28].mxu1 %vm219_vm2, %v14582_v35  ;;  %v14607_v35 = vld [vmem:[%s18632_s1 + $0x30] sm:$0xf] }
  0xdc   : > { %1156 = vmatpush1.bf16.msra.mxu0 %v1144_v42  ;;  %v1134_v43 = vpop.permute.xlu1 %1133  ;;  %v1132_v44 = vpop.permute.xlu0 %1131  ;;  %1228 = vmatprep.mubr.bf16.mxu1 %v15392_v0 }
  0xdd   : > { %v1138_v46 = vsel %vm1135_vm9, %v1130_v38, %v1132_v44  ;;  %v1139_v47 = vsel %vm1135_vm9, %v1132_v44, %v1134_v43 }
  0xde   : > { %2545 = vrot.lane.b32.xlu1 %v15547_v3, %s18641_s27  ;;  %2543 = vrot.lane.b32.xlu0 %v15555_v6, %s18641_s27  ;;  %v1150_v48 = vsel %vm223_vm1, %v1138_v46, 0 }
  0xdf   : > { %14590 = vmatprep.subr.msk.bf16.mxu1 %vm223_vm1, %v1139_v47  ;;  %14589 = vmatmul.mubr.msk.bf16.vlgmr.msra.gmra.mrb[32].mxu0 %vm219_vm2, %v14587_v45 }
  0xe0   : > { %1197 = vmatpush1.bf16.msra.mxu1 %v1150_v48  ;;  %v1246_v49 = vpop.permute.xlu1 %1245  ;;  %v1244_v50 = vpop.permute.xlu0 %1243  ;;  %1305 = vmatprep.mubr.bf16.mxu0 %v15392_v0 }
  0xe1   : > { %v1254_v51 = vsel %vm1253_vm10, %v1244_v50, %v1246_v49 }
  0xe2   : > { %2549 = vrot.lane.b32.xlu1 %v15560_v7, %s18641_s27  ;;  %2547 = vrot.lane.b32.xlu0 %v15553_v5, %s18641_s27  ;;  %v1262_v55 = vsel %vm223_vm1, %v1254_v51, 0  ;;  %s15414_s27 = smov 76  }
  0xe3   : > { %14591 = vmatmul.mubr.msk.bf16.vlgmr.msra.gmra.mrb[32].mxu1 %vm219_vm2, %v14587_v45 }
  0xe4   : > { %v1250_v52 = vpop.permute.xlu1 %1249  ;;  %v1248_v53 = vpop.permute.xlu0 %1247  ;;  %1346 = vmatprep.mubr.bf16.mxu1 %v15392_v0 }
  0xe5   : > { %v1255_v54 = vsel %vm1253_vm10, %v1246_v49, %v1248_v53  ;;  %v1256_v56 = vsel %vm1253_vm10, %v1248_v53, %v1250_v52  ;;  %v14612_v49 = vld [vmem:[%s18632_s1 + $0x34] sm:$0xf] }
  0xe6   : > { %2661 = vrot.lane.b32.xlu1 %v15555_v6, %s18645_s21  ;;  %2659 = vrot.lane.b32.xlu0 %v15549_v4, %s18645_s21  ;;  %v1268_v61 = vsel %vm223_vm1, %v1256_v56, 0 }
  0xe7   : > { %14593 = vmatprep.subr.msk.bf16.mxu0 %vm223_vm1, %v1255_v54 }
  0xe8   : > { %1274 = vmatpush1.bf16.msra.mxu0 %v1262_v55  ;;  %v1362_v57 = vpop.permute.xlu1 %1361  ;;  %v1252_v58 = vpop.permute.xlu0 %1251 }
  0xe9   : > { %v1257_v60 = vsel %vm1253_vm10, %v1250_v52, %v1252_v58 }
  0xea   : > { %2665 = vrot.lane.b32.xlu1 %v15553_v5, %s18645_s21  ;;  %2663 = vrot.lane.b32.xlu0 %v15547_v3, %s18645_s21 }
  0xeb   : > { %14595 = vmatprep.subr.msk.bf16.mxu1 %vm223_vm1, %v1257_v60  ;;  %14594 = vmatmul.mubr.msk.bf16.vlgmr.msra.gmra.mrb[36].mxu0 %vm219_vm2, %v14592_v59 }
  0xec   : > { %1315 = vmatpush1.bf16.msra.mxu1 %v1268_v61  ;;  %v1366_v62 = vpop.permute.xlu1 %1365  ;;  %v1364_v63 = vpop.permute.xlu0 %1363  ;;  %1423 = vmatprep.mubr.bf16.mxu0 %v15392_v0 }
  0xed   : > { %v1372_v1 = vsel %vm1371_vm11, %v1362_v57, %v1364_v63  ;;  %v1373_v2 = vsel %vm1371_vm11, %v1364_v63, %v1366_v62 }
  0xee   : > { %2777 = vrot.lane.b32.xlu1 %v15549_v4, %s15414_s27  ;;  %2667 = vrot.lane.b32.xlu0 %v15560_v7, %s18645_s21  ;;  %v1380_v8 = vsel %vm223_vm1, %v1372_v1, 0  ;;  %s18651_s21 = smov 73  }
  0xef   : > { %14598 = vmatprep.subr.msk.bf16.mxu0 %vm223_vm1, %v1373_v2  ;;  %14596 = vmatmul.mubr.msk.bf16.vlgmr.msra.gmra.mrb[36].mxu1 %vm219_vm2, %v14592_v59  ;;  %v14617_v59 = vld [vmem:[%s18632_s1 + $0x38] sm:$0xf] }
  0xf0   : > { %1392 = vmatpush1.bf16.msra.mxu0 %v1380_v8  ;;  %v1370_v9 = vpop.permute.xlu1 %1369  ;;  %v1368_v10 = vpop.permute.xlu0 %1367  ;;  %1464 = vmatprep.mubr.bf16.mxu1 %v15392_v0 }
  0xf1   : > { %v1374_v12 = vsel %vm1371_vm11, %v1366_v62, %v1368_v10  ;;  %v1375_v13 = vsel %vm1371_vm11, %v1368_v10, %v1370_v9 }
  0xf2   : > { %2781 = vrot.lane.b32.xlu1 %v15547_v3, %s15414_s27  ;;  %2779 = vrot.lane.b32.xlu0 %v15555_v6, %s15414_s27  ;;  %v1386_v14 = vsel %vm223_vm1, %v1374_v12, 0 }
  0xf3   : > { %14600 = vmatprep.subr.msk.bf16.mxu1 %vm223_vm1, %v1375_v13  ;;  %14599 = vmatmul.mubr.msk.bf16.vlgmr.msra.gmra.mrb[40].mxu0 %vm219_vm2, %v14597_v11 }
  0xf4   : > { %1433 = vmatpush1.bf16.msra.mxu1 %v1386_v14  ;;  %v1482_v15 = vpop.permute.xlu1 %1481  ;;  %v1480_v16 = vpop.permute.xlu0 %1479  ;;  %1541 = vmatprep.mubr.bf16.mxu0 %v15392_v0 }
  0xf5   : > { %v1490_v17 = vsel %vm1489_vm12, %v1480_v16, %v1482_v15 }
  0xf6   : > { %2785 = vrot.lane.b32.xlu1 %v15560_v7, %s15414_s27  ;;  %2783 = vrot.lane.b32.xlu0 %v15553_v5, %s15414_s27  ;;  %v1498_v21 = vsel %vm223_vm1, %v1490_v17, 0  ;;  %s18647_s27 = smov 74  }
  0xf7   : > { %14601 = vmatmul.mubr.msk.bf16.vlgmr.msra.gmra.mrb[40].mxu1 %vm219_vm2, %v14597_v11 }
  0xf8   : > { %v1486_v18 = vpop.permute.xlu1 %1485  ;;  %v1484_v19 = vpop.permute.xlu0 %1483  ;;  %1582 = vmatprep.mubr.bf16.mxu1 %v15392_v0 }
  0xf9   : > { %v1491_v20 = vsel %vm1489_vm12, %v1482_v15, %v1484_v19  ;;  %v1492_v22 = vsel %vm1489_vm12, %v1484_v19, %v1486_v18  ;;  %v14622_v15 = vld [vmem:[%s18632_s1 + $0x3c] sm:$0xf] }
  0xfa   : > { %2897 = vrot.lane.b32.xlu1 %v15555_v6, %s15415_s23  ;;  %2895 = vrot.lane.b32.xlu0 %v15549_v4, %s15415_s23  ;;  %v1504_v27 = vsel %vm223_vm1, %v1492_v22, 0 }
  0xfb   : > { %14603 = vmatprep.subr.msk.bf16.mxu0 %vm223_vm1, %v1491_v20 }
  0xfc   : > { %1510 = vmatpush1.bf16.msra.mxu0 %v1498_v21  ;;  %v1598_v23 = vpop.permute.xlu1 %1597  ;;  %v1488_v24 = vpop.permute.xlu0 %1487 }
  0xfd   : > { %v1493_v26 = vsel %vm1489_vm12, %v1486_v18, %v1488_v24  ;;  %vm18655_vm12 = vcmask 793600  }
  0xfe   : > { %2901 = vrot.lane.b32.xlu1 %v15553_v5, %s15415_s23  ;;  %2899 = vrot.lane.b32.xlu0 %v15547_v3, %s15415_s23 }
  0xff   : > { %14605 = vmatprep.subr.msk.bf16.mxu1 %vm223_vm1, %v1493_v26  ;;  %14604 = vmatmul.mubr.msk.bf16.vlgmr.msra.gmra.mrb[44].mxu0 %vm219_vm2, %v14602_v25 }
 0x100   : > { %1551 = vmatpush1.bf16.msra.mxu1 %v1504_v27  ;;  %v1602_v28 = vpop.permute.xlu1 %1601  ;;  %v1600_v29 = vpop.permute.xlu0 %1599  ;;  %1659 = vmatprep.mubr.bf16.mxu0 %v15392_v0 }
 0x101   : > { %v1608_v30 = vsel %vm1607_vm13, %v1598_v23, %v1600_v29  ;;  %v1609_v31 = vsel %vm1607_vm13, %v1600_v29, %v1602_v28 }
 0x102   : > { %3013 = vrot.lane.b32.xlu1 %v15549_v4, %s18647_s27  ;;  %2903 = vrot.lane.b32.xlu0 %v15560_v7, %s15415_s23  ;;  %v1616_v32 = vsel %vm223_vm1, %v1608_v30, 0  ;;  %s18649_s23 = smov 72   ;;  %v16063_v30 = vld [vmem:[%s15542_s30 + $0x10] ss:$0 sps:$4 sm:$0xff]  }
 0x103   : > { %14608 = vmatprep.subr.msk.bf16.mxu0 %vm223_vm1, %v1609_v31  ;;  %14606 = vmatmul.mubr.msk.bf16.vlgmr.msra.gmra.mrb[44].mxu1 %vm219_vm2, %v14602_v25  ;;  %v14627_v25 = vld [vmem:[%s18632_s1 + $0x40] sm:$0xf] }
 0x104   : > { %1628 = vmatpush1.bf16.msra.mxu0 %v1616_v32  ;;  %v1606_v33 = vpop.permute.xlu1 %1605  ;;  %v1604_v34 = vpop.permute.xlu0 %1603  ;;  %1700 = vmatprep.mubr.bf16.mxu1 %v15392_v0 }
 0x105   : > { %v1610_v36 = vsel %vm1607_vm13, %v1602_v28, %v1604_v34  ;;  %v1611_v37 = vsel %vm1607_vm13, %v1604_v34, %v1606_v33  ;;  %vm18658_vm13 = vcmask 785408  }
 0x106   : > { %3017 = vrot.lane.b32.xlu1 %v15547_v3, %s18647_s27  ;;  %3015 = vrot.lane.b32.xlu0 %v15555_v6, %s18647_s27  ;;  %v1622_v38 = vsel %vm223_vm1, %v1610_v36, 0 }
 0x107   : > { %14610 = vmatprep.subr.msk.bf16.mxu1 %vm223_vm1, %v1611_v37  ;;  %14609 = vmatmul.mubr.msk.bf16.vlgmr.msra.gmra.mrb[48].mxu0 %vm219_vm2, %v14607_v35 }
 0x108   : > { %1669 = vmatpush1.bf16.msra.mxu1 %v1622_v38  ;;  %v1718_v39 = vpop.permute.xlu1 %1717  ;;  %v1716_v40 = vpop.permute.xlu0 %1715  ;;  %1777 = vmatprep.mubr.bf16.mxu0 %v15392_v0 }
 0x109   : > { %v1726_v41 = vsel %vm1725_vm14, %v1716_v40, %v1718_v39 }
 0x10a   : > { %3021 = vrot.lane.b32.xlu1 %v15560_v7, %s18647_s27  ;;  %3019 = vrot.lane.b32.xlu0 %v15553_v5, %s18647_s27  ;;  %v1734_v45 = vsel %vm223_vm1, %v1726_v41, 0  ;;  %s18656_s27 = smov 71  }
 0x10b   : > { %14611 = vmatmul.mubr.msk.bf16.vlgmr.msra.gmra.mrb[48].mxu1 %vm219_vm2, %v14607_v35 }
 0x10c   : > { %v1722_v42 = vpop.permute.xlu1 %1721  ;;  %v1720_v43 = vpop.permute.xlu0 %1719  ;;  %1818 = vmatprep.mubr.bf16.mxu1 %v15392_v0 }
 0x10d   : > { %v1727_v44 = vsel %vm1725_vm14, %v1718_v39, %v1720_v43  ;;  %v1728_v46 = vsel %vm1725_vm14, %v1720_v43, %v1722_v42  ;;  %v14632_v39 = vld [vmem:[%s18632_s1 + $0x44] sm:$0xf] }
 0x10e   : > { %3133 = vrot.lane.b32.xlu1 %v15555_v6, %s18651_s21  ;;  %3131 = vrot.lane.b32.xlu0 %v15549_v4, %s18651_s21  ;;  %v1740_v51 = vsel %vm223_vm1, %v1728_v46, 0 }
 0x10f   : > { %14613 = vmatprep.subr.msk.bf16.mxu0 %vm223_vm1, %v1727_v44 }
 0x110   : > { %1746 = vmatpush1.bf16.msra.mxu0 %v1734_v45  ;;  %v1834_v47 = vpop.permute.xlu1 %1833  ;;  %v1724_v48 = vpop.permute.xlu0 %1723 }
 0x111   : > { %v1729_v50 = vsel %vm1725_vm14, %v1722_v42, %v1724_v48 }
 0x112   : > { %3137 = vrot.lane.b32.xlu1 %v15553_v5, %s18651_s21  ;;  %3135 = vrot.lane.b32.xlu0 %v15547_v3, %s18651_s21 }
 0x113   : > { %14615 = vmatprep.subr.msk.bf16.mxu1 %vm223_vm1, %v1729_v50  ;;  %14614 = vmatmul.mubr.msk.bf16.vlgmr.msra.gmra.mrb[52].mxu0 %vm219_vm2, %v14612_v49 }
 0x114   : > { %1787 = vmatpush1.bf16.msra.mxu1 %v1740_v51  ;;  %v1838_v52 = vpop.permute.xlu1 %1837  ;;  %v1836_v53 = vpop.permute.xlu0 %1835  ;;  %1895 = vmatprep.mubr.bf16.mxu0 %v15392_v0 }
 0x115   : > { %v1844_v54 = vsel %vm1843_vm15, %v1834_v47, %v1836_v53  ;;  %v1845_v55 = vsel %vm1843_vm15, %v1836_v53, %v1838_v52 }
 0x116   : > { %3249 = vrot.lane.b32.xlu1 %v15549_v4, %s18649_s23  ;;  %3139 = vrot.lane.b32.xlu0 %v15560_v7, %s18651_s21  ;;  %v1852_v56 = vsel %vm223_vm1, %v1844_v54, 0  ;;  %s18662_s21 = smov 69  }
 0x117   : > { %14618 = vmatprep.subr.msk.bf16.mxu0 %vm223_vm1, %v1845_v55  ;;  %14616 = vmatmul.mubr.msk.bf16.vlgmr.msra.gmra.mrb[52].mxu1 %vm219_vm2, %v14612_v49  ;;  %v14637_v49 = vld [vmem:[%s18632_s1 + $0x48] sm:$0xf] }
 0x118   : > { %1864 = vmatpush1.bf16.msra.mxu0 %v1852_v56  ;;  %v1842_v57 = vpop.permute.xlu1 %1841  ;;  %v1840_v58 = vpop.permute.xlu0 %1839  ;;  %1936 = vmatprep.mubr.bf16.mxu1 %v15392_v0 }
 0x119   : > { %v1846_v60 = vsel %vm1843_vm15, %v1838_v52, %v1840_v58  ;;  %v1847_v61 = vsel %vm1843_vm15, %v1840_v58, %v1842_v57 }
 0x11a   : > { %3253 = vrot.lane.b32.xlu1 %v15547_v3, %s18649_s23  ;;  %3251 = vrot.lane.b32.xlu0 %v15555_v6, %s18649_s23  ;;  %v1858_v62 = vsel %vm223_vm1, %v1846_v60, 0 }
 0x11b   : > { %14620 = vmatprep.subr.msk.bf16.mxu1 %vm223_vm1, %v1847_v61  ;;  %14619 = vmatmul.mubr.msk.bf16.vlgmr.msra.gmra.mrb[56].mxu0 %vm219_vm2, %v14617_v59 }
 0x11c   : > { %1905 = vmatpush1.bf16.msra.mxu1 %v1858_v62  ;;  %v1954_v63 = vpop.permute.xlu1 %1953  ;;  %v1952_v1 = vpop.permute.xlu0 %1951  ;;  %2013 = vmatprep.mubr.bf16.mxu0 %v15392_v0 }
 0x11d   : > { %v1962_v2 = vsel %vm1961_vm0, %v1952_v1, %v1954_v63 }
 0x11e   : > { %3257 = vrot.lane.b32.xlu1 %v15560_v7, %s18649_s23  ;;  %3255 = vrot.lane.b32.xlu0 %v15553_v5, %s18649_s23  ;;  %v1970_v11 = vsel %vm223_vm1, %v1962_v2, 0  ;;  %s18653_s23 = smov 70  }
 0x11f   : > { %14621 = vmatmul.mubr.msk.bf16.vlgmr.msra.gmra.mrb[56].mxu1 %vm219_vm2, %v14617_v59 }
 0x120   : > { %v1958_v8 = vpop.permute.xlu1 %1957  ;;  %v1956_v9 = vpop.permute.xlu0 %1955  ;;  %2054 = vmatprep.mubr.bf16.mxu1 %v15392_v0 }
 0x121   : > { %v1963_v10 = vsel %vm1961_vm0, %v1954_v63, %v1956_v9  ;;  %v1964_v12 = vsel %vm1961_vm0, %v1956_v9, %v1958_v8  ;;  %v14642_v63 = vld [vmem:[%s18632_s1 + $0x4c] sm:$0xf] }
 0x122   : > { %3369 = vrot.lane.b32.xlu1 %v15555_v6, %s18656_s27  ;;  %3367 = vrot.lane.b32.xlu0 %v15549_v4, %s18656_s27  ;;  %v1976_v17 = vsel %vm223_vm1, %v1964_v12, 0 }
 0x123   : > { %14623 = vmatprep.subr.msk.bf16.mxu0 %vm223_vm1, %v1963_v10 }
 0x124   : > { %1982 = vmatpush1.bf16.msra.mxu0 %v1970_v11  ;;  %v2070_v13 = vpop.permute.xlu1 %2069  ;;  %v1960_v14 = vpop.permute.xlu0 %1959 }
 0x125   : > { %v1965_v16 = vsel %vm1961_vm0, %v1958_v8, %v1960_v14 }
 0x126   : > { %3373 = vrot.lane.b32.xlu1 %v15553_v5, %s18656_s27  ;;  %3371 = vrot.lane.b32.xlu0 %v15547_v3, %s18656_s27 }
 0x127   : > { %14625 = vmatprep.subr.msk.bf16.mxu1 %vm223_vm1, %v1965_v16  ;;  %14624 = vmatmul.mubr.msk.bf16.vlgmr.msra.gmra.mrb[60].mxu0 %vm219_vm2, %v14622_v15 }
 0x128   : > { %2023 = vmatpush1.bf16.msra.mxu1 %v1976_v17  ;;  %v2074_v18 = vpop.permute.xlu1 %2073  ;;  %v2072_v19 = vpop.permute.xlu0 %2071  ;;  %2131 = vmatprep.mubr.bf16.mxu0 %v15392_v0 }
 0x129   : > { %v2080_v20 = vsel %vm18655_vm12, %v2070_v13, %v2072_v19  ;;  %v2081_v21 = vsel %vm18655_vm12, %v2072_v19, %v2074_v18 }
 0x12a   : > { %3485 = vrot.lane.b32.xlu1 %v15549_v4, %s18653_s23  ;;  %3375 = vrot.lane.b32.xlu0 %v15560_v7, %s18656_s27  ;;  %v2088_v22 = vsel %vm223_vm1, %v2080_v20, 0  ;;  %s18668_s27 = smov 67  }
 0x12b   : > { %14628 = vmatprep.subr.msk.bf16.mxu0 %vm223_vm1, %v2081_v21  ;;  %14626 = vmatmul.mubr.msk.bf16.vlgmr.msra.gmra.mrb[60].mxu1 %vm219_vm2, %v14622_v15  ;;  %v14647_v15 = vld [vmem:[%s18632_s1 + $0x50] sm:$0xf] }
 0x12c   : > { %2100 = vmatpush1.bf16.msra.mxu0 %v2088_v22  ;;  %v2078_v23 = vpop.permute.xlu1 %2077  ;;  %v2076_v24 = vpop.permute.xlu0 %2075  ;;  %2172 = vmatprep.mubr.bf16.mxu1 %v15392_v0 }
 0x12d   : > { %v2082_v26 = vsel %vm18655_vm12, %v2074_v18, %v2076_v24  ;;  %v2083_v7 = vsel %vm18655_vm12, %v2076_v24, %v2078_v23  ;;  %vm18661_vm12 = vcmask 777216  }
 0x12e   : > { %3489 = vrot.lane.b32.xlu1 %v15547_v3, %s18653_s23  ;;  %3487 = vrot.lane.b32.xlu0 %v15555_v6, %s18653_s23  ;;  %v2094_v27 = vsel %vm223_vm1, %v2082_v26, 0 }
 0x12f   : > { %14630 = vmatprep.subr.msk.bf16.mxu1 %vm223_vm1, %v2083_v7  ;;  %14629 = vmatmul.mubr.msk.bf16.vlgmr.msra.gmra.mrb[64].mxu0 %vm219_vm2, %v14627_v25 }
 0x130   : > { %2141 = vmatpush1.bf16.msra.mxu1 %v2094_v27  ;;  %v2190_v28 = vpop.permute.xlu1 %2189  ;;  %v2188_v29 = vpop.permute.xlu0 %2187  ;;  %2249 = vmatprep.mubr.bf16.mxu0 %v15392_v0 }
 0x131   : > { %v2198_v31 = vsel %vm18658_vm13, %v2188_v29, %v2190_v28 }
 0x132   : > { %3493 = vrot.lane.b32.xlu1 %v16063_v30, %s18653_s23  ;;  %3491 = vrot.lane.b32.xlu0 %v15553_v5, %s18653_s23  ;;  %v2206_v35 = vsel %vm223_vm1, %v2198_v31, 0  ;;  %s18659_s23 = smov 68  }
 0x133   : > { %14631 = vmatmul.mubr.msk.bf16.vlgmr.msra.gmra.mrb[64].mxu1 %vm219_vm2, %v14627_v25 }
 0x134   : > { %v2194_v32 = vpop.permute.xlu1 %2193  ;;  %v2192_v33 = vpop.permute.xlu0 %2191  ;;  %2290 = vmatprep.mubr.bf16.mxu1 %v15392_v0 }
 0x135   : > { %v2199_v34 = vsel %vm18658_vm13, %v2190_v28, %v2192_v33  ;;  %v2200_v36 = vsel %vm18658_vm13, %v2192_v33, %v2194_v32  ;;  %v14652_v28 = vld [vmem:[%s18632_s1 + $0x54] sm:$0xf] }
 0x136   : > { %3605 = vrot.lane.b32.xlu1 %v15555_v6, %s18662_s21  ;;  %3603 = vrot.lane.b32.xlu0 %v15549_v4, %s18662_s21  ;;  %v2212_v41 = vsel %vm223_vm1, %v2200_v36, 0 }
 0x137   : > { %14633 = vmatprep.subr.msk.bf16.mxu0 %vm223_vm1, %v2199_v34 }
 0x138   : > { %2218 = vmatpush1.bf16.msra.mxu0 %v2206_v35  ;;  %v2306_v37 = vpop.permute.xlu1 %2305  ;;  %v2196_v38 = vpop.permute.xlu0 %2195 }
 0x139   : > { %v2201_v40 = vsel %vm18658_vm13, %v2194_v32, %v2196_v38  ;;  %vm18664_vm13 = vcmask 769024  }
 0x13a   : > { %3609 = vrot.lane.b32.xlu1 %v15553_v5, %s18662_s21  ;;  %3607 = vrot.lane.b32.xlu0 %v15547_v3, %s18662_s21 }
 0x13b   : > { %14635 = vmatprep.subr.msk.bf16.mxu1 %vm223_vm1, %v2201_v40  ;;  %14634 = vmatmul.mubr.msk.bf16.vlgmr.msra.gmra.mrb[68].mxu0 %vm219_vm2, %v14632_v39 }
 0x13c   : > { %2259 = vmatpush1.bf16.msra.mxu1 %v2212_v41  ;;  %v2310_v42 = vpop.permute.xlu1 %2309  ;;  %v2308_v43 = vpop.permute.xlu0 %2307  ;;  %2367 = vmatprep.mubr.bf16.mxu0 %v15392_v0 }
 0x13d   : > { %v2316_v44 = vsel %vm18661_vm12, %v2306_v37, %v2308_v43  ;;  %v2317_v45 = vsel %vm18661_vm12, %v2308_v43, %v2310_v42 }
 0x13e   : > { %3721 = vrot.lane.b32.xlu1 %v15549_v4, %s18659_s23  ;;  %3611 = vrot.lane.b32.xlu0 %v16063_v30, %s18662_s21  ;;  %v2324_v46 = vsel %vm223_vm1, %v2316_v44, 0  ;;  %s15425_s21 = smov 50  }
 0x13f   : > { %14638 = vmatprep.subr.msk.bf16.mxu0 %vm223_vm1, %v2317_v45  ;;  %14636 = vmatmul.mubr.msk.bf16.vlgmr.msra.gmra.mrb[68].mxu1 %vm219_vm2, %v14632_v39  ;;  %v14657_v39 = vld [vmem:[%s18632_s1 + $0x58] sm:$0xf] }
 0x140   : > { %2336 = vmatpush1.bf16.msra.mxu0 %v2324_v46  ;;  %v2314_v47 = vpop.permute.xlu1 %2313  ;;  %v2312_v48 = vpop.permute.xlu0 %2311  ;;  %2408 = vmatprep.mubr.bf16.mxu1 %v15392_v0 }
 0x141   : > { %v2318_v50 = vsel %vm18661_vm12, %v2310_v42, %v2312_v48  ;;  %v2319_v51 = vsel %vm18661_vm12, %v2312_v48, %v2314_v47  ;;  %vm18667_vm12 = vcmask 760832  }
 0x142   : > { %3725 = vrot.lane.b32.xlu1 %v15547_v3, %s18659_s23  ;;  %3723 = vrot.lane.b32.xlu0 %v15555_v6, %s18659_s23  ;;  %v2330_v52 = vsel %vm223_vm1, %v2318_v50, 0 }
 0x143   : > { %14640 = vmatprep.subr.msk.bf16.mxu1 %vm223_vm1, %v2319_v51  ;;  %14639 = vmatmul.mubr.msk.bf16.vlgmr.msra.gmra.mrb[72].mxu0 %vm219_vm2, %v14637_v49 }
 0x144   : > { %2377 = vmatpush1.bf16.msra.mxu1 %v2330_v52  ;;  %v2426_v53 = vpop.permute.xlu1 %2425  ;;  %v2424_v54 = vpop.permute.xlu0 %2423  ;;  %2485 = vmatprep.mubr.bf16.mxu0 %v15392_v0 }
 0x145   : > { %v2434_v55 = vsel %vm18664_vm13, %v2424_v54, %v2426_v53 }
 0x146   : > { %3729 = vrot.lane.b32.xlu1 %v16063_v30, %s18659_s23  ;;  %3727 = vrot.lane.b32.xlu0 %v15553_v5, %s18659_s23  ;;  %v2442_v59 = vsel %vm223_vm1, %v2434_v55, 0  ;;  %s18665_s23 = smov 66  }
 0x147   : > { %14641 = vmatmul.mubr.msk.bf16.vlgmr.msra.gmra.mrb[72].mxu1 %vm219_vm2, %v14637_v49 }
 0x148   : > { %v2430_v56 = vpop.permute.xlu1 %2429  ;;  %v2428_v57 = vpop.permute.xlu0 %2427  ;;  %2526 = vmatprep.mubr.bf16.mxu1 %v15392_v0 }
 0x149   : > { %v2435_v58 = vsel %vm18664_vm13, %v2426_v53, %v2428_v57  ;;  %v2436_v60 = vsel %vm18664_vm13, %v2428_v57, %v2430_v56  ;;  %v14662_v53 = vld [vmem:[%s18632_s1 + $0x5c] sm:$0xf] }
 0x14a   : > { %3841 = vrot.lane.b32.xlu1 %v15555_v6, %s18668_s27  ;;  %3839 = vrot.lane.b32.xlu0 %v15549_v4, %s18668_s27  ;;  %v2448_v2 = vsel %vm223_vm1, %v2436_v60, 0 }
 0x14b   : > { %14643 = vmatprep.subr.msk.bf16.mxu0 %vm223_vm1, %v2435_v58 }
 0x14c   : > { %2454 = vmatpush1.bf16.msra.mxu0 %v2442_v59  ;;  %v2542_v61 = vpop.permute.xlu1 %2541  ;;  %v2432_v62 = vpop.permute.xlu0 %2431 }
 0x14d   : > { %v2437_v1 = vsel %vm18664_vm13, %v2430_v56, %v2432_v62  ;;  %vm18670_vm13 = vcmask 752640  }
 0x14e   : > { %3845 = vrot.lane.b32.xlu1 %v15553_v5, %s18668_s27  ;;  %3843 = vrot.lane.b32.xlu0 %v15547_v3, %s18668_s27 }
 0x14f   : > { %14645 = vmatprep.subr.msk.bf16.mxu1 %vm223_vm1, %v2437_v1  ;;  %14644 = vmatmul.mubr.msk.bf16.vlgmr.msra.gmra.mrb[76].mxu0 %vm219_vm2, %v14642_v63 }
 0x150   : > { %2495 = vmatpush1.bf16.msra.mxu1 %v2448_v2  ;;  %v2546_v8 = vpop.permute.xlu1 %2545  ;;  %v2544_v9 = vpop.permute.xlu0 %2543  ;;  %2603 = vmatprep.mubr.bf16.mxu0 %v15392_v0 }
 0x151   : > { %v2552_v10 = vsel %vm18667_vm12, %v2542_v61, %v2544_v9  ;;  %v2553_v11 = vsel %vm18667_vm12, %v2544_v9, %v2546_v8 }
 0x152   : > { %3957 = vrot.lane.b32.xlu1 %v15549_v4, %s18665_s23  ;;  %3847 = vrot.lane.b32.xlu0 %v16063_v30, %s18668_s27  ;;  %v2560_v12 = vsel %vm223_vm1, %v2552_v10, 0  ;;  %s18674_s27 = smov 48  }
 0x153   : > { %14648 = vmatprep.subr.msk.bf16.mxu0 %vm223_vm1, %v2553_v11  ;;  %14646 = vmatmul.mubr.msk.bf16.vlgmr.msra.gmra.mrb[76].mxu1 %vm219_vm2, %v14642_v63  ;;  %v14667_v63 = vld [vmem:[%s18632_s1 + $0x60] sm:$0xf] }
 0x154   : > { %2572 = vmatpush1.bf16.msra.mxu0 %v2560_v12  ;;  %v2550_v13 = vpop.permute.xlu1 %2549  ;;  %v2548_v14 = vpop.permute.xlu0 %2547  ;;  %2644 = vmatprep.mubr.bf16.mxu1 %v15392_v0 }
 0x155   : > { %v2554_v16 = vsel %vm18667_vm12, %v2546_v8, %v2548_v14  ;;  %v2555_v17 = vsel %vm18667_vm12, %v2548_v14, %v2550_v13  ;;  %vm2787_vm12 = vcmask 621568  }
 0x156   : > { %3961 = vrot.lane.b32.xlu1 %v15547_v3, %s18665_s23  ;;  %3959 = vrot.lane.b32.xlu0 %v15555_v6, %s18665_s23  ;;  %v2566_v18 = vsel %vm223_vm1, %v2554_v16, 0 }
 0x157   : > { %14650 = vmatprep.subr.msk.bf16.mxu1 %vm223_vm1, %v2555_v17  ;;  %14649 = vmatmul.mubr.msk.bf16.vlgmr.msra.gmra.mrb[80].mxu0 %vm219_vm2, %v14647_v15 }
 0x158   : > { %2613 = vmatpush1.bf16.msra.mxu1 %v2566_v18  ;;  %v2662_v19 = vpop.permute.xlu1 %2661  ;;  %v2660_v20 = vpop.permute.xlu0 %2659  ;;  %2721 = vmatprep.mubr.bf16.mxu0 %v15392_v0 }
 0x159   : > { %v2670_v21 = vsel %vm18670_vm13, %v2660_v20, %v2662_v19 }
 0x15a   : > { %3965 = vrot.lane.b32.xlu1 %v16063_v30, %s18665_s23  ;;  %3963 = vrot.lane.b32.xlu0 %v15553_v5, %s18665_s23  ;;  %v2678_v25 = vsel %vm223_vm1, %v2670_v21, 0  ;;  %s15426_s23 = smov 49  }
 0x15b   : > { %14651 = vmatmul.mubr.msk.bf16.vlgmr.msra.gmra.mrb[80].mxu1 %vm219_vm2, %v14647_v15 }
 0x15c   : > { %v2666_v22 = vpop.permute.xlu1 %2665  ;;  %v2664_v23 = vpop.permute.xlu0 %2663  ;;  %2762 = vmatprep.mubr.bf16.mxu1 %v15392_v0 }
 0x15d   : > { %v2671_v24 = vsel %vm18670_vm13, %v2662_v19, %v2664_v23  ;;  %v2672_v26 = vsel %vm18670_vm13, %v2664_v23, %v2666_v22  ;;  %v14672_v19 = vld [vmem:[%s18632_s1 + $0x64] sm:$0xf] }
 0x15e   : > { %4077 = vrot.lane.b32.xlu1 %v15555_v6, %s15425_s21  ;;  %4075 = vrot.lane.b32.xlu0 %v15549_v4, %s15425_s21  ;;  %v2684_v31 = vsel %vm223_vm1, %v2672_v26, 0 }
 0x15f   : > { %14653 = vmatprep.subr.msk.bf16.mxu0 %vm223_vm1, %v2671_v24 }
 0x160   : > { %2690 = vmatpush1.bf16.msra.mxu0 %v2678_v25  ;;  %v2778_v7 = vpop.permute.xlu1 %2777  ;;  %v2668_v27 = vpop.permute.xlu0 %2667 }
 0x161   : > { %v2673_v29 = vsel %vm18670_vm13, %v2666_v22, %v2668_v27  ;;  %vm2905_vm13 = vcmask 613376  }
 0x162   : > { %4081 = vrot.lane.b32.xlu1 %v15553_v5, %s15425_s21  ;;  %4079 = vrot.lane.b32.xlu0 %v15547_v3, %s15425_s21 }
 0x163   : > { %14655 = vmatprep.subr.msk.bf16.mxu1 %vm223_vm1, %v2673_v29  ;;  %14654 = vmatmul.mubr.msk.bf16.vlgmr.msra.gmra.mrb[84].mxu0 %vm219_vm2, %v14652_v28 }
 0x164   : > { %2731 = vmatpush1.bf16.msra.mxu1 %v2684_v31  ;;  %v2782_v32 = vpop.permute.xlu1 %2781  ;;  %v2780_v33 = vpop.permute.xlu0 %2779  ;;  %2839 = vmatprep.mubr.bf16.mxu0 %v15392_v0 }
 0x165   : > { %v2788_v34 = vsel %vm2787_vm12, %v2778_v7, %v2780_v33  ;;  %v2789_v35 = vsel %vm2787_vm12, %v2780_v33, %v2782_v32 }
 0x166   : > { %4193 = vrot.lane.b32.xlu1 %v15549_v4, %s15426_s23  ;;  %4083 = vrot.lane.b32.xlu0 %v16063_v30, %s15425_s21  ;;  %v2796_v36 = vsel %vm223_vm1, %v2788_v34, 0  ;;  %s18680_s21 = smov 46  }
 0x167   : > { %14658 = vmatprep.subr.msk.bf16.mxu0 %vm223_vm1, %v2789_v35  ;;  %14656 = vmatmul.mubr.msk.bf16.vlgmr.msra.gmra.mrb[84].mxu1 %vm219_vm2, %v14652_v28  ;;  %v14677_v28 = vld [vmem:[%s18632_s1 + $0x68] sm:$0xf] }
 0x168   : > { %2808 = vmatpush1.bf16.msra.mxu0 %v2796_v36  ;;  %v2786_v37 = vpop.permute.xlu1 %2785  ;;  %v2784_v38 = vpop.permute.xlu0 %2783  ;;  %2880 = vmatprep.mubr.bf16.mxu1 %v15392_v0 }
 0x169   : > { %v2790_v40 = vsel %vm2787_vm12, %v2782_v32, %v2784_v38  ;;  %v2791_v41 = vsel %vm2787_vm12, %v2784_v38, %v2786_v37  ;;  %vm18673_vm12 = vcmask 605184  }
 0x16a   : > { %4197 = vrot.lane.b32.xlu1 %v15547_v3, %s15426_s23  ;;  %4195 = vrot.lane.b32.xlu0 %v15555_v6, %s15426_s23  ;;  %v2802_v42 = vsel %vm223_vm1, %v2790_v40, 0 }
 0x16b   : > { %14660 = vmatprep.subr.msk.bf16.mxu1 %vm223_vm1, %v2791_v41  ;;  %14659 = vmatmul.mubr.msk.bf16.vlgmr.msra.gmra.mrb[88].mxu0 %vm219_vm2, %v14657_v39 }
 0x16c   : > { %2849 = vmatpush1.bf16.msra.mxu1 %v2802_v42  ;;  %v2898_v43 = vpop.permute.xlu1 %2897  ;;  %v2896_v44 = vpop.permute.xlu0 %2895  ;;  %2957 = vmatprep.mubr.bf16.mxu0 %v15392_v0 }
 0x16d   : > { %v2906_v45 = vsel %vm2905_vm13, %v2896_v44, %v2898_v43 }
 0x16e   : > { %4201 = vrot.lane.b32.xlu1 %v16063_v30, %s15426_s23  ;;  %4199 = vrot.lane.b32.xlu0 %v15553_v5, %s15426_s23  ;;  %v2914_v49 = vsel %vm223_vm1, %v2906_v45, 0  ;;  %s15450_s23 = smov 90  }
 0x16f   : > { %14661 = vmatmul.mubr.msk.bf16.vlgmr.msra.gmra.mrb[88].mxu1 %vm219_vm2, %v14657_v39  ;;  %v270_v39 = vpop.f32.mrb[0].mxu0 }
 0x170   : > { %v2902_v46 = vpop.permute.xlu1 %2901  ;;  %v2900_v47 = vpop.permute.xlu0 %2899  ;;  %2998 = vmatprep.mubr.bf16.mxu1 %v15392_v0 }
 0x171   : > { %v2907_v48 = vsel %vm2905_vm13, %v2898_v43, %v2900_v47  ;;  %v2908_v50 = vsel %vm2905_vm13, %v2900_v47, %v2902_v46  ;;  %v272_v41 = vpop.f32.mrb[1].mxu0 }
 0x172   : > { %4313 = vrot.lane.b32.xlu1 %v15555_v6, %s18674_s27  ;;  %4311 = vrot.lane.b32.xlu0 %v15549_v4, %s18674_s27  ;;  %v2920_v55 = vsel %vm223_vm1, %v2908_v50, 0  ;;  %v311_v40 = vpop.f32.mrb[0].mxu1  ;;  %v274_v44 = vpop.f32.mrb[2].mxu0 }
 0x173   : > { %14663 = vmatprep.subr.msk.bf16.mxu0 %vm223_vm1, %v2907_v48  ;;  %v313_v43 = vpop.f32.mrb[1].mxu1  ;;  %v14682_v48 = vld [vmem:[%s18632_s1 + $0x6c] sm:$0xf] }
 0x174   : > { %2926 = vmatpush1.bf16.msra.mxu0 %v2914_v49  ;;  %v3014_v51 = vpop.permute.xlu1 %3013  ;;  %v2904_v52 = vpop.permute.xlu0 %2903 }
 0x175   : > { %v2909_v54 = vsel %vm2905_vm13, %v2902_v46, %v2904_v52  ;;  %vm18676_vm13 = vcmask 596992   ;;  %v315_v50 = vpop.f32.mrb[2].mxu1 }
 0x176   : > { %4317 = vrot.lane.b32.xlu1 %v15553_v5, %s18674_s27  ;;  %4315 = vrot.lane.b32.xlu0 %v15547_v3, %s18674_s27  ;;  %v316_v52 = vpop.f32.mrb[3].mxu1 }
 0x177   : > { %14665 = vmatprep.subr.msk.bf16.mxu1 %vm223_vm1, %v2909_v54  ;;  %14664 = vmatmul.mubr.msk.bf16.vlgmr.msra.gmra.mrb[92].mxu0 %vm219_vm2, %v14662_v53 }
 0x178   : > { %2967 = vmatpush1.bf16.msra.mxu1 %v2920_v55  ;;  %v3018_v56 = vpop.permute.xlu1 %3017  ;;  %v3016_v57 = vpop.permute.xlu0 %3015  ;;  %3075 = vmatprep.mubr.bf16.mxu0 %v15392_v0 }
 0x179   : > { %v3024_v58 = vsel %vm18673_vm12, %v3014_v51, %v3016_v57  ;;  %v3025_v59 = vsel %vm18673_vm12, %v3016_v57, %v3018_v56  ;;  %v275_v51 = vpop.f32.mrb[3].mxu0 }
 0x17a   : > { %4429 = vrot.lane.b32.xlu1 %v15549_v4, %s18671_s4  ;;  %4319 = vrot.lane.b32.xlu0 %v16063_v30, %s18674_s27  ;;  %v3032_v60 = vsel %vm223_vm1, %v3024_v58, 0  ;;  %s18686_s27 = smov 44  }
 0x17b   : > { %14668 = vmatprep.subr.msk.bf16.mxu0 %vm223_vm1, %v3025_v59  ;;  %14666 = vmatmul.mubr.msk.bf16.vlgmr.msra.gmra.mrb[92].mxu1 %vm219_vm2, %v14662_v53  ;;  %v367_v53 = vpop.f32.mrb[4].mxu0 }
 0x17c   : > { %3044 = vmatpush1.bf16.msra.mxu0 %v3032_v60  ;;  %v3022_v61 = vpop.permute.xlu1 %3021  ;;  %v3020_v62 = vpop.permute.xlu0 %3019  ;;  %3116 = vmatprep.mubr.bf16.mxu1 %v15392_v0  ;;  %v368_v55 = vadd.f32 %v367_v53, %v270_v39 }
 0x17d   : > { %v3026_v1 = vsel %vm18673_vm12, %v3018_v56, %v3020_v62  ;;  %v3027_v2 = vsel %vm18673_vm12, %v3020_v62, %v3022_v61  ;;  %vm18679_vm12 = vcmask 588800   ;;  %v408_v56 = vpop.f32.mrb[4].mxu1  ;;  %v369_v57 = vpop.f32.mrb[5].mxu0 }
 0x17e   : > { %4433 = vrot.lane.b32.xlu1 %v15547_v3, %s18671_s4  ;;  %4431 = vrot.lane.b32.xlu0 %v15555_v6, %s18671_s4  ;;  %v3038_v8 = vsel %vm223_vm1, %v3026_v1, 0  ;;  %v409_v60 = vadd.f32 %v408_v56, %v311_v40  ;;  %v371_v1 = vpop.f32.mrb[6].mxu0 }
 0x17f   : > { %14670 = vmatprep.subr.msk.bf16.mxu1 %vm223_vm1, %v3027_v2  ;;  %14669 = vmatmul.mubr.msk.bf16.vlgmr.msra.gmra.mrb[96].mxu0 %vm219_vm2, %v14667_v63 }
 0x180   : > { %3085 = vmatpush1.bf16.msra.mxu1 %v3038_v8  ;;  %v3134_v9 = vpop.permute.xlu1 %3133  ;;  %v3132_v10 = vpop.permute.xlu0 %3131  ;;  %3193 = vmatprep.mubr.bf16.mxu0 %v15392_v0 }
 0x181   : > { %v3142_v11 = vsel %vm18676_vm13, %v3132_v10, %v3134_v9 }
 0x182   : > { %4437 = vrot.lane.b32.xlu1 %v16063_v30, %s18671_s4  ;;  %4435 = vrot.lane.b32.xlu0 %v15553_v5, %s18671_s4  ;;  %v3150_v15 = vsel %vm223_vm1, %v3142_v11, 0  ;;  %s18677_s4 = smov 45   ;;  %v372_v11 = vpop.f32.mrb[7].mxu0 }
 0x183   : > { %14671 = vmatmul.mubr.msk.bf16.vlgmr.msra.gmra.mrb[96].mxu1 %vm219_vm2, %v14667_v63  ;;  %v410_v63 = vpop.f32.mrb[5].mxu1 }
 0x184   : > { %v3138_v12 = vpop.permute.xlu1 %3137  ;;  %v3136_v13 = vpop.permute.xlu0 %3135  ;;  %3234 = vmatprep.mubr.bf16.mxu1 %v15392_v0  ;;  %v411_v8 = vadd.f32 %v410_v63, %v313_v43 }
 0x185   : > { %v3143_v14 = vsel %vm18676_vm13, %v3134_v9, %v3136_v13  ;;  %v3144_v16 = vsel %vm18676_vm13, %v3136_v13, %v3138_v12  ;;  %v370_v9 = vadd.f32 %v369_v57, %v272_v41  ;;  %v412_v10 = vpop.f32.mrb[6].mxu1  ;;  %v481_v13 = vpop.f32.mrb[8].mxu0  ;;  %v14692_v57 = vld [vmem:[%s18632_s1 + $0x74] sm:$0xf] }
 0x186   : > { %4549 = vrot.lane.b32.xlu1 %v15555_v6, %s18680_s21  ;;  %4547 = vrot.lane.b32.xlu0 %v15549_v4, %s18680_s21  ;;  %v3156_v21 = vsel %vm223_vm1, %v3144_v16, 0  ;;  %v14687_v16 = vld [vmem:[%s18632_s1 + $0x70] sm:$0xf] }
 0x187   : > { %14673 = vmatprep.subr.msk.bf16.mxu0 %vm223_vm1, %v3143_v14 }
 0x188   : > { %3162 = vmatpush1.bf16.msra.mxu0 %v3150_v15  ;;  %v3250_v17 = vpop.permute.xlu1 %3249  ;;  %v3140_v18 = vpop.permute.xlu0 %3139 }
 0x189   : > { %v3145_v20 = vsel %vm18676_vm13, %v3138_v12, %v3140_v18  ;;  %vm18685_vm13 = vcmask 580608   ;;  %v413_v12 = vpop.f32.mrb[7].mxu1 }
 0x18a   : > { %4553 = vrot.lane.b32.xlu1 %v15553_v5, %s18680_s21  ;;  %4551 = vrot.lane.b32.xlu0 %v15547_v3, %s18680_s21 }
 0x18b   : > { %14675 = vmatprep.subr.msk.bf16.mxu1 %vm223_vm1, %v3145_v20  ;;  %14674 = vmatmul.mubr.msk.bf16.vlgmr.msra.gmra.mrb[100].mxu0 %vm219_vm2, %v14672_v19  ;;  %v522_v20 = vpop.f32.mrb[8].mxu1 }
 0x18c   : > { %3203 = vmatpush1.bf16.msra.mxu1 %v3156_v21  ;;  %v3254_v22 = vpop.permute.xlu1 %3253  ;;  %v3252_v23 = vpop.permute.xlu0 %3251  ;;  %3311 = vmatprep.mubr.bf16.mxu0 %v15392_v0 }
 0x18d   : > { %v3260_v24 = vsel %vm18679_vm12, %v3250_v17, %v3252_v23  ;;  %v3261_v25 = vsel %vm18679_vm12, %v3252_v23, %v3254_v22  ;;  %v529_v17 = vadd.f32 %v481_v13, %v368_v55  ;;  %v483_v21 = vpop.f32.mrb[9].mxu0  ;;  %v531_v23 = vadd.f32 %v522_v20, %v409_v60 }
 0x18e   : > { %4665 = vrot.lane.b32.xlu1 %v15549_v4, %s18677_s4  ;;  %4555 = vrot.lane.b32.xlu0 %v16063_v30, %s18680_s21  ;;  %v3268_v26 = vsel %vm223_vm1, %v3260_v24, 0  ;;  %v524_v24 = vpop.f32.mrb[9].mxu1  ;;  %s18692_s21 = smov 42  }
 0x18f   : > { %14678 = vmatprep.subr.msk.bf16.mxu0 %vm223_vm1, %v3261_v25  ;;  %14676 = vmatmul.mubr.msk.bf16.vlgmr.msra.gmra.mrb[100].mxu1 %vm219_vm2, %v14672_v19  ;;  %v530_v25 = vadd.f32 %v483_v21, %v370_v9 }
 0x190   : > { %3280 = vmatpush1.bf16.msra.mxu0 %v3268_v26  ;;  %v3258_v7 = vpop.permute.xlu1 %3257  ;;  %v3256_v27 = vpop.permute.xlu0 %3255  ;;  %3352 = vmatprep.mubr.bf16.mxu1 %v15392_v0 }
 0x191   : > { %v3262_v29 = vsel %vm18679_vm12, %v3254_v22, %v3256_v27  ;;  %v3263_v31 = vsel %vm18679_vm12, %v3256_v27, %v3258_v7  ;;  %vm18682_vm12 = vcmask 572416   ;;  %v485_v26 = vpop.f32.mrb[10].mxu0  ;;  %v532_v7 = vadd.f32 %v524_v24, %v411_v8  ;;  %v526_v27 = vpop.f32.mrb[10].mxu1 }
 0x192   : > { %4669 = vrot.lane.b32.xlu1 %v15547_v3, %s18677_s4  ;;  %4667 = vrot.lane.b32.xlu0 %v15555_v6, %s18677_s4  ;;  %v3274_v32 = vsel %vm223_vm1, %v3262_v29, 0  ;;  %v14697_v27 = vld [vmem:[%s18632_s1 + $0x78] sm:$0xf] }
 0x193   : > { %14680 = vmatprep.subr.msk.bf16.mxu1 %vm223_vm1, %v3263_v31  ;;  %14679 = vmatmul.mubr.msk.bf16.vlgmr.msra.gmra.mrb[104].mxu0 %vm219_vm2, %v14677_v28 }
 0x194   : > { %3321 = vmatpush1.bf16.msra.mxu1 %v3274_v32  ;;  %v3370_v33 = vpop.permute.xlu1 %3369  ;;  %v3368_v34 = vpop.permute.xlu0 %3367  ;;  %3429 = vmatprep.mubr.bf16.mxu0 %v15392_v0 }
 0x195   : > { %v3378_v35 = vsel %vm18685_vm13, %v3368_v34, %v3370_v33  ;;  %v527_v32 = vpop.f32.mrb[11].mxu1 }
 0x196   : > { %4673 = vrot.lane.b32.xlu1 %v16063_v30, %s18677_s4  ;;  %4671 = vrot.lane.b32.xlu0 %v15553_v5, %s18677_s4  ;;  %v3386_v42 = vsel %vm223_vm1, %v3378_v35, 0  ;;  %s18683_s4 = smov 43   ;;  %v640_v35 = vpop.f32.mrb[12].mxu1 }
 0x197   : > { %14681 = vmatmul.mubr.msk.bf16.vlgmr.msra.gmra.mrb[104].mxu1 %vm219_vm2, %v14677_v28  ;;  %v486_v28 = vpop.f32.mrb[11].mxu0 }
 0x198   : > { %v3374_v36 = vpop.permute.xlu1 %3373  ;;  %v3372_v37 = vpop.permute.xlu0 %3371  ;;  %3470 = vmatprep.mubr.bf16.mxu1 %v15392_v0 }
 0x199   : > { %v3379_v38 = vsel %vm18685_vm13, %v3370_v33, %v3372_v37  ;;  %v3380_v45 = vsel %vm18685_vm13, %v3372_v37, %v3374_v36  ;;  %v599_v33 = vpop.f32.mrb[12].mxu0  ;;  %v649_v37 = vadd.f32 %v640_v35, %v531_v23 }
 0x19a   : > { %4785 = vrot.lane.b32.xlu1 %v15555_v6, %s18686_s27  ;;  %4783 = vrot.lane.b32.xlu0 %v15549_v4, %s18686_s27  ;;  %v3392_v54 = vsel %vm223_vm1, %v3380_v45, 0  ;;  %v647_v34 = vadd.f32 %v599_v33, %v529_v17 }
 0x19b   : > { %14683 = vmatprep.subr.msk.bf16.mxu0 %vm223_vm1, %v3379_v38  ;;  %v642_v38 = vpop.f32.mrb[13].mxu1 }
 0x19c   : > { %3398 = vmatpush1.bf16.msra.mxu0 %v3386_v42  ;;  %v3486_v46 = vpop.permute.xlu1 %3485  ;;  %v3376_v47 = vpop.permute.xlu0 %3375  ;;  %v650_v44 = vadd.f32 %v642_v38, %v532_v7 }
 0x19d   : > { %v3381_v49 = vsel %vm18685_vm13, %v3374_v36, %v3376_v47  ;;  %v601_v36 = vpop.f32.mrb[13].mxu0  ;;  %vm18688_vm13 = vcmask 556032  }
 0x19e   : > { %4789 = vrot.lane.b32.xlu1 %v15553_v5, %s18686_s27  ;;  %4787 = vrot.lane.b32.xlu0 %v15547_v3, %s18686_s27  ;;  %v648_v39 = vadd.f32 %v601_v36, %v530_v25  ;;  %v603_v40 = vpop.f32.mrb[14].mxu0 }
 0x19f   : > { %14685 = vmatprep.subr.msk.bf16.mxu1 %vm223_vm1, %v3381_v49  ;;  %14684 = vmatmul.mubr.msk.bf16.vlgmr.msra.gmra.mrb[108].mxu0 %vm219_vm2, %v14682_v48  ;;  %v604_v47 = vpop.f32.mrb[15].mxu0 }
 0x1a0   : > { %3439 = vmatpush1.bf16.msra.mxu1 %v3392_v54  ;;  %v3490_v58 = vpop.permute.xlu1 %3489  ;;  %v3488_v59 = vpop.permute.xlu0 %3487  ;;  %3547 = vmatprep.mubr.bf16.mxu0 %v15392_v0 }
 0x1a1   : > { %v3496_v61 = vsel %vm18682_vm12, %v3486_v46, %v3488_v59  ;;  %v3497_v62 = vsel %vm18682_vm12, %v3488_v59, %v3490_v58  ;;  %v644_v46 = vpop.f32.mrb[14].mxu1  ;;  %v717_v49 = vpop.f32.mrb[16].mxu0 }
 0x1a2   : > { %4901 = vrot.lane.b32.xlu1 %v15549_v4, %s18683_s4  ;;  %4791 = vrot.lane.b32.xlu0 %v16063_v30, %s18686_s27  ;;  %v3504_v2 = vsel %vm223_vm1, %v3496_v61, 0  ;;  %v765_v51 = vadd.f32 %v717_v49, %v647_v34  ;;  %v719_v53 = vpop.f32.mrb[17].mxu0  ;;  %s18696_s27 = smov 40  }
 0x1a3   : > { %14688 = vmatprep.subr.msk.bf16.mxu0 %vm223_vm1, %v3497_v62  ;;  %14686 = vmatmul.mubr.msk.bf16.vlgmr.msra.gmra.mrb[108].mxu1 %vm219_vm2, %v14682_v48  ;;  %v645_v48 = vpop.f32.mrb[15].mxu1  ;;  %v766_v59 = vadd.f32 %v719_v53, %v648_v39  ;;  %v721_v62 = vpop.f32.mrb[18].mxu0 }
 0x1a4   : > { %3516 = vmatpush1.bf16.msra.mxu0 %v3504_v2  ;;  %v3494_v14 = vpop.permute.xlu1 %3493  ;;  %v3492_v15 = vpop.permute.xlu0 %3491  ;;  %3588 = vmatprep.mubr.bf16.mxu1 %v15392_v0 }
 0x1a5   : > { %v3498_v18 = vsel %vm18682_vm12, %v3490_v58, %v3492_v15  ;;  %v3499_v19 = vsel %vm18682_vm12, %v3492_v15, %v3494_v14  ;;  %vm18691_vm12 = vcmask 564224   ;;  %v758_v52 = vpop.f32.mrb[16].mxu1  ;;  %v722_v2 = vpop.f32.mrb[19].mxu0 }
 0x1a6   : > { %4905 = vrot.lane.b32.xlu1 %v15547_v3, %s18683_s4  ;;  %4903 = vrot.lane.b32.xlu0 %v15555_v6, %s18683_s4  ;;  %v3510_v22 = vsel %vm223_vm1, %v3498_v18, 0  ;;  %v767_v58 = vadd.f32 %v758_v52, %v649_v37  ;;  %v760_v61 = vpop.f32.mrb[17].mxu1  ;;  %v835_v10 = vpop.f32.mrb[20].mxu0 }
 0x1a7   : > { %14690 = vmatprep.subr.msk.bf16.mxu1 %vm223_vm1, %v3499_v19  ;;  %14689 = vmatmul.mubr.msk.bf16.vlgmr.msra.gmra.mrb[112].mxu0 %vm219_vm2, %v14687_v16  ;;  %v768_v63 = vadd.f32 %v760_v61, %v650_v44  ;;  %v762_v1 = vpop.f32.mrb[18].mxu1  ;;  %v883_v13 = vadd.f32 %v835_v10, %v765_v51  ;;  %v837_v17 = vpop.f32.mrb[21].mxu0 }
 0x1a8   : > { %3557 = vmatpush1.bf16.msra.mxu1 %v3510_v22  ;;  %v3606_v29 = vpop.permute.xlu1 %3605  ;;  %v3604_v31 = vpop.permute.xlu0 %3603  ;;  %3665 = vmatprep.mubr.bf16.mxu0 %v15392_v0  ;;  %v884_v21 = vadd.f32 %v837_v17, %v766_v59 }
 0x1a9   : > { %v3614_v41 = vsel %vm18691_vm12, %v3604_v31, %v3606_v29  ;;  %v763_v9 = vpop.f32.mrb[19].mxu1  ;;  %v839_v22 = vpop.f32.mrb[22].mxu0 }
 0x1aa   : > { %4909 = vrot.lane.b32.xlu1 %v16063_v30, %s18683_s4  ;;  %4907 = vrot.lane.b32.xlu0 %v15553_v5, %s18683_s4  ;;  %v3622_v50 = vsel %vm223_vm1, %v3614_v41, 0  ;;  %s18689_s4 = smov 41   ;;  %v840_v25 = vpop.f32.mrb[23].mxu0  ;;  %v14702_v9 = vld [vmem:[%s18632_s1 + $0x7c] sm:$0xf] }
 0x1ab   : > { %14691 = vmatmul.mubr.msk.bf16.vlgmr.msra.gmra.mrb[112].mxu1 %vm219_vm2, %v14687_v16  ;;  %v876_v16 = vpop.f32.mrb[20].mxu1  ;;  %v953_v32 = vpop.f32.mrb[24].mxu0 }
 0x1ac   : > { %v3610_v42 = vpop.permute.xlu1 %3609  ;;  %v3608_v43 = vpop.permute.xlu0 %3607  ;;  %3706 = vmatprep.mubr.bf16.mxu1 %v15392_v0  ;;  %v885_v19 = vadd.f32 %v876_v16, %v767_v58  ;;  %v1001_v34 = vadd.f32 %v953_v32, %v883_v13 }
 0x1ad   : > { %v3615_v45 = vsel %vm18691_vm12, %v3606_v29, %v3608_v43  ;;  %v3616_v54 = vsel %vm18691_vm12, %v3608_v43, %v3610_v42  ;;  %v878_v20 = vpop.f32.mrb[21].mxu1  ;;  %v955_v36 = vpop.f32.mrb[25].mxu0 }
 0x1ae   : > { %5021 = vrot.lane.b32.xlu1 %v15555_v6, %s18692_s21  ;;  %5019 = vrot.lane.b32.xlu0 %v15549_v4, %s18692_s21  ;;  %v3628_v8 = vsel %vm223_vm1, %v3616_v54, 0  ;;  %v886_v23 = vadd.f32 %v878_v20, %v768_v63  ;;  %v880_v24 = vpop.f32.mrb[22].mxu1  ;;  %v1002_v39 = vadd.f32 %v955_v36, %v884_v21  ;;  %v957_v40 = vpop.f32.mrb[26].mxu0 }
 0x1af   : > { %14693 = vmatprep.subr.msk.bf16.mxu0 %vm223_vm1, %v3615_v45  ;;  %v881_v31 = vpop.f32.mrb[23].mxu1  ;;  %v958_v45 = vpop.f32.mrb[27].mxu0 }
 0x1b0   : > { %3634 = vmatpush1.bf16.msra.mxu0 %v3622_v50  ;;  %v3722_v55 = vpop.permute.xlu1 %3721  ;;  %v3612_v56 = vpop.permute.xlu0 %3611 }
 0x1b1   : > { %v3617_v60 = vsel %vm18691_vm12, %v3610_v42, %v3612_v56  ;;  %v994_v35 = vpop.f32.mrb[24].mxu1  ;;  %v1071_v47 = vpop.f32.mrb[28].mxu0  ;;  %vm18694_vm12 = vcmask 539648  }
 0x1b2   : > { %5025 = vrot.lane.b32.xlu1 %v15553_v5, %s18692_s21  ;;  %5023 = vrot.lane.b32.xlu0 %v15547_v3, %s18692_s21  ;;  %v1003_v37 = vadd.f32 %v994_v35, %v885_v19  ;;  %v996_v38 = vpop.f32.mrb[25].mxu1  ;;  %v1119_v48 = vadd.f32 %v1071_v47, %v1001_v34  ;;  %v1073_v50 = vpop.f32.mrb[29].mxu0 }
 0x1b3   : > { %14695 = vmatprep.subr.msk.bf16.mxu1 %vm223_vm1, %v3617_v60  ;;  %14694 = vmatmul.mubr.msk.bf16.vlgmr.msra.gmra.mrb[116].mxu0 %vm219_vm2, %v14692_v57  ;;  %v1004_v43 = vadd.f32 %v996_v38, %v886_v23  ;;  %v998_v44 = vpop.f32.mrb[26].mxu1 }
 0x1b4   : > { %3675 = vmatpush1.bf16.msra.mxu1 %v3628_v8  ;;  %v3726_v11 = vpop.permute.xlu1 %3725  ;;  %v3724_v12 = vpop.permute.xlu0 %3723  ;;  %3783 = vmatprep.mubr.bf16.mxu0 %v15392_v0 }
 0x1b5   : > { %v3732_v14 = vsel %vm18688_vm13, %v3722_v55, %v3724_v12  ;;  %v3733_v15 = vsel %vm18688_vm13, %v3724_v12, %v3726_v11  ;;  %v999_v46 = vpop.f32.mrb[27].mxu1  ;;  %v1120_v55 = vadd.f32 %v1073_v50, %v1002_v39  ;;  %v14707_v39 = vld [vmem:[%s18632_s1 + $0x80] sm:$0xf] }
 0x1b6   : > { %5137 = vrot.lane.b32.xlu1 %v15549_v4, %s18689_s4  ;;  %5027 = vrot.lane.b32.xlu0 %v16063_v30, %s18692_s21  ;;  %v3740_v18 = vsel %vm223_vm1, %v3732_v14, 0  ;;  %v1112_v49 = vpop.f32.mrb[28].mxu1  ;;  %s15437_s21 = smov 23  }
 0x1b7   : > { %14698 = vmatprep.subr.msk.bf16.mxu0 %vm223_vm1, %v3733_v15  ;;  %14696 = vmatmul.mubr.msk.bf16.vlgmr.msra.gmra.mrb[116].mxu1 %vm219_vm2, %v14692_v57  ;;  %v1121_v54 = vadd.f32 %v1112_v49, %v1003_v37  ;;  %v1114_v56 = vpop.f32.mrb[29].mxu1  ;;  %v1075_v57 = vpop.f32.mrb[30].mxu0 }
 0x1b8   : > { %3752 = vmatpush1.bf16.msra.mxu0 %v3740_v18  ;;  %v3730_v26 = vpop.permute.xlu1 %3729  ;;  %v3728_v7 = vpop.permute.xlu0 %3727  ;;  %3824 = vmatprep.mubr.bf16.mxu1 %v15392_v0  ;;  %v1122_v58 = vadd.f32 %v1114_v56, %v1004_v43 }
 0x1b9   : > { %v3734_v28 = vsel %vm18688_vm13, %v3726_v11, %v3728_v7  ;;  %v3735_v29 = vsel %vm18688_vm13, %v3728_v7, %v3730_v26  ;;  %vm18695_vm13 = vcmask 547840   ;;  %v1116_v59 = vpop.f32.mrb[30].mxu1  ;;  %v1076_v60 = vpop.f32.mrb[31].mxu0 }
 0x1ba   : > { %5141 = vrot.lane.b32.xlu1 %v15547_v3, %s18689_s4  ;;  %5139 = vrot.lane.b32.xlu0 %v15555_v6, %s18689_s4  ;;  %v3746_v33 = vsel %vm223_vm1, %v3734_v28, 0  ;;  %v1117_v62 = vpop.f32.mrb[31].mxu1  ;;  %v1189_v63 = vpop.f32.mrb[32].mxu0 }
 0x1bb   : > { %14700 = vmatprep.subr.msk.bf16.mxu1 %vm223_vm1, %v3735_v29  ;;  %14699 = vmatmul.mubr.msk.bf16.vlgmr.msra.gmra.mrb[120].mxu0 %vm219_vm2, %v14697_v27  ;;  %v1237_v10 = vadd.f32 %v1189_v63, %v1119_v48  ;;  %v1230_v12 = vpop.f32.mrb[32].mxu1  ;;  %v1191_v13 = vpop.f32.mrb[33].mxu0 }
 0x1bc   : > { %3793 = vmatpush1.bf16.msra.mxu1 %v3746_v33  ;;  %v3842_v41 = vpop.permute.xlu1 %3841  ;;  %v3840_v42 = vpop.permute.xlu0 %3839  ;;  %3901 = vmatprep.mubr.bf16.mxu0 %v15392_v0  ;;  %v1239_v14 = vadd.f32 %v1230_v12, %v1121_v54  ;;  %v1238_v16 = vadd.f32 %v1191_v13, %v1120_v55 }
 0x1bd   : > { %v3850_v51 = vsel %vm18695_vm13, %v3840_v42, %v3842_v41  ;;  %v1232_v15 = vpop.f32.mrb[33].mxu1  ;;  %v1193_v17 = vpop.f32.mrb[34].mxu0 }
 0x1be   : > { %5145 = vrot.lane.b32.xlu1 %v16063_v30, %s18689_s4  ;;  %5143 = vrot.lane.b32.xlu0 %v15553_v5, %s18689_s4  ;;  %v3858_v61 = vsel %vm223_vm1, %v3850_v51, 0  ;;  %v1240_v19 = vadd.f32 %v1232_v15, %v1122_v58  ;;  %v1234_v20 = vpop.f32.mrb[34].mxu1  ;;  %v1194_v21 = vpop.f32.mrb[35].mxu0  ;;  %s15436_s4 = smov 24  }
 0x1bf   : > { %14701 = vmatmul.mubr.msk.bf16.vlgmr.msra.gmra.mrb[120].mxu1 %vm219_vm2, %v14697_v27  ;;  %v1235_v26 = vpop.f32.mrb[35].mxu1  ;;  %v1307_v7 = vpop.f32.mrb[36].mxu0  ;;  %v16437_v27 = vld [vmem:[%s15542_s30 + $0x10] ss:$0 sps:$4 sm:$0xff]  }
 0x1c0   : > { %v3846_v52 = vpop.permute.xlu1 %3845  ;;  %v3844_v53 = vpop.permute.xlu0 %3843  ;;  %3942 = vmatprep.mubr.bf16.mxu1 %v15392_v0  ;;  %v1355_v29 = vadd.f32 %v1307_v7, %v1237_v10 }
 0x1c1   : > { %v3851_v30 = vsel %vm18695_vm13, %v3842_v41, %v3844_v53  ;;  %v3852_v1 = vsel %vm18695_vm13, %v3844_v53, %v3846_v52  ;;  %v1309_v32 = vpop.f32.mrb[37].mxu0 }
 0x1c2   : > { %5257 = vrot.lane.b32.xlu1 %v15555_v6, %s18696_s27  ;;  %5255 = vrot.lane.b32.xlu0 %v15549_v4, %s18696_s27  ;;  %v3864_v18 = vsel %vm223_vm1, %v3852_v1, 0  ;;  %v1348_v31 = vpop.f32.mrb[36].mxu1  ;;  %v1356_v35 = vadd.f32 %v1309_v32, %v1238_v16  ;;  %v1311_v36 = vpop.f32.mrb[38].mxu0 }
 0x1c3   : > { %14703 = vmatprep.subr.msk.bf16.mxu0 %vm223_vm1, %v3851_v30  ;;  %v1357_v33 = vadd.f32 %v1348_v31, %v1239_v14  ;;  %v1350_v34 = vpop.f32.mrb[37].mxu1  ;;  %v1312_v44 = vpop.f32.mrb[39].mxu0 }
 0x1c4   : > { %3870 = vmatpush1.bf16.msra.mxu0 %v3858_v61  ;;  %v3958_v2 = vpop.permute.xlu1 %3957  ;;  %v3848_v8 = vpop.permute.xlu0 %3847  ;;  %v1358_v40 = vadd.f32 %v1350_v34, %v1240_v19  ;;  %v14712_v19 = vld [vmem:[%s18632_s1 + $0x84] sm:$0xf] }
 0x1c5   : > { %v3853_v11 = vsel %vm18695_vm13, %v3846_v52, %v3848_v8  ;;  %v1352_v43 = vpop.f32.mrb[38].mxu1  ;;  %vm4203_vm13 = vcmask 400384  }
 0x1c6   : > { %5261 = vrot.lane.b32.xlu1 %v15553_v5, %s18696_s27  ;;  %5259 = vrot.lane.b32.xlu0 %v15547_v3, %s18696_s27  ;;  %v1353_v46 = vpop.f32.mrb[39].mxu1  ;;  %v1425_v47 = vpop.f32.mrb[40].mxu0 }
 0x1c7   : > { %14704 = vmatmul.mubr.msk.bf16.vlgmr.msra.gmra.mrb[124].mxu0 %vm219_vm2, %v14702_v9  ;;  %14705 = vmatprep.subr.msk.bf16.mxu1 %vm223_vm1, %v3853_v11  ;;  %v1473_v48 = vadd.f32 %v1425_v47, %v1355_v29  ;;  %v1427_v50 = vpop.f32.mrb[41].mxu0 }
 0x1c8   : > { %3911 = vmatpush1.bf16.msra.mxu1 %v3864_v18  ;;  %v3962_v22 = vpop.permute.xlu1 %3961  ;;  %v3960_v23 = vpop.permute.xlu0 %3959  ;;  %4019 = vmatprep.mubr.bf16.mxu0 %v15392_v0  ;;  %v1474_v54 = vadd.f32 %v1427_v50, %v1356_v35 }
 0x1c9   : > { %v3968_v24 = vsel %vm18694_vm12, %v3958_v2, %v3960_v23  ;;  %v3969_v25 = vsel %vm18694_vm12, %v3960_v23, %v3962_v22  ;;  %v1429_v30 = vpop.f32.mrb[42].mxu0 }
 0x1ca   : > { %5373 = vrot.lane.b32.xlu1 %v15549_v4, %s15436_s4  ;;  %5263 = vrot.lane.b32.xlu0 %v16437_v27, %s18696_s27  ;;  %v3976_v28 = vsel %vm223_vm1, %v3968_v24, 0  ;;  %v1466_v49 = vpop.f32.mrb[40].mxu1  ;;  %v1430_v58 = vpop.f32.mrb[43].mxu0  ;;  %s18704_s27 = smov 21  }
 0x1cb   : > { %14706 = vmatmul.mubr.msk.bf16.vlgmr.msra.gmra.mrb[124].mxu1 %vm219_vm2, %v14702_v9  ;;  %14708 = vmatprep.subr.msk.bf16.mxu0 %vm223_vm1, %v3969_v25  ;;  %v1475_v53 = vadd.f32 %v1466_v49, %v1357_v33  ;;  %v1468_v55 = vpop.f32.mrb[41].mxu1 }
 0x1cc   : > { %3988 = vmatpush1.bf16.msra.mxu0 %v3976_v28  ;;  %v3966_v37 = vpop.permute.xlu1 %3965  ;;  %v3964_v38 = vpop.permute.xlu0 %3963  ;;  %4060 = vmatprep.mubr.bf16.mxu1 %v15392_v0  ;;  %v1476_v56 = vadd.f32 %v1468_v55, %v1358_v40 }
 0x1cd   : > { %v3970_v41 = vsel %vm18694_vm12, %v3962_v22, %v3964_v38  ;;  %v3971_v42 = vsel %vm18694_vm12, %v3964_v38, %v3966_v37  ;;  %vm4085_vm12 = vcmask 408576   ;;  %v1470_v57 = vpop.f32.mrb[42].mxu1 }
 0x1ce   : > { %5377 = vrot.lane.b32.xlu1 %v15547_v3, %s15436_s4  ;;  %5375 = vrot.lane.b32.xlu0 %v15555_v6, %s15436_s4  ;;  %v3982_v45 = vsel %vm223_vm1, %v3970_v41, 0  ;;  %v1471_v59 = vpop.f32.mrb[43].mxu1 }
 0x1cf   : > { %14709 = vmatmul.mubr.msk.bf16.vlgmr.msra.gmra.mrb[128].mxu0 %vm219_vm2, %v14707_v39  ;;  %14710 = vmatprep.subr.msk.bf16.mxu1 %vm223_vm1, %v3971_v42  ;;  %v14717_v42 = vld [vmem:[%s18632_s1 + $0x88] sm:$0xf] }
 0x1d0   : > { %4029 = vmatpush1.bf16.msra.mxu1 %v3982_v45  ;;  %v4078_v51 = vpop.permute.xlu1 %4077  ;;  %v4076_v52 = vpop.permute.xlu0 %4075  ;;  %4137 = vmatprep.mubr.bf16.mxu0 %v15392_v0 }
 0x1d1   : > { %v4086_v61 = vsel %vm4085_vm12, %v4076_v52, %v4078_v51 }
 0x1d2   : > { %5381 = vrot.lane.b32.xlu1 %v16437_v27, %s15436_s4  ;;  %5379 = vrot.lane.b32.xlu0 %v15553_v5, %s15436_s4  ;;  %v1543_v60 = vpop.f32.mrb[44].mxu0  ;;  %v4094_v12 = vsel %vm223_vm1, %v4086_v61, 0  ;;  %s18698_s4 = smov 22  }
 0x1d3   : > { %14711 = vmatmul.mubr.msk.bf16.vlgmr.msra.gmra.mrb[128].mxu1 %vm219_vm2, %v14707_v39  ;;  %v1591_v1 = vadd.f32 %v1543_v60, %v1473_v48  ;;  %v1545_v8 = vpop.f32.mrb[45].mxu0 }
 0x1d4   : > { %v4082_v62 = vpop.permute.xlu1 %4081  ;;  %v4080_v63 = vpop.permute.xlu0 %4079  ;;  %4178 = vmatprep.mubr.bf16.mxu1 %v15392_v0  ;;  %v1592_v10 = vadd.f32 %v1545_v8, %v1474_v54 }
 0x1d5   : > { %v4087_v2 = vsel %vm4085_vm12, %v4078_v51, %v4080_v63  ;;  %v1547_v11 = vpop.f32.mrb[46].mxu0  ;;  %v4088_v16 = vsel %vm4085_vm12, %v4080_v63, %v4082_v62 }
 0x1d6   : > { %5493 = vrot.lane.b32.xlu1 %v15555_v6, %s15437_s21  ;;  %5491 = vrot.lane.b32.xlu0 %v15549_v4, %s15437_s21  ;;  %v1584_v9 = vpop.f32.mrb[44].mxu1  ;;  %v1548_v15 = vpop.f32.mrb[47].mxu0  ;;  %v4100_v25 = vsel %vm223_vm1, %v4088_v16, 0 }
 0x1d7   : > { %14713 = vmatprep.subr.msk.bf16.mxu0 %vm223_vm1, %v4087_v2  ;;  %v1593_v13 = vadd.f32 %v1584_v9, %v1475_v53  ;;  %v1586_v14 = vpop.f32.mrb[45].mxu1  ;;  %v14722_v9 = vld [vmem:[%s18632_s1 + $0x8c] sm:$0xf] }
 0x1d8   : > { %4106 = vmatpush1.bf16.msra.mxu0 %v4094_v12  ;;  %v4194_v17 = vpop.permute.xlu1 %4193  ;;  %v4084_v18 = vpop.permute.xlu0 %4083  ;;  %v1594_v20 = vadd.f32 %v1586_v14, %v1476_v56 }
 0x1d9   : > { %v4089_v21 = vsel %vm4085_vm12, %v4082_v62, %v4084_v18  ;;  %v1588_v22 = vpop.f32.mrb[46].mxu1  ;;  %vm18703_vm12 = vcmask 392192  }
 0x1da   : > { %5497 = vrot.lane.b32.xlu1 %v15553_v5, %s15437_s21  ;;  %5495 = vrot.lane.b32.xlu0 %v15547_v3, %s15437_s21  ;;  %v1589_v23 = vpop.f32.mrb[47].mxu1  ;;  %v1661_v24 = vpop.f32.mrb[48].mxu0 }
 0x1db   : > { %14714 = vmatmul.mubr.msk.bf16.vlgmr.msra.gmra.mrb[132].mxu0 %vm219_vm2, %v14712_v19  ;;  %14715 = vmatprep.subr.msk.bf16.mxu1 %vm223_vm1, %v4089_v21  ;;  %v1709_v26 = vadd.f32 %v1661_v24, %v1591_v1  ;;  %v1663_v7 = vpop.f32.mrb[49].mxu0 }
 0x1dc   : > { %4147 = vmatpush1.bf16.msra.mxu1 %v4100_v25  ;;  %v4198_v28 = vpop.permute.xlu1 %4197  ;;  %v4196_v29 = vpop.permute.xlu0 %4195  ;;  %4255 = vmatprep.mubr.bf16.mxu0 %v15392_v0  ;;  %v1710_v31 = vadd.f32 %v1663_v7, %v1592_v10 }
 0x1dd   : > { %v4204_v32 = vsel %vm4203_vm13, %v4194_v17, %v4196_v29  ;;  %v4205_v33 = vsel %vm4203_vm13, %v4196_v29, %v4198_v28  ;;  %v1665_v34 = vpop.f32.mrb[50].mxu0 }
 0x1de   : > { %5609 = vrot.lane.b32.xlu1 %v15549_v4, %s18698_s4  ;;  %5499 = vrot.lane.b32.xlu0 %v16437_v27, %s15437_s21  ;;  %v4212_v35 = vsel %vm223_vm1, %v4204_v32, 0  ;;  %v1702_v36 = vpop.f32.mrb[48].mxu1  ;;  %v1666_v37 = vpop.f32.mrb[51].mxu0  ;;  %s18701_s21 = smov 20   ;;  %v14727_v32 = vld [vmem:[%s18632_s1 + $0x90] sm:$0xf] }
 0x1df   : > { %14716 = vmatmul.mubr.msk.bf16.vlgmr.msra.gmra.mrb[132].mxu1 %vm219_vm2, %v14712_v19  ;;  %14718 = vmatprep.subr.msk.bf16.mxu0 %vm223_vm1, %v4205_v33  ;;  %v1711_v38 = vadd.f32 %v1702_v36, %v1593_v13  ;;  %v1704_v39 = vpop.f32.mrb[49].mxu1 }
 0x1e0   : > { %4224 = vmatpush1.bf16.msra.mxu0 %v4212_v35  ;;  %v4202_v40 = vpop.permute.xlu1 %4201  ;;  %v4200_v41 = vpop.permute.xlu0 %4199  ;;  %4296 = vmatprep.mubr.bf16.mxu1 %v15392_v0  ;;  %v1712_v43 = vadd.f32 %v1704_v39, %v1594_v20 }
 0x1e1   : > { %v4206_v44 = vsel %vm4203_vm13, %v4198_v28, %v4200_v41  ;;  %v4207_v45 = vsel %vm4203_vm13, %v4200_v41, %v4202_v40  ;;  %v1706_v46 = vpop.f32.mrb[50].mxu1  ;;  %vm18700_vm13 = vcmask 384000  }
 0x1e2   : > { %5613 = vrot.lane.b32.xlu1 %v15547_v3, %s18698_s4  ;;  %5611 = vrot.lane.b32.xlu0 %v15555_v6, %s18698_s4  ;;  %v4218_v47 = vsel %vm223_vm1, %v4206_v44, 0  ;;  %v1707_v48 = vpop.f32.mrb[51].mxu1 }
 0x1e3   : > { %14719 = vmatmul.mubr.msk.bf16.vlgmr.msra.gmra.mrb[136].mxu0 %vm219_vm2, %v14717_v42  ;;  %14720 = vmatprep.subr.msk.bf16.mxu1 %vm223_vm1, %v4207_v45 }
 0x1e4   : > { %4265 = vmatpush1.bf16.msra.mxu1 %v4218_v47  ;;  %v4314_v49 = vpop.permute.xlu1 %4313  ;;  %v4312_v50 = vpop.permute.xlu0 %4311  ;;  %4373 = vmatprep.mubr.bf16.mxu0 %v15392_v0 }
 0x1e5   : > { %v4322_v54 = vsel %vm18703_vm12, %v4312_v50, %v4314_v49 }
 0x1e6   : > { %5617 = vrot.lane.b32.xlu1 %v16437_v27, %s18698_s4  ;;  %5615 = vrot.lane.b32.xlu0 %v15553_v5, %s18698_s4  ;;  %v1779_v51 = vpop.f32.mrb[52].mxu0  ;;  %v4330_v61 = vsel %vm223_vm1, %v4322_v54, 0  ;;  %s18710_s4 = smov 19  }
 0x1e7   : > { %14721 = vmatmul.mubr.msk.bf16.vlgmr.msra.gmra.mrb[136].mxu1 %vm219_vm2, %v14717_v42  ;;  %v1827_v52 = vadd.f32 %v1779_v51, %v1709_v26  ;;  %v1781_v53 = vpop.f32.mrb[53].mxu0 }
 0x1e8   : > { %v4318_v55 = vpop.permute.xlu1 %4317  ;;  %v4316_v30 = vpop.permute.xlu0 %4315  ;;  %4414 = vmatprep.mubr.bf16.mxu1 %v15392_v0  ;;  %v1828_v56 = vadd.f32 %v1781_v53, %v1710_v31 }
 0x1e9   : > { %v4323_v57 = vsel %vm18703_vm12, %v4314_v49, %v4316_v30  ;;  %v1783_v58 = vpop.f32.mrb[54].mxu0  ;;  %v4324_v1 = vsel %vm18703_vm12, %v4316_v30, %v4318_v55 }
 0x1ea   : > { %5729 = vrot.lane.b32.xlu1 %v15555_v6, %s18704_s27  ;;  %5727 = vrot.lane.b32.xlu0 %v15549_v4, %s18704_s27  ;;  %v1820_v59 = vpop.f32.mrb[52].mxu1  ;;  %v1784_v60 = vpop.f32.mrb[55].mxu0  ;;  %v4336_v15 = vsel %vm223_vm1, %v4324_v1, 0 }
 0x1eb   : > { %14723 = vmatprep.subr.msk.bf16.mxu0 %vm223_vm1, %v4323_v57  ;;  %v1829_v62 = vadd.f32 %v1820_v59, %v1711_v38  ;;  %v1822_v63 = vpop.f32.mrb[53].mxu1  ;;  %v14732_v57 = vld [vmem:[%s18632_s1 + $0x94] sm:$0xf] }
 0x1ec   : > { %4342 = vmatpush1.bf16.msra.mxu0 %v4330_v61  ;;  %v4430_v2 = vpop.permute.xlu1 %4429  ;;  %v4320_v8 = vpop.permute.xlu0 %4319  ;;  %v1830_v10 = vadd.f32 %v1822_v63, %v1712_v43 }
 0x1ed   : > { %v4325_v11 = vsel %vm18703_vm12, %v4318_v55, %v4320_v8  ;;  %v1824_v12 = vpop.f32.mrb[54].mxu1  ;;  %vm18706_vm12 = vcmask 367616  }
 0x1ee   : > { %5733 = vrot.lane.b32.xlu1 %v15553_v5, %s18704_s27  ;;  %5731 = vrot.lane.b32.xlu0 %v15547_v3, %s18704_s27  ;;  %v1825_v13 = vpop.f32.mrb[55].mxu1  ;;  %v1897_v14 = vpop.f32.mrb[56].mxu0 }
 0x1ef   : > { %14724 = vmatmul.mubr.msk.bf16.vlgmr.msra.gmra.mrb[140].mxu0 %vm219_vm2, %v14722_v9  ;;  %14725 = vmatprep.subr.msk.bf16.mxu1 %vm223_vm1, %v4325_v11  ;;  %v1945_v16 = vadd.f32 %v1897_v14, %v1827_v52  ;;  %v1899_v17 = vpop.f32.mrb[57].mxu0 }
 0x1f0   : > { %4383 = vmatpush1.bf16.msra.mxu1 %v4336_v15  ;;  %v4434_v18 = vpop.permute.xlu1 %4433  ;;  %v4432_v19 = vpop.permute.xlu0 %4431  ;;  %4491 = vmatprep.mubr.bf16.mxu0 %v15392_v0  ;;  %v1946_v20 = vadd.f32 %v1899_v17, %v1828_v56 }
 0x1f1   : > { %v4440_v21 = vsel %vm18700_vm13, %v4430_v2, %v4432_v19  ;;  %v4441_v22 = vsel %vm18700_vm13, %v4432_v19, %v4434_v18  ;;  %v1901_v23 = vpop.f32.mrb[58].mxu0 }
 0x1f2   : > { %5845 = vrot.lane.b32.xlu1 %v15549_v4, %s18701_s21  ;;  %5735 = vrot.lane.b32.xlu0 %v16437_v27, %s18704_s27  ;;  %v4448_v24 = vsel %vm223_vm1, %v4440_v21, 0  ;;  %v1938_v25 = vpop.f32.mrb[56].mxu1  ;;  %v1902_v26 = vpop.f32.mrb[59].mxu0  ;;  %v14737_v21 = vld [vmem:[%s18632_s1 + $0x98] sm:$0xf]  ;;  %s18716_s27 = smov 17  }
 0x1f3   : > { %14726 = vmatmul.mubr.msk.bf16.vlgmr.msra.gmra.mrb[140].mxu1 %vm219_vm2, %v14722_v9  ;;  %14728 = vmatprep.subr.msk.bf16.mxu0 %vm223_vm1, %v4441_v22  ;;  %v1947_v7 = vadd.f32 %v1938_v25, %v1829_v62  ;;  %v1940_v28 = vpop.f32.mrb[57].mxu1 }
 0x1f4   : > { %4460 = vmatpush1.bf16.msra.mxu0 %v4448_v24  ;;  %v4438_v29 = vpop.permute.xlu1 %4437  ;;  %v4436_v31 = vpop.permute.xlu0 %4435  ;;  %4532 = vmatprep.mubr.bf16.mxu1 %v15392_v0  ;;  %v1948_v33 = vadd.f32 %v1940_v28, %v1830_v10 }
 0x1f5   : > { %v4442_v34 = vsel %vm18700_vm13, %v4434_v18, %v4436_v31  ;;  %v4443_v35 = vsel %vm18700_vm13, %v4436_v31, %v4438_v29  ;;  %v1942_v36 = vpop.f32.mrb[58].mxu1  ;;  %vm18709_vm13 = vcmask 375808  }
 0x1f6   : > { %5849 = vrot.lane.b32.xlu1 %v15547_v3, %s18701_s21  ;;  %5847 = vrot.lane.b32.xlu0 %v15555_v6, %s18701_s21  ;;  %v4454_v37 = vsel %vm223_vm1, %v4442_v34, 0  ;;  %v1943_v38 = vpop.f32.mrb[59].mxu1 }
 0x1f7   : > { %14729 = vmatmul.mubr.msk.bf16.vlgmr.msra.gmra.mrb[144].mxu0 %vm219_vm2, %v14727_v32  ;;  %14730 = vmatprep.subr.msk.bf16.mxu1 %vm223_vm1, %v4443_v35 }
 0x1f8   : > { %4501 = vmatpush1.bf16.msra.mxu1 %v4454_v37  ;;  %v4550_v39 = vpop.permute.xlu1 %4549  ;;  %v4548_v40 = vpop.permute.xlu0 %4547  ;;  %4609 = vmatprep.mubr.bf16.mxu0 %v15392_v0 }
 0x1f9   : > { %v4558_v44 = vsel %vm18709_vm13, %v4548_v40, %v4550_v39 }
 0x1fa   : > { %5853 = vrot.lane.b32.xlu1 %v16437_v27, %s18701_s21  ;;  %5851 = vrot.lane.b32.xlu0 %v15553_v5, %s18701_s21  ;;  %v2015_v41 = vpop.f32.mrb[60].mxu0  ;;  %v4566_v52 = vsel %vm223_vm1, %v4558_v44, 0  ;;  %s18707_s21 = smov 18  }
 0x1fb   : > { %14731 = vmatmul.mubr.msk.bf16.vlgmr.msra.gmra.mrb[144].mxu1 %vm219_vm2, %v14727_v32  ;;  %v2063_v42 = vadd.f32 %v2015_v41, %v1945_v16  ;;  %v2017_v43 = vpop.f32.mrb[61].mxu0 }
 0x1fc   : > { %v4554_v45 = vpop.permute.xlu1 %4553  ;;  %v4552_v46 = vpop.permute.xlu0 %4551  ;;  %4650 = vmatprep.mubr.bf16.mxu1 %v15392_v0  ;;  %v2064_v47 = vadd.f32 %v2017_v43, %v1946_v20 }
 0x1fd   : > { %v4559_v48 = vsel %vm18709_vm13, %v4550_v39, %v4552_v46  ;;  %v2019_v49 = vpop.f32.mrb[62].mxu0  ;;  %v4560_v55 = vsel %vm18709_vm13, %v4552_v46, %v4554_v45 }
 0x1fe   : > { %5965 = vrot.lane.b32.xlu1 %v15555_v6, %s18710_s4  ;;  %5963 = vrot.lane.b32.xlu0 %v15549_v4, %s18710_s4  ;;  %v2056_v50 = vpop.f32.mrb[60].mxu1  ;;  %v2020_v51 = vpop.f32.mrb[63].mxu0  ;;  %v4572_v63 = vsel %vm223_vm1, %v4560_v55, 0 }
 0x1ff   : > { %14733 = vmatprep.subr.msk.bf16.mxu0 %vm223_vm1, %v4559_v48  ;;  %v2065_v53 = vadd.f32 %v2056_v50, %v1947_v7  ;;  %v2058_v54 = vpop.f32.mrb[61].mxu1  ;;  %v14742_v48 = vld [vmem:[%s18632_s1 + $0x9c] sm:$0xf] }
 0x200   : > { %4578 = vmatpush1.bf16.msra.mxu0 %v4566_v52  ;;  %v4666_v30 = vpop.permute.xlu1 %4665  ;;  %v4556_v56 = vpop.permute.xlu0 %4555  ;;  %v2066_v58 = vadd.f32 %v2058_v54, %v1948_v33 }
 0x201   : > { %v4561_v59 = vsel %vm18709_vm13, %v4554_v45, %v4556_v56  ;;  %v2060_v60 = vpop.f32.mrb[62].mxu1  ;;  %vm18712_vm13 = vcmask 351232  }
 0x202   : > { %5969 = vrot.lane.b32.xlu1 %v15553_v5, %s18710_s4  ;;  %5967 = vrot.lane.b32.xlu0 %v15547_v3, %s18710_s4  ;;  %v2061_v61 = vpop.f32.mrb[63].mxu1  ;;  %v2133_v62 = vpop.f32.mrb[64].mxu0 }
 0x203   : > { %14734 = vmatmul.mubr.msk.bf16.vlgmr.msra.gmra.mrb[148].mxu0 %vm219_vm2, %v14732_v57  ;;  %14735 = vmatprep.subr.msk.bf16.mxu1 %vm223_vm1, %v4561_v59  ;;  %v2181_v1 = vadd.f32 %v2133_v62, %v2063_v42  ;;  %v2135_v2 = vpop.f32.mrb[65].mxu0 }
 0x204   : > { %4619 = vmatpush1.bf16.msra.mxu1 %v4572_v63  ;;  %v4670_v8 = vpop.permute.xlu1 %4669  ;;  %v4668_v9 = vpop.permute.xlu0 %4667  ;;  %4727 = vmatprep.mubr.bf16.mxu0 %v15392_v0  ;;  %v2182_v10 = vadd.f32 %v2135_v2, %v2064_v47 }
 0x205   : > { %v4676_v11 = vsel %vm18706_vm12, %v4666_v30, %v4668_v9  ;;  %v4677_v12 = vsel %vm18706_vm12, %v4668_v9, %v4670_v8  ;;  %v2137_v13 = vpop.f32.mrb[66].mxu0 }
 0x206   : > { %6081 = vrot.lane.b32.xlu1 %v15549_v4, %s18707_s21  ;;  %5971 = vrot.lane.b32.xlu0 %v16437_v27, %s18710_s4  ;;  %v4684_v14 = vsel %vm223_vm1, %v4676_v11, 0  ;;  %v2174_v15 = vpop.f32.mrb[64].mxu1  ;;  %v2138_v16 = vpop.f32.mrb[67].mxu0  ;;  %v14747_v11 = vld [vmem:[%s18632_s1 + $0xa0] sm:$0xf]  ;;  %s15445_s4 = smov 15  }
 0x207   : > { %14736 = vmatmul.mubr.msk.bf16.vlgmr.msra.gmra.mrb[148].mxu1 %vm219_vm2, %v14732_v57  ;;  %14738 = vmatprep.subr.msk.bf16.mxu0 %vm223_vm1, %v4677_v12  ;;  %v2183_v17 = vadd.f32 %v2174_v15, %v2065_v53  ;;  %v2176_v18 = vpop.f32.mrb[65].mxu1 }
 0x208   : > { %4696 = vmatpush1.bf16.msra.mxu0 %v4684_v14  ;;  %v4674_v19 = vpop.permute.xlu1 %4673  ;;  %v4672_v20 = vpop.permute.xlu0 %4671  ;;  %4768 = vmatprep.mubr.bf16.mxu1 %v15392_v0  ;;  %v2184_v22 = vadd.f32 %v2176_v18, %v2066_v58 }
 0x209   : > { %v4678_v23 = vsel %vm18706_vm12, %v4670_v8, %v4672_v20  ;;  %v4679_v24 = vsel %vm18706_vm12, %v4672_v20, %v4674_v19  ;;  %v2178_v25 = vpop.f32.mrb[66].mxu1  ;;  %vm18715_vm12 = vcmask 359424  }
 0x20a   : > { %6085 = vrot.lane.b32.xlu1 %v15547_v3, %s18707_s21  ;;  %6083 = vrot.lane.b32.xlu0 %v15555_v6, %s18707_s21  ;;  %v4690_v26 = vsel %vm223_vm1, %v4678_v23, 0  ;;  %v2179_v7 = vpop.f32.mrb[67].mxu1 }
 0x20b   : > { %14739 = vmatmul.mubr.msk.bf16.vlgmr.msra.gmra.mrb[152].mxu0 %vm219_vm2, %v14737_v21  ;;  %14740 = vmatprep.subr.msk.bf16.mxu1 %vm223_vm1, %v4679_v24 }
 0x20c   : > { %4737 = vmatpush1.bf16.msra.mxu1 %v4690_v26  ;;  %v4786_v28 = vpop.permute.xlu1 %4785  ;;  %v4784_v29 = vpop.permute.xlu0 %4783  ;;  %4845 = vmatprep.mubr.bf16.mxu0 %v15392_v0 }
 0x20d   : > { %v4794_v34 = vsel %vm18715_vm12, %v4784_v29, %v4786_v28 }
 0x20e   : > { %6089 = vrot.lane.b32.xlu1 %v16437_v27, %s18707_s21  ;;  %6087 = vrot.lane.b32.xlu0 %v15553_v5, %s18707_s21  ;;  %v2251_v31 = vpop.f32.mrb[68].mxu0  ;;  %v4802_v42 = vsel %vm223_vm1, %v4794_v34, 0  ;;  %s18713_s21 = smov 16  }
 0x20f   : > { %14741 = vmatmul.mubr.msk.bf16.vlgmr.msra.gmra.mrb[152].mxu1 %vm219_vm2, %v14737_v21  ;;  %v2299_v32 = vadd.f32 %v2251_v31, %v2181_v1  ;;  %v2253_v33 = vpop.f32.mrb[69].mxu0 }
 0x210   : > { %v4790_v35 = vpop.permute.xlu1 %4789  ;;  %v4788_v36 = vpop.permute.xlu0 %4787  ;;  %4886 = vmatprep.mubr.bf16.mxu1 %v15392_v0  ;;  %v2300_v37 = vadd.f32 %v2253_v33, %v2182_v10 }
 0x211   : > { %v4795_v38 = vsel %vm18715_vm12, %v4786_v28, %v4788_v36  ;;  %v2255_v39 = vpop.f32.mrb[70].mxu0  ;;  %v4796_v45 = vsel %vm18715_vm12, %v4788_v36, %v4790_v35 }
 0x212   : > { %6201 = vrot.lane.b32.xlu1 %v15555_v6, %s18716_s27  ;;  %6199 = vrot.lane.b32.xlu0 %v15549_v4, %s18716_s27  ;;  %v2292_v40 = vpop.f32.mrb[68].mxu1  ;;  %v2256_v41 = vpop.f32.mrb[71].mxu0  ;;  %v4808_v54 = vsel %vm223_vm1, %v4796_v45, 0 }
 0x213   : > { %14743 = vmatprep.subr.msk.bf16.mxu0 %vm223_vm1, %v4795_v38  ;;  %v2301_v43 = vadd.f32 %v2292_v40, %v2183_v17  ;;  %v2294_v44 = vpop.f32.mrb[69].mxu1  ;;  %v14752_v38 = vld [vmem:[%s18632_s1 + $0xa4] sm:$0xf] }
 0x214   : > { %4814 = vmatpush1.bf16.msra.mxu0 %v4802_v42  ;;  %v4902_v46 = vpop.permute.xlu1 %4901  ;;  %v4792_v47 = vpop.permute.xlu0 %4791  ;;  %v2302_v49 = vadd.f32 %v2294_v44, %v2184_v22 }
 0x215   : > { %v4797_v50 = vsel %vm18715_vm12, %v4790_v35, %v4792_v47  ;;  %v2296_v51 = vpop.f32.mrb[70].mxu1  ;;  %vm18718_vm12 = vcmask 334848  }
 0x216   : > { %6205 = vrot.lane.b32.xlu1 %v15553_v5, %s18716_s27  ;;  %6203 = vrot.lane.b32.xlu0 %v15547_v3, %s18716_s27  ;;  %v2297_v52 = vpop.f32.mrb[71].mxu1  ;;  %v2369_v53 = vpop.f32.mrb[72].mxu0 }
 0x217   : > { %14744 = vmatmul.mubr.msk.bf16.vlgmr.msra.gmra.mrb[156].mxu0 %vm219_vm2, %v14742_v48  ;;  %14745 = vmatprep.subr.msk.bf16.mxu1 %vm223_vm1, %v4797_v50  ;;  %v2417_v55 = vadd.f32 %v2369_v53, %v2299_v32  ;;  %v2371_v30 = vpop.f32.mrb[73].mxu0 }
 0x218   : > { %4855 = vmatpush1.bf16.msra.mxu1 %v4808_v54  ;;  %v4906_v56 = vpop.permute.xlu1 %4905  ;;  %v4904_v57 = vpop.permute.xlu0 %4903  ;;  %4963 = vmatprep.mubr.bf16.mxu0 %v15392_v0  ;;  %v2418_v58 = vadd.f32 %v2371_v30, %v2300_v37 }
 0x219   : > { %v4912_v59 = vsel %vm18712_vm13, %v4902_v46, %v4904_v57  ;;  %v4913_v60 = vsel %vm18712_vm13, %v4904_v57, %v4906_v56  ;;  %v2373_v61 = vpop.f32.mrb[74].mxu0 }
 0x21a   : > { %6317 = vrot.lane.b32.xlu1 %v15549_v4, %s18713_s21  ;;  %6207 = vrot.lane.b32.xlu0 %v16437_v27, %s18716_s27  ;;  %v4920_v62 = vsel %vm223_vm1, %v4912_v59, 0  ;;  %v2410_v63 = vpop.f32.mrb[72].mxu1  ;;  %v2374_v1 = vpop.f32.mrb[75].mxu0  ;;  %s15447_s27 = smov 117  }
 0x21b   : > { %14746 = vmatmul.mubr.msk.bf16.vlgmr.msra.gmra.mrb[156].mxu1 %vm219_vm2, %v14742_v48  ;;  %14748 = vmatprep.subr.msk.bf16.mxu0 %vm223_vm1, %v4913_v60  ;;  %v2419_v2 = vadd.f32 %v2410_v63, %v2301_v43  ;;  %v2412_v8 = vpop.f32.mrb[73].mxu1 }
 0x21c   : > { %4932 = vmatpush1.bf16.msra.mxu0 %v4920_v62  ;;  %v4910_v9 = vpop.permute.xlu1 %4909  ;;  %v4908_v10 = vpop.permute.xlu0 %4907  ;;  %5004 = vmatprep.mubr.bf16.mxu1 %v15392_v0  ;;  %v2420_v12 = vadd.f32 %v2412_v8, %v2302_v49 }
 0x21d   : > { %v4914_v13 = vsel %vm18712_vm13, %v4906_v56, %v4908_v10  ;;  %v4915_v14 = vsel %vm18712_vm13, %v4908_v10, %v4910_v9  ;;  %v2414_v15 = vpop.f32.mrb[74].mxu1  ;;  %vm18719_vm13 = vcmask 343040  }
 0x21e   : > { %6321 = vrot.lane.b32.xlu1 %v15547_v3, %s18713_s21  ;;  %6319 = vrot.lane.b32.xlu0 %v15555_v6, %s18713_s21  ;;  %v4926_v16 = vsel %vm223_vm1, %v4914_v13, 0  ;;  %v2415_v17 = vpop.f32.mrb[75].mxu1 }
 0x21f   : > { %14749 = vmatmul.mubr.msk.bf16.vlgmr.msra.gmra.mrb[160].mxu0 %vm219_vm2, %v14747_v11  ;;  %14750 = vmatprep.subr.msk.bf16.mxu1 %vm223_vm1, %v4915_v14 }
 0x220   : > { %4973 = vmatpush1.bf16.msra.mxu1 %v4926_v16  ;;  %v5022_v18 = vpop.permute.xlu1 %5021  ;;  %v5020_v19 = vpop.permute.xlu0 %5019  ;;  %5081 = vmatprep.mubr.bf16.mxu0 %v15392_v0 }
 0x221   : > { %v5030_v23 = vsel %vm18719_vm13, %v5020_v19, %v5022_v18 }
 0x222   : > { %6325 = vrot.lane.b32.xlu1 %v16437_v27, %s18713_s21  ;;  %6323 = vrot.lane.b32.xlu0 %v15553_v5, %s18713_s21  ;;  %v2487_v20 = vpop.f32.mrb[76].mxu0  ;;  %v5038_v32 = vsel %vm223_vm1, %v5030_v23, 0  ;;  %s15446_s21 = smov 14  }
 0x223   : > { %14751 = vmatmul.mubr.msk.bf16.vlgmr.msra.gmra.mrb[160].mxu1 %vm219_vm2, %v14747_v11  ;;  %v2535_v21 = vadd.f32 %v2487_v20, %v2417_v55  ;;  %v2489_v22 = vpop.f32.mrb[77].mxu0  ;;  %v6670_v11 = vld [vmem:[%s15542_s30 + $0xc] sm:$0xff] }
 0x224   : > { %v5026_v24 = vpop.permute.xlu1 %5025  ;;  %v5024_v25 = vpop.permute.xlu0 %5023  ;;  %5122 = vmatprep.mubr.bf16.mxu1 %v15392_v0  ;;  %v2536_v26 = vadd.f32 %v2489_v22, %v2418_v58  ;;  %v16728_v19 = vcombine.low %v6670_v11, %v6670_v11 }
 0x225   : > { %v5031_v7 = vsel %vm18719_vm13, %v5022_v18, %v5024_v25  ;;  %v2491_v28 = vpop.f32.mrb[78].mxu0  ;;  %v5032_v35 = vsel %vm18719_vm13, %v5024_v25, %v5026_v24  ;;  %v16726_v18 = vcombine.high %v6670_v11, %v6670_v11 }
 0x226   : > { %6437 = vrot.lane.b32.xlu1 %v15555_v6, %s15445_s4  ;;  %6435 = vrot.lane.b32.xlu0 %v15549_v4, %s15445_s4  ;;  %v2528_v29 = vpop.f32.mrb[76].mxu1  ;;  %v2492_v31 = vpop.f32.mrb[79].mxu0  ;;  %v5044_v44 = vsel %vm223_vm1, %v5032_v35, 0  ;;  %v14762_v28 = vld [vmem:[%s18632_s1 + $0xac] sm:$0xf] }
 0x227   : > { %14753 = vmatprep.subr.msk.bf16.mxu0 %vm223_vm1, %v5031_v7  ;;  %v2537_v33 = vadd.f32 %v2528_v29, %v2419_v2  ;;  %v2530_v34 = vpop.f32.mrb[77].mxu1  ;;  %v6669_v2 = vld [vmem:[%s15542_s30 + $0x4] sm:$0xff] }
 0x228   : > { %5050 = vmatpush1.bf16.msra.mxu0 %v5038_v32  ;;  %v5138_v36 = vpop.permute.xlu1 %5137  ;;  %v5028_v37 = vpop.permute.xlu0 %5027  ;;  %v2538_v39 = vadd.f32 %v2530_v34, %v2420_v12 }
 0x229   : > { %v5033_v40 = vsel %vm18719_vm13, %v5026_v24, %v5028_v37  ;;  %v2532_v41 = vpop.f32.mrb[78].mxu1  ;;  %vm5383_vm13 = vcmask 195584  }
 0x22a   : > { %6441 = vrot.lane.b32.xlu1 %v15553_v5, %s15445_s4  ;;  %6439 = vrot.lane.b32.xlu0 %v15547_v3, %s15445_s4  ;;  %v2533_v42 = vpop.f32.mrb[79].mxu1  ;;  %v2605_v43 = vpop.f32.mrb[80].mxu0 }
 0x22b   : > { %14754 = vmatmul.mubr.msk.bf16.vlgmr.msra.gmra.mrb[164].mxu0 %vm219_vm2, %v14752_v38  ;;  %14755 = vmatprep.subr.msk.bf16.mxu1 %vm223_vm1, %v5033_v40  ;;  %v2653_v45 = vadd.f32 %v2605_v43, %v2535_v21  ;;  %v2607_v46 = vpop.f32.mrb[81].mxu0 }
 0x22c   : > { %5091 = vmatpush1.bf16.msra.mxu1 %v5044_v44  ;;  %v5142_v47 = vpop.permute.xlu1 %5141  ;;  %v5140_v48 = vpop.permute.xlu0 %5139  ;;  %5199 = vmatprep.mubr.bf16.mxu0 %v15392_v0  ;;  %v2654_v49 = vadd.f32 %v2607_v46, %v2536_v26 }
 0x22d   : > { %v5148_v50 = vsel %vm18718_vm12, %v5138_v36, %v5140_v48  ;;  %v5149_v51 = vsel %vm18718_vm12, %v5140_v48, %v5142_v47  ;;  %v2609_v52 = vpop.f32.mrb[82].mxu0 }
 0x22e   : > { %6553 = vrot.lane.b32.xlu1 %v15549_v4, %s15446_s21  ;;  %6443 = vrot.lane.b32.xlu0 %v16437_v27, %s15445_s4  ;;  %v5156_v53 = vsel %vm223_vm1, %v5148_v50, 0  ;;  %v2646_v54 = vpop.f32.mrb[80].mxu1  ;;  %v2610_v55 = vpop.f32.mrb[83].mxu0  ;;  %v14757_v4 = vld [vmem:[%s18632_s1 + $0xa8] sm:$0xf] }
 0x22f   : > { %14756 = vmatmul.mubr.msk.bf16.vlgmr.msra.gmra.mrb[164].mxu1 %vm219_vm2, %v14752_v38  ;;  %14758 = vmatprep.subr.msk.bf16.mxu0 %vm223_vm1, %v5149_v51  ;;  %v2655_v30 = vadd.f32 %v2646_v54, %v2537_v33  ;;  %v2648_v56 = vpop.f32.mrb[81].mxu1  ;;  %v16742_v33 = vld [vmem:[%s15542_s30 + $0x14] ss:$0 sps:$4 sm:$0xff]   ;;  %v14767_v52 = vld [vmem:[%s18632_s1 + $0xb0] sm:$0xf] }
 0x230   : > { %5168 = vmatpush1.bf16.msra.mxu0 %v5156_v53  ;;  %v5146_v57 = vpop.permute.xlu1 %5145  ;;  %v5144_v58 = vpop.permute.xlu0 %5143  ;;  %5240 = vmatprep.mubr.bf16.mxu1 %v15392_v0  ;;  %v2656_v59 = vadd.f32 %v2648_v56, %v2538_v39 }
 0x231   : > { %v5150_v60 = vsel %vm18718_vm12, %v5142_v47, %v5144_v58  ;;  %v5151_v61 = vsel %vm18718_vm12, %v5144_v58, %v5146_v57  ;;  %v2650_v62 = vpop.f32.mrb[82].mxu1  ;;  %vm18720_vm12 = vcmask 326656  }
 0x232   : > { %6557 = vrot.lane.b32.xlu1 %v15547_v3, %s15446_s21  ;;  %6555 = vrot.lane.b32.xlu0 %v15555_v6, %s15446_s21  ;;  %v5162_v63 = vsel %vm223_vm1, %v5150_v60, 0  ;;  %v2651_v1 = vpop.f32.mrb[83].mxu1  ;;  %v16713_v3 = vcombine.high %v6669_v2, %v6669_v2  ;;  %v16715_v6 = vcombine.low %v6669_v2, %v6669_v2 }
 0x233   : > { %14759 = vmatmul.mubr.msk.bf16.vlgmr.msra.gmra.mrb[168].mxu0 %vm219_vm2, %v14757_v4  ;;  %14760 = vmatprep.subr.msk.bf16.mxu1 %vm223_vm1, %v5151_v61 }
 0x234   : > { %5209 = vmatpush1.bf16.msra.mxu1 %v5162_v63  ;;  %v5258_v8 = vpop.permute.xlu1 %5257  ;;  %v5256_v9 = vpop.permute.xlu0 %5255  ;;  %5317 = vmatprep.mubr.bf16.mxu0 %v15392_v0 }
 0x235   : > { %v5266_v14 = vsel %vm18720_vm12, %v5256_v9, %v5258_v8 }
 0x236   : > { %6561 = vrot.lane.b32.xlu1 %v16437_v27, %s15446_s21  ;;  %6559 = vrot.lane.b32.xlu0 %v15553_v5, %s15446_s21  ;;  %v2723_v10 = vpop.f32.mrb[84].mxu0  ;;  %v5274_v22 = vsel %vm223_vm1, %v5266_v14, 0 }
 0x237   : > { %14761 = vmatmul.mubr.msk.bf16.vlgmr.msra.gmra.mrb[168].mxu1 %vm219_vm2, %v14757_v4  ;;  %v2771_v12 = vadd.f32 %v2723_v10, %v2653_v45  ;;  %v2725_v13 = vpop.f32.mrb[85].mxu0 }
 0x238   : > { %v5262_v15 = vpop.permute.xlu1 %5261  ;;  %v5260_v16 = vpop.permute.xlu0 %5259  ;;  %5358 = vmatprep.mubr.bf16.mxu1 %v15392_v0  ;;  %v2772_v27 = vadd.f32 %v2725_v13, %v2654_v49 }
 0x239   : > { %v5267_v17 = vsel %vm18720_vm12, %v5258_v8, %v5260_v16  ;;  %v2727_v5 = vpop.f32.mrb[86].mxu0  ;;  %v5268_v25 = vsel %vm18720_vm12, %v5260_v16, %v5262_v15 }
 0x23a   : > { %6689 = vrot.lane.b32.xlu1 %v16713_v3, %s15394_s5  ;;  %6687 = vrot.lane.b32.xlu0 %v16715_v6, %s15394_s5  ;;  %v2764_v20 = vpop.f32.mrb[84].mxu1  ;;  %v2728_v21 = vpop.f32.mrb[87].mxu0  ;;  %v5280_v36 = vsel %vm223_vm1, %v5268_v25, 0 }
 0x23b   : > { %14763 = vmatprep.subr.msk.bf16.mxu0 %vm223_vm1, %v5267_v17  ;;  %v2773_v23 = vadd.f32 %v2764_v20, %v2655_v30  ;;  %v2766_v24 = vpop.f32.mrb[85].mxu1  ;;  %v14772_v17 = vld [vmem:[%s18632_s1 + $0xb4] sm:$0xf] }
 0x23c   : > { %5286 = vmatpush1.bf16.msra.mxu0 %v5274_v22  ;;  %v5374_v26 = vpop.permute.xlu1 %5373  ;;  %v5264_v7 = vpop.permute.xlu0 %5263  ;;  %v2774_v29 = vadd.f32 %v2766_v24, %v2656_v59 }
 0x23d   : > { %v5269_v31 = vsel %vm18720_vm12, %v5262_v15, %v5264_v7  ;;  %v2768_v32 = vpop.f32.mrb[86].mxu1  ;;  %vm18721_vm12 = vcmask 179200  }
 0x23e   : > { %6693 = vrot.lane.b32.xlu1 %v16726_v18, %s15394_s5  ;;  %6691 = vrot.lane.b32.xlu0 %v16728_v19, %s15394_s5  ;;  %v2769_v34 = vpop.f32.mrb[87].mxu1  ;;  %v2841_v35 = vpop.f32.mrb[88].mxu0 }
 0x23f   : > { %14764 = vmatmul.mubr.msk.bf16.vlgmr.msra.gmra.mrb[172].mxu0 %vm219_vm2, %v14762_v28  ;;  %14765 = vmatprep.subr.msk.bf16.mxu1 %vm223_vm1, %v5269_v31  ;;  %v2889_v37 = vadd.f32 %v2841_v35, %v2771_v12  ;;  %v2843_v38 = vpop.f32.mrb[89].mxu0 }
 0x240   : > { %5327 = vmatpush1.bf16.msra.mxu1 %v5280_v36  ;;  %v5378_v39 = vpop.permute.xlu1 %5377  ;;  %v5376_v40 = vpop.permute.xlu0 %5375  ;;  %5435 = vmatprep.mubr.bf16.mxu0 %v15392_v0  ;;  %v2890_v41 = vadd.f32 %v2843_v38, %v2772_v27 }
 0x241   : > { %v5384_v42 = vsel %vm5383_vm13, %v5374_v26, %v5376_v40  ;;  %v5385_v43 = vsel %vm5383_vm13, %v5376_v40, %v5378_v39  ;;  %v2845_v44 = vpop.f32.mrb[90].mxu0 }
 0x242   : > { %6804 = vrot.lane.b32.xlu1 %v16715_v6, %s15395_s6  ;;  %6695 = vrot.lane.b32.xlu0 %v16742_v33, %s15394_s5  ;;  %v5392_v45 = vsel %vm223_vm1, %v5384_v42, 0  ;;  %v2882_v46 = vpop.f32.mrb[88].mxu1  ;;  %v2846_v47 = vpop.f32.mrb[91].mxu0  ;;  %v14777_v42 = vld [vmem:[%s18632_s1 + $0xb8] sm:$0xf]  ;;  %s18731_s5 = smov 96  }
 0x243   : > { %14766 = vmatmul.mubr.msk.bf16.vlgmr.msra.gmra.mrb[172].mxu1 %vm219_vm2, %v14762_v28  ;;  %14768 = vmatprep.subr.msk.bf16.mxu0 %vm223_vm1, %v5385_v43  ;;  %v2891_v48 = vadd.f32 %v2882_v46, %v2773_v23  ;;  %v2884_v49 = vpop.f32.mrb[89].mxu1 }
 0x244   : > { %5404 = vmatpush1.bf16.msra.mxu0 %v5392_v45  ;;  %v5382_v50 = vpop.permute.xlu1 %5381  ;;  %v5380_v51 = vpop.permute.xlu0 %5379  ;;  %5476 = vmatprep.mubr.bf16.mxu1 %v15392_v0  ;;  %v2892_v53 = vadd.f32 %v2884_v49, %v2774_v29 }
 0x245   : > { %v5386_v54 = vsel %vm5383_vm13, %v5378_v39, %v5380_v51  ;;  %v5387_v55 = vsel %vm5383_vm13, %v5380_v51, %v5382_v50  ;;  %v2886_v30 = vpop.f32.mrb[90].mxu1  ;;  %vm5501_vm13 = vcmask 187392  }
 0x246   : > { %6808 = vrot.lane.b32.xlu1 %v16728_v19, %s15395_s6  ;;  %6806 = vrot.lane.b32.xlu0 %v16713_v3, %s15395_s6  ;;  %v5398_v56 = vsel %vm223_vm1, %v5386_v54, 0  ;;  %v2887_v57 = vpop.f32.mrb[91].mxu1 }
 0x247   : > { %14769 = vmatmul.mubr.msk.bf16.vlgmr.msra.gmra.mrb[176].mxu0 %vm219_vm2, %v14767_v52  ;;  %14770 = vmatprep.subr.msk.bf16.mxu1 %vm223_vm1, %v5387_v55 }
 0x248   : > { %5445 = vmatpush1.bf16.msra.mxu1 %v5398_v56  ;;  %v5494_v58 = vpop.permute.xlu1 %5493  ;;  %v5492_v4 = vpop.permute.xlu0 %5491  ;;  %5553 = vmatprep.mubr.bf16.mxu0 %v15392_v0 }
 0x249   : > { %v5502_v62 = vsel %vm5501_vm13, %v5492_v4, %v5494_v58 }
 0x24a   : > { %6812 = vrot.lane.b32.xlu1 %v16742_v33, %s15395_s6  ;;  %6810 = vrot.lane.b32.xlu0 %v16726_v18, %s15395_s6  ;;  %v2959_v59 = vpop.f32.mrb[92].mxu0  ;;  %v5510_v12 = vsel %vm223_vm1, %v5502_v62, 0  ;;  %s15448_s6 = smov 116  }
 0x24b   : > { %14771 = vmatmul.mubr.msk.bf16.vlgmr.msra.gmra.mrb[176].mxu1 %vm219_vm2, %v14767_v52  ;;  %v3007_v60 = vadd.f32 %v2959_v59, %v2889_v37  ;;  %v2961_v61 = vpop.f32.mrb[93].mxu0 }
 0x24c   : > { %v5498_v63 = vpop.permute.xlu1 %5497  ;;  %v5496_v1 = vpop.permute.xlu0 %5495  ;;  %5594 = vmatprep.mubr.bf16.mxu1 %v15392_v0  ;;  %v3008_v2 = vadd.f32 %v2961_v61, %v2890_v41 }
 0x24d   : > { %v5503_v8 = vsel %vm5501_vm13, %v5494_v58, %v5496_v1  ;;  %v2963_v9 = vpop.f32.mrb[94].mxu0  ;;  %v5504_v15 = vsel %vm5501_vm13, %v5496_v1, %v5498_v63 }
 0x24e   : > { %6923 = vrot.lane.b32.xlu1 %v16713_v3, %s15396_s7  ;;  %6921 = vrot.lane.b32.xlu0 %v16715_v6, %s15396_s7  ;;  %v3000_v10 = vpop.f32.mrb[92].mxu1  ;;  %v2964_v11 = vpop.f32.mrb[95].mxu0  ;;  %v5516_v24 = vsel %vm223_vm1, %v5504_v15, 0 }
 0x24f   : > { %14773 = vmatprep.subr.msk.bf16.mxu0 %vm223_vm1, %v5503_v8  ;;  %v3009_v13 = vadd.f32 %v3000_v10, %v2891_v48  ;;  %v3002_v14 = vpop.f32.mrb[93].mxu1  ;;  %v14782_v8 = vld [vmem:[%s18632_s1 + $0xbc] sm:$0xf] }
 0x250   : > { %5522 = vmatpush1.bf16.msra.mxu0 %v5510_v12  ;;  %v5610_v16 = vpop.permute.xlu1 %5609  ;;  %v5500_v27 = vpop.permute.xlu0 %5499  ;;  %v3010_v5 = vadd.f32 %v3002_v14, %v2892_v53 }
 0x251   : > { %v5505_v20 = vsel %vm5501_vm13, %v5498_v63, %v5500_v27  ;;  %v3004_v21 = vpop.f32.mrb[94].mxu1  ;;  %vm18723_vm13 = vcmask 171008  }
 0x252   : > { %6927 = vrot.lane.b32.xlu1 %v16726_v18, %s15396_s7  ;;  %6925 = vrot.lane.b32.xlu0 %v16728_v19, %s15396_s7  ;;  %v3005_v22 = vpop.f32.mrb[95].mxu1  ;;  %v3077_v23 = vpop.f32.mrb[96].mxu0 }
 0x253   : > { %14774 = vmatmul.mubr.msk.bf16.vlgmr.msra.gmra.mrb[180].mxu0 %vm219_vm2, %v14772_v17  ;;  %14775 = vmatprep.subr.msk.bf16.mxu1 %vm223_vm1, %v5505_v20  ;;  %v3125_v25 = vadd.f32 %v3077_v23, %v3007_v60  ;;  %v3079_v26 = vpop.f32.mrb[97].mxu0 }
 0x254   : > { %5563 = vmatpush1.bf16.msra.mxu1 %v5516_v24  ;;  %v5614_v7 = vpop.permute.xlu1 %5613  ;;  %v5612_v28 = vpop.permute.xlu0 %5611  ;;  %5671 = vmatprep.mubr.bf16.mxu0 %v15392_v0  ;;  %v3126_v29 = vadd.f32 %v3079_v26, %v3008_v2 }
 0x255   : > { %v5620_v31 = vsel %vm18721_vm12, %v5610_v16, %v5612_v28  ;;  %v5621_v32 = vsel %vm18721_vm12, %v5612_v28, %v5614_v7  ;;  %v3081_v34 = vpop.f32.mrb[98].mxu0 }
 0x256   : > { %7038 = vrot.lane.b32.xlu1 %v16715_v6, %s15397_s8  ;;  %6929 = vrot.lane.b32.xlu0 %v16742_v33, %s15396_s7  ;;  %v5628_v35 = vsel %vm223_vm1, %v5620_v31, 0  ;;  %v3118_v36 = vpop.f32.mrb[96].mxu1  ;;  %v3082_v37 = vpop.f32.mrb[99].mxu0  ;;  %v14787_v31 = vld [vmem:[%s18632_s1 + $0xc0] sm:$0xf] }
 0x257   : > { %14776 = vmatmul.mubr.msk.bf16.vlgmr.msra.gmra.mrb[180].mxu1 %vm219_vm2, %v14772_v17  ;;  %14778 = vmatprep.subr.msk.bf16.mxu0 %vm223_vm1, %v5621_v32  ;;  %v3127_v38 = vadd.f32 %v3118_v36, %v3009_v13  ;;  %v3120_v39 = vpop.f32.mrb[97].mxu1 }
 0x258   : > { %5640 = vmatpush1.bf16.msra.mxu0 %v5628_v35  ;;  %v5618_v40 = vpop.permute.xlu1 %5617  ;;  %v5616_v41 = vpop.permute.xlu0 %5615  ;;  %5712 = vmatprep.mubr.bf16.mxu1 %v15392_v0  ;;  %v3128_v43 = vadd.f32 %v3120_v39, %v3010_v5 }
 0x259   : > { %v5622_v44 = vsel %vm18721_vm12, %v5614_v7, %v5616_v41  ;;  %v5623_v45 = vsel %vm18721_vm12, %v5616_v41, %v5618_v40  ;;  %v3122_v46 = vpop.f32.mrb[98].mxu1  ;;  %vm18722_vm12 = vcmask 162816  }
 0x25a   : > { %7042 = vrot.lane.b32.xlu1 %v16728_v19, %s15397_s8  ;;  %7040 = vrot.lane.b32.xlu0 %v16713_v3, %s15397_s8  ;;  %v5634_v47 = vsel %vm223_vm1, %v5622_v44, 0  ;;  %v3123_v48 = vpop.f32.mrb[99].mxu1 }
 0x25b   : > { %14779 = vmatmul.mubr.msk.bf16.vlgmr.msra.gmra.mrb[184].mxu0 %vm219_vm2, %v14777_v42  ;;  %14780 = vmatprep.subr.msk.bf16.mxu1 %vm223_vm1, %v5623_v45 }
 0x25c   : > { %5681 = vmatpush1.bf16.msra.mxu1 %v5634_v47  ;;  %v5730_v49 = vpop.permute.xlu1 %5729  ;;  %v5728_v50 = vpop.permute.xlu0 %5727  ;;  %5789 = vmatprep.mubr.bf16.mxu0 %v15392_v0 }
 0x25d   : > { %v5738_v54 = vsel %vm18723_vm13, %v5728_v50, %v5730_v49 }
 0x25e   : > { %7046 = vrot.lane.b32.xlu1 %v16742_v33, %s15397_s8  ;;  %7044 = vrot.lane.b32.xlu0 %v16726_v18, %s15397_s8  ;;  %v3195_v51 = vpop.f32.mrb[100].mxu0  ;;  %v5746_v60 = vsel %vm223_vm1, %v5738_v54, 0 }
 0x25f   : > { %14781 = vmatmul.mubr.msk.bf16.vlgmr.msra.gmra.mrb[184].mxu1 %vm219_vm2, %v14777_v42  ;;  %v3243_v52 = vadd.f32 %v3195_v51, %v3125_v25  ;;  %v3197_v53 = vpop.f32.mrb[101].mxu0 }
 0x260   : > { %v5734_v55 = vpop.permute.xlu1 %5733  ;;  %v5732_v30 = vpop.permute.xlu0 %5731  ;;  %5830 = vmatprep.mubr.bf16.mxu1 %v15392_v0  ;;  %v3244_v56 = vadd.f32 %v3197_v53, %v3126_v29 }
 0x261   : > { %v5739_v57 = vsel %vm18723_vm13, %v5730_v49, %v5732_v30  ;;  %v3199_v58 = vpop.f32.mrb[102].mxu0  ;;  %v5740_v63 = vsel %vm18723_vm13, %v5732_v30, %v5734_v55 }
 0x262   : > { %7157 = vrot.lane.b32.xlu1 %v16713_v3, %s15398_s9  ;;  %7155 = vrot.lane.b32.xlu0 %v16715_v6, %s15398_s9  ;;  %v3236_v4 = vpop.f32.mrb[100].mxu1  ;;  %v3200_v59 = vpop.f32.mrb[103].mxu0  ;;  %v5752_v14 = vsel %vm223_vm1, %v5740_v63, 0 }
 0x263   : > { %14783 = vmatprep.subr.msk.bf16.mxu0 %vm223_vm1, %v5739_v57  ;;  %v3245_v61 = vadd.f32 %v3236_v4, %v3127_v38  ;;  %v3238_v62 = vpop.f32.mrb[101].mxu1  ;;  %v14792_v57 = vld [vmem:[%s18632_s1 + $0xc4] sm:$0xf] }
 0x264   : > { %5758 = vmatpush1.bf16.msra.mxu0 %v5746_v60  ;;  %v5846_v1 = vpop.permute.xlu1 %5845  ;;  %v5736_v2 = vpop.permute.xlu0 %5735  ;;  %v3246_v9 = vadd.f32 %v3238_v62, %v3128_v43 }
 0x265   : > { %v5741_v10 = vsel %vm18723_vm13, %v5734_v55, %v5736_v2  ;;  %v3240_v11 = vpop.f32.mrb[102].mxu1  ;;  %vm18724_vm13 = vcmask 146432  }
 0x266   : > { %7161 = vrot.lane.b32.xlu1 %v16726_v18, %s15398_s9  ;;  %7159 = vrot.lane.b32.xlu0 %v16728_v19, %s15398_s9  ;;  %v3241_v12 = vpop.f32.mrb[103].mxu1  ;;  %v3313_v13 = vpop.f32.mrb[104].mxu0 }
 0x267   : > { %14784 = vmatmul.mubr.msk.bf16.vlgmr.msra.gmra.mrb[188].mxu0 %vm219_vm2, %v14782_v8  ;;  %14785 = vmatprep.subr.msk.bf16.mxu1 %vm223_vm1, %v5741_v10  ;;  %v3361_v15 = vadd.f32 %v3313_v13, %v3243_v52  ;;  %v3315_v16 = vpop.f32.mrb[105].mxu0 }
 0x268   : > { %5799 = vmatpush1.bf16.msra.mxu1 %v5752_v14  ;;  %v5850_v27 = vpop.permute.xlu1 %5849  ;;  %v5848_v17 = vpop.permute.xlu0 %5847  ;;  %5907 = vmatprep.mubr.bf16.mxu0 %v15392_v0  ;;  %v3362_v5 = vadd.f32 %v3315_v16, %v3244_v56 }
 0x269   : > { %v5856_v20 = vsel %vm18722_vm12, %v5846_v1, %v5848_v17  ;;  %v5857_v21 = vsel %vm18722_vm12, %v5848_v17, %v5850_v27  ;;  %v3317_v22 = vpop.f32.mrb[106].mxu0 }
 0x26a   : > { %7272 = vrot.lane.b32.xlu1 %v16715_v6, %s15399_s10  ;;  %7163 = vrot.lane.b32.xlu0 %v16742_v33, %s15398_s9  ;;  %v5864_v23 = vsel %vm223_vm1, %v5856_v20, 0  ;;  %v3354_v24 = vpop.f32.mrb[104].mxu1  ;;  %v3318_v25 = vpop.f32.mrb[107].mxu0  ;;  %v14797_v20 = vld [vmem:[%s18632_s1 + $0xc8] sm:$0xf] }
 0x26b   : > { %14786 = vmatmul.mubr.msk.bf16.vlgmr.msra.gmra.mrb[188].mxu1 %vm219_vm2, %v14782_v8  ;;  %14788 = vmatprep.subr.msk.bf16.mxu0 %vm223_vm1, %v5857_v21  ;;  %v3363_v26 = vadd.f32 %v3354_v24, %v3245_v61  ;;  %v3356_v7 = vpop.f32.mrb[105].mxu1 }
 0x26c   : > { %5876 = vmatpush1.bf16.msra.mxu0 %v5864_v23  ;;  %v5854_v28 = vpop.permute.xlu1 %5853  ;;  %v5852_v29 = vpop.permute.xlu0 %5851  ;;  %5948 = vmatprep.mubr.bf16.mxu1 %v15392_v0  ;;  %v3364_v32 = vadd.f32 %v3356_v7, %v3246_v9 }
 0x26d   : > { %v5858_v34 = vsel %vm18722_vm12, %v5850_v27, %v5852_v29  ;;  %v5859_v35 = vsel %vm18722_vm12, %v5852_v29, %v5854_v28  ;;  %v3358_v36 = vpop.f32.mrb[106].mxu1  ;;  %vm18725_vm12 = vcmask 154624  }
 0x26e   : > { %7276 = vrot.lane.b32.xlu1 %v16728_v19, %s15399_s10  ;;  %7274 = vrot.lane.b32.xlu0 %v16713_v3, %s15399_s10  ;;  %v5870_v37 = vsel %vm223_vm1, %v5858_v34, 0  ;;  %v3359_v38 = vpop.f32.mrb[107].mxu1 }
 0x26f   : > { %14789 = vmatmul.mubr.msk.bf16.vlgmr.msra.gmra.mrb[192].mxu0 %vm219_vm2, %v14787_v31  ;;  %14790 = vmatprep.subr.msk.bf16.mxu1 %vm223_vm1, %v5859_v35 }
 0x270   : > { %5917 = vmatpush1.bf16.msra.mxu1 %v5870_v37  ;;  %v5966_v39 = vpop.permute.xlu1 %5965  ;;  %v5964_v40 = vpop.permute.xlu0 %5963  ;;  %6025 = vmatprep.mubr.bf16.mxu0 %v15392_v0 }
 0x271   : > { %v5974_v44 = vsel %vm18725_vm12, %v5964_v40, %v5966_v39 }
 0x272   : > { %7280 = vrot.lane.b32.xlu1 %v16742_v33, %s15399_s10  ;;  %7278 = vrot.lane.b32.xlu0 %v16726_v18, %s15399_s10  ;;  %v3431_v41 = vpop.f32.mrb[108].mxu0  ;;  %v5982_v52 = vsel %vm223_vm1, %v5974_v44, 0 }
 0x273   : > { %14791 = vmatmul.mubr.msk.bf16.vlgmr.msra.gmra.mrb[192].mxu1 %vm219_vm2, %v14787_v31  ;;  %v3479_v42 = vadd.f32 %v3431_v41, %v3361_v15  ;;  %v3433_v43 = vpop.f32.mrb[109].mxu0 }
 0x274   : > { %v5970_v45 = vpop.permute.xlu1 %5969  ;;  %v5968_v46 = vpop.permute.xlu0 %5967  ;;  %6066 = vmatprep.mubr.bf16.mxu1 %v15392_v0  ;;  %v3480_v47 = vadd.f32 %v3433_v43, %v3362_v5 }
 0x275   : > { %v5975_v48 = vsel %vm18725_vm12, %v5966_v39, %v5968_v46  ;;  %v3435_v49 = vpop.f32.mrb[110].mxu0  ;;  %v5976_v55 = vsel %vm18725_vm12, %v5968_v46, %v5970_v45 }
 0x276   : > { %7391 = vrot.lane.b32.xlu1 %v16713_v3, %s15400_s11  ;;  %7389 = vrot.lane.b32.xlu0 %v16715_v6, %s15400_s11  ;;  %v3472_v50 = vpop.f32.mrb[108].mxu1  ;;  %v3436_v51 = vpop.f32.mrb[111].mxu0  ;;  %v5988_v62 = vsel %vm223_vm1, %v5976_v55, 0 }
 0x277   : > { %14793 = vmatprep.subr.msk.bf16.mxu0 %vm223_vm1, %v5975_v48  ;;  %v3481_v53 = vadd.f32 %v3472_v50, %v3363_v26  ;;  %v3474_v54 = vpop.f32.mrb[109].mxu1  ;;  %v14802_v48 = vld [vmem:[%s18632_s1 + $0xcc] sm:$0xf] }
 0x278   : > { %5994 = vmatpush1.bf16.msra.mxu0 %v5982_v52  ;;  %v6082_v30 = vpop.permute.xlu1 %6081  ;;  %v5972_v56 = vpop.permute.xlu0 %5971  ;;  %v3482_v58 = vadd.f32 %v3474_v54, %v3364_v32 }
 0x279   : > { %v5977_v4 = vsel %vm18725_vm12, %v5970_v45, %v5972_v56  ;;  %v3476_v59 = vpop.f32.mrb[110].mxu1  ;;  %vm18726_vm12 = vcmask 130048  }
 0x27a   : > { %7395 = vrot.lane.b32.xlu1 %v16726_v18, %s15400_s11  ;;  %7393 = vrot.lane.b32.xlu0 %v16728_v19, %s15400_s11  ;;  %v3477_v60 = vpop.f32.mrb[111].mxu1  ;;  %v3549_v61 = vpop.f32.mrb[112].mxu0 }
 0x27b   : > { %14794 = vmatmul.mubr.msk.bf16.vlgmr.msra.gmra.mrb[196].mxu0 %vm219_vm2, %v14792_v57  ;;  %14795 = vmatprep.subr.msk.bf16.mxu1 %vm223_vm1, %v5977_v4  ;;  %v3597_v63 = vadd.f32 %v3549_v61, %v3479_v42  ;;  %v3551_v1 = vpop.f32.mrb[113].mxu0 }
 0x27c   : > { %6035 = vmatpush1.bf16.msra.mxu1 %v5988_v62  ;;  %v6086_v2 = vpop.permute.xlu1 %6085  ;;  %v6084_v8 = vpop.permute.xlu0 %6083  ;;  %6143 = vmatprep.mubr.bf16.mxu0 %v15392_v0  ;;  %v3598_v9 = vadd.f32 %v3551_v1, %v3480_v47 }
 0x27d   : > { %v6092_v10 = vsel %vm18724_vm13, %v6082_v30, %v6084_v8  ;;  %v6093_v11 = vsel %vm18724_vm13, %v6084_v8, %v6086_v2  ;;  %v3553_v12 = vpop.f32.mrb[114].mxu0 }
 0x27e   : > { %7506 = vrot.lane.b32.xlu1 %v16715_v6, %s15401_s18  ;;  %7397 = vrot.lane.b32.xlu0 %v16742_v33, %s15400_s11  ;;  %v6100_v13 = vsel %vm223_vm1, %v6092_v10, 0  ;;  %v3590_v14 = vpop.f32.mrb[112].mxu1  ;;  %v3554_v15 = vpop.f32.mrb[115].mxu0 }
 0x27f   : > { %14796 = vmatmul.mubr.msk.bf16.vlgmr.msra.gmra.mrb[196].mxu1 %vm219_vm2, %v14792_v57  ;;  %14798 = vmatprep.subr.msk.bf16.mxu0 %vm223_vm1, %v6093_v11  ;;  %v3599_v16 = vadd.f32 %v3590_v14, %v3481_v53  ;;  %v3592_v27 = vpop.f32.mrb[113].mxu1  ;;  %v14807_v11 = vld [vmem:[%s18632_s1 + $0xd0] sm:$0xf] }
 0x280   : > { %6112 = vmatpush1.bf16.msra.mxu0 %v6100_v13  ;;  %v6090_v17 = vpop.permute.xlu1 %6089  ;;  %v6088_v5 = vpop.permute.xlu0 %6087  ;;  %6184 = vmatprep.mubr.bf16.mxu1 %v15392_v0  ;;  %v3600_v21 = vadd.f32 %v3592_v27, %v3482_v58 }
 0x281   : > { %v6094_v22 = vsel %vm18724_vm13, %v6086_v2, %v6088_v5  ;;  %v6095_v23 = vsel %vm18724_vm13, %v6088_v5, %v6090_v17  ;;  %v3594_v24 = vpop.f32.mrb[114].mxu1  ;;  %vm18727_vm13 = vcmask 138240  }
 0x282   : > { %7510 = vrot.lane.b32.xlu1 %v16728_v19, %s15401_s18  ;;  %7508 = vrot.lane.b32.xlu0 %v16713_v3, %s15401_s18  ;;  %v6106_v25 = vsel %vm223_vm1, %v6094_v22, 0  ;;  %v3595_v26 = vpop.f32.mrb[115].mxu1 }
 0x283   : > { %14799 = vmatmul.mubr.msk.bf16.vlgmr.msra.gmra.mrb[200].mxu0 %vm219_vm2, %v14797_v20  ;;  %14800 = vmatprep.subr.msk.bf16.mxu1 %vm223_vm1, %v6095_v23 }
 0x284   : > { %6153 = vmatpush1.bf16.msra.mxu1 %v6106_v25  ;;  %v6202_v7 = vpop.permute.xlu1 %6201  ;;  %v6200_v28 = vpop.permute.xlu0 %6199  ;;  %6261 = vmatprep.mubr.bf16.mxu0 %v15392_v0 }
 0x285   : > { %v6210_v34 = vsel %vm18727_vm13, %v6200_v28, %v6202_v7 }
 0x286   : > { %7514 = vrot.lane.b32.xlu1 %v16742_v33, %s15401_s18  ;;  %7512 = vrot.lane.b32.xlu0 %v16726_v18, %s15401_s18  ;;  %v3667_v29 = vpop.f32.mrb[116].mxu0  ;;  %v6218_v42 = vsel %vm223_vm1, %v6210_v34, 0 }
 0x287   : > { %14801 = vmatmul.mubr.msk.bf16.vlgmr.msra.gmra.mrb[200].mxu1 %vm219_vm2, %v14797_v20  ;;  %v3715_v31 = vadd.f32 %v3667_v29, %v3597_v63  ;;  %v3669_v32 = vpop.f32.mrb[117].mxu0 }
 0x288   : > { %v6206_v35 = vpop.permute.xlu1 %6205  ;;  %v6204_v36 = vpop.permute.xlu0 %6203  ;;  %v3716_v37 = vadd.f32 %v3669_v32, %v3598_v9  ;;  %6302 = vmatprep.mubr.bf16.mxu1 %v15392_v0 }
 0x289   : > { %v6211_v38 = vsel %vm18727_vm13, %v6202_v7, %v6204_v36  ;;  %v3671_v39 = vpop.f32.mrb[118].mxu0  ;;  %v6212_v45 = vsel %vm18727_vm13, %v6204_v36, %v6206_v35 }
 0x28a   : > { %7625 = vrot.lane.b32.xlu1 %v16713_v3, %s15402_s19  ;;  %7623 = vrot.lane.b32.xlu0 %v16715_v6, %s15402_s19  ;;  %v3708_v40 = vpop.f32.mrb[116].mxu1  ;;  %v3672_v41 = vpop.f32.mrb[119].mxu0  ;;  %v6224_v54 = vsel %vm223_vm1, %v6212_v45, 0  ;;  %v14812_v39 = vld [vmem:[%s18632_s1 + $0xd4] sm:$0xf] }
 0x28b   : > { %14803 = vmatprep.subr.msk.bf16.mxu0 %vm223_vm1, %v6211_v38  ;;  %v3717_v43 = vadd.f32 %v3708_v40, %v3599_v16  ;;  %v3710_v44 = vpop.f32.mrb[117].mxu1 }
 0x28c   : > { %6230 = vmatpush1.bf16.msra.mxu0 %v6218_v42  ;;  %v6318_v46 = vpop.permute.xlu1 %6317  ;;  %v6208_v47 = vpop.permute.xlu0 %6207  ;;  %v3718_v49 = vadd.f32 %v3710_v44, %v3600_v21 }
 0x28d   : > { %v6213_v50 = vsel %vm18727_vm13, %v6206_v35, %v6208_v47  ;;  %v3712_v51 = vpop.f32.mrb[118].mxu1  ;;  %vm6563_vm13 = vcmask 113664  }
 0x28e   : > { %7629 = vrot.lane.b32.xlu1 %v16726_v18, %s15402_s19  ;;  %7627 = vrot.lane.b32.xlu0 %v16728_v19, %s15402_s19  ;;  %v3713_v52 = vpop.f32.mrb[119].mxu1  ;;  %v3785_v53 = vpop.f32.mrb[120].mxu0 }
 0x28f   : > { %14804 = vmatmul.mubr.msk.bf16.vlgmr.msra.gmra.mrb[204].mxu0 %vm219_vm2, %v14802_v48  ;;  %14805 = vmatprep.subr.msk.bf16.mxu1 %vm223_vm1, %v6213_v50  ;;  %v3833_v55 = vadd.f32 %v3785_v53, %v3715_v31  ;;  %v3787_v30 = vpop.f32.mrb[121].mxu0 }
 0x290   : > { %6271 = vmatpush1.bf16.msra.mxu1 %v6224_v54  ;;  %v6322_v56 = vpop.permute.xlu1 %6321  ;;  %v6320_v57 = vpop.permute.xlu0 %6319  ;;  %v3834_v58 = vadd.f32 %v3787_v30, %v3716_v37  ;;  %6379 = vmatprep.mubr.bf16.mxu0 %v15392_v0 }
 0x291   : > { %v6328_v4 = vsel %vm18726_vm12, %v6318_v46, %v6320_v57  ;;  %v6329_v59 = vsel %vm18726_vm12, %v6320_v57, %v6322_v56  ;;  %v3789_v60 = vpop.f32.mrb[122].mxu0 }
 0x292   : > { %7740 = vrot.lane.b32.xlu1 %v16715_v6, %s15447_s27  ;;  %7631 = vrot.lane.b32.xlu0 %v16742_v33, %s15402_s19  ;;  %v3826_v61 = vpop.f32.mrb[120].mxu1  ;;  %v6336_v62 = vsel %vm223_vm1, %v6328_v4, 0  ;;  %v3790_v63 = vpop.f32.mrb[123].mxu0 }
 0x293   : > { %14806 = vmatmul.mubr.msk.bf16.vlgmr.msra.gmra.mrb[204].mxu1 %vm219_vm2, %v14802_v48  ;;  %14808 = vmatprep.subr.msk.bf16.mxu0 %vm223_vm1, %v6329_v59  ;;  %v3835_v1 = vadd.f32 %v3826_v61, %v3717_v43  ;;  %v3828_v2 = vpop.f32.mrb[121].mxu1  ;;  %v14817_v59 = vld [vmem:[%s18632_s1 + $0xd8] sm:$0xf] }
 0x294   : > { %6348 = vmatpush1.bf16.msra.mxu0 %v6336_v62  ;;  %v6326_v8 = vpop.permute.xlu1 %6325  ;;  %v3836_v9 = vadd.f32 %v3828_v2, %v3718_v49  ;;  %v6324_v10 = vpop.permute.xlu0 %6323  ;;  %6420 = vmatprep.mubr.bf16.mxu1 %v15392_v0 }
 0x295   : > { %v6330_v12 = vsel %vm18726_vm12, %v6322_v56, %v6324_v10  ;;  %v6331_v13 = vsel %vm18726_vm12, %v6324_v10, %v6326_v8  ;;  %v3830_v14 = vpop.f32.mrb[122].mxu1  ;;  %vm6445_vm12 = vcmask 121856  }
 0x296   : > { %7744 = vrot.lane.b32.xlu1 %v16728_v19, %s15447_s27  ;;  %7742 = vrot.lane.b32.xlu0 %v16713_v3, %s15447_s27  ;;  %v6342_v15 = vsel %vm223_vm1, %v6330_v12, 0  ;;  %v3831_v16 = vpop.f32.mrb[123].mxu1 }
 0x297   : > { %14809 = vmatmul.mubr.msk.bf16.vlgmr.msra.gmra.mrb[208].mxu0 %vm219_vm2, %v14807_v11  ;;  %14810 = vmatprep.subr.msk.bf16.mxu1 %vm223_vm1, %v6331_v13 }
 0x298   : > { %6389 = vmatpush1.bf16.msra.mxu1 %v6342_v15  ;;  %v6438_v27 = vpop.permute.xlu1 %6437  ;;  %v6436_v17 = vpop.permute.xlu0 %6435  ;;  %6497 = vmatprep.mubr.bf16.mxu0 %v15392_v0 }
 0x299   : > { %v6446_v22 = vsel %vm6445_vm12, %v6436_v17, %v6438_v27 }
 0x29a   : > { %v3903_v5 = vpop.f32.mrb[124].mxu0  ;;  %7748 = vrot.lane.b32.xlu1 %v16742_v33, %s15447_s27  ;;  %7746 = vrot.lane.b32.xlu0 %v16726_v18, %s15447_s27  ;;  %v6454_v31 = vsel %vm223_vm1, %v6446_v22, 0 }
 0x29b   : > { %v3951_v20 = vadd.f32 %v3903_v5, %v3833_v55  ;;  %v3905_v21 = vpop.f32.mrb[125].mxu0  ;;  %14811 = vmatmul.mubr.msk.bf16.vlgmr.msra.gmra.mrb[208].mxu1 %vm219_vm2, %v14807_v11 }
 0x29c   : > { %v3952_v23 = vadd.f32 %v3905_v21, %v3834_v58  ;;  %v6442_v24 = vpop.permute.xlu1 %6441  ;;  %v6440_v25 = vpop.permute.xlu0 %6439  ;;  %6538 = vmatprep.mubr.bf16.mxu1 %v15392_v0 }
 0x29d   : > { %v6447_v26 = vsel %vm6445_vm12, %v6438_v27, %v6440_v25  ;;  %v3907_v7 = vpop.f32.mrb[126].mxu0  ;;  %v6448_v35 = vsel %vm6445_vm12, %v6440_v25, %v6442_v24 }
 0x29e   : > { %v3944_v28 = vpop.f32.mrb[124].mxu1  ;;  %7860 = vrot.lane.b32.xlu1 %v16713_v3, %s15448_s6  ;;  %7858 = vrot.lane.b32.xlu0 %v16715_v6, %s15448_s6  ;;  %v3908_v29 = vpop.f32.mrb[127].mxu0  ;;  %v6460_v46 = vsel %vm223_vm1, %v6448_v35, 0  ;;  %v14822_v7 = vld [vmem:[%s18632_s1 + $0xdc] sm:$0xf] }
 0x29f   : > { %v3953_v32 = vadd.f32 %v3944_v28, %v3835_v1  ;;  %v3946_v34 = vpop.f32.mrb[125].mxu1  ;;  %14813 = vmatprep.subr.msk.bf16.mxu0 %vm223_vm1, %v6447_v26 }
 0x2a0   : > { %v3954_v36 = vadd.f32 %v3946_v34, %v3836_v9  ;;  %6466 = vmatpush1.bf16.msra.mxu0 %v6454_v31  ;;  %v6554_v37 = vpop.permute.xlu1 %6553  ;;  %v6444_v38 = vpop.permute.xlu0 %6443 }
 0x2a1   : > { %v6449_v40 = vsel %vm6445_vm12, %v6442_v24, %v6444_v38  ;;  %v3948_v41 = vpop.f32.mrb[126].mxu1 }
 0x2a2   : > { %v4021_v42 = vpop.f32.mrb[128].mxu0  ;;  %7864 = vrot.lane.b32.xlu1 %v16726_v18, %s15448_s6  ;;  %7862 = vrot.lane.b32.xlu0 %v16728_v19, %s15448_s6  ;;  %v3949_v43 = vpop.f32.mrb[127].mxu1 }
 0x2a3   : > { %v4069_v44 = vadd.f32 %v4021_v42, %v3951_v20  ;;  %v4023_v45 = vpop.f32.mrb[129].mxu0  ;;  %14814 = vmatmul.mubr.msk.bf16.vlgmr.msra.gmra.mrb[212].mxu0 %vm219_vm2, %v14812_v39  ;;  %14815 = vmatprep.subr.msk.bf16.mxu1 %vm223_vm1, %v6449_v40 }
 0x2a4   : > { %v4070_v47 = vadd.f32 %v4023_v45, %v3952_v23  ;;  %6507 = vmatpush1.bf16.msra.mxu1 %v6460_v46  ;;  %v6558_v48 = vpop.permute.xlu1 %6557  ;;  %v6556_v49 = vpop.permute.xlu0 %6555  ;;  %6615 = vmatprep.mubr.bf16.mxu0 %v15392_v0 }
 0x2a5   : > { %v6564_v50 = vsel %vm6563_vm13, %v6554_v37, %v6556_v49  ;;  %v6565_v51 = vsel %vm6563_vm13, %v6556_v49, %v6558_v48  ;;  %v4025_v52 = vpop.f32.mrb[130].mxu0 }
 0x2a6   : > { %v4062_v53 = vpop.f32.mrb[128].mxu1  ;;  %7976 = vrot.lane.b32.xlu1 %v16715_v6, %s15405_s26  ;;  %7866 = vrot.lane.b32.xlu0 %v16742_v33, %s15448_s6  ;;  %v6572_v54 = vsel %vm223_vm1, %v6564_v50, 0  ;;  %v4026_v55 = vpop.f32.mrb[131].mxu0 }
 0x2a7   : > { %v4071_v30 = vadd.f32 %v4062_v53, %v3953_v32  ;;  %v4064_v56 = vpop.f32.mrb[129].mxu1  ;;  %14816 = vmatmul.mubr.msk.bf16.vlgmr.msra.gmra.mrb[212].mxu1 %vm219_vm2, %v14812_v39  ;;  %14818 = vmatprep.subr.msk.bf16.mxu0 %vm223_vm1, %v6565_v51  ;;  %v14832_v51 = vld [vmem:[%s18632_s1 + $0xe0] sm:$0xf] }
 0x2a8   : > { %v4072_v57 = vadd.f32 %v4064_v56, %v3954_v36  ;;  %6584 = vmatpush1.bf16.msra.mxu0 %v6572_v54  ;;  %v6562_v58 = vpop.permute.xlu1 %6561  ;;  %v6560_v4 = vpop.permute.xlu0 %6559  ;;  %6656 = vmatprep.mubr.bf16.mxu1 %v15392_v0 }
 0x2a9   : > { %v6566_v60 = vsel %vm6563_vm13, %v6558_v48, %v6560_v4  ;;  %v6567_v61 = vsel %vm6563_vm13, %v6560_v4, %v6562_v58  ;;  %v4066_v62 = vpop.f32.mrb[130].mxu1 }
 0x2aa   : > { %7980 = vrot.lane.b32.xlu1 %v16728_v19, %s15405_s26  ;;  %7978 = vrot.lane.b32.xlu0 %v16713_v3, %s15405_s26  ;;  %v6578_v63 = vsel %vm223_vm1, %v6566_v60, 0  ;;  %v4067_v1 = vpop.f32.mrb[131].mxu1 }
 0x2ab   : > { %14819 = vmatmul.mubr.msk.bf16.vlgmr.msra.gmra.mrb[216].mxu0 %vm219_vm2, %v14817_v59  ;;  %14820 = vmatprep.subr.msk.bf16.mxu1 %vm223_vm1, %v6567_v61 }
 0x2ac   : > { %6625 = vmatpush1.bf16.msra.mxu1 %v6578_v63  ;;  %v6690_v2 = vpop.permute.xlu1 %6689  ;;  %v6688_v8 = vpop.permute.xlu0 %6687  ;;  %6748 = vmatprep.mubr.bf16.mxu0 %v15392_v0 }
 0x2ad   : > { %v6697_v12 = vsel %vm427_vm3, %v6688_v8, %v6690_v2 }
 0x2ae   : > { %v4139_v9 = vpop.f32.mrb[132].mxu0  ;;  %7984 = vrot.lane.b32.xlu1 %v16742_v33, %s15405_s26  ;;  %7982 = vrot.lane.b32.xlu0 %v16726_v18, %s15405_s26  ;;  %v6705_v20 = vsel %vm223_vm1, %v6697_v12, 0  ;;  %s18733_s26 = smov 94  }
 0x2af   : > { %v4187_v10 = vadd.f32 %v4139_v9, %v4069_v44  ;;  %v4141_v11 = vpop.f32.mrb[133].mxu0  ;;  %14821 = vmatmul.mubr.msk.bf16.vlgmr.msra.gmra.mrb[216].mxu1 %vm219_vm2, %v14817_v59 }
 0x2b0   : > { %v4188_v13 = vadd.f32 %v4141_v11, %v4070_v47  ;;  %v6694_v14 = vpop.permute.xlu1 %6693  ;;  %v6692_v15 = vpop.permute.xlu0 %6691  ;;  %6789 = vmatprep.mubr.bf16.mxu1 %v15392_v0 }
 0x2b1   : > { %v6698_v16 = vsel %vm427_vm3, %v6690_v2, %v6692_v15  ;;  %v4143_v27 = vpop.f32.mrb[134].mxu0  ;;  %v6699_v23 = vsel %vm427_vm3, %v6692_v15, %v6694_v14 }
 0x2b2   : > { %v4180_v17 = vpop.f32.mrb[132].mxu1  ;;  %8095 = vrot.lane.b32.xlu1 %v16713_v3, %s15406_s29  ;;  %8093 = vrot.lane.b32.xlu0 %v16715_v6, %s15406_s29  ;;  %v4144_v5 = vpop.f32.mrb[135].mxu0  ;;  %v6711_v36 = vsel %vm223_vm1, %v6699_v23, 0 }
 0x2b3   : > { %v4189_v21 = vadd.f32 %v4180_v17, %v4071_v30  ;;  %v4182_v22 = vpop.f32.mrb[133].mxu1  ;;  %14828 = vmatprep.subr.msk.bf16.mxu0 %vm223_vm1, %v6698_v16  ;;  %v14837_v16 = vld [vmem:[%s18632_s1 + $0xe4] sm:$0xf] }
 0x2b4   : > { %v4190_v24 = vadd.f32 %v4182_v22, %v4072_v57  ;;  %6717 = vmatpush1.bf16.msra.mxu0 %v6705_v20  ;;  %v6805_v25 = vpop.permute.xlu1 %6804  ;;  %v6696_v26 = vpop.permute.xlu0 %6695 }
 0x2b5   : > { %v6700_v28 = vsel %vm427_vm3, %v6694_v14, %v6696_v26  ;;  %v4184_v29 = vpop.f32.mrb[134].mxu1  ;;  %vm7750_vm3 = vcmask 957440  }
 0x2b6   : > { %v4257_v31 = vpop.f32.mrb[136].mxu0  ;;  %8099 = vrot.lane.b32.xlu1 %v16726_v18, %s15406_s29  ;;  %8097 = vrot.lane.b32.xlu0 %v16728_v19, %s15406_s29  ;;  %v4185_v32 = vpop.f32.mrb[135].mxu1 }
 0x2b7   : > { %v4305_v34 = vadd.f32 %v4257_v31, %v4187_v10  ;;  %v4259_v35 = vpop.f32.mrb[137].mxu0  ;;  %14829 = vmatmul.mubr.msk.bf16.vlgmr.msra.gmra.mrb[220].mxu0 %vm219_vm2, %v14822_v7  ;;  %14830 = vmatprep.subr.msk.bf16.mxu1 %vm223_vm1, %v6700_v28  ;;  %v17103_v32 = vld [vmem:[%s15542_s30 + $0x14] ss:$0 sps:$4 sm:$0xff]  }
 0x2b8   : > { %v4306_v37 = vadd.f32 %v4259_v35, %v4188_v13  ;;  %6758 = vmatpush1.bf16.msra.mxu1 %v6711_v36  ;;  %v6809_v38 = vpop.permute.xlu1 %6808  ;;  %v6807_v39 = vpop.permute.xlu0 %6806  ;;  %6865 = vmatprep.mubr.bf16.mxu0 %v15392_v0 }
 0x2b9   : > { %v6814_v40 = vsel %vm545_vm4, %v6805_v25, %v6807_v39  ;;  %v6815_v41 = vsel %vm545_vm4, %v6807_v39, %v6809_v38  ;;  %v4261_v42 = vpop.f32.mrb[138].mxu0 }
 0x2ba   : > { %v4298_v43 = vpop.f32.mrb[136].mxu1  ;;  %8210 = vrot.lane.b32.xlu1 %v16715_v6, %s15407_s28  ;;  %8101 = vrot.lane.b32.xlu0 %v16742_v33, %s15406_s29  ;;  %v6822_v44 = vsel %vm223_vm1, %v6814_v40, 0  ;;  %v4262_v45 = vpop.f32.mrb[139].mxu0  ;;  %s18730_s29 = smov 97  }
 0x2bb   : > { %v4307_v46 = vadd.f32 %v4298_v43, %v4189_v21  ;;  %v4300_v47 = vpop.f32.mrb[137].mxu1  ;;  %14831 = vmatmul.mubr.msk.bf16.vlgmr.msra.gmra.mrb[220].mxu1 %vm219_vm2, %v14822_v7  ;;  %14833 = vmatprep.subr.msk.bf16.mxu0 %vm223_vm1, %v6815_v41  ;;  %v14842_v41 = vld [vmem:[%s18632_s1 + $0xe8] sm:$0xf] }
 0x2bc   : > { %v4308_v48 = vadd.f32 %v4300_v47, %v4190_v24  ;;  %6834 = vmatpush1.bf16.msra.mxu0 %v6822_v44  ;;  %v6813_v49 = vpop.permute.xlu1 %6812  ;;  %v6811_v50 = vpop.permute.xlu0 %6810  ;;  %6906 = vmatprep.mubr.bf16.mxu1 %v15392_v0 }
 0x2bd   : > { %v6816_v52 = vsel %vm545_vm4, %v6809_v38, %v6811_v50  ;;  %v6817_v53 = vsel %vm545_vm4, %v6811_v50, %v6813_v49  ;;  %v4302_v54 = vpop.f32.mrb[138].mxu1  ;;  %vm7868_vm4 = vcmask 949248  }
 0x2be   : > { %8214 = vrot.lane.b32.xlu1 %v16728_v19, %s15407_s28  ;;  %8212 = vrot.lane.b32.xlu0 %v16713_v3, %s15407_s28  ;;  %v6828_v55 = vsel %vm223_vm1, %v6816_v52, 0  ;;  %v4303_v30 = vpop.f32.mrb[139].mxu1 }
 0x2bf   : > { %14834 = vmatmul.mubr.msk.bf16.vlgmr.msra.gmra.mrb[224].mxu0 %vm219_vm2, %v14832_v51  ;;  %14835 = vmatprep.subr.msk.bf16.mxu1 %vm223_vm1, %v6817_v53 }
 0x2c0   : > { %6875 = vmatpush1.bf16.msra.mxu1 %v6828_v55  ;;  %v6924_v56 = vpop.permute.xlu1 %6923  ;;  %v6922_v57 = vpop.permute.xlu0 %6921  ;;  %6982 = vmatprep.mubr.bf16.mxu0 %v15392_v0 }
 0x2c1   : > { %v6931_v60 = vsel %vm663_vm5, %v6922_v57, %v6924_v56 }
 0x2c2   : > { %v4375_v58 = vpop.f32.mrb[140].mxu0  ;;  %8218 = vrot.lane.b32.xlu1 %v16742_v33, %s15407_s28  ;;  %8216 = vrot.lane.b32.xlu0 %v16726_v18, %s15407_s28  ;;  %v6939_v9 = vsel %vm223_vm1, %v6931_v60, 0  ;;  %s18735_s28 = smov 92  }
 0x2c3   : > { %v4423_v4 = vadd.f32 %v4375_v58, %v4305_v34  ;;  %v4377_v59 = vpop.f32.mrb[141].mxu0  ;;  %14836 = vmatmul.mubr.msk.bf16.vlgmr.msra.gmra.mrb[224].mxu1 %vm219_vm2, %v14832_v51 }
 0x2c4   : > { %v4424_v61 = vadd.f32 %v4377_v59, %v4306_v37  ;;  %v6928_v62 = vpop.permute.xlu1 %6927  ;;  %v6926_v63 = vpop.permute.xlu0 %6925  ;;  %7023 = vmatprep.mubr.bf16.mxu1 %v15392_v0 }
 0x2c5   : > { %v6932_v1 = vsel %vm663_vm5, %v6924_v56, %v6926_v63  ;;  %v4379_v2 = vpop.f32.mrb[142].mxu0  ;;  %v6933_v12 = vsel %vm663_vm5, %v6926_v63, %v6928_v62 }
 0x2c6   : > { %v4416_v8 = vpop.f32.mrb[140].mxu1  ;;  %8329 = vrot.lane.b32.xlu1 %v16713_v3, %s18730_s29  ;;  %8327 = vrot.lane.b32.xlu0 %v16715_v6, %s18730_s29  ;;  %v4380_v33 = vpop.f32.mrb[143].mxu0  ;;  %v6945_v23 = vsel %vm223_vm1, %v6933_v12, 0  ;;  %v14847_v2 = vld [vmem:[%s18632_s1 + $0xec] sm:$0xf] }
 0x2c7   : > { %v4425_v10 = vadd.f32 %v4416_v8, %v4307_v46  ;;  %v4418_v11 = vpop.f32.mrb[141].mxu1  ;;  %14838 = vmatprep.subr.msk.bf16.mxu0 %vm223_vm1, %v6932_v1 }
 0x2c8   : > { %v4426_v13 = vadd.f32 %v4418_v11, %v4308_v48  ;;  %6951 = vmatpush1.bf16.msra.mxu0 %v6939_v9  ;;  %v7039_v14 = vpop.permute.xlu1 %7038  ;;  %v6930_v15 = vpop.permute.xlu0 %6929 }
 0x2c9   : > { %v6934_v27 = vsel %vm663_vm5, %v6928_v62, %v6930_v15  ;;  %v4420_v17 = vpop.f32.mrb[142].mxu1 }
 0x2ca   : > { %v4493_v5 = vpop.f32.mrb[144].mxu0  ;;  %8333 = vrot.lane.b32.xlu1 %v16726_v18, %s18730_s29  ;;  %8331 = vrot.lane.b32.xlu0 %v16728_v19, %s18730_s29  ;;  %v4421_v20 = vpop.f32.mrb[143].mxu1 }
 0x2cb   : > { %v4541_v21 = vadd.f32 %v4493_v5, %v4423_v4  ;;  %v4495_v22 = vpop.f32.mrb[145].mxu0  ;;  %14839 = vmatmul.mubr.msk.bf16.vlgmr.msra.gmra.mrb[228].mxu0 %vm219_vm2, %v14837_v16  ;;  %14840 = vmatprep.subr.msk.bf16.mxu1 %vm223_vm1, %v6934_v27 }
 0x2cc   : > { %v4542_v24 = vadd.f32 %v4495_v22, %v4424_v61  ;;  %6992 = vmatpush1.bf16.msra.mxu1 %v6945_v23  ;;  %v7043_v25 = vpop.permute.xlu1 %7042  ;;  %v7041_v26 = vpop.permute.xlu0 %7040  ;;  %7099 = vmatprep.mubr.bf16.mxu0 %v15392_v0 }
 0x2cd   : > { %v7048_v7 = vsel %vm781_vm6, %v7039_v14, %v7041_v26  ;;  %v7049_v28 = vsel %vm781_vm6, %v7041_v26, %v7043_v25  ;;  %v4497_v29 = vpop.f32.mrb[146].mxu0 }
 0x2ce   : > { %v4534_v31 = vpop.f32.mrb[144].mxu1  ;;  %8444 = vrot.lane.b32.xlu1 %v16715_v6, %s18731_s5  ;;  %8335 = vrot.lane.b32.xlu0 %v17103_v32, %s18730_s29  ;;  %v7056_v34 = vsel %vm223_vm1, %v7048_v7, 0  ;;  %v4498_v35 = vpop.f32.mrb[147].mxu0  ;;  %s18732_s29 = smov 95  }
 0x2cf   : > { %v4543_v36 = vadd.f32 %v4534_v31, %v4425_v10  ;;  %v4536_v37 = vpop.f32.mrb[145].mxu1  ;;  %14841 = vmatmul.mubr.msk.bf16.vlgmr.msra.gmra.mrb[228].mxu1 %vm219_vm2, %v14837_v16  ;;  %14843 = vmatprep.subr.msk.bf16.mxu0 %vm223_vm1, %v7049_v28  ;;  %v14852_v28 = vld [vmem:[%s18632_s1 + $0xf0] sm:$0xf] }
 0x2d0   : > { %v4544_v38 = vadd.f32 %v4536_v37, %v4426_v13  ;;  %7068 = vmatpush1.bf16.msra.mxu0 %v7056_v34  ;;  %v7047_v39 = vpop.permute.xlu1 %7046  ;;  %v7045_v40 = vpop.permute.xlu0 %7044  ;;  %7140 = vmatprep.mubr.bf16.mxu1 %v15392_v0 }
 0x2d1   : > { %v7050_v42 = vsel %vm781_vm6, %v7043_v25, %v7045_v40  ;;  %v7051_v43 = vsel %vm781_vm6, %v7045_v40, %v7047_v39  ;;  %v4538_v44 = vpop.f32.mrb[146].mxu1 }
 0x2d2   : > { %8448 = vrot.lane.b32.xlu1 %v16728_v19, %s18731_s5  ;;  %8446 = vrot.lane.b32.xlu0 %v16713_v3, %s18731_s5  ;;  %v7062_v45 = vsel %vm223_vm1, %v7050_v42, 0  ;;  %v4539_v46 = vpop.f32.mrb[147].mxu1 }
 0x2d3   : > { %14844 = vmatmul.mubr.msk.bf16.vlgmr.msra.gmra.mrb[232].mxu0 %vm219_vm2, %v14842_v41  ;;  %14845 = vmatprep.subr.msk.bf16.mxu1 %vm223_vm1, %v7051_v43 }
 0x2d4   : > { %7109 = vmatpush1.bf16.msra.mxu1 %v7062_v45  ;;  %v7158_v47 = vpop.permute.xlu1 %7157  ;;  %v7156_v48 = vpop.permute.xlu0 %7155  ;;  %7216 = vmatprep.mubr.bf16.mxu0 %v15392_v0 }
 0x2d5   : > { %v7165_v52 = vsel %vm899_vm7, %v7156_v48, %v7158_v47 }
 0x2d6   : > { %v4611_v49 = vpop.f32.mrb[148].mxu0  ;;  %8452 = vrot.lane.b32.xlu1 %v17103_v32, %s18731_s5  ;;  %8450 = vrot.lane.b32.xlu0 %v16726_v18, %s18731_s5  ;;  %v7173_v4 = vsel %vm223_vm1, %v7165_v52, 0  ;;  %s18737_s5 = smov 73  }
 0x2d7   : > { %v4659_v50 = vadd.f32 %v4611_v49, %v4541_v21  ;;  %v4613_v51 = vpop.f32.mrb[149].mxu0  ;;  %14846 = vmatmul.mubr.msk.bf16.vlgmr.msra.gmra.mrb[232].mxu1 %vm219_vm2, %v14842_v41 }
 0x2d8   : > { %v4660_v53 = vadd.f32 %v4613_v51, %v4542_v24  ;;  %v7162_v54 = vpop.permute.xlu1 %7161  ;;  %v7160_v55 = vpop.permute.xlu0 %7159  ;;  %7257 = vmatprep.mubr.bf16.mxu1 %v15392_v0 }
 0x2d9   : > { %v7166_v30 = vsel %vm899_vm7, %v7158_v47, %v7160_v55  ;;  %v4615_v56 = vpop.f32.mrb[150].mxu0  ;;  %v7167_v61 = vsel %vm899_vm7, %v7160_v55, %v7162_v54 }
 0x2da   : > { %v4652_v57 = vpop.f32.mrb[148].mxu1  ;;  %8563 = vrot.lane.b32.xlu1 %v16713_v3, %s18732_s29  ;;  %8561 = vrot.lane.b32.xlu0 %v16715_v6, %s18732_s29  ;;  %v4616_v58 = vpop.f32.mrb[151].mxu0  ;;  %v7179_v13 = vsel %vm223_vm1, %v7167_v61, 0  ;;  %v14857_v56 = vld [vmem:[%s18632_s1 + $0xf4] sm:$0xf] }
 0x2db   : > { %v4661_v59 = vadd.f32 %v4652_v57, %v4543_v36  ;;  %v4654_v60 = vpop.f32.mrb[149].mxu1  ;;  %14848 = vmatprep.subr.msk.bf16.mxu0 %vm223_vm1, %v7166_v30 }
 0x2dc   : > { %v4662_v62 = vadd.f32 %v4654_v60, %v4544_v38  ;;  %7185 = vmatpush1.bf16.msra.mxu0 %v7173_v4  ;;  %v7273_v63 = vpop.permute.xlu1 %7272  ;;  %v7164_v1 = vpop.permute.xlu0 %7163 }
 0x2dd   : > { %v7168_v8 = vsel %vm899_vm7, %v7162_v54, %v7164_v1  ;;  %v4656_v33 = vpop.f32.mrb[150].mxu1 }
 0x2de   : > { %v4729_v9 = vpop.f32.mrb[152].mxu0  ;;  %8567 = vrot.lane.b32.xlu1 %v16726_v18, %s18732_s29  ;;  %8565 = vrot.lane.b32.xlu0 %v16728_v19, %s18732_s29  ;;  %v4657_v10 = vpop.f32.mrb[151].mxu1 }
 0x2df   : > { %v4777_v11 = vadd.f32 %v4729_v9, %v4659_v50  ;;  %v4731_v12 = vpop.f32.mrb[153].mxu0  ;;  %14849 = vmatmul.mubr.msk.bf16.vlgmr.msra.gmra.mrb[236].mxu0 %vm219_vm2, %v14847_v2  ;;  %14850 = vmatprep.subr.msk.bf16.mxu1 %vm223_vm1, %v7168_v8 }
 0x2e0   : > { %v4778_v14 = vadd.f32 %v4731_v12, %v4660_v53  ;;  %7226 = vmatpush1.bf16.msra.mxu1 %v7179_v13  ;;  %v7277_v15 = vpop.permute.xlu1 %7276  ;;  %v7275_v16 = vpop.permute.xlu0 %7274  ;;  %7333 = vmatprep.mubr.bf16.mxu0 %v15392_v0 }
 0x2e1   : > { %v7282_v27 = vsel %vm1017_vm8, %v7273_v63, %v7275_v16  ;;  %v7283_v17 = vsel %vm1017_vm8, %v7275_v16, %v7277_v15  ;;  %v4733_v5 = vpop.f32.mrb[154].mxu0 }
 0x2e2   : > { %v4770_v20 = vpop.f32.mrb[152].mxu1  ;;  %8678 = vrot.lane.b32.xlu1 %v16715_v6, %s18733_s26  ;;  %8569 = vrot.lane.b32.xlu0 %v17103_v32, %s18732_s29  ;;  %v7290_v21 = vsel %vm223_vm1, %v7282_v27, 0  ;;  %v4734_v22 = vpop.f32.mrb[155].mxu0  ;;  %s18734_s29 = smov 93  }
 0x2e3   : > { %v4779_v23 = vadd.f32 %v4770_v20, %v4661_v59  ;;  %v4772_v24 = vpop.f32.mrb[153].mxu1  ;;  %14851 = vmatmul.mubr.msk.bf16.vlgmr.msra.gmra.mrb[236].mxu1 %vm219_vm2, %v14847_v2  ;;  %14853 = vmatprep.subr.msk.bf16.mxu0 %vm223_vm1, %v7283_v17  ;;  %v14862_v17 = vld [vmem:[%s18632_s1 + $0xf8] sm:$0xf] }
 0x2e4   : > { %v4780_v25 = vadd.f32 %v4772_v24, %v4662_v62  ;;  %7302 = vmatpush1.bf16.msra.mxu0 %v7290_v21  ;;  %v7281_v26 = vpop.permute.xlu1 %7280  ;;  %v7279_v7 = vpop.permute.xlu0 %7278  ;;  %7374 = vmatprep.mubr.bf16.mxu1 %v15392_v0 }
 0x2e5   : > { %v7284_v29 = vsel %vm1017_vm8, %v7277_v15, %v7279_v7  ;;  %v7285_v31 = vsel %vm1017_vm8, %v7279_v7, %v7281_v26  ;;  %v4774_v34 = vpop.f32.mrb[154].mxu1 }
 0x2e6   : > { %8682 = vrot.lane.b32.xlu1 %v16728_v19, %s18733_s26  ;;  %8680 = vrot.lane.b32.xlu0 %v16713_v3, %s18733_s26  ;;  %v7296_v35 = vsel %vm223_vm1, %v7284_v29, 0  ;;  %v4775_v36 = vpop.f32.mrb[155].mxu1 }
 0x2e7   : > { %14854 = vmatmul.mubr.msk.bf16.vlgmr.msra.gmra.mrb[240].mxu0 %vm219_vm2, %v14852_v28  ;;  %14855 = vmatprep.subr.msk.bf16.mxu1 %vm223_vm1, %v7285_v31 }
 0x2e8   : > { %7343 = vmatpush1.bf16.msra.mxu1 %v7296_v35  ;;  %v7392_v37 = vpop.permute.xlu1 %7391  ;;  %v7390_v38 = vpop.permute.xlu0 %7389  ;;  %7450 = vmatprep.mubr.bf16.mxu0 %v15392_v0 }
 0x2e9   : > { %v7399_v42 = vsel %vm1135_vm9, %v7390_v38, %v7392_v37 }
 0x2ea   : > { %v4847_v39 = vpop.f32.mrb[156].mxu0  ;;  %8686 = vrot.lane.b32.xlu1 %v17103_v32, %s18733_s26  ;;  %8684 = vrot.lane.b32.xlu0 %v16726_v18, %s18733_s26  ;;  %v7407_v50 = vsel %vm223_vm1, %v7399_v42, 0  ;;  %s18739_s26 = smov 71  }
 0x2eb   : > { %v4895_v40 = vadd.f32 %v4847_v39, %v4777_v11  ;;  %v4849_v41 = vpop.f32.mrb[157].mxu0  ;;  %14856 = vmatmul.mubr.msk.bf16.vlgmr.msra.gmra.mrb[240].mxu1 %vm219_vm2, %v14852_v28 }
 0x2ec   : > { %v4896_v43 = vadd.f32 %v4849_v41, %v4778_v14  ;;  %v7396_v44 = vpop.permute.xlu1 %7395  ;;  %v7394_v45 = vpop.permute.xlu0 %7393  ;;  %7491 = vmatprep.mubr.bf16.mxu1 %v15392_v0 }
 0x2ed   : > { %v7400_v46 = vsel %vm1135_vm9, %v7392_v37, %v7394_v45  ;;  %v4851_v47 = vpop.f32.mrb[158].mxu0  ;;  %v7401_v53 = vsel %vm1135_vm9, %v7394_v45, %v7396_v44 }
 0x2ee   : > { %v4888_v48 = vpop.f32.mrb[156].mxu1  ;;  %8797 = vrot.lane.b32.xlu1 %v16713_v3, %s18734_s29  ;;  %8795 = vrot.lane.b32.xlu0 %v16715_v6, %s18734_s29  ;;  %v4852_v49 = vpop.f32.mrb[159].mxu0  ;;  %v7413_v62 = vsel %vm223_vm1, %v7401_v53, 0  ;;  %v14867_v47 = vld [vmem:[%s18632_s1 + $0xfc] sm:$0xf] }
 0x2ef   : > { %v4897_v51 = vadd.f32 %v4888_v48, %v4779_v23  ;;  %v4890_v52 = vpop.f32.mrb[157].mxu1  ;;  %14858 = vmatprep.subr.msk.bf16.mxu0 %vm223_vm1, %v7400_v46 }
 0x2f0   : > { %v4898_v54 = vadd.f32 %v4890_v52, %v4780_v25  ;;  %7419 = vmatpush1.bf16.msra.mxu0 %v7407_v50  ;;  %v7507_v55 = vpop.permute.xlu1 %7506  ;;  %v7398_v30 = vpop.permute.xlu0 %7397 }
 0x2f1   : > { %v7402_v57 = vsel %vm1135_vm9, %v7396_v44, %v7398_v30  ;;  %v4892_v58 = vpop.f32.mrb[158].mxu1 }
 0x2f2   : > { %v4965_v4 = vpop.f32.mrb[160].mxu0  ;;  %8801 = vrot.lane.b32.xlu1 %v16726_v18, %s18734_s29  ;;  %8799 = vrot.lane.b32.xlu0 %v16728_v19, %s18734_s29  ;;  %v4893_v59 = vpop.f32.mrb[159].mxu1 }
 0x2f3   : > { %v5013_v60 = vadd.f32 %v4965_v4, %v4895_v40  ;;  %v4967_v61 = vpop.f32.mrb[161].mxu0  ;;  %14859 = vmatmul.mubr.msk.bf16.vlgmr.msra.gmra.mrb[244].mxu0 %vm219_vm2, %v14857_v56  ;;  %14860 = vmatprep.subr.msk.bf16.mxu1 %vm223_vm1, %v7402_v57 }
 0x2f4   : > { %v5014_v63 = vadd.f32 %v4967_v61, %v4896_v43  ;;  %7460 = vmatpush1.bf16.msra.mxu1 %v7413_v62  ;;  %v7511_v1 = vpop.permute.xlu1 %7510  ;;  %v7509_v2 = vpop.permute.xlu0 %7508  ;;  %7567 = vmatprep.mubr.bf16.mxu0 %v15392_v0 }
 0x2f5   : > { %v7516_v8 = vsel %vm1253_vm10, %v7507_v55, %v7509_v2  ;;  %v7517_v33 = vsel %vm1253_vm10, %v7509_v2, %v7511_v1  ;;  %v4969_v9 = vpop.f32.mrb[162].mxu0 }
 0x2f6   : > { %v5006_v10 = vpop.f32.mrb[160].mxu1  ;;  %8912 = vrot.lane.b32.xlu1 %v16715_v6, %s18735_s28  ;;  %8803 = vrot.lane.b32.xlu0 %v17103_v32, %s18734_s29  ;;  %v7524_v11 = vsel %vm223_vm1, %v7516_v8, 0  ;;  %v4970_v12 = vpop.f32.mrb[163].mxu0  ;;  %s15449_s29 = smov 91  }
 0x2f7   : > { %v5015_v13 = vadd.f32 %v5006_v10, %v4897_v51  ;;  %v5008_v14 = vpop.f32.mrb[161].mxu1  ;;  %14861 = vmatmul.mubr.msk.bf16.vlgmr.msra.gmra.mrb[244].mxu1 %vm219_vm2, %v14857_v56  ;;  %14863 = vmatprep.subr.msk.bf16.mxu0 %vm223_vm1, %v7517_v33  ;;  %v14872_v33 = vld [vmem:[%s18632_s1 + $0x100] sm:$0xf] }
 0x2f8   : > { %v5016_v15 = vadd.f32 %v5008_v14, %v4898_v54  ;;  %7536 = vmatpush1.bf16.msra.mxu0 %v7524_v11  ;;  %v7515_v16 = vpop.permute.xlu1 %7514  ;;  %v7513_v27 = vpop.permute.xlu0 %7512  ;;  %7608 = vmatprep.mubr.bf16.mxu1 %v15392_v0 }
 0x2f9   : > { %v7518_v5 = vsel %vm1253_vm10, %v7511_v1, %v7513_v27  ;;  %v7519_v20 = vsel %vm1253_vm10, %v7513_v27, %v7515_v16  ;;  %v5010_v21 = vpop.f32.mrb[162].mxu1 }
 0x2fa   : > { %8916 = vrot.lane.b32.xlu1 %v16728_v19, %s18735_s28  ;;  %8914 = vrot.lane.b32.xlu0 %v16713_v3, %s18735_s28  ;;  %v7530_v22 = vsel %vm223_vm1, %v7518_v5, 0  ;;  %v5011_v23 = vpop.f32.mrb[163].mxu1 }
 0x2fb   : > { %14864 = vmatmul.mubr.msk.bf16.vlgmr.msra.gmra.mrb[248].mxu0 %vm219_vm2, %v14862_v17  ;;  %14865 = vmatprep.subr.msk.bf16.mxu1 %vm223_vm1, %v7519_v20 }
 0x2fc   : > { %7577 = vmatpush1.bf16.msra.mxu1 %v7530_v22  ;;  %v7626_v24 = vpop.permute.xlu1 %7625  ;;  %v7624_v25 = vpop.permute.xlu0 %7623  ;;  %7684 = vmatprep.mubr.bf16.mxu0 %v15392_v0 }
 0x2fd   : > { %v7633_v29 = vsel %vm1371_vm11, %v7624_v25, %v7626_v24 }
 0x2fe   : > { %v5083_v26 = vpop.f32.mrb[164].mxu0  ;;  %8920 = vrot.lane.b32.xlu1 %v17103_v32, %s18735_s28  ;;  %8918 = vrot.lane.b32.xlu0 %v16726_v18, %s18735_s28  ;;  %v7641_v40 = vsel %vm223_vm1, %v7633_v29, 0  ;;  %s18747_s28 = smov 69  }
 0x2ff   : > { %v5131_v7 = vadd.f32 %v5083_v26, %v5013_v60  ;;  %v5085_v28 = vpop.f32.mrb[165].mxu0  ;;  %14866 = vmatmul.mubr.msk.bf16.vlgmr.msra.gmra.mrb[248].mxu1 %vm219_vm2, %v14862_v17 }
 0x300   : > { %v5132_v31 = vadd.f32 %v5085_v28, %v5014_v63  ;;  %v7630_v34 = vpop.permute.xlu1 %7629  ;;  %v7628_v35 = vpop.permute.xlu0 %7627  ;;  %7725 = vmatprep.mubr.bf16.mxu1 %v15392_v0 }
 0x301   : > { %v7634_v36 = vsel %vm1371_vm11, %v7626_v24, %v7628_v35  ;;  %v5087_v37 = vpop.f32.mrb[166].mxu0  ;;  %v7635_v43 = vsel %vm1371_vm11, %v7628_v35, %v7630_v34 }
 0x302   : > { %v5124_v38 = vpop.f32.mrb[164].mxu1  ;;  %9031 = vrot.lane.b32.xlu1 %v16713_v3, %s15449_s29  ;;  %9029 = vrot.lane.b32.xlu0 %v16715_v6, %s15449_s29  ;;  %v5088_v39 = vpop.f32.mrb[167].mxu0  ;;  %v7647_v54 = vsel %vm223_vm1, %v7635_v43, 0  ;;  %v14877_v37 = vld [vmem:[%s18632_s1 + $0x104] sm:$0xf] }
 0x303   : > { %v5133_v41 = vadd.f32 %v5124_v38, %v5015_v13  ;;  %v5126_v42 = vpop.f32.mrb[165].mxu1  ;;  %14868 = vmatprep.subr.msk.bf16.mxu0 %vm223_vm1, %v7634_v36 }
 0x304   : > { %v5134_v44 = vadd.f32 %v5126_v42, %v5016_v15  ;;  %7653 = vmatpush1.bf16.msra.mxu0 %v7641_v40  ;;  %v7741_v45 = vpop.permute.xlu1 %7740  ;;  %v7632_v46 = vpop.permute.xlu0 %7631 }
 0x305   : > { %v7636_v48 = vsel %vm1371_vm11, %v7630_v34, %v7632_v46  ;;  %v5128_v49 = vpop.f32.mrb[166].mxu1 }
 0x306   : > { %v5201_v50 = vpop.f32.mrb[168].mxu0  ;;  %9035 = vrot.lane.b32.xlu1 %v16726_v18, %s15449_s29  ;;  %9033 = vrot.lane.b32.xlu0 %v16728_v19, %s15449_s29  ;;  %v5129_v51 = vpop.f32.mrb[167].mxu1 }
 0x307   : > { %v5249_v52 = vadd.f32 %v5201_v50, %v5131_v7  ;;  %v5203_v53 = vpop.f32.mrb[169].mxu0  ;;  %14869 = vmatmul.mubr.msk.bf16.vlgmr.msra.gmra.mrb[252].mxu0 %vm219_vm2, %v14867_v47  ;;  %14870 = vmatprep.subr.msk.bf16.mxu1 %vm223_vm1, %v7636_v48 }
 0x308   : > { %v5250_v55 = vadd.f32 %v5203_v53, %v5132_v31  ;;  %7694 = vmatpush1.bf16.msra.mxu1 %v7647_v54  ;;  %v7745_v30 = vpop.permute.xlu1 %7744  ;;  %v7743_v56 = vpop.permute.xlu0 %7742  ;;  %7802 = vmatprep.mubr.bf16.mxu0 %v15392_v0 }
 0x309   : > { %v7751_v57 = vsel %vm7750_vm3, %v7741_v45, %v7743_v56  ;;  %v7752_v58 = vsel %vm7750_vm3, %v7743_v56, %v7745_v30  ;;  %v5205_v4 = vpop.f32.mrb[170].mxu0 }
 0x30a   : > { %v5242_v59 = vpop.f32.mrb[168].mxu1  ;;  %9147 = vrot.lane.b32.xlu1 %v16715_v6, %s15450_s23  ;;  %9037 = vrot.lane.b32.xlu0 %v17103_v32, %s15449_s29  ;;  %v7759_v60 = vsel %vm223_vm1, %v7751_v57, 0  ;;  %v5206_v61 = vpop.f32.mrb[171].mxu0  ;;  %s18736_s29 = smov 74  }
 0x30b   : > { %v5251_v62 = vadd.f32 %v5242_v59, %v5133_v41  ;;  %v5244_v63 = vpop.f32.mrb[169].mxu1  ;;  %14871 = vmatmul.mubr.msk.bf16.vlgmr.msra.gmra.mrb[252].mxu1 %vm219_vm2, %v14867_v47  ;;  %14873 = vmatprep.subr.msk.bf16.mxu0 %vm223_vm1, %v7752_v58  ;;  %v14882_v58 = vld [vmem:[%s18632_s1 + $0x108] sm:$0xf] }
 0x30c   : > { %v5252_v1 = vadd.f32 %v5244_v63, %v5134_v44  ;;  %7771 = vmatpush1.bf16.msra.mxu0 %v7759_v60  ;;  %v7749_v2 = vpop.permute.xlu1 %7748  ;;  %v7747_v8 = vpop.permute.xlu0 %7746  ;;  %7843 = vmatprep.mubr.bf16.mxu1 %v15392_v0 }
 0x30d   : > { %v7753_v9 = vsel %vm7750_vm3, %v7745_v30, %v7747_v8  ;;  %v7754_v10 = vsel %vm7750_vm3, %v7747_v8, %v7749_v2  ;;  %v5246_v11 = vpop.f32.mrb[170].mxu1 }
 0x30e   : > { %9151 = vrot.lane.b32.xlu1 %v16728_v19, %s15450_s23  ;;  %9149 = vrot.lane.b32.xlu0 %v16713_v3, %s15450_s23  ;;  %v7765_v12 = vsel %vm223_vm1, %v7753_v9, 0  ;;  %v5247_v13 = vpop.f32.mrb[171].mxu1 }
 0x30f   : > { %14874 = vmatmul.mubr.msk.bf16.vlgmr.msra.gmra.mrb[0].mxu0 %vm219_vm2, %v14872_v33  ;;  %14875 = vmatprep.subr.msk.bf16.mxu1 %vm223_vm1, %v7754_v10 }
 0x310   : > { %7812 = vmatpush1.bf16.msra.mxu1 %v7765_v12  ;;  %v7861_v14 = vpop.permute.xlu1 %7860  ;;  %v7859_v15 = vpop.permute.xlu0 %7858  ;;  %7920 = vmatprep.mubr.bf16.mxu0 %v15392_v0 }
 0x311   : > { %v7869_v5 = vsel %vm7868_vm4, %v7859_v15, %v7861_v14 }
 0x312   : > { %v5319_v16 = vpop.f32.mrb[172].mxu0  ;;  %9155 = vrot.lane.b32.xlu1 %v17103_v32, %s15450_s23  ;;  %9153 = vrot.lane.b32.xlu0 %v16726_v18, %s15450_s23  ;;  %v7877_v7 = vsel %vm223_vm1, %v7869_v5, 0  ;;  %s18756_s23 = smov 67  }
 0x313   : > { %v5367_v27 = vadd.f32 %v5319_v16, %v5249_v52  ;;  %v5321_v17 = vpop.f32.mrb[173].mxu0  ;;  %14876 = vmatmul.mubr.msk.bf16.vlgmr.msra.gmra.mrb[0].mxu1 %vm219_vm2, %v14872_v33 }
 0x314   : > { %v5368_v20 = vadd.f32 %v5321_v17, %v5250_v55  ;;  %v7865_v21 = vpop.permute.xlu1 %7864  ;;  %v7863_v22 = vpop.permute.xlu0 %7862  ;;  %7961 = vmatprep.mubr.bf16.mxu1 %v15392_v0 }
 0x315   : > { %v7870_v23 = vsel %vm7868_vm4, %v7861_v14, %v7863_v22  ;;  %v5323_v24 = vpop.f32.mrb[174].mxu0  ;;  %v7871_v31 = vsel %vm7868_vm4, %v7863_v22, %v7865_v21 }
 0x316   : > { %v5360_v25 = vpop.f32.mrb[172].mxu1  ;;  %9267 = vrot.lane.b32.xlu1 %v16713_v3, %s18736_s29  ;;  %9265 = vrot.lane.b32.xlu0 %v16715_v6, %s18736_s29  ;;  %v5324_v26 = vpop.f32.mrb[175].mxu0  ;;  %v7883_v44 = vsel %vm223_vm1, %v7871_v31, 0  ;;  %v14887_v24 = vld [vmem:[%s18632_s1 + $0x10c] sm:$0xf] }
 0x317   : > { %v5369_v28 = vadd.f32 %v5360_v25, %v5251_v62  ;;  %v5362_v29 = vpop.f32.mrb[173].mxu1  ;;  %14878 = vmatprep.subr.msk.bf16.mxu0 %vm223_vm1, %v7870_v23 }
 0x318   : > { %v5370_v34 = vadd.f32 %v5362_v29, %v5252_v1  ;;  %7889 = vmatpush1.bf16.msra.mxu0 %v7877_v7  ;;  %v7977_v35 = vpop.permute.xlu1 %7976  ;;  %v7867_v36 = vpop.permute.xlu0 %7866 }
 0x319   : > { %v7872_v38 = vsel %vm7868_vm4, %v7865_v21, %v7867_v36  ;;  %v5364_v39 = vpop.f32.mrb[174].mxu1 }
 0x31a   : > { %v5437_v40 = vpop.f32.mrb[176].mxu0  ;;  %9271 = vrot.lane.b32.xlu1 %v16726_v18, %s18736_s29  ;;  %9269 = vrot.lane.b32.xlu0 %v16728_v19, %s18736_s29  ;;  %v5365_v41 = vpop.f32.mrb[175].mxu1 }
 0x31b   : > { %v5485_v42 = vadd.f32 %v5437_v40, %v5367_v27  ;;  %v5439_v43 = vpop.f32.mrb[177].mxu0  ;;  %14879 = vmatmul.mubr.msk.bf16.vlgmr.msra.gmra.mrb[4].mxu0 %vm219_vm2, %v14877_v37  ;;  %14880 = vmatprep.subr.msk.bf16.mxu1 %vm223_vm1, %v7872_v38 }
 0x31c   : > { %v5486_v45 = vadd.f32 %v5439_v43, %v5368_v20  ;;  %7930 = vmatpush1.bf16.msra.mxu1 %v7883_v44  ;;  %v7981_v46 = vpop.permute.xlu1 %7980  ;;  %v7979_v47 = vpop.permute.xlu0 %7978  ;;  %8037 = vmatprep.mubr.bf16.mxu0 %v15392_v0 }
 0x31d   : > { %v7986_v48 = vsel %vm1725_vm14, %v7977_v35, %v7979_v47  ;;  %v7987_v49 = vsel %vm1725_vm14, %v7979_v47, %v7981_v46  ;;  %v5441_v50 = vpop.f32.mrb[178].mxu0 }
 0x31e   : > { %v5478_v51 = vpop.f32.mrb[176].mxu1  ;;  %9382 = vrot.lane.b32.xlu1 %v16715_v6, %s18737_s5  ;;  %9273 = vrot.lane.b32.xlu0 %v17103_v32, %s18736_s29  ;;  %v7994_v52 = vsel %vm223_vm1, %v7986_v48, 0  ;;  %v5442_v53 = vpop.f32.mrb[179].mxu0  ;;  %s18738_s29 = smov 72  }
 0x31f   : > { %v5487_v54 = vadd.f32 %v5478_v51, %v5369_v28  ;;  %v5480_v55 = vpop.f32.mrb[177].mxu1  ;;  %14881 = vmatmul.mubr.msk.bf16.vlgmr.msra.gmra.mrb[4].mxu1 %vm219_vm2, %v14877_v37  ;;  %14883 = vmatprep.subr.msk.bf16.mxu0 %vm223_vm1, %v7987_v49  ;;  %v14892_v49 = vld [vmem:[%s18632_s1 + $0x110] sm:$0xf] }
 0x320   : > { %v5488_v30 = vadd.f32 %v5480_v55, %v5370_v34  ;;  %8006 = vmatpush1.bf16.msra.mxu0 %v7994_v52  ;;  %v7985_v56 = vpop.permute.xlu1 %7984  ;;  %v7983_v57 = vpop.permute.xlu0 %7982  ;;  %8078 = vmatprep.mubr.bf16.mxu1 %v15392_v0 }
 0x321   : > { %v7988_v4 = vsel %vm1725_vm14, %v7981_v46, %v7983_v57  ;;  %v7989_v59 = vsel %vm1725_vm14, %v7983_v57, %v7985_v56  ;;  %v5482_v60 = vpop.f32.mrb[178].mxu1  ;;  %vm18740_vm14 = vcmask 793600  }
 0x322   : > { %9386 = vrot.lane.b32.xlu1 %v16728_v19, %s18737_s5  ;;  %9384 = vrot.lane.b32.xlu0 %v16713_v3, %s18737_s5  ;;  %v8000_v61 = vsel %vm223_vm1, %v7988_v4, 0  ;;  %v5483_v62 = vpop.f32.mrb[179].mxu1 }
 0x323   : > { %14884 = vmatmul.mubr.msk.bf16.vlgmr.msra.gmra.mrb[8].mxu0 %vm219_vm2, %v14882_v58  ;;  %14885 = vmatprep.subr.msk.bf16.mxu1 %vm223_vm1, %v7989_v59 }
 0x324   : > { %8047 = vmatpush1.bf16.msra.mxu1 %v8000_v61  ;;  %v8096_v63 = vpop.permute.xlu1 %8095  ;;  %v8094_v1 = vpop.permute.xlu0 %8093  ;;  %8154 = vmatprep.mubr.bf16.mxu0 %v15392_v0 }
 0x325   : > { %v8103_v9 = vsel %vm1843_vm15, %v8094_v1, %v8096_v63 }
 0x326   : > { %v5555_v2 = vpop.f32.mrb[180].mxu0  ;;  %9390 = vrot.lane.b32.xlu1 %v17103_v32, %s18737_s5  ;;  %9388 = vrot.lane.b32.xlu0 %v16726_v18, %s18737_s5  ;;  %v8111_v27 = vsel %vm223_vm1, %v8103_v9, 0  ;;  %s15451_s5 = smov 65  }
 0x327   : > { %v5603_v8 = vadd.f32 %v5555_v2, %v5485_v42  ;;  %v5557_v33 = vpop.f32.mrb[181].mxu0  ;;  %14886 = vmatmul.mubr.msk.bf16.vlgmr.msra.gmra.mrb[8].mxu1 %vm219_vm2, %v14882_v58 }
 0x328   : > { %v5604_v10 = vadd.f32 %v5557_v33, %v5486_v45  ;;  %v8100_v11 = vpop.permute.xlu1 %8099  ;;  %v8098_v12 = vpop.permute.xlu0 %8097  ;;  %8195 = vmatprep.mubr.bf16.mxu1 %v15392_v0 }
 0x329   : > { %v8104_v13 = vsel %vm1843_vm15, %v8096_v63, %v8098_v12  ;;  %v5559_v14 = vpop.f32.mrb[182].mxu0  ;;  %v8105_v20 = vsel %vm1843_vm15, %v8098_v12, %v8100_v11 }
 0x32a   : > { %v5596_v15 = vpop.f32.mrb[180].mxu1  ;;  %9501 = vrot.lane.b32.xlu1 %v16713_v3, %s18738_s29  ;;  %9499 = vrot.lane.b32.xlu0 %v16715_v6, %s18738_s29  ;;  %v5560_v16 = vpop.f32.mrb[183].mxu0  ;;  %v8117_v34 = vsel %vm223_vm1, %v8105_v20, 0  ;;  %v14897_v14 = vld [vmem:[%s18632_s1 + $0x114] sm:$0xf] }
 0x32b   : > { %v5605_v17 = vadd.f32 %v5596_v15, %v5487_v54  ;;  %v5598_v5 = vpop.f32.mrb[181].mxu1  ;;  %14888 = vmatprep.subr.msk.bf16.mxu0 %vm223_vm1, %v8104_v13 }
 0x32c   : > { %v5606_v21 = vadd.f32 %v5598_v5, %v5488_v30  ;;  %8123 = vmatpush1.bf16.msra.mxu0 %v8111_v27  ;;  %v8211_v22 = vpop.permute.xlu1 %8210  ;;  %v8102_v23 = vpop.permute.xlu0 %8101 }
 0x32d   : > { %v8106_v25 = vsel %vm1843_vm15, %v8100_v11, %v8102_v23  ;;  %v5600_v26 = vpop.f32.mrb[182].mxu1  ;;  %vm18741_vm15 = vmmov %vm18740_vm14 }
 0x32e   : > { %v5673_v7 = vpop.f32.mrb[184].mxu0  ;;  %9505 = vrot.lane.b32.xlu1 %v16726_v18, %s18738_s29  ;;  %9503 = vrot.lane.b32.xlu0 %v16728_v19, %s18738_s29  ;;  %v5601_v28 = vpop.f32.mrb[183].mxu1 }
 0x32f   : > { %v5721_v29 = vadd.f32 %v5673_v7, %v5603_v8  ;;  %v5675_v31 = vpop.f32.mrb[185].mxu0  ;;  %14889 = vmatmul.mubr.msk.bf16.vlgmr.msra.gmra.mrb[12].mxu0 %vm219_vm2, %v14887_v24  ;;  %14890 = vmatprep.subr.msk.bf16.mxu1 %vm223_vm1, %v8106_v25 }
 0x330   : > { %v5722_v35 = vadd.f32 %v5675_v31, %v5604_v10  ;;  %8164 = vmatpush1.bf16.msra.mxu1 %v8117_v34  ;;  %v8215_v36 = vpop.permute.xlu1 %8214  ;;  %v8213_v37 = vpop.permute.xlu0 %8212  ;;  %8271 = vmatprep.mubr.bf16.mxu0 %v15392_v0 }
 0x331   : > { %v8220_v38 = vsel %vm1961_vm0, %v8211_v22, %v8213_v37  ;;  %v8221_v39 = vsel %vm1961_vm0, %v8213_v37, %v8215_v36  ;;  %v5677_v40 = vpop.f32.mrb[186].mxu0 }
 0x332   : > { %v5714_v41 = vpop.f32.mrb[184].mxu1  ;;  %9616 = vrot.lane.b32.xlu1 %v16715_v6, %s18739_s26  ;;  %9507 = vrot.lane.b32.xlu0 %v17103_v32, %s18738_s29  ;;  %v8228_v42 = vsel %vm223_vm1, %v8220_v38, 0  ;;  %v5678_v43 = vpop.f32.mrb[187].mxu0  ;;  %s18742_s29 = smov 70  }
 0x333   : > { %v5723_v44 = vadd.f32 %v5714_v41, %v5605_v17  ;;  %v5716_v45 = vpop.f32.mrb[185].mxu1  ;;  %14891 = vmatmul.mubr.msk.bf16.vlgmr.msra.gmra.mrb[12].mxu1 %vm219_vm2, %v14887_v24  ;;  %14893 = vmatprep.subr.msk.bf16.mxu0 %vm223_vm1, %v8221_v39  ;;  %v14902_v39 = vld [vmem:[%s18632_s1 + $0x118] sm:$0xf] }
 0x334   : > { %v5724_v46 = vadd.f32 %v5716_v45, %v5606_v21  ;;  %8240 = vmatpush1.bf16.msra.mxu0 %v8228_v42  ;;  %v8219_v47 = vpop.permute.xlu1 %8218  ;;  %v8217_v48 = vpop.permute.xlu0 %8216  ;;  %8312 = vmatprep.mubr.bf16.mxu1 %v15392_v0 }
 0x335   : > { %v8222_v50 = vsel %vm1961_vm0, %v8215_v36, %v8217_v48  ;;  %v8223_v51 = vsel %vm1961_vm0, %v8217_v48, %v8219_v47  ;;  %v5718_v52 = vpop.f32.mrb[186].mxu1  ;;  %vm18743_vm0 = vmmov %vm18740_vm14 }
 0x336   : > { %9620 = vrot.lane.b32.xlu1 %v16728_v19, %s18739_s26  ;;  %9618 = vrot.lane.b32.xlu0 %v16713_v3, %s18739_s26  ;;  %v8234_v53 = vsel %vm223_vm1, %v8222_v50, 0  ;;  %v5719_v54 = vpop.f32.mrb[187].mxu1 }
 0x337   : > { %14894 = vmatmul.mubr.msk.bf16.vlgmr.msra.gmra.mrb[16].mxu0 %vm219_vm2, %v14892_v49  ;;  %14895 = vmatprep.subr.msk.bf16.mxu1 %vm223_vm1, %v8223_v51 }
 0x338   : > { %8281 = vmatpush1.bf16.msra.mxu1 %v8234_v53  ;;  %v8330_v55 = vpop.permute.xlu1 %8329  ;;  %v8328_v30 = vpop.permute.xlu0 %8327  ;;  %8388 = vmatprep.mubr.bf16.mxu0 %v15392_v0 }
 0x339   : > { %v8337_v4 = vsel %vm18740_vm14, %v8328_v30, %v8330_v55  ;;  %vm18744_vm14 = vmmov %vm18743_vm0 }
 0x33a   : > { %v5791_v56 = vpop.f32.mrb[188].mxu0  ;;  %9624 = vrot.lane.b32.xlu1 %v17103_v32, %s18739_s26  ;;  %9622 = vrot.lane.b32.xlu0 %v16726_v18, %s18739_s26  ;;  %v8345_v8 = vsel %vm223_vm1, %v8337_v4, 0  ;;  %s18767_s26 = smov 48  }
 0x33b   : > { %v5839_v57 = vadd.f32 %v5791_v56, %v5721_v29  ;;  %v5793_v58 = vpop.f32.mrb[189].mxu0  ;;  %14896 = vmatmul.mubr.msk.bf16.vlgmr.msra.gmra.mrb[16].mxu1 %vm219_vm2, %v14892_v49 }
 0x33c   : > { %v5840_v59 = vadd.f32 %v5793_v58, %v5722_v35  ;;  %v8334_v60 = vpop.permute.xlu1 %8333  ;;  %v8332_v61 = vpop.permute.xlu0 %8331  ;;  %8429 = vmatprep.mubr.bf16.mxu1 %v15392_v0 }
 0x33d   : > { %v8338_v62 = vsel %vm18741_vm15, %v8330_v55, %v8332_v61  ;;  %v5795_v63 = vpop.f32.mrb[190].mxu0  ;;  %v8339_v10 = vsel %vm18743_vm0, %v8332_v61, %v8334_v60  ;;  %vm18745_vm15 = vcmask 785408  }
 0x33e   : > { %v5832_v1 = vpop.f32.mrb[188].mxu1  ;;  %9735 = vrot.lane.b32.xlu1 %v16713_v3, %s18742_s29  ;;  %9733 = vrot.lane.b32.xlu0 %v16715_v6, %s18742_s29  ;;  %v5796_v2 = vpop.f32.mrb[191].mxu0  ;;  %v8351_v21 = vsel %vm223_vm1, %v8339_v10, 0  ;;  %vm18746_vm0 = vmmov %vm18745_vm15 }
 0x33f   : > { %v5841_v33 = vadd.f32 %v5832_v1, %v5723_v44  ;;  %v5834_v9 = vpop.f32.mrb[189].mxu1  ;;  %14898 = vmatprep.subr.msk.bf16.mxu0 %vm223_vm1, %v8338_v62  ;;  %v14907_v62 = vld [vmem:[%s18632_s1 + $0x11c] sm:$0xf] }
 0x340   : > { %v5842_v11 = vadd.f32 %v5834_v9, %v5724_v46  ;;  %8357 = vmatpush1.bf16.msra.mxu0 %v8345_v8  ;;  %v8445_v12 = vpop.permute.xlu1 %8444  ;;  %v8336_v13 = vpop.permute.xlu0 %8335 }
 0x341   : > { %v8340_v15 = vsel %vm18744_vm14, %v8334_v60, %v8336_v13  ;;  %v5836_v16 = vpop.f32.mrb[190].mxu1  ;;  %vm18748_vm14 = vmmov %vm18746_vm0 }
 0x342   : > { %v5909_v27 = vpop.f32.mrb[192].mxu0  ;;  %9739 = vrot.lane.b32.xlu1 %v16726_v18, %s18742_s29  ;;  %9737 = vrot.lane.b32.xlu0 %v16728_v19, %s18742_s29  ;;  %v5837_v17 = vpop.f32.mrb[191].mxu1 }
 0x343   : > { %v5957_v5 = vadd.f32 %v5909_v27, %v5839_v57  ;;  %v5911_v20 = vpop.f32.mrb[193].mxu0  ;;  %14899 = vmatmul.mubr.msk.bf16.vlgmr.msra.gmra.mrb[20].mxu0 %vm219_vm2, %v14897_v14  ;;  %14900 = vmatprep.subr.msk.bf16.mxu1 %vm223_vm1, %v8340_v15  ;;  %v17456_v17 = vld [vmem:[%s15542_s30 + $0x14] ss:$0 sps:$4 sm:$0xff]  }
 0x344   : > { %v5958_v22 = vadd.f32 %v5911_v20, %v5840_v59  ;;  %8398 = vmatpush1.bf16.msra.mxu1 %v8351_v21  ;;  %v8449_v23 = vpop.permute.xlu1 %8448  ;;  %v8447_v24 = vpop.permute.xlu0 %8446  ;;  %8505 = vmatprep.mubr.bf16.mxu0 %v15392_v0 }
 0x345   : > { %v8454_v25 = vsel %vm18745_vm15, %v8445_v12, %v8447_v24  ;;  %v8455_v26 = vsel %vm18746_vm0, %v8447_v24, %v8449_v23  ;;  %v5913_v7 = vpop.f32.mrb[194].mxu0  ;;  %vm18749_vm15 = vmmov %vm18746_vm0  ;;  %vm18750_vm0 = vcmask 777216  }
 0x346   : > { %v5950_v28 = vpop.f32.mrb[192].mxu1  ;;  %9850 = vrot.lane.b32.xlu1 %v16715_v6, %s18747_s28  ;;  %9741 = vrot.lane.b32.xlu0 %v17103_v32, %s18742_s29  ;;  %v8462_v29 = vsel %vm223_vm1, %v8454_v25, 0  ;;  %v5914_v31 = vpop.f32.mrb[195].mxu0  ;;  %s18752_s29 = smov 68  }
 0x347   : > { %v5959_v34 = vadd.f32 %v5950_v28, %v5841_v33  ;;  %v5952_v35 = vpop.f32.mrb[193].mxu1  ;;  %14901 = vmatmul.mubr.msk.bf16.vlgmr.msra.gmra.mrb[20].mxu1 %vm219_vm2, %v14897_v14  ;;  %14903 = vmatprep.subr.msk.bf16.mxu0 %vm223_vm1, %v8455_v26  ;;  %v14912_v26 = vld [vmem:[%s18632_s1 + $0x120] sm:$0xf] }
 0x348   : > { %v5960_v36 = vadd.f32 %v5952_v35, %v5842_v11  ;;  %8474 = vmatpush1.bf16.msra.mxu0 %v8462_v29  ;;  %v8453_v37 = vpop.permute.xlu1 %8452  ;;  %v8451_v38 = vpop.permute.xlu0 %8450  ;;  %8546 = vmatprep.mubr.bf16.mxu1 %v15392_v0 }
 0x349   : > { %v8456_v40 = vsel %vm18748_vm14, %v8449_v23, %v8451_v38  ;;  %v8457_v41 = vsel %vm18749_vm15, %v8451_v38, %v8453_v37  ;;  %v5954_v42 = vpop.f32.mrb[194].mxu1  ;;  %vm18751_vm14 = vmmov %vm18750_vm0 }
 0x34a   : > { %9854 = vrot.lane.b32.xlu1 %v16728_v19, %s18747_s28  ;;  %9852 = vrot.lane.b32.xlu0 %v16713_v3, %s18747_s28  ;;  %v8468_v43 = vsel %vm223_vm1, %v8456_v40, 0  ;;  %v5955_v44 = vpop.f32.mrb[195].mxu1  ;;  %vm18753_vm15 = vmmov %vm18750_vm0 }
 0x34b   : > { %14904 = vmatmul.mubr.msk.bf16.vlgmr.msra.gmra.mrb[24].mxu0 %vm219_vm2, %v14902_v39  ;;  %14905 = vmatprep.subr.msk.bf16.mxu1 %vm223_vm1, %v8457_v41 }
 0x34c   : > { %8515 = vmatpush1.bf16.msra.mxu1 %v8468_v43  ;;  %v8564_v45 = vpop.permute.xlu1 %8563  ;;  %v8562_v46 = vpop.permute.xlu0 %8561  ;;  %8622 = vmatprep.mubr.bf16.mxu0 %v15392_v0 }
 0x34d   : > { %v8571_v50 = vsel %vm18750_vm0, %v8562_v46, %v8564_v45 }
 0x34e   : > { %v6027_v47 = vpop.f32.mrb[196].mxu0  ;;  %9858 = vrot.lane.b32.xlu1 %v17103_v32, %s18747_s28  ;;  %9856 = vrot.lane.b32.xlu0 %v16726_v18, %s18747_s28  ;;  %v8579_v56 = vsel %vm223_vm1, %v8571_v50, 0  ;;  %s18774_s28 = smov 46  }
 0x34f   : > { %v6075_v48 = vadd.f32 %v6027_v47, %v5957_v5  ;;  %v6029_v49 = vpop.f32.mrb[197].mxu0  ;;  %14906 = vmatmul.mubr.msk.bf16.vlgmr.msra.gmra.mrb[24].mxu1 %vm219_vm2, %v14902_v39 }
 0x350   : > { %v6076_v51 = vadd.f32 %v6029_v49, %v5958_v22  ;;  %v8568_v52 = vpop.permute.xlu1 %8567  ;;  %v8566_v53 = vpop.permute.xlu0 %8565  ;;  %8663 = vmatprep.mubr.bf16.mxu1 %v15392_v0 }
 0x351   : > { %v8572_v54 = vsel %vm18751_vm14, %v8564_v45, %v8566_v53  ;;  %v6031_v55 = vpop.f32.mrb[198].mxu0  ;;  %v8573_v4 = vsel %vm18753_vm15, %v8566_v53, %v8568_v52  ;;  %vm18754_vm14 = vcmask 769024  }
 0x352   : > { %v6068_v30 = vpop.f32.mrb[196].mxu1  ;;  %9969 = vrot.lane.b32.xlu1 %v16713_v3, %s18752_s29  ;;  %9967 = vrot.lane.b32.xlu0 %v16715_v6, %s18752_s29  ;;  %v6032_v32 = vpop.f32.mrb[199].mxu0  ;;  %v8585_v10 = vsel %vm223_vm1, %v8573_v4, 0  ;;  %vm18755_vm15 = vmmov %vm18754_vm14  ;;  %v14917_v55 = vld [vmem:[%s18632_s1 + $0x124] sm:$0xf] }
 0x353   : > { %v6077_v57 = vadd.f32 %v6068_v30, %v5959_v34  ;;  %v6070_v58 = vpop.f32.mrb[197].mxu1  ;;  %14908 = vmatprep.subr.msk.bf16.mxu0 %vm223_vm1, %v8572_v54 }
 0x354   : > { %v6078_v59 = vadd.f32 %v6070_v58, %v5960_v36  ;;  %8591 = vmatpush1.bf16.msra.mxu0 %v8579_v56  ;;  %v8679_v60 = vpop.permute.xlu1 %8678  ;;  %v8570_v61 = vpop.permute.xlu0 %8569 }
 0x355   : > { %v8574_v63 = vsel %vm18750_vm0, %v8568_v52, %v8570_v61  ;;  %v6072_v1 = vpop.f32.mrb[198].mxu1  ;;  %vm18757_vm0 = vmmov %vm18754_vm14 }
 0x356   : > { %v6145_v2 = vpop.f32.mrb[200].mxu0  ;;  %9973 = vrot.lane.b32.xlu1 %v16726_v18, %s18752_s29  ;;  %9971 = vrot.lane.b32.xlu0 %v16728_v19, %s18752_s29  ;;  %v6073_v8 = vpop.f32.mrb[199].mxu1 }
 0x357   : > { %v6193_v33 = vadd.f32 %v6145_v2, %v6075_v48  ;;  %v6147_v9 = vpop.f32.mrb[201].mxu0  ;;  %14909 = vmatmul.mubr.msk.bf16.vlgmr.msra.gmra.mrb[28].mxu0 %vm219_vm2, %v14907_v62  ;;  %14910 = vmatprep.subr.msk.bf16.mxu1 %vm223_vm1, %v8574_v63 }
 0x358   : > { %v6194_v11 = vadd.f32 %v6147_v9, %v6076_v51  ;;  %8632 = vmatpush1.bf16.msra.mxu1 %v8585_v10  ;;  %v8683_v12 = vpop.permute.xlu1 %8682  ;;  %v8681_v13 = vpop.permute.xlu0 %8680  ;;  %8739 = vmatprep.mubr.bf16.mxu0 %v15392_v0 }
 0x359   : > { %v8688_v14 = vsel %vm18754_vm14, %v8679_v60, %v8681_v13  ;;  %v8689_v15 = vsel %vm18755_vm15, %v8681_v13, %v8683_v12  ;;  %v6149_v16 = vpop.f32.mrb[202].mxu0  ;;  %vm18758_vm14 = vmmov %vm18757_vm0  ;;  %vm18759_vm15 = vcmask 760832  }
 0x35a   : > { %v6186_v27 = vpop.f32.mrb[200].mxu1  ;;  %10084 = vrot.lane.b32.xlu1 %v16715_v6, %s18756_s23  ;;  %9975 = vrot.lane.b32.xlu0 %v17456_v17, %s18752_s29  ;;  %v8696_v5 = vsel %vm223_vm1, %v8688_v14, 0  ;;  %v6150_v20 = vpop.f32.mrb[203].mxu0  ;;  %s18761_s29 = smov 66  }
 0x35b   : > { %v6195_v21 = vadd.f32 %v6186_v27, %v6077_v57  ;;  %v6188_v22 = vpop.f32.mrb[201].mxu1  ;;  %14911 = vmatmul.mubr.msk.bf16.vlgmr.msra.gmra.mrb[28].mxu1 %vm219_vm2, %v14907_v62  ;;  %14913 = vmatprep.subr.msk.bf16.mxu0 %vm223_vm1, %v8689_v15  ;;  %v14922_v15 = vld [vmem:[%s18632_s1 + $0x128] sm:$0xf] }
 0x35c   : > { %v6196_v23 = vadd.f32 %v6188_v22, %v6078_v59  ;;  %8708 = vmatpush1.bf16.msra.mxu0 %v8696_v5  ;;  %v8687_v24 = vpop.permute.xlu1 %8686  ;;  %v8685_v25 = vpop.permute.xlu0 %8684  ;;  %8780 = vmatprep.mubr.bf16.mxu1 %v15392_v0 }
 0x35d   : > { %v8690_v7 = vsel %vm18757_vm0, %v8683_v12, %v8685_v25  ;;  %v8691_v28 = vsel %vm18758_vm14, %v8685_v25, %v8687_v24  ;;  %v6190_v29 = vpop.f32.mrb[202].mxu1  ;;  %vm18760_vm0 = vmmov %vm18759_vm15 }
 0x35e   : > { %10088 = vrot.lane.b32.xlu1 %v16728_v19, %s18756_s23  ;;  %10086 = vrot.lane.b32.xlu0 %v16713_v3, %s18756_s23  ;;  %v8702_v31 = vsel %vm223_vm1, %v8690_v7, 0  ;;  %v6191_v34 = vpop.f32.mrb[203].mxu1  ;;  %vm18762_vm14 = vmmov %vm18760_vm0 }
 0x35f   : > { %14914 = vmatmul.mubr.msk.bf16.vlgmr.msra.gmra.mrb[32].mxu0 %vm219_vm2, %v14912_v26  ;;  %14915 = vmatprep.subr.msk.bf16.mxu1 %vm223_vm1, %v8691_v28 }
 0x360   : > { %8749 = vmatpush1.bf16.msra.mxu1 %v8702_v31  ;;  %v8798_v35 = vpop.permute.xlu1 %8797  ;;  %v8796_v36 = vpop.permute.xlu0 %8795  ;;  %8856 = vmatprep.mubr.bf16.mxu0 %v15392_v0 }
 0x361   : > { %v8805_v40 = vsel %vm18759_vm15, %v8796_v36, %v8798_v35  ;;  %vm18763_vm15 = vmmov %vm18760_vm0 }
 0x362   : > { %v6263_v37 = vpop.f32.mrb[204].mxu0  ;;  %10092 = vrot.lane.b32.xlu1 %v17456_v17, %s18756_s23  ;;  %10090 = vrot.lane.b32.xlu0 %v16726_v18, %s18756_s23  ;;  %v8813_v48 = vsel %vm223_vm1, %v8805_v40, 0  ;;  %s18784_s23 = smov 44  }
 0x363   : > { %v6311_v38 = vadd.f32 %v6263_v37, %v6193_v33  ;;  %v6265_v39 = vpop.f32.mrb[205].mxu0  ;;  %14916 = vmatmul.mubr.msk.bf16.vlgmr.msra.gmra.mrb[32].mxu1 %vm219_vm2, %v14912_v26 }
 0x364   : > { %v6312_v41 = vadd.f32 %v6265_v39, %v6194_v11  ;;  %v8802_v42 = vpop.permute.xlu1 %8801  ;;  %v8800_v43 = vpop.permute.xlu0 %8799  ;;  %8897 = vmatprep.mubr.bf16.mxu1 %v15392_v0 }
 0x365   : > { %v8806_v44 = vsel %vm18760_vm0, %v8798_v35, %v8800_v43  ;;  %v6267_v45 = vpop.f32.mrb[206].mxu0  ;;  %v8807_v51 = vsel %vm18762_vm14, %v8800_v43, %v8802_v42  ;;  %vm18764_vm0 = vcmask 752640  }
 0x366   : > { %v6304_v46 = vpop.f32.mrb[204].mxu1  ;;  %10203 = vrot.lane.b32.xlu1 %v16713_v3, %s18761_s29  ;;  %10201 = vrot.lane.b32.xlu0 %v16715_v6, %s18761_s29  ;;  %v6268_v47 = vpop.f32.mrb[207].mxu0  ;;  %v8819_v59 = vsel %vm223_vm1, %v8807_v51, 0  ;;  %vm18765_vm14 = vmmov %vm18764_vm0  ;;  %v14927_v45 = vld [vmem:[%s18632_s1 + $0x12c] sm:$0xf] }
 0x367   : > { %v6313_v49 = vadd.f32 %v6304_v46, %v6195_v21  ;;  %v6306_v50 = vpop.f32.mrb[205].mxu1  ;;  %14918 = vmatprep.subr.msk.bf16.mxu0 %vm223_vm1, %v8806_v44 }
 0x368   : > { %v6314_v52 = vadd.f32 %v6306_v50, %v6196_v23  ;;  %8825 = vmatpush1.bf16.msra.mxu0 %v8813_v48  ;;  %v8913_v53 = vpop.permute.xlu1 %8912  ;;  %v8804_v54 = vpop.permute.xlu0 %8803 }
 0x369   : > { %v8808_v30 = vsel %vm18763_vm15, %v8802_v42, %v8804_v54  ;;  %v6308_v32 = vpop.f32.mrb[206].mxu1  ;;  %vm18766_vm15 = vmmov %vm18764_vm0 }
 0x36a   : > { %v6381_v56 = vpop.f32.mrb[208].mxu0  ;;  %10207 = vrot.lane.b32.xlu1 %v16726_v18, %s18761_s29  ;;  %10205 = vrot.lane.b32.xlu0 %v16728_v19, %s18761_s29  ;;  %v6309_v57 = vpop.f32.mrb[207].mxu1 }
 0x36b   : > { %v6429_v58 = vadd.f32 %v6381_v56, %v6311_v38  ;;  %v6383_v4 = vpop.f32.mrb[209].mxu0  ;;  %14919 = vmatmul.mubr.msk.bf16.vlgmr.msra.gmra.mrb[36].mxu0 %vm219_vm2, %v14917_v55  ;;  %14920 = vmatprep.subr.msk.bf16.mxu1 %vm223_vm1, %v8808_v30 }
 0x36c   : > { %v6430_v60 = vadd.f32 %v6383_v4, %v6312_v41  ;;  %8866 = vmatpush1.bf16.msra.mxu1 %v8819_v59  ;;  %v8917_v61 = vpop.permute.xlu1 %8916  ;;  %v8915_v62 = vpop.permute.xlu0 %8914  ;;  %8973 = vmatprep.mubr.bf16.mxu0 %v15392_v0 }
 0x36d   : > { %v8922_v63 = vsel %vm18764_vm0, %v8913_v53, %v8915_v62  ;;  %v8923_v1 = vsel %vm18765_vm14, %v8915_v62, %v8917_v61  ;;  %v6385_v2 = vpop.f32.mrb[210].mxu0  ;;  %vm9039_vm14 = vcmask 744448  }
 0x36e   : > { %v6422_v8 = vpop.f32.mrb[208].mxu1  ;;  %10318 = vrot.lane.b32.xlu1 %v16715_v6, %s15451_s5  ;;  %10209 = vrot.lane.b32.xlu0 %v17456_v17, %s18761_s29  ;;  %v8930_v33 = vsel %vm223_vm1, %v8922_v63, 0  ;;  %v6386_v9 = vpop.f32.mrb[211].mxu0  ;;  %s15452_s29 = smov 64  }
 0x36f   : > { %v6431_v10 = vadd.f32 %v6422_v8, %v6313_v49  ;;  %v6424_v11 = vpop.f32.mrb[209].mxu1  ;;  %14921 = vmatmul.mubr.msk.bf16.vlgmr.msra.gmra.mrb[36].mxu1 %vm219_vm2, %v14917_v55  ;;  %14923 = vmatprep.subr.msk.bf16.mxu0 %vm223_vm1, %v8923_v1  ;;  %v14932_v1 = vld [vmem:[%s18632_s1 + $0x130] sm:$0xf] }
 0x370   : > { %v6432_v12 = vadd.f32 %v6424_v11, %v6314_v52  ;;  %8942 = vmatpush1.bf16.msra.mxu0 %v8930_v33  ;;  %v8921_v13 = vpop.permute.xlu1 %8920  ;;  %v8919_v14 = vpop.permute.xlu0 %8918  ;;  %9014 = vmatprep.mubr.bf16.mxu1 %v15392_v0 }
 0x371   : > { %v8924_v16 = vsel %vm18766_vm15, %v8917_v61, %v8919_v14  ;;  %v8925_v27 = vsel %vm18764_vm0, %v8919_v14, %v8921_v13  ;;  %v6426_v5 = vpop.f32.mrb[210].mxu1  ;;  %vm9157_vm15 = vcmask 736256   ;;  %vm18768_vm0 = vcmask 605184  }
 0x372   : > { %10322 = vrot.lane.b32.xlu1 %v16728_v19, %s15451_s5  ;;  %10320 = vrot.lane.b32.xlu0 %v16713_v3, %s15451_s5  ;;  %v8936_v20 = vsel %vm223_vm1, %v8924_v16, 0  ;;  %v6427_v21 = vpop.f32.mrb[211].mxu1 }
 0x373   : > { %14924 = vmatmul.mubr.msk.bf16.vlgmr.msra.gmra.mrb[40].mxu0 %vm219_vm2, %v14922_v15  ;;  %14925 = vmatprep.subr.msk.bf16.mxu1 %vm223_vm1, %v8925_v27 }
 0x374   : > { %8983 = vmatpush1.bf16.msra.mxu1 %v8936_v20  ;;  %v9032_v22 = vpop.permute.xlu1 %9031  ;;  %v9030_v23 = vpop.permute.xlu0 %9029  ;;  %9091 = vmatprep.mubr.bf16.mxu0 %v15392_v0 }
 0x375   : > { %v9040_v7 = vsel %vm9039_vm14, %v9030_v23, %v9032_v22 }
 0x376   : > { %v6499_v24 = vpop.f32.mrb[212].mxu0  ;;  %10326 = vrot.lane.b32.xlu1 %v17456_v17, %s15451_s5  ;;  %10324 = vrot.lane.b32.xlu0 %v16726_v18, %s15451_s5  ;;  %v9048_v38 = vsel %vm223_vm1, %v9040_v7, 0  ;;  %s18793_s5 = smov 42  }
 0x377   : > { %v6547_v25 = vadd.f32 %v6499_v24, %v6429_v58  ;;  %v6501_v26 = vpop.f32.mrb[213].mxu0  ;;  %14926 = vmatmul.mubr.msk.bf16.vlgmr.msra.gmra.mrb[40].mxu1 %vm219_vm2, %v14922_v15 }
 0x378   : > { %v6548_v28 = vadd.f32 %v6501_v26, %v6430_v60  ;;  %v9036_v29 = vpop.permute.xlu1 %9035  ;;  %v9034_v31 = vpop.permute.xlu0 %9033  ;;  %9132 = vmatprep.mubr.bf16.mxu1 %v15392_v0 }
 0x379   : > { %v9041_v34 = vsel %vm9039_vm14, %v9032_v22, %v9034_v31  ;;  %v6503_v35 = vpop.f32.mrb[214].mxu0  ;;  %v9042_v41 = vsel %vm9039_vm14, %v9034_v31, %v9036_v29 }
 0x37a   : > { %v6540_v36 = vpop.f32.mrb[212].mxu1  ;;  %10438 = vrot.lane.b32.xlu1 %v16713_v3, %s15452_s29  ;;  %10436 = vrot.lane.b32.xlu0 %v16715_v6, %s15452_s29  ;;  %v6504_v37 = vpop.f32.mrb[215].mxu0  ;;  %v9054_v52 = vsel %vm223_vm1, %v9042_v41, 0  ;;  %v14937_v35 = vld [vmem:[%s18632_s1 + $0x134] sm:$0xf] }
 0x37b   : > { %v6549_v39 = vadd.f32 %v6540_v36, %v6431_v10  ;;  %v6542_v40 = vpop.f32.mrb[213].mxu1  ;;  %14928 = vmatprep.subr.msk.bf16.mxu0 %vm223_vm1, %v9041_v34 }
 0x37c   : > { %v6550_v42 = vadd.f32 %v6542_v40, %v6432_v12  ;;  %9060 = vmatpush1.bf16.msra.mxu0 %v9048_v38  ;;  %v9148_v43 = vpop.permute.xlu1 %9147  ;;  %v9038_v44 = vpop.permute.xlu0 %9037 }
 0x37d   : > { %v9043_v46 = vsel %vm9039_vm14, %v9036_v29, %v9038_v44  ;;  %v6544_v47 = vpop.f32.mrb[214].mxu1  ;;  %vm18769_vm14 = vmmov %vm18768_vm0 }
 0x37e   : > { %v6617_v48 = vpop.f32.mrb[216].mxu0  ;;  %10442 = vrot.lane.b32.xlu1 %v16726_v18, %s15452_s29  ;;  %10440 = vrot.lane.b32.xlu0 %v16728_v19, %s15452_s29  ;;  %v6545_v49 = vpop.f32.mrb[215].mxu1 }
 0x37f   : > { %v6665_v50 = vadd.f32 %v6617_v48, %v6547_v25  ;;  %v6619_v51 = vpop.f32.mrb[217].mxu0  ;;  %14929 = vmatmul.mubr.msk.bf16.vlgmr.msra.gmra.mrb[44].mxu0 %vm219_vm2, %v14927_v45  ;;  %14930 = vmatprep.subr.msk.bf16.mxu1 %vm223_vm1, %v9043_v46 }
 0x380   : > { %v6666_v53 = vadd.f32 %v6619_v51, %v6548_v28  ;;  %9101 = vmatpush1.bf16.msra.mxu1 %v9054_v52  ;;  %v9152_v54 = vpop.permute.xlu1 %9151  ;;  %v9150_v55 = vpop.permute.xlu0 %9149  ;;  %9209 = vmatprep.mubr.bf16.mxu0 %v15392_v0 }
 0x381   : > { %v9158_v30 = vsel %vm9157_vm15, %v9148_v43, %v9150_v55  ;;  %v9159_v32 = vsel %vm9157_vm15, %v9150_v55, %v9152_v54  ;;  %v6621_v56 = vpop.f32.mrb[218].mxu0 }
 0x382   : > { %v6658_v57 = vpop.f32.mrb[216].mxu1  ;;  %10554 = vrot.lane.b32.xlu1 %v16715_v6, %s18767_s26  ;;  %10444 = vrot.lane.b32.xlu0 %v17456_v17, %s15452_s29  ;;  %v9166_v58 = vsel %vm223_vm1, %v9158_v30, 0  ;;  %v6622_v4 = vpop.f32.mrb[219].mxu0  ;;  %s18770_s29 = smov 47  }
 0x383   : > { %v6667_v59 = vadd.f32 %v6658_v57, %v6549_v39  ;;  %v6660_v60 = vpop.f32.mrb[217].mxu1  ;;  %14931 = vmatmul.mubr.msk.bf16.vlgmr.msra.gmra.mrb[44].mxu1 %vm219_vm2, %v14927_v45  ;;  %14933 = vmatprep.subr.msk.bf16.mxu0 %vm223_vm1, %v9159_v32  ;;  %v14942_v32 = vld [vmem:[%s18632_s1 + $0x138] sm:$0xf] }
 0x384   : > { %v6668_v61 = vadd.f32 %v6660_v60, %v6550_v42  ;;  %9178 = vmatpush1.bf16.msra.mxu0 %v9166_v58  ;;  %v9156_v62 = vpop.permute.xlu1 %9155  ;;  %v9154_v63 = vpop.permute.xlu0 %9153  ;;  %9250 = vmatprep.mubr.bf16.mxu1 %v15392_v0 }
 0x385   : > { %v9160_v2 = vsel %vm9157_vm15, %v9152_v54, %v9154_v63  ;;  %v9161_v8 = vsel %vm9157_vm15, %v9154_v63, %v9156_v62  ;;  %v6662_v33 = vpop.f32.mrb[218].mxu1  ;;  %vm18771_vm15 = vmmov %vm18768_vm0 }
 0x386   : > { %10558 = vrot.lane.b32.xlu1 %v16728_v19, %s18767_s26  ;;  %10556 = vrot.lane.b32.xlu0 %v16713_v3, %s18767_s26  ;;  %v9172_v9 = vsel %vm223_vm1, %v9160_v2, 0  ;;  %v6663_v10 = vpop.f32.mrb[219].mxu1 }
 0x387   : > { %14934 = vmatmul.mubr.msk.bf16.vlgmr.msra.gmra.mrb[48].mxu0 %vm219_vm2, %v14932_v1  ;;  %14935 = vmatprep.subr.msk.bf16.mxu1 %vm223_vm1, %v9161_v8 }
 0x388   : > { %9219 = vmatpush1.bf16.msra.mxu1 %v9172_v9  ;;  %v9268_v11 = vpop.permute.xlu1 %9267  ;;  %v9266_v12 = vpop.permute.xlu0 %9265  ;;  %9326 = vmatprep.mubr.bf16.mxu0 %v15392_v0 }
 0x389   : > { %v9275_v16 = vsel %vm18768_vm0, %v9266_v12, %v9268_v11 }
 0x38a   : > { %v6750_v13 = vpop.f32.mrb[220].mxu0  ;;  %10562 = vrot.lane.b32.xlu1 %v17456_v17, %s18767_s26  ;;  %10560 = vrot.lane.b32.xlu0 %v16726_v18, %s18767_s26  ;;  %v9283_v25 = vsel %vm223_vm1, %v9275_v16, 0  ;;  %s18802_s26 = smov 40  }
 0x38b   : > { %v6798_v14 = vadd.f32 %v6750_v13, %v6665_v50  ;;  %v6752_v15 = vpop.f32.mrb[221].mxu0  ;;  %14936 = vmatmul.mubr.msk.bf16.vlgmr.msra.gmra.mrb[48].mxu1 %vm219_vm2, %v14932_v1 }
 0x38c   : > { %v6799_v27 = vadd.f32 %v6752_v15, %v6666_v53  ;;  %v9272_v5 = vpop.permute.xlu1 %9271  ;;  %v9270_v20 = vpop.permute.xlu0 %9269  ;;  %9367 = vmatprep.mubr.bf16.mxu1 %v15392_v0 }
 0x38d   : > { %v9276_v21 = vsel %vm18769_vm14, %v9268_v11, %v9270_v20  ;;  %v6754_v22 = vpop.f32.mrb[222].mxu0  ;;  %v9277_v28 = vsel %vm18771_vm15, %v9270_v20, %v9272_v5  ;;  %vm18772_vm14 = vcmask 596992  }
 0x38e   : > { %v6791_v23 = vpop.f32.mrb[220].mxu1  ;;  %10673 = vrot.lane.b32.xlu1 %v16713_v3, %s18770_s29  ;;  %10671 = vrot.lane.b32.xlu0 %v16715_v6, %s18770_s29  ;;  %v6755_v24 = vpop.f32.mrb[223].mxu0  ;;  %v9289_v42 = vsel %vm223_vm1, %v9277_v28, 0  ;;  %vm18773_vm15 = vmmov %vm18772_vm14  ;;  %v14947_v22 = vld [vmem:[%s18632_s1 + $0x13c] sm:$0xf] }
 0x38f   : > { %v6800_v26 = vadd.f32 %v6791_v23, %v6667_v59  ;;  %v6793_v7 = vpop.f32.mrb[221].mxu1  ;;  %14938 = vmatprep.subr.msk.bf16.mxu0 %vm223_vm1, %v9276_v21 }
 0x390   : > { %v6801_v29 = vadd.f32 %v6793_v7, %v6668_v61  ;;  %9295 = vmatpush1.bf16.msra.mxu0 %v9283_v25  ;;  %v9383_v31 = vpop.permute.xlu1 %9382  ;;  %v9274_v34 = vpop.permute.xlu0 %9273 }
 0x391   : > { %v9278_v36 = vsel %vm18768_vm0, %v9272_v5, %v9274_v34  ;;  %v6795_v37 = vpop.f32.mrb[222].mxu1  ;;  %vm18775_vm0 = vmmov %vm18772_vm14 }
 0x392   : > { %v6867_v38 = vpop.f32.mrb[224].mxu0  ;;  %10677 = vrot.lane.b32.xlu1 %v16726_v18, %s18770_s29  ;;  %10675 = vrot.lane.b32.xlu0 %v16728_v19, %s18770_s29  ;;  %v6796_v39 = vpop.f32.mrb[223].mxu1 }
 0x393   : > { %v6915_v40 = vadd.f32 %v6867_v38, %v6798_v14  ;;  %v6869_v41 = vpop.f32.mrb[225].mxu0  ;;  %14939 = vmatmul.mubr.msk.bf16.vlgmr.msra.gmra.mrb[52].mxu0 %vm219_vm2, %v14937_v35  ;;  %14940 = vmatprep.subr.msk.bf16.mxu1 %vm223_vm1, %v9278_v36 }
 0x394   : > { %v6916_v43 = vadd.f32 %v6869_v41, %v6799_v27  ;;  %9336 = vmatpush1.bf16.msra.mxu1 %v9289_v42  ;;  %v9387_v44 = vpop.permute.xlu1 %9386  ;;  %v9385_v45 = vpop.permute.xlu0 %9384  ;;  %9443 = vmatprep.mubr.bf16.mxu0 %v15392_v0 }
 0x395   : > { %v9392_v46 = vsel %vm18772_vm14, %v9383_v31, %v9385_v45  ;;  %v9393_v47 = vsel %vm18773_vm15, %v9385_v45, %v9387_v44  ;;  %v6871_v48 = vpop.f32.mrb[226].mxu0  ;;  %vm18776_vm14 = vmmov %vm18775_vm0  ;;  %vm18777_vm15 = vcmask 588800  }
 0x396   : > { %v6908_v49 = vpop.f32.mrb[224].mxu1  ;;  %10788 = vrot.lane.b32.xlu1 %v16715_v6, %s18774_s28  ;;  %10679 = vrot.lane.b32.xlu0 %v17456_v17, %s18770_s29  ;;  %v9400_v50 = vsel %vm223_vm1, %v9392_v46, 0  ;;  %v6872_v51 = vpop.f32.mrb[227].mxu0  ;;  %s18779_s29 = smov 45  }
 0x397   : > { %v6917_v52 = vadd.f32 %v6908_v49, %v6800_v26  ;;  %v6910_v53 = vpop.f32.mrb[225].mxu1  ;;  %14941 = vmatmul.mubr.msk.bf16.vlgmr.msra.gmra.mrb[52].mxu1 %vm219_vm2, %v14937_v35  ;;  %14943 = vmatprep.subr.msk.bf16.mxu0 %vm223_vm1, %v9393_v47  ;;  %v14952_v47 = vld [vmem:[%s18632_s1 + $0x140] sm:$0xf] }
 0x398   : > { %v6918_v54 = vadd.f32 %v6910_v53, %v6801_v29  ;;  %9412 = vmatpush1.bf16.msra.mxu0 %v9400_v50  ;;  %v9391_v55 = vpop.permute.xlu1 %9390  ;;  %v9389_v30 = vpop.permute.xlu0 %9388  ;;  %9484 = vmatprep.mubr.bf16.mxu1 %v15392_v0 }
 0x399   : > { %v9394_v56 = vsel %vm18775_vm0, %v9387_v44, %v9389_v30  ;;  %v9395_v57 = vsel %vm18776_vm14, %v9389_v30, %v9391_v55  ;;  %v6912_v58 = vpop.f32.mrb[226].mxu1  ;;  %vm18778_vm0 = vmmov %vm18777_vm15 }
 0x39a   : > { %10792 = vrot.lane.b32.xlu1 %v16728_v19, %s18774_s28  ;;  %10790 = vrot.lane.b32.xlu0 %v16713_v3, %s18774_s28  ;;  %v9406_v4 = vsel %vm223_vm1, %v9394_v56, 0  ;;  %v6913_v59 = vpop.f32.mrb[227].mxu1  ;;  %vm18780_vm14 = vmmov %vm18778_vm0 }
 0x39b   : > { %14944 = vmatmul.mubr.msk.bf16.vlgmr.msra.gmra.mrb[56].mxu0 %vm219_vm2, %v14942_v32  ;;  %14945 = vmatprep.subr.msk.bf16.mxu1 %vm223_vm1, %v9395_v57 }
 0x39c   : > { %9453 = vmatpush1.bf16.msra.mxu1 %v9406_v4  ;;  %v9502_v60 = vpop.permute.xlu1 %9501  ;;  %v9500_v61 = vpop.permute.xlu0 %9499  ;;  %9560 = vmatprep.mubr.bf16.mxu0 %v15392_v0 }
 0x39d   : > { %v9509_v2 = vsel %vm18777_vm15, %v9500_v61, %v9502_v60  ;;  %vm18781_vm15 = vmmov %vm18778_vm0 }
 0x39e   : > { %v6984_v62 = vpop.f32.mrb[228].mxu0  ;;  %10796 = vrot.lane.b32.xlu1 %v17456_v17, %s18774_s28  ;;  %10794 = vrot.lane.b32.xlu0 %v16726_v18, %s18774_s28  ;;  %v9517_v14 = vsel %vm223_vm1, %v9509_v2, 0  ;;  %s15454_s28 = smov 38  }
 0x39f   : > { %v7032_v63 = vadd.f32 %v6984_v62, %v6915_v40  ;;  %v6986_v1 = vpop.f32.mrb[229].mxu0  ;;  %14946 = vmatmul.mubr.msk.bf16.vlgmr.msra.gmra.mrb[56].mxu1 %vm219_vm2, %v14942_v32 }
 0x3a0   : > { %v7033_v8 = vadd.f32 %v6986_v1, %v6916_v43  ;;  %v9506_v33 = vpop.permute.xlu1 %9505  ;;  %v9504_v9 = vpop.permute.xlu0 %9503  ;;  %9601 = vmatprep.mubr.bf16.mxu1 %v15392_v0 }
 0x3a1   : > { %v9510_v10 = vsel %vm18778_vm0, %v9502_v60, %v9504_v9  ;;  %v6988_v11 = vpop.f32.mrb[230].mxu0  ;;  %v9511_v27 = vsel %vm18780_vm14, %v9504_v9, %v9506_v33  ;;  %vm18782_vm0 = vcmask 580608  }
 0x3a2   : > { %v7025_v12 = vpop.f32.mrb[228].mxu1  ;;  %10907 = vrot.lane.b32.xlu1 %v16713_v3, %s18779_s29  ;;  %10905 = vrot.lane.b32.xlu0 %v16715_v6, %s18779_s29  ;;  %v6989_v13 = vpop.f32.mrb[231].mxu0  ;;  %v9523_v29 = vsel %vm223_vm1, %v9511_v27, 0  ;;  %vm18783_vm14 = vmmov %vm18782_vm0  ;;  %v14957_v11 = vld [vmem:[%s18632_s1 + $0x144] sm:$0xf] }
 0x3a3   : > { %v7034_v15 = vadd.f32 %v7025_v12, %v6917_v52  ;;  %v7027_v16 = vpop.f32.mrb[229].mxu1  ;;  %14948 = vmatprep.subr.msk.bf16.mxu0 %vm223_vm1, %v9510_v10 }
 0x3a4   : > { %v7035_v5 = vadd.f32 %v7027_v16, %v6918_v54  ;;  %9529 = vmatpush1.bf16.msra.mxu0 %v9517_v14  ;;  %v9617_v20 = vpop.permute.xlu1 %9616  ;;  %v9508_v21 = vpop.permute.xlu0 %9507 }
 0x3a5   : > { %v9512_v23 = vsel %vm18781_vm15, %v9506_v33, %v9508_v21  ;;  %v7029_v24 = vpop.f32.mrb[230].mxu1  ;;  %vm18785_vm15 = vmmov %vm18782_vm0 }
 0x3a6   : > { %v7101_v25 = vpop.f32.mrb[232].mxu0  ;;  %10911 = vrot.lane.b32.xlu1 %v16726_v18, %s18779_s29  ;;  %10909 = vrot.lane.b32.xlu0 %v16728_v19, %s18779_s29  ;;  %v7030_v26 = vpop.f32.mrb[231].mxu1 }
 0x3a7   : > { %v7149_v7 = vadd.f32 %v7101_v25, %v7032_v63  ;;  %v7103_v28 = vpop.f32.mrb[233].mxu0  ;;  %14949 = vmatmul.mubr.msk.bf16.vlgmr.msra.gmra.mrb[60].mxu0 %vm219_vm2, %v14947_v22  ;;  %14950 = vmatprep.subr.msk.bf16.mxu1 %vm223_vm1, %v9512_v23 }
 0x3a8   : > { %v7150_v31 = vadd.f32 %v7103_v28, %v7033_v8  ;;  %9570 = vmatpush1.bf16.msra.mxu1 %v9523_v29  ;;  %v9621_v34 = vpop.permute.xlu1 %9620  ;;  %v9619_v35 = vpop.permute.xlu0 %9618  ;;  %9677 = vmatprep.mubr.bf16.mxu0 %v15392_v0 }
 0x3a9   : > { %v9626_v36 = vsel %vm18782_vm0, %v9617_v20, %v9619_v35  ;;  %v9627_v37 = vsel %vm18783_vm14, %v9619_v35, %v9621_v34  ;;  %v7105_v38 = vpop.f32.mrb[234].mxu0  ;;  %vm18786_vm14 = vcmask 572416  }
 0x3aa   : > { %v7142_v39 = vpop.f32.mrb[232].mxu1  ;;  %11022 = vrot.lane.b32.xlu1 %v16715_v6, %s18784_s23  ;;  %10913 = vrot.lane.b32.xlu0 %v17456_v17, %s18779_s29  ;;  %v9634_v40 = vsel %vm223_vm1, %v9626_v36, 0  ;;  %v7106_v41 = vpop.f32.mrb[235].mxu0  ;;  %s18788_s29 = smov 43  }
 0x3ab   : > { %v7151_v42 = vadd.f32 %v7142_v39, %v7034_v15  ;;  %v7144_v43 = vpop.f32.mrb[233].mxu1  ;;  %14951 = vmatmul.mubr.msk.bf16.vlgmr.msra.gmra.mrb[60].mxu1 %vm219_vm2, %v14947_v22  ;;  %14953 = vmatprep.subr.msk.bf16.mxu0 %vm223_vm1, %v9627_v37  ;;  %v14962_v37 = vld [vmem:[%s18632_s1 + $0x148] sm:$0xf] }
 0x3ac   : > { %v7152_v44 = vadd.f32 %v7144_v43, %v7035_v5  ;;  %9646 = vmatpush1.bf16.msra.mxu0 %v9634_v40  ;;  %v9625_v45 = vpop.permute.xlu1 %9624  ;;  %v9623_v46 = vpop.permute.xlu0 %9622  ;;  %9718 = vmatprep.mubr.bf16.mxu1 %v15392_v0 }
 0x3ad   : > { %v9628_v48 = vsel %vm18785_vm15, %v9621_v34, %v9623_v46  ;;  %v9629_v49 = vsel %vm18782_vm0, %v9623_v46, %v9625_v45  ;;  %v7146_v50 = vpop.f32.mrb[234].mxu1  ;;  %vm18787_vm15 = vmmov %vm18786_vm14 }
 0x3ae   : > { %11026 = vrot.lane.b32.xlu1 %v16728_v19, %s18784_s23  ;;  %11024 = vrot.lane.b32.xlu0 %v16713_v3, %s18784_s23  ;;  %v9640_v51 = vsel %vm223_vm1, %v9628_v48, 0  ;;  %v7147_v52 = vpop.f32.mrb[235].mxu1  ;;  %vm18789_vm0 = vmmov %vm18786_vm14 }
 0x3af   : > { %14954 = vmatmul.mubr.msk.bf16.vlgmr.msra.gmra.mrb[64].mxu0 %vm219_vm2, %v14952_v47  ;;  %14955 = vmatprep.subr.msk.bf16.mxu1 %vm223_vm1, %v9629_v49 }
 0x3b0   : > { %9687 = vmatpush1.bf16.msra.mxu1 %v9640_v51  ;;  %v9736_v53 = vpop.permute.xlu1 %9735  ;;  %v9734_v54 = vpop.permute.xlu0 %9733  ;;  %9794 = vmatprep.mubr.bf16.mxu0 %v15392_v0 }
 0x3b1   : > { %v9743_v56 = vsel %vm18786_vm14, %v9734_v54, %v9736_v53  ;;  %vm18790_vm14 = vmmov %vm18789_vm0 }
 0x3b2   : > { %v7218_v55 = vpop.f32.mrb[236].mxu0  ;;  %11030 = vrot.lane.b32.xlu1 %v17456_v17, %s18784_s23  ;;  %11028 = vrot.lane.b32.xlu0 %v16726_v18, %s18784_s23  ;;  %v9751_v63 = vsel %vm223_vm1, %v9743_v56, 0  ;;  %s18812_s23 = smov 21  }
 0x3b3   : > { %v7266_v30 = vadd.f32 %v7218_v55, %v7149_v7  ;;  %v7220_v32 = vpop.f32.mrb[237].mxu0  ;;  %14956 = vmatmul.mubr.msk.bf16.vlgmr.msra.gmra.mrb[64].mxu1 %vm219_vm2, %v14952_v47 }
 0x3b4   : > { %v7267_v57 = vadd.f32 %v7220_v32, %v7150_v31  ;;  %v9740_v58 = vpop.permute.xlu1 %9739  ;;  %v9738_v4 = vpop.permute.xlu0 %9737  ;;  %9835 = vmatprep.mubr.bf16.mxu1 %v15392_v0 }
 0x3b5   : > { %v9744_v59 = vsel %vm18787_vm15, %v9736_v53, %v9738_v4  ;;  %v7222_v60 = vpop.f32.mrb[238].mxu0  ;;  %v9745_v8 = vsel %vm18789_vm0, %v9738_v4, %v9740_v58  ;;  %vm18791_vm15 = vcmask 564224  }
 0x3b6   : > { %v7259_v61 = vpop.f32.mrb[236].mxu1  ;;  %11141 = vrot.lane.b32.xlu1 %v16713_v3, %s18788_s29  ;;  %11139 = vrot.lane.b32.xlu0 %v16715_v6, %s18788_s29  ;;  %v7223_v62 = vpop.f32.mrb[239].mxu0  ;;  %v9757_v5 = vsel %vm223_vm1, %v9745_v8, 0  ;;  %vm18792_vm0 = vmmov %vm18791_vm15  ;;  %v14967_v60 = vld [vmem:[%s18632_s1 + $0x14c] sm:$0xf] }
 0x3b7   : > { %v7268_v1 = vadd.f32 %v7259_v61, %v7151_v42  ;;  %v7261_v2 = vpop.f32.mrb[237].mxu1  ;;  %14958 = vmatprep.subr.msk.bf16.mxu0 %vm223_vm1, %v9744_v59 }
 0x3b8   : > { %v7269_v33 = vadd.f32 %v7261_v2, %v7152_v44  ;;  %9763 = vmatpush1.bf16.msra.mxu0 %v9751_v63  ;;  %v9851_v9 = vpop.permute.xlu1 %9850  ;;  %v9742_v10 = vpop.permute.xlu0 %9741 }
 0x3b9   : > { %v9746_v12 = vsel %vm18790_vm14, %v9740_v58, %v9742_v10  ;;  %v7263_v13 = vpop.f32.mrb[238].mxu1  ;;  %vm18794_vm14 = vmmov %vm18792_vm0 }
 0x3ba   : > { %v7335_v14 = vpop.f32.mrb[240].mxu0  ;;  %11145 = vrot.lane.b32.xlu1 %v16726_v18, %s18788_s29  ;;  %11143 = vrot.lane.b32.xlu0 %v16728_v19, %s18788_s29  ;;  %v7264_v15 = vpop.f32.mrb[239].mxu1 }
 0x3bb   : > { %v7383_v16 = vadd.f32 %v7335_v14, %v7266_v30  ;;  %v7337_v27 = vpop.f32.mrb[241].mxu0  ;;  %14959 = vmatmul.mubr.msk.bf16.vlgmr.msra.gmra.mrb[68].mxu0 %vm219_vm2, %v14957_v11  ;;  %14960 = vmatprep.subr.msk.bf16.mxu1 %vm223_vm1, %v9746_v12 }
 0x3bc   : > { %v7384_v20 = vadd.f32 %v7337_v27, %v7267_v57  ;;  %9804 = vmatpush1.bf16.msra.mxu1 %v9757_v5  ;;  %v9855_v21 = vpop.permute.xlu1 %9854  ;;  %v9853_v22 = vpop.permute.xlu0 %9852  ;;  %9911 = vmatprep.mubr.bf16.mxu0 %v15392_v0 }
 0x3bd   : > { %v9860_v23 = vsel %vm18791_vm15, %v9851_v9, %v9853_v22  ;;  %v9861_v24 = vsel %vm18792_vm0, %v9853_v22, %v9855_v21  ;;  %v7339_v25 = vpop.f32.mrb[242].mxu0  ;;  %vm18795_vm15 = vmmov %vm18792_vm0  ;;  %vm18796_vm0 = vcmask 556032  }
 0x3be   : > { %v7376_v26 = vpop.f32.mrb[240].mxu1  ;;  %11256 = vrot.lane.b32.xlu1 %v16715_v6, %s18793_s5  ;;  %11147 = vrot.lane.b32.xlu0 %v17456_v17, %s18788_s29  ;;  %v9868_v7 = vsel %vm223_vm1, %v9860_v23, 0  ;;  %v7340_v28 = vpop.f32.mrb[243].mxu0  ;;  %s18798_s29 = smov 41  }
 0x3bf   : > { %v7385_v29 = vadd.f32 %v7376_v26, %v7268_v1  ;;  %v7378_v31 = vpop.f32.mrb[241].mxu1  ;;  %14961 = vmatmul.mubr.msk.bf16.vlgmr.msra.gmra.mrb[68].mxu1 %vm219_vm2, %v14957_v11  ;;  %14963 = vmatprep.subr.msk.bf16.mxu0 %vm223_vm1, %v9861_v24  ;;  %v14972_v24 = vld [vmem:[%s18632_s1 + $0x150] sm:$0xf] }
 0x3c0   : > { %v7386_v34 = vadd.f32 %v7378_v31, %v7269_v33  ;;  %9880 = vmatpush1.bf16.msra.mxu0 %v9868_v7  ;;  %v9859_v35 = vpop.permute.xlu1 %9858  ;;  %v9857_v36 = vpop.permute.xlu0 %9856  ;;  %9952 = vmatprep.mubr.bf16.mxu1 %v15392_v0 }
 0x3c1   : > { %v9862_v38 = vsel %vm18794_vm14, %v9855_v21, %v9857_v36  ;;  %v9863_v39 = vsel %vm18795_vm15, %v9857_v36, %v9859_v35  ;;  %v7380_v40 = vpop.f32.mrb[242].mxu1  ;;  %vm18797_vm14 = vmmov %vm18796_vm0 }
 0x3c2   : > { %11260 = vrot.lane.b32.xlu1 %v16728_v19, %s18793_s5  ;;  %11258 = vrot.lane.b32.xlu0 %v16713_v3, %s18793_s5  ;;  %v9874_v41 = vsel %vm223_vm1, %v9862_v38, 0  ;;  %v7381_v42 = vpop.f32.mrb[243].mxu1  ;;  %vm18799_vm15 = vmmov %vm18796_vm0 }
 0x3c3   : > { %14964 = vmatmul.mubr.msk.bf16.vlgmr.msra.gmra.mrb[72].mxu0 %vm219_vm2, %v14962_v37  ;;  %14965 = vmatprep.subr.msk.bf16.mxu1 %vm223_vm1, %v9863_v39 }
 0x3c4   : > { %9921 = vmatpush1.bf16.msra.mxu1 %v9874_v41  ;;  %v9970_v43 = vpop.permute.xlu1 %9969  ;;  %v9968_v44 = vpop.permute.xlu0 %9967  ;;  %10028 = vmatprep.mubr.bf16.mxu0 %v15392_v0 }
 0x3c5   : > { %v9977_v48 = vsel %vm18796_vm0, %v9968_v44, %v9970_v43 }
 0x3c6   : > { %v7452_v45 = vpop.f32.mrb[244].mxu0  ;;  %11264 = vrot.lane.b32.xlu1 %v17456_v17, %s18793_s5  ;;  %11262 = vrot.lane.b32.xlu0 %v16726_v18, %s18793_s5  ;;  %v9985_v30 = vsel %vm223_vm1, %v9977_v48, 0  ;;  %s18821_s5 = smov 19  }
 0x3c7   : > { %v7500_v46 = vadd.f32 %v7452_v45, %v7383_v16  ;;  %v7454_v47 = vpop.f32.mrb[245].mxu0  ;;  %14966 = vmatmul.mubr.msk.bf16.vlgmr.msra.gmra.mrb[72].mxu1 %vm219_vm2, %v14962_v37 }
 0x3c8   : > { %v7501_v49 = vadd.f32 %v7454_v47, %v7384_v20  ;;  %v9974_v50 = vpop.permute.xlu1 %9973  ;;  %v9972_v51 = vpop.permute.xlu0 %9971  ;;  %10069 = vmatprep.mubr.bf16.mxu1 %v15392_v0 }
 0x3c9   : > { %v9978_v52 = vsel %vm18797_vm14, %v9970_v43, %v9972_v51  ;;  %v7456_v53 = vpop.f32.mrb[246].mxu0  ;;  %v9979_v57 = vsel %vm18799_vm15, %v9972_v51, %v9974_v50  ;;  %vm18800_vm14 = vcmask 547840  }
 0x3ca   : > { %v7493_v54 = vpop.f32.mrb[244].mxu1  ;;  %11375 = vrot.lane.b32.xlu1 %v16713_v3, %s18798_s29  ;;  %11373 = vrot.lane.b32.xlu0 %v16715_v6, %s18798_s29  ;;  %v7457_v55 = vpop.f32.mrb[247].mxu0  ;;  %v9991_v33 = vsel %vm223_vm1, %v9979_v57, 0  ;;  %vm18801_vm15 = vmmov %vm18800_vm14 }
 0x3cb   : > { %v7502_v32 = vadd.f32 %v7493_v54, %v7385_v29  ;;  %v7495_v56 = vpop.f32.mrb[245].mxu1  ;;  %14968 = vmatprep.subr.msk.bf16.mxu0 %vm223_vm1, %v9978_v52  ;;  %v14977_v52 = vld [vmem:[%s18632_s1 + $0x154] sm:$0xf] }
 0x3cc   : > { %v7503_v58 = vadd.f32 %v7495_v56, %v7386_v34  ;;  %9997 = vmatpush1.bf16.msra.mxu0 %v9985_v30  ;;  %v10085_v4 = vpop.permute.xlu1 %10084  ;;  %v9976_v59 = vpop.permute.xlu0 %9975 }
 0x3cd   : > { %v9980_v61 = vsel %vm18796_vm0, %v9974_v50, %v9976_v59  ;;  %v7497_v62 = vpop.f32.mrb[246].mxu1  ;;  %vm18803_vm0 = vmmov %vm18800_vm14 }
 0x3ce   : > { %v7569_v63 = vpop.f32.mrb[248].mxu0  ;;  %11379 = vrot.lane.b32.xlu1 %v16726_v18, %s18798_s29  ;;  %11377 = vrot.lane.b32.xlu0 %v16728_v19, %s18798_s29  ;;  %v7498_v1 = vpop.f32.mrb[247].mxu1 }
 0x3cf   : > { %v7617_v2 = vadd.f32 %v7569_v63, %v7500_v46  ;;  %v7571_v8 = vpop.f32.mrb[249].mxu0  ;;  %14969 = vmatmul.mubr.msk.bf16.vlgmr.msra.gmra.mrb[76].mxu0 %vm219_vm2, %v14967_v60  ;;  %14970 = vmatprep.subr.msk.bf16.mxu1 %vm223_vm1, %v9980_v61  ;;  %v17809_v1 = vld [vmem:[%s15542_s30 + $0x14] ss:$0 sps:$4 sm:$0xff]  }
 0x3d0   : > { %v7618_v9 = vadd.f32 %v7571_v8, %v7501_v49  ;;  %10038 = vmatpush1.bf16.msra.mxu1 %v9991_v33  ;;  %v10089_v10 = vpop.permute.xlu1 %10088  ;;  %v10087_v11 = vpop.permute.xlu0 %10086  ;;  %10145 = vmatprep.mubr.bf16.mxu0 %v15392_v0 }
 0x3d1   : > { %v10094_v12 = vsel %vm18800_vm14, %v10085_v4, %v10087_v11  ;;  %v10095_v13 = vsel %vm18801_vm15, %v10087_v11, %v10089_v10  ;;  %v7573_v14 = vpop.f32.mrb[250].mxu0  ;;  %vm18804_vm14 = vmmov %vm18803_vm0  ;;  %vm18805_vm15 = vcmask 539648  }
 0x3d2   : > { %v7610_v15 = vpop.f32.mrb[248].mxu1  ;;  %11490 = vrot.lane.b32.xlu1 %v16715_v6, %s18802_s26  ;;  %11381 = vrot.lane.b32.xlu0 %v17456_v17, %s18798_s29  ;;  %v10102_v16 = vsel %vm223_vm1, %v10094_v12, 0  ;;  %v7574_v27 = vpop.f32.mrb[251].mxu0  ;;  %s15453_s29 = smov 39  }
 0x3d3   : > { %v7619_v5 = vadd.f32 %v7610_v15, %v7502_v32  ;;  %v7612_v20 = vpop.f32.mrb[249].mxu1  ;;  %14971 = vmatmul.mubr.msk.bf16.vlgmr.msra.gmra.mrb[76].mxu1 %vm219_vm2, %v14967_v60  ;;  %14973 = vmatprep.subr.msk.bf16.mxu0 %vm223_vm1, %v10095_v13  ;;  %v14982_v13 = vld [vmem:[%s18632_s1 + $0x158] sm:$0xf] }
 0x3d4   : > { %v7620_v21 = vadd.f32 %v7612_v20, %v7503_v58  ;;  %10114 = vmatpush1.bf16.msra.mxu0 %v10102_v16  ;;  %v10093_v22 = vpop.permute.xlu1 %10092  ;;  %v10091_v23 = vpop.permute.xlu0 %10090  ;;  %10186 = vmatprep.mubr.bf16.mxu1 %v15392_v0 }
 0x3d5   : > { %v10096_v25 = vsel %vm18803_vm0, %v10089_v10, %v10091_v23  ;;  %v10097_v26 = vsel %vm18804_vm14, %v10091_v23, %v10093_v22  ;;  %v7614_v7 = vpop.f32.mrb[250].mxu1  ;;  %vm18806_vm0 = vmmov %vm18805_vm15 }
 0x3d6   : > { %11494 = vrot.lane.b32.xlu1 %v16728_v19, %s18802_s26  ;;  %11492 = vrot.lane.b32.xlu0 %v16713_v3, %s18802_s26  ;;  %v10108_v28 = vsel %vm223_vm1, %v10096_v25, 0  ;;  %v7615_v29 = vpop.f32.mrb[251].mxu1  ;;  %vm18807_vm14 = vmmov %vm18806_vm0 }
 0x3d7   : > { %14974 = vmatmul.mubr.msk.bf16.vlgmr.msra.gmra.mrb[80].mxu0 %vm219_vm2, %v14972_v24  ;;  %14975 = vmatprep.subr.msk.bf16.mxu1 %vm223_vm1, %v10097_v26 }
 0x3d8   : > { %10155 = vmatpush1.bf16.msra.mxu1 %v10108_v28  ;;  %v10204_v31 = vpop.permute.xlu1 %10203  ;;  %v10202_v34 = vpop.permute.xlu0 %10201  ;;  %10262 = vmatprep.mubr.bf16.mxu0 %v15392_v0 }
 0x3d9   : > { %v10211_v38 = vsel %vm18805_vm15, %v10202_v34, %v10204_v31  ;;  %vm18808_vm15 = vmmov %vm18806_vm0 }
 0x3da   : > { %v7686_v35 = vpop.f32.mrb[252].mxu0  ;;  %11498 = vrot.lane.b32.xlu1 %v17456_v17, %s18802_s26  ;;  %11496 = vrot.lane.b32.xlu0 %v16726_v18, %s18802_s26  ;;  %v10219_v45 = vsel %vm223_vm1, %v10211_v38, 0  ;;  %s18831_s26 = smov 17  }
 0x3db   : > { %v7734_v36 = vadd.f32 %v7686_v35, %v7617_v2  ;;  %v7688_v37 = vpop.f32.mrb[253].mxu0  ;;  %14976 = vmatmul.mubr.msk.bf16.vlgmr.msra.gmra.mrb[80].mxu1 %vm219_vm2, %v14972_v24 }
 0x3dc   : > { %v7735_v39 = vadd.f32 %v7688_v37, %v7618_v9  ;;  %v10208_v40 = vpop.permute.xlu1 %10207  ;;  %v10206_v41 = vpop.permute.xlu0 %10205  ;;  %10303 = vmatprep.mubr.bf16.mxu1 %v15392_v0 }
 0x3dd   : > { %v10212_v42 = vsel %vm18806_vm0, %v10204_v31, %v10206_v41  ;;  %v7690_v43 = vpop.f32.mrb[254].mxu0  ;;  %v10213_v48 = vsel %vm18807_vm14, %v10206_v41, %v10208_v40  ;;  %vm10328_vm0 = vcmask 531456   ;;  %vm10446_vm14 = vcmask 523264  }
 0x3de   : > { %v7727_v44 = vpop.f32.mrb[252].mxu1  ;;  %11609 = vrot.lane.b32.xlu1 %v16713_v3, %s15453_s29  ;;  %11607 = vrot.lane.b32.xlu0 %v16715_v6, %s15453_s29  ;;  %v7691_v17 = vpop.f32.mrb[255].mxu0  ;;  %v10225_v57 = vsel %vm223_vm1, %v10213_v48, 0  ;;  %v14987_v43 = vld [vmem:[%s18632_s1 + $0x15c] sm:$0xf] }
 0x3df   : > { %v7736_v46 = vadd.f32 %v7727_v44, %v7619_v5  ;;  %v7729_v47 = vpop.f32.mrb[253].mxu1  ;;  %14978 = vmatprep.subr.msk.bf16.mxu0 %vm223_vm1, %v10212_v42 }
 0x3e0   : > { %v7737_v49 = vadd.f32 %v7729_v47, %v7620_v21  ;;  %10231 = vmatpush1.bf16.msra.mxu0 %v10219_v45  ;;  %v10319_v50 = vpop.permute.xlu1 %10318  ;;  %v10210_v51 = vpop.permute.xlu0 %10209 }
 0x3e1   : > { %v10214_v53 = vsel %vm18808_vm15, %v10208_v40, %v10210_v51  ;;  %v7731_v54 = vpop.f32.mrb[254].mxu1  ;;  %vm18810_vm15 = vcmask 392192  }
 0x3e2   : > { %v7804_v55 = vpop.f32.mrb[0].mxu0  ;;  %11613 = vrot.lane.b32.xlu1 %v16726_v18, %s15453_s29  ;;  %11611 = vrot.lane.b32.xlu0 %v16728_v19, %s15453_s29  ;;  %v7732_v30 = vpop.f32.mrb[255].mxu1 }
 0x3e3   : > { %v7852_v32 = vadd.f32 %v7804_v55, %v7734_v36  ;;  %v7806_v56 = vpop.f32.mrb[1].mxu0  ;;  %14979 = vmatmul.mubr.msk.bf16.vlgmr.msra.gmra.mrb[84].mxu0 %vm219_vm2, %v14977_v52  ;;  %14980 = vmatprep.subr.msk.bf16.mxu1 %vm223_vm1, %v10214_v53 }
 0x3e4   : > { %v7853_v58 = vadd.f32 %v7806_v56, %v7735_v39  ;;  %10272 = vmatpush1.bf16.msra.mxu1 %v10225_v57  ;;  %v10323_v4 = vpop.permute.xlu1 %10322  ;;  %v10321_v59 = vpop.permute.xlu0 %10320  ;;  %10380 = vmatprep.mubr.bf16.mxu0 %v15392_v0 }
 0x3e5   : > { %v10329_v60 = vsel %vm10328_vm0, %v10319_v50, %v10321_v59  ;;  %v10330_v61 = vsel %vm10328_vm0, %v10321_v59, %v10323_v4  ;;  %v7808_v62 = vpop.f32.mrb[2].mxu0 }
 0x3e6   : > { %v7845_v63 = vpop.f32.mrb[0].mxu1  ;;  %11725 = vrot.lane.b32.xlu1 %v16715_v6, %s15454_s28  ;;  %11615 = vrot.lane.b32.xlu0 %v17809_v1, %s15453_s29  ;;  %v10337_v2 = vsel %vm223_vm1, %v10329_v60, 0  ;;  %v7809_v8 = vpop.f32.mrb[3].mxu0  ;;  %s18809_s29 = smov 22  }
 0x3e7   : > { %v7854_v33 = vadd.f32 %v7845_v63, %v7736_v46  ;;  %v7847_v9 = vpop.f32.mrb[1].mxu1  ;;  %14981 = vmatmul.mubr.msk.bf16.vlgmr.msra.gmra.mrb[84].mxu1 %vm219_vm2, %v14977_v52  ;;  %14983 = vmatprep.subr.msk.bf16.mxu0 %vm223_vm1, %v10330_v61  ;;  %v14992_v61 = vld [vmem:[%s18632_s1 + $0x160] sm:$0xf] }
 0x3e8   : > { %v7855_v10 = vadd.f32 %v7847_v9, %v7737_v49  ;;  %10349 = vmatpush1.bf16.msra.mxu0 %v10337_v2  ;;  %v10327_v11 = vpop.permute.xlu1 %10326  ;;  %v10325_v12 = vpop.permute.xlu0 %10324  ;;  %10421 = vmatprep.mubr.bf16.mxu1 %v15392_v0 }
 0x3e9   : > { %v10331_v14 = vsel %vm10328_vm0, %v10323_v4, %v10325_v12  ;;  %v10332_v15 = vsel %vm10328_vm0, %v10325_v12, %v10327_v11  ;;  %v7849_v16 = vpop.f32.mrb[2].mxu1  ;;  %vm18811_vm0 = vmmov %vm18810_vm15 }
 0x3ea   : > { %11729 = vrot.lane.b32.xlu1 %v16728_v19, %s15454_s28  ;;  %11727 = vrot.lane.b32.xlu0 %v16713_v3, %s15454_s28  ;;  %v10343_v27 = vsel %vm223_vm1, %v10331_v14, 0  ;;  %v7850_v5 = vpop.f32.mrb[3].mxu1 }
 0x3eb   : > { %14984 = vmatmul.mubr.msk.bf16.vlgmr.msra.gmra.mrb[88].mxu0 %vm219_vm2, %v14982_v13  ;;  %14985 = vmatprep.subr.msk.bf16.mxu1 %vm223_vm1, %v10332_v15 }
 0x3ec   : > { %10390 = vmatpush1.bf16.msra.mxu1 %v10343_v27  ;;  %v10439_v20 = vpop.permute.xlu1 %10438  ;;  %v10437_v21 = vpop.permute.xlu0 %10436  ;;  %10498 = vmatprep.mubr.bf16.mxu0 %v15392_v0 }
 0x3ed   : > { %v10447_v25 = vsel %vm10446_vm14, %v10437_v21, %v10439_v20 }
 0x3ee   : > { %v7922_v22 = vpop.f32.mrb[4].mxu0  ;;  %11733 = vrot.lane.b32.xlu1 %v17809_v1, %s15454_s28  ;;  %11731 = vrot.lane.b32.xlu0 %v16726_v18, %s15454_s28  ;;  %v10455_v36 = vsel %vm223_vm1, %v10447_v25, 0 }
 0x3ef   : > { %v7970_v23 = vadd.f32 %v7922_v22, %v7852_v32  ;;  %v7924_v24 = vpop.f32.mrb[5].mxu0  ;;  %14986 = vmatmul.mubr.msk.bf16.vlgmr.msra.gmra.mrb[88].mxu1 %vm219_vm2, %v14982_v13 }
 0x3f0   : > { %v7971_v26 = vadd.f32 %v7924_v24, %v7853_v58  ;;  %v10443_v7 = vpop.permute.xlu1 %10442  ;;  %v10441_v28 = vpop.permute.xlu0 %10440  ;;  %10539 = vmatprep.mubr.bf16.mxu1 %v15392_v0 }
 0x3f1   : > { %v10448_v29 = vsel %vm10446_vm14, %v10439_v20, %v10441_v28  ;;  %v7926_v31 = vpop.f32.mrb[6].mxu0  ;;  %v10449_v39 = vsel %vm10446_vm14, %v10441_v28, %v10443_v7 }
 0x3f2   : > { %v7963_v34 = vpop.f32.mrb[4].mxu1  ;;  %11845 = vrot.lane.b32.xlu1 %v16713_v3, %s18809_s29  ;;  %11843 = vrot.lane.b32.xlu0 %v16715_v6, %s18809_s29  ;;  %v7927_v35 = vpop.f32.mrb[7].mxu0  ;;  %v10461_v49 = vsel %vm223_vm1, %v10449_v39, 0  ;;  %v14997_v31 = vld [vmem:[%s18632_s1 + $0x164] sm:$0xf] }
 0x3f3   : > { %v7972_v37 = vadd.f32 %v7963_v34, %v7854_v33  ;;  %v7965_v38 = vpop.f32.mrb[5].mxu1  ;;  %14988 = vmatprep.subr.msk.bf16.mxu0 %vm223_vm1, %v10448_v29 }
 0x3f4   : > { %v7973_v40 = vadd.f32 %v7965_v38, %v7855_v10  ;;  %10467 = vmatpush1.bf16.msra.mxu0 %v10455_v36  ;;  %v10555_v41 = vpop.permute.xlu1 %10554  ;;  %v10445_v42 = vpop.permute.xlu0 %10444 }
 0x3f5   : > { %v10450_v44 = vsel %vm10446_vm14, %v10443_v7, %v10445_v42  ;;  %v7967_v17 = vpop.f32.mrb[6].mxu1  ;;  %vm18813_vm14 = vmmov %vm18811_vm0 }
 0x3f6   : > { %v8039_v45 = vpop.f32.mrb[8].mxu0  ;;  %11849 = vrot.lane.b32.xlu1 %v16726_v18, %s18809_s29  ;;  %11847 = vrot.lane.b32.xlu0 %v16728_v19, %s18809_s29  ;;  %v7968_v46 = vpop.f32.mrb[7].mxu1 }
 0x3f7   : > { %v8087_v47 = vadd.f32 %v8039_v45, %v7970_v23  ;;  %v8041_v48 = vpop.f32.mrb[9].mxu0  ;;  %14989 = vmatmul.mubr.msk.bf16.vlgmr.msra.gmra.mrb[92].mxu0 %vm219_vm2, %v14987_v43  ;;  %14990 = vmatprep.subr.msk.bf16.mxu1 %vm223_vm1, %v10450_v44 }
 0x3f8   : > { %v8088_v50 = vadd.f32 %v8041_v48, %v7971_v26  ;;  %10508 = vmatpush1.bf16.msra.mxu1 %v10461_v49  ;;  %v10559_v51 = vpop.permute.xlu1 %10558  ;;  %v10557_v52 = vpop.permute.xlu0 %10556  ;;  %10615 = vmatprep.mubr.bf16.mxu0 %v15392_v0 }
 0x3f9   : > { %v10564_v53 = vsel %vm18810_vm15, %v10555_v41, %v10557_v52  ;;  %v10565_v54 = vsel %vm18811_vm0, %v10557_v52, %v10559_v51  ;;  %v8043_v55 = vpop.f32.mrb[10].mxu0  ;;  %vm18814_vm15 = vmmov %vm18811_vm0  ;;  %vm18815_vm0 = vcmask 384000  }
 0x3fa   : > { %v8080_v30 = vpop.f32.mrb[8].mxu1  ;;  %11960 = vrot.lane.b32.xlu1 %v16715_v6, %s18812_s23  ;;  %11851 = vrot.lane.b32.xlu0 %v17809_v1, %s18809_s29  ;;  %v10572_v32 = vsel %vm223_vm1, %v10564_v53, 0  ;;  %v8044_v56 = vpop.f32.mrb[11].mxu0  ;;  %s18817_s29 = smov 20  }
 0x3fb   : > { %v8089_v57 = vadd.f32 %v8080_v30, %v7972_v37  ;;  %v8082_v58 = vpop.f32.mrb[9].mxu1  ;;  %14991 = vmatmul.mubr.msk.bf16.vlgmr.msra.gmra.mrb[92].mxu1 %vm219_vm2, %v14987_v43  ;;  %14993 = vmatprep.subr.msk.bf16.mxu0 %vm223_vm1, %v10565_v54  ;;  %v15002_v54 = vld [vmem:[%s18632_s1 + $0x168] sm:$0xf] }
 0x3fc   : > { %v8090_v4 = vadd.f32 %v8082_v58, %v7973_v40  ;;  %10584 = vmatpush1.bf16.msra.mxu0 %v10572_v32  ;;  %v10563_v59 = vpop.permute.xlu1 %10562  ;;  %v10561_v60 = vpop.permute.xlu0 %10560  ;;  %10656 = vmatprep.mubr.bf16.mxu1 %v15392_v0 }
 0x3fd   : > { %v10566_v62 = vsel %vm18813_vm14, %v10559_v51, %v10561_v60  ;;  %v10567_v63 = vsel %vm18814_vm15, %v10561_v60, %v10563_v59  ;;  %v8084_v2 = vpop.f32.mrb[10].mxu1  ;;  %vm18816_vm14 = vmmov %vm18815_vm0 }
 0x3fe   : > { %11964 = vrot.lane.b32.xlu1 %v16728_v19, %s18812_s23  ;;  %11962 = vrot.lane.b32.xlu0 %v16713_v3, %s18812_s23  ;;  %v10578_v8 = vsel %vm223_vm1, %v10566_v62, 0  ;;  %v8085_v33 = vpop.f32.mrb[11].mxu1  ;;  %vm18818_vm15 = vmmov %vm18815_vm0 }
 0x3ff   : > { %14994 = vmatmul.mubr.msk.bf16.vlgmr.msra.gmra.mrb[96].mxu0 %vm219_vm2, %v14992_v61  ;;  %14995 = vmatprep.subr.msk.bf16.mxu1 %vm223_vm1, %v10567_v63 }
 0x400   : > { %10625 = vmatpush1.bf16.msra.mxu1 %v10578_v8  ;;  %v10674_v9 = vpop.permute.xlu1 %10673  ;;  %v10672_v10 = vpop.permute.xlu0 %10671  ;;  %10732 = vmatprep.mubr.bf16.mxu0 %v15392_v0 }
 0x401   : > { %v10681_v14 = vsel %vm18815_vm0, %v10672_v10, %v10674_v9 }
 0x402   : > { %v8156_v11 = vpop.f32.mrb[12].mxu0  ;;  %11968 = vrot.lane.b32.xlu1 %v17809_v1, %s18812_s23  ;;  %11966 = vrot.lane.b32.xlu0 %v16726_v18, %s18812_s23  ;;  %v10689_v23 = vsel %vm223_vm1, %v10681_v14, 0 }
 0x403   : > { %v8204_v12 = vadd.f32 %v8156_v11, %v8087_v47  ;;  %v8158_v13 = vpop.f32.mrb[13].mxu0  ;;  %14996 = vmatmul.mubr.msk.bf16.vlgmr.msra.gmra.mrb[96].mxu1 %vm219_vm2, %v14992_v61 }
 0x404   : > { %v8205_v15 = vadd.f32 %v8158_v13, %v8088_v50  ;;  %v10678_v16 = vpop.permute.xlu1 %10677  ;;  %v10676_v27 = vpop.permute.xlu0 %10675  ;;  %10773 = vmatprep.mubr.bf16.mxu1 %v15392_v0 }
 0x405   : > { %v10682_v5 = vsel %vm18816_vm14, %v10674_v9, %v10676_v27  ;;  %v8160_v20 = vpop.f32.mrb[14].mxu0  ;;  %v10683_v26 = vsel %vm18818_vm15, %v10676_v27, %v10678_v16  ;;  %vm18819_vm14 = vcmask 375808  }
 0x406   : > { %v8197_v21 = vpop.f32.mrb[12].mxu1  ;;  %12079 = vrot.lane.b32.xlu1 %v16713_v3, %s18817_s29  ;;  %12077 = vrot.lane.b32.xlu0 %v16715_v6, %s18817_s29  ;;  %v8161_v22 = vpop.f32.mrb[15].mxu0  ;;  %v10695_v40 = vsel %vm223_vm1, %v10683_v26, 0  ;;  %vm18820_vm15 = vmmov %vm18819_vm14  ;;  %v15007_v20 = vld [vmem:[%s18632_s1 + $0x16c] sm:$0xf] }
 0x407   : > { %v8206_v24 = vadd.f32 %v8197_v21, %v8089_v57  ;;  %v8199_v25 = vpop.f32.mrb[13].mxu1  ;;  %14998 = vmatprep.subr.msk.bf16.mxu0 %vm223_vm1, %v10682_v5 }
 0x408   : > { %v8207_v7 = vadd.f32 %v8199_v25, %v8090_v4  ;;  %10701 = vmatpush1.bf16.msra.mxu0 %v10689_v23  ;;  %v10789_v28 = vpop.permute.xlu1 %10788  ;;  %v10680_v29 = vpop.permute.xlu0 %10679 }
 0x409   : > { %v10684_v34 = vsel %vm18815_vm0, %v10678_v16, %v10680_v29  ;;  %v8201_v35 = vpop.f32.mrb[14].mxu1  ;;  %vm18822_vm0 = vmmov %vm18819_vm14 }
 0x40a   : > { %v8273_v36 = vpop.f32.mrb[16].mxu0  ;;  %12083 = vrot.lane.b32.xlu1 %v16726_v18, %s18817_s29  ;;  %12081 = vrot.lane.b32.xlu0 %v16728_v19, %s18817_s29  ;;  %v8202_v37 = vpop.f32.mrb[15].mxu1 }
 0x40b   : > { %v8321_v38 = vadd.f32 %v8273_v36, %v8204_v12  ;;  %v8275_v39 = vpop.f32.mrb[17].mxu0  ;;  %14999 = vmatmul.mubr.msk.bf16.vlgmr.msra.gmra.mrb[100].mxu0 %vm219_vm2, %v14997_v31  ;;  %15000 = vmatprep.subr.msk.bf16.mxu1 %vm223_vm1, %v10684_v34 }
 0x40c   : > { %v8322_v41 = vadd.f32 %v8275_v39, %v8205_v15  ;;  %10742 = vmatpush1.bf16.msra.mxu1 %v10695_v40  ;;  %v10793_v42 = vpop.permute.xlu1 %10792  ;;  %v10791_v43 = vpop.permute.xlu0 %10790  ;;  %10849 = vmatprep.mubr.bf16.mxu0 %v15392_v0 }
 0x40d   : > { %v10798_v44 = vsel %vm18819_vm14, %v10789_v28, %v10791_v43  ;;  %v10799_v17 = vsel %vm18820_vm15, %v10791_v43, %v10793_v42  ;;  %v8277_v45 = vpop.f32.mrb[18].mxu0  ;;  %vm18823_vm14 = vmmov %vm18822_vm0  ;;  %vm18824_vm15 = vcmask 367616  }
 0x40e   : > { %v8314_v46 = vpop.f32.mrb[16].mxu1  ;;  %12194 = vrot.lane.b32.xlu1 %v16715_v6, %s18821_s5  ;;  %12085 = vrot.lane.b32.xlu0 %v17809_v1, %s18817_s29  ;;  %v10806_v47 = vsel %vm223_vm1, %v10798_v44, 0  ;;  %v8278_v48 = vpop.f32.mrb[19].mxu0  ;;  %s18826_s29 = smov 18  }
 0x40f   : > { %v8323_v49 = vadd.f32 %v8314_v46, %v8206_v24  ;;  %v8316_v50 = vpop.f32.mrb[17].mxu1  ;;  %15001 = vmatmul.mubr.msk.bf16.vlgmr.msra.gmra.mrb[100].mxu1 %vm219_vm2, %v14997_v31  ;;  %15003 = vmatprep.subr.msk.bf16.mxu0 %vm223_vm1, %v10799_v17  ;;  %v15012_v17 = vld [vmem:[%s18632_s1 + $0x170] sm:$0xf] }
 0x410   : > { %v8324_v51 = vadd.f32 %v8316_v50, %v8207_v7  ;;  %10818 = vmatpush1.bf16.msra.mxu0 %v10806_v47  ;;  %v10797_v52 = vpop.permute.xlu1 %10796  ;;  %v10795_v53 = vpop.permute.xlu0 %10794  ;;  %10890 = vmatprep.mubr.bf16.mxu1 %v15392_v0 }
 0x411   : > { %v10800_v55 = vsel %vm18822_vm0, %v10793_v42, %v10795_v53  ;;  %v10801_v30 = vsel %vm18823_vm14, %v10795_v53, %v10797_v52  ;;  %v8318_v32 = vpop.f32.mrb[18].mxu1  ;;  %vm18825_vm0 = vmmov %vm18824_vm15 }
 0x412   : > { %12198 = vrot.lane.b32.xlu1 %v16728_v19, %s18821_s5  ;;  %12196 = vrot.lane.b32.xlu0 %v16713_v3, %s18821_s5  ;;  %v10812_v56 = vsel %vm223_vm1, %v10800_v55, 0  ;;  %v8319_v57 = vpop.f32.mrb[19].mxu1  ;;  %vm18827_vm14 = vmmov %vm18825_vm0 }
 0x413   : > { %15004 = vmatmul.mubr.msk.bf16.vlgmr.msra.gmra.mrb[104].mxu0 %vm219_vm2, %v15002_v54  ;;  %15005 = vmatprep.subr.msk.bf16.mxu1 %vm223_vm1, %v10801_v30 }
 0x414   : > { %10859 = vmatpush1.bf16.msra.mxu1 %v10812_v56  ;;  %v10908_v58 = vpop.permute.xlu1 %10907  ;;  %v10906_v4 = vpop.permute.xlu0 %10905  ;;  %10966 = vmatprep.mubr.bf16.mxu0 %v15392_v0 }
 0x415   : > { %v10915_v62 = vsel %vm18824_vm15, %v10906_v4, %v10908_v58  ;;  %vm18828_vm15 = vmmov %vm18825_vm0 }
 0x416   : > { %v8390_v59 = vpop.f32.mrb[20].mxu0  ;;  %12202 = vrot.lane.b32.xlu1 %v17809_v1, %s18821_s5  ;;  %12200 = vrot.lane.b32.xlu0 %v16726_v18, %s18821_s5  ;;  %v10923_v12 = vsel %vm223_vm1, %v10915_v62, 0  ;;  %s15455_s5 = smov 13  }
 0x417   : > { %v8438_v60 = vadd.f32 %v8390_v59, %v8321_v38  ;;  %v8392_v61 = vpop.f32.mrb[21].mxu0  ;;  %15006 = vmatmul.mubr.msk.bf16.vlgmr.msra.gmra.mrb[104].mxu1 %vm219_vm2, %v15002_v54 }
 0x418   : > { %v8439_v63 = vadd.f32 %v8392_v61, %v8322_v41  ;;  %v10912_v2 = vpop.permute.xlu1 %10911  ;;  %v10910_v8 = vpop.permute.xlu0 %10909  ;;  %11007 = vmatprep.mubr.bf16.mxu1 %v15392_v0 }
 0x419   : > { %v10916_v33 = vsel %vm18825_vm0, %v10908_v58, %v10910_v8  ;;  %v8394_v9 = vpop.f32.mrb[22].mxu0  ;;  %v10917_v15 = vsel %vm18827_vm14, %v10910_v8, %v10912_v2  ;;  %vm18829_vm0 = vcmask 359424  }
 0x41a   : > { %v8431_v10 = vpop.f32.mrb[20].mxu1  ;;  %12313 = vrot.lane.b32.xlu1 %v16713_v3, %s18826_s29  ;;  %12311 = vrot.lane.b32.xlu0 %v16715_v6, %s18826_s29  ;;  %v8395_v11 = vpop.f32.mrb[23].mxu0  ;;  %v10929_v7 = vsel %vm223_vm1, %v10917_v15, 0  ;;  %vm18830_vm14 = vmmov %vm18829_vm0  ;;  %v15017_v9 = vld [vmem:[%s18632_s1 + $0x174] sm:$0xf] }
 0x41b   : > { %v8440_v13 = vadd.f32 %v8431_v10, %v8323_v49  ;;  %v8433_v14 = vpop.f32.mrb[21].mxu1  ;;  %15008 = vmatprep.subr.msk.bf16.mxu0 %vm223_vm1, %v10916_v33 }
 0x41c   : > { %v8441_v16 = vadd.f32 %v8433_v14, %v8324_v51  ;;  %10935 = vmatpush1.bf16.msra.mxu0 %v10923_v12  ;;  %v11023_v27 = vpop.permute.xlu1 %11022  ;;  %v10914_v5 = vpop.permute.xlu0 %10913 }
 0x41d   : > { %v10918_v21 = vsel %vm18828_vm15, %v10912_v2, %v10914_v5  ;;  %v8435_v22 = vpop.f32.mrb[22].mxu1  ;;  %vm18832_vm15 = vmmov %vm18829_vm0 }
 0x41e   : > { %v8507_v23 = vpop.f32.mrb[24].mxu0  ;;  %12317 = vrot.lane.b32.xlu1 %v16726_v18, %s18826_s29  ;;  %12315 = vrot.lane.b32.xlu0 %v16728_v19, %s18826_s29  ;;  %v8436_v24 = vpop.f32.mrb[23].mxu1 }
 0x41f   : > { %v8555_v25 = vadd.f32 %v8507_v23, %v8438_v60  ;;  %v8509_v26 = vpop.f32.mrb[25].mxu0  ;;  %15009 = vmatmul.mubr.msk.bf16.vlgmr.msra.gmra.mrb[108].mxu0 %vm219_vm2, %v15007_v20  ;;  %15010 = vmatprep.subr.msk.bf16.mxu1 %vm223_vm1, %v10918_v21 }
 0x420   : > { %v8556_v28 = vadd.f32 %v8509_v26, %v8439_v63  ;;  %10976 = vmatpush1.bf16.msra.mxu1 %v10929_v7  ;;  %v11027_v29 = vpop.permute.xlu1 %11026  ;;  %v11025_v31 = vpop.permute.xlu0 %11024  ;;  %11083 = vmatprep.mubr.bf16.mxu0 %v15392_v0 }
 0x421   : > { %v11032_v34 = vsel %vm18829_vm0, %v11023_v27, %v11025_v31  ;;  %v11033_v35 = vsel %vm18830_vm14, %v11025_v31, %v11027_v29  ;;  %v8511_v36 = vpop.f32.mrb[26].mxu0  ;;  %vm18833_vm14 = vcmask 351232  }
 0x422   : > { %v8548_v37 = vpop.f32.mrb[24].mxu1  ;;  %12428 = vrot.lane.b32.xlu1 %v16715_v6, %s18831_s26  ;;  %12319 = vrot.lane.b32.xlu0 %v17809_v1, %s18826_s29  ;;  %v11040_v38 = vsel %vm223_vm1, %v11032_v34, 0  ;;  %v8512_v39 = vpop.f32.mrb[27].mxu0  ;;  %s18835_s29 = smov 16  }
 0x423   : > { %v8557_v40 = vadd.f32 %v8548_v37, %v8440_v13  ;;  %v8550_v41 = vpop.f32.mrb[25].mxu1  ;;  %15011 = vmatmul.mubr.msk.bf16.vlgmr.msra.gmra.mrb[108].mxu1 %vm219_vm2, %v15007_v20  ;;  %15013 = vmatprep.subr.msk.bf16.mxu0 %vm223_vm1, %v11033_v35  ;;  %v15022_v35 = vld [vmem:[%s18632_s1 + $0x178] sm:$0xf] }
 0x424   : > { %v8558_v42 = vadd.f32 %v8550_v41, %v8441_v16  ;;  %11052 = vmatpush1.bf16.msra.mxu0 %v11040_v38  ;;  %v11031_v43 = vpop.permute.xlu1 %11030  ;;  %v11029_v44 = vpop.permute.xlu0 %11028  ;;  %11124 = vmatprep.mubr.bf16.mxu1 %v15392_v0 }
 0x425   : > { %v11034_v45 = vsel %vm18832_vm15, %v11027_v29, %v11029_v44  ;;  %v11035_v46 = vsel %vm18829_vm0, %v11029_v44, %v11031_v43  ;;  %v8552_v47 = vpop.f32.mrb[26].mxu1  ;;  %vm18834_vm15 = vmmov %vm18833_vm14 }
 0x426   : > { %12432 = vrot.lane.b32.xlu1 %v16728_v19, %s18831_s26  ;;  %12430 = vrot.lane.b32.xlu0 %v16713_v3, %s18831_s26  ;;  %v11046_v48 = vsel %vm223_vm1, %v11034_v45, 0  ;;  %v8553_v49 = vpop.f32.mrb[27].mxu1  ;;  %vm18836_vm0 = vmmov %vm18833_vm14 }
 0x427   : > { %15014 = vmatmul.mubr.msk.bf16.vlgmr.msra.gmra.mrb[112].mxu0 %vm219_vm2, %v15012_v17  ;;  %15015 = vmatprep.subr.msk.bf16.mxu1 %vm223_vm1, %v11035_v46 }
 0x428   : > { %11093 = vmatpush1.bf16.msra.mxu1 %v11046_v48  ;;  %v11142_v50 = vpop.permute.xlu1 %11141  ;;  %v11140_v51 = vpop.permute.xlu0 %11139  ;;  %11200 = vmatprep.mubr.bf16.mxu0 %v15392_v0 }
 0x429   : > { %v11149_v55 = vsel %vm18833_vm14, %v11140_v51, %v11142_v50  ;;  %vm18837_vm14 = vmmov %vm18836_vm0 }
 0x42a   : > { %v8624_v52 = vpop.f32.mrb[28].mxu0  ;;  %12436 = vrot.lane.b32.xlu1 %v17809_v1, %s18831_s26  ;;  %12434 = vrot.lane.b32.xlu0 %v16726_v18, %s18831_s26  ;;  %v11157_v60 = vsel %vm223_vm1, %v11149_v55, 0  ;;  %s15458_s26 = smov 114  }
 0x42b   : > { %v8672_v53 = vadd.f32 %v8624_v52, %v8555_v25  ;;  %v8626_v54 = vpop.f32.mrb[29].mxu0  ;;  %15016 = vmatmul.mubr.msk.bf16.vlgmr.msra.gmra.mrb[112].mxu1 %vm219_vm2, %v15012_v17 }
 0x42c   : > { %v8673_v30 = vadd.f32 %v8626_v54, %v8556_v28  ;;  %v11146_v32 = vpop.permute.xlu1 %11145  ;;  %v11144_v56 = vpop.permute.xlu0 %11143  ;;  %11241 = vmatprep.mubr.bf16.mxu1 %v15392_v0 }
 0x42d   : > { %v11150_v57 = vsel %vm18834_vm15, %v11142_v50, %v11144_v56  ;;  %v8628_v58 = vpop.f32.mrb[30].mxu0  ;;  %v11151_v63 = vsel %vm18836_vm0, %v11144_v56, %v11146_v32  ;;  %vm18838_vm15 = vcmask 343040  }
 0x42e   : > { %v8665_v4 = vpop.f32.mrb[28].mxu1  ;;  %12547 = vrot.lane.b32.xlu1 %v16713_v3, %s18835_s29  ;;  %12545 = vrot.lane.b32.xlu0 %v16715_v6, %s18835_s29  ;;  %v8629_v59 = vpop.f32.mrb[31].mxu0  ;;  %v11163_v16 = vsel %vm223_vm1, %v11151_v63, 0  ;;  %vm18839_vm0 = vmmov %vm18838_vm15  ;;  %v15027_v58 = vld [vmem:[%s18632_s1 + $0x17c] sm:$0xf] }
 0x42f   : > { %v8674_v61 = vadd.f32 %v8665_v4, %v8557_v40  ;;  %v8667_v62 = vpop.f32.mrb[29].mxu1  ;;  %15018 = vmatprep.subr.msk.bf16.mxu0 %vm223_vm1, %v11150_v57 }
 0x430   : > { %v8675_v2 = vadd.f32 %v8667_v62, %v8558_v42  ;;  %11169 = vmatpush1.bf16.msra.mxu0 %v11157_v60  ;;  %v11257_v8 = vpop.permute.xlu1 %11256  ;;  %v11148_v33 = vpop.permute.xlu0 %11147 }
 0x431   : > { %v11152_v10 = vsel %vm18837_vm14, %v11146_v32, %v11148_v33  ;;  %v8669_v11 = vpop.f32.mrb[30].mxu1  ;;  %vm18840_vm14 = vmmov %vm18839_vm0 }
 0x432   : > { %v8741_v12 = vpop.f32.mrb[32].mxu0  ;;  %12551 = vrot.lane.b32.xlu1 %v16726_v18, %s18835_s29  ;;  %12549 = vrot.lane.b32.xlu0 %v16728_v19, %s18835_s29  ;;  %v8670_v13 = vpop.f32.mrb[31].mxu1 }
 0x433   : > { %v8789_v14 = vadd.f32 %v8741_v12, %v8672_v53  ;;  %v8743_v15 = vpop.f32.mrb[33].mxu0  ;;  %15019 = vmatmul.mubr.msk.bf16.vlgmr.msra.gmra.mrb[116].mxu0 %vm219_vm2, %v15017_v9  ;;  %15020 = vmatprep.subr.msk.bf16.mxu1 %vm223_vm1, %v11152_v10 }
 0x434   : > { %v8790_v27 = vadd.f32 %v8743_v15, %v8673_v30  ;;  %11210 = vmatpush1.bf16.msra.mxu1 %v11163_v16  ;;  %v11261_v5 = vpop.permute.xlu1 %11260  ;;  %v11259_v20 = vpop.permute.xlu0 %11258  ;;  %11317 = vmatprep.mubr.bf16.mxu0 %v15392_v0 }
 0x435   : > { %v11266_v21 = vsel %vm18838_vm15, %v11257_v8, %v11259_v20  ;;  %v11267_v22 = vsel %vm18839_vm0, %v11259_v20, %v11261_v5  ;;  %v8745_v23 = vpop.f32.mrb[34].mxu0  ;;  %vm18841_vm15 = vmmov %vm18839_vm0  ;;  %vm18842_vm0 = vcmask 334848  }
 0x436   : > { %v8782_v24 = vpop.f32.mrb[32].mxu1  ;;  %12662 = vrot.lane.b32.xlu1 %v16715_v6, %s15445_s4  ;;  %12553 = vrot.lane.b32.xlu0 %v17809_v1, %s18835_s29  ;;  %v11274_v25 = vsel %vm223_vm1, %v11266_v21, 0  ;;  %v8746_v26 = vpop.f32.mrb[35].mxu0 }
 0x437   : > { %v8791_v7 = vadd.f32 %v8782_v24, %v8674_v61  ;;  %v8784_v28 = vpop.f32.mrb[33].mxu1  ;;  %15021 = vmatmul.mubr.msk.bf16.vlgmr.msra.gmra.mrb[116].mxu1 %vm219_vm2, %v15017_v9  ;;  %15023 = vmatprep.subr.msk.bf16.mxu0 %vm223_vm1, %v11267_v22  ;;  %v15032_v22 = vld [vmem:[%s18632_s1 + $0x180] sm:$0xf] }
 0x438   : > { %v8792_v29 = vadd.f32 %v8784_v28, %v8675_v2  ;;  %11286 = vmatpush1.bf16.msra.mxu0 %v11274_v25  ;;  %v11265_v31 = vpop.permute.xlu1 %11264  ;;  %v11263_v34 = vpop.permute.xlu0 %11262  ;;  %11358 = vmatprep.mubr.bf16.mxu1 %v15392_v0 }
 0x439   : > { %v11268_v36 = vsel %vm18840_vm14, %v11261_v5, %v11263_v34  ;;  %v11269_v37 = vsel %vm18841_vm15, %v11263_v34, %v11265_v31  ;;  %v8786_v38 = vpop.f32.mrb[34].mxu1  ;;  %vm18843_vm14 = vmmov %vm18842_vm0 }
 0x43a   : > { %12666 = vrot.lane.b32.xlu1 %v16728_v19, %s15445_s4  ;;  %12664 = vrot.lane.b32.xlu0 %v16713_v3, %s15445_s4  ;;  %v11280_v39 = vsel %vm223_vm1, %v11268_v36, 0  ;;  %v8787_v40 = vpop.f32.mrb[35].mxu1  ;;  %vm18844_vm15 = vmmov %vm18842_vm0 }
 0x43b   : > { %15024 = vmatmul.mubr.msk.bf16.vlgmr.msra.gmra.mrb[120].mxu0 %vm219_vm2, %v15022_v35  ;;  %15025 = vmatprep.subr.msk.bf16.mxu1 %vm223_vm1, %v11269_v37 }
 0x43c   : > { %11327 = vmatpush1.bf16.msra.mxu1 %v11280_v39  ;;  %v11376_v41 = vpop.permute.xlu1 %11375  ;;  %v11374_v42 = vpop.permute.xlu0 %11373  ;;  %11434 = vmatprep.mubr.bf16.mxu0 %v15392_v0 }
 0x43d   : > { %v11383_v45 = vsel %vm18842_vm0, %v11374_v42, %v11376_v41 }
 0x43e   : > { %v8858_v43 = vpop.f32.mrb[36].mxu0  ;;  %12670 = vrot.lane.b32.xlu1 %v17809_v1, %s15445_s4  ;;  %12668 = vrot.lane.b32.xlu0 %v16726_v18, %s15445_s4  ;;  %v11391_v53 = vsel %vm223_vm1, %v11383_v45, 0 }
 0x43f   : > { %v8906_v44 = vadd.f32 %v8858_v43, %v8789_v14  ;;  %v8860_v17 = vpop.f32.mrb[37].mxu0  ;;  %15026 = vmatmul.mubr.msk.bf16.vlgmr.msra.gmra.mrb[120].mxu1 %vm219_vm2, %v15022_v35 }
 0x440   : > { %v8907_v46 = vadd.f32 %v8860_v17, %v8790_v27  ;;  %v11380_v47 = vpop.permute.xlu1 %11379  ;;  %v11378_v48 = vpop.permute.xlu0 %11377  ;;  %11475 = vmatprep.mubr.bf16.mxu1 %v15392_v0 }
 0x441   : > { %v11384_v49 = vsel %vm18843_vm14, %v11376_v41, %v11378_v48  ;;  %v8862_v50 = vpop.f32.mrb[38].mxu0  ;;  %v11385_v30 = vsel %vm18844_vm15, %v11378_v48, %v11380_v47  ;;  %vm18845_vm14 = vcmask 326656  }
 0x442   : > { %v8899_v51 = vpop.f32.mrb[36].mxu1  ;;  %12781 = vrot.lane.b32.xlu1 %v16713_v3, %s15446_s21  ;;  %12779 = vrot.lane.b32.xlu0 %v16715_v6, %s15446_s21  ;;  %v8863_v52 = vpop.f32.mrb[39].mxu0  ;;  %v11397_v2 = vsel %vm223_vm1, %v11385_v30, 0  ;;  %vm18846_vm15 = vmmov %vm18845_vm14 }
 0x443   : > { %v8908_v54 = vadd.f32 %v8899_v51, %v8791_v7  ;;  %v8901_v55 = vpop.f32.mrb[37].mxu1  ;;  %15028 = vmatprep.subr.msk.bf16.mxu0 %vm223_vm1, %v11384_v49 }
 0x444   : > { %v8909_v32 = vadd.f32 %v8901_v55, %v8792_v29  ;;  %11403 = vmatpush1.bf16.msra.mxu0 %v11391_v53  ;;  %v11491_v56 = vpop.permute.xlu1 %11490  ;;  %v11382_v57 = vpop.permute.xlu0 %11381 }
 0x445   : > { %v11386_v4 = vsel %vm18842_vm0, %v11380_v47, %v11382_v57  ;;  %v8903_v59 = vpop.f32.mrb[38].mxu1  ;;  %vm18847_vm0 = vmmov %vm18845_vm14 }
 0x446   : > { %v8975_v60 = vpop.f32.mrb[40].mxu0  ;;  %12785 = vrot.lane.b32.xlu1 %v16726_v18, %s15446_s21  ;;  %12783 = vrot.lane.b32.xlu0 %v16728_v19, %s15446_s21  ;;  %v8904_v61 = vpop.f32.mrb[39].mxu1 }
 0x447   : > { %v9023_v62 = vadd.f32 %v8975_v60, %v8906_v44  ;;  %v8977_v63 = vpop.f32.mrb[41].mxu0  ;;  %15029 = vmatmul.mubr.msk.bf16.vlgmr.msra.gmra.mrb[124].mxu0 %vm219_vm2, %v15027_v58  ;;  %15030 = vmatprep.subr.msk.bf16.mxu1 %vm223_vm1, %v11386_v4 }
 0x448   : > { %v9024_v8 = vadd.f32 %v8977_v63, %v8907_v46  ;;  %11444 = vmatpush1.bf16.msra.mxu1 %v11397_v2  ;;  %v11495_v33 = vpop.permute.xlu1 %11494  ;;  %v11493_v9 = vpop.permute.xlu0 %11492  ;;  %11551 = vmatprep.mubr.bf16.mxu0 %v15392_v0  ;;  %v13130_v46 = vld [vmem:[%s15542_s30 + $0x8] sm:$0xff] }
 0x449   : > { %v11500_v10 = vsel %vm18845_vm14, %v11491_v56, %v11493_v9  ;;  %v11501_v11 = vsel %vm18846_vm15, %v11493_v9, %v11495_v33  ;;  %v8979_v12 = vpop.f32.mrb[42].mxu0  ;;  %vm18848_vm14 = vmmov %vm18847_vm0  ;;  %vm11617_vm15 = vcmask 318464   ;;  %v13131_v56 = vld [vmem:[%s15542_s30 + $0x10] sm:$0xff]  ;;  %v18120_v63 = vcombine.high %v13130_v46, %v13130_v46 }
 0x44a   : > { %v9016_v13 = vpop.f32.mrb[40].mxu1  ;;  %12896 = vrot.lane.b32.xlu1 %v16715_v6, %s15455_s5  ;;  %12787 = vrot.lane.b32.xlu0 %v17809_v1, %s15446_s21  ;;  %v11508_v14 = vsel %vm223_vm1, %v11500_v10, 0  ;;  %v8980_v15 = vpop.f32.mrb[43].mxu0  ;;  %s15456_s21 = smov 12  }
 0x44b   : > { %v9025_v16 = vadd.f32 %v9016_v13, %v8908_v54  ;;  %v9018_v27 = vpop.f32.mrb[41].mxu1  ;;  %15031 = vmatmul.mubr.msk.bf16.vlgmr.msra.gmra.mrb[124].mxu1 %vm219_vm2, %v15027_v58  ;;  %15033 = vmatprep.subr.msk.bf16.mxu0 %vm223_vm1, %v11501_v11  ;;  %v18104_v54 = vcombine.low %v13130_v46, %v13130_v46 }
 0x44c   : > { %v9026_v5 = vadd.f32 %v9018_v27, %v8909_v32  ;;  %11520 = vmatpush1.bf16.msra.mxu0 %v11508_v14  ;;  %v11499_v20 = vpop.permute.xlu1 %11498  ;;  %v11497_v21 = vpop.permute.xlu0 %11496  ;;  %11592 = vmatprep.mubr.bf16.mxu1 %v15392_v0  ;;  %v18138_v27 = vcombine.high %v13131_v56, %v13131_v56 }
 0x44d   : > { %v11502_v23 = vsel %vm18847_vm0, %v11495_v33, %v11497_v21  ;;  %v11503_v24 = vsel %vm18848_vm14, %v11497_v21, %v11499_v20  ;;  %v9020_v25 = vpop.f32.mrb[42].mxu1  ;;  %vm11735_vm0 = vcmask 310272   ;;  %vm18849_vm14 = vcmask 179200  }
 0x44e   : > { %12900 = vrot.lane.b32.xlu1 %v16728_v19, %s15455_s5  ;;  %12898 = vrot.lane.b32.xlu0 %v16713_v3, %s15455_s5  ;;  %v11514_v26 = vsel %vm223_vm1, %v11502_v23, 0  ;;  %v9021_v7 = vpop.f32.mrb[43].mxu1 }
 0x44f   : > { %15034 = vmatmul.mubr.msk.bf16.vlgmr.msra.gmra.mrb[128].mxu0 %vm219_vm2, %v15032_v22  ;;  %15035 = vmatprep.subr.msk.bf16.mxu1 %vm223_vm1, %v11503_v24 }
 0x450   : > { %11561 = vmatpush1.bf16.msra.mxu1 %v11514_v26  ;;  %v11610_v28 = vpop.permute.xlu1 %11609  ;;  %v11608_v29 = vpop.permute.xlu0 %11607  ;;  %11669 = vmatprep.mubr.bf16.mxu0 %v15392_v0 }
 0x451   : > { %v11618_v36 = vsel %vm11617_vm15, %v11608_v29, %v11610_v28 }
 0x452   : > { %v9093_v31 = vpop.f32.mrb[44].mxu0  ;;  %12904 = vrot.lane.b32.xlu1 %v17809_v1, %s15455_s5  ;;  %12902 = vrot.lane.b32.xlu0 %v16726_v18, %s15455_s5  ;;  %v11626_v44 = vsel %vm223_vm1, %v11618_v36, 0  ;;  %s175_s5 = sand.u32 1, %s15374_s13  }
 0x453   : > { %v9141_v34 = vadd.f32 %v9093_v31, %v9023_v62  ;;  %v9095_v35 = vpop.f32.mrb[45].mxu0  ;;  %15036 = vmatmul.mubr.msk.bf16.vlgmr.msra.gmra.mrb[128].mxu1 %vm219_vm2, %v15032_v22  ;;  %v18118_v62 = vcombine.low %v13131_v56, %v13131_v56 }
 0x454   : > { %v9142_v37 = vadd.f32 %v9095_v35, %v9024_v8  ;;  %v11614_v38 = vpop.permute.xlu1 %11613  ;;  %v11612_v39 = vpop.permute.xlu0 %11611  ;;  %11710 = vmatprep.mubr.bf16.mxu1 %v15392_v0 }
 0x455   : > { %v11619_v40 = vsel %vm11617_vm15, %v11610_v28, %v11612_v39  ;;  %v9097_v41 = vpop.f32.mrb[46].mxu0  ;;  %v11620_v47 = vsel %vm11617_vm15, %v11612_v39, %v11614_v38 }
 0x456   : > { %v9134_v42 = vpop.f32.mrb[44].mxu1  ;;  %13016 = vrot.lane.b32.xlu1 %v16713_v3, %s15456_s21  ;;  %13014 = vrot.lane.b32.xlu0 %v16715_v6, %s15456_s21  ;;  %v9098_v43 = vpop.f32.mrb[47].mxu0  ;;  %v15037_v3 = vld [vmem:[%s18632_s1 + $0x184] sm:$0xf]  ;;  %v11632_v32 = vsel %vm223_vm1, %v11620_v47, 0 }
 0x457   : > { %v9143_v17 = vadd.f32 %v9134_v42, %v9025_v16  ;;  %v9136_v45 = vpop.f32.mrb[45].mxu1  ;;  %15038 = vmatprep.subr.msk.bf16.mxu0 %vm223_vm1, %v11619_v40  ;;  %v18136_v16 = vld [vmem:[%s15542_s30 + $0x18] ss:$0 sps:$4 sm:$0xff]   ;;  %v15047_v43 = vld [vmem:[%s18632_s1 + $0x18c] sm:$0xf]  ;;  %s14541_s30 = sshll.u32 %s175_s5, 5 }
 0x458   : > { %v9144_v48 = vadd.f32 %v9136_v45, %v9026_v5  ;;  %11638 = vmatpush1.bf16.msra.mxu0 %v11626_v44  ;;  %v11726_v49 = vpop.permute.xlu1 %11725  ;;  %v11616_v50 = vpop.permute.xlu0 %11615 }
 0x459   : > { %v11621_v6 = vsel %vm11617_vm15, %v11614_v38, %v11616_v50  ;;  %v9138_v51 = vpop.f32.mrb[46].mxu1  ;;  %vm18850_vm15 = vmmov %vm18849_vm14 }
 0x45a   : > { %v9211_v52 = vpop.f32.mrb[48].mxu0  ;;  %13020 = vrot.lane.b32.xlu1 %v16726_v18, %s15456_s21  ;;  %13018 = vrot.lane.b32.xlu0 %v16728_v19, %s15456_s21  ;;  %v9139_v53 = vpop.f32.mrb[47].mxu1 }
 0x45b   : > { %v9259_v55 = vadd.f32 %v9211_v52, %v9141_v34  ;;  %v9213_v30 = vpop.f32.mrb[49].mxu0  ;;  %15039 = vmatmul.mubr.msk.bf16.vlgmr.msra.gmra.mrb[132].mxu0 %vm219_vm2, %v15037_v3  ;;  %15040 = vmatprep.subr.msk.bf16.mxu1 %vm223_vm1, %v11621_v6 }
 0x45c   : > { %v9260_v57 = vadd.f32 %v9213_v30, %v9142_v37  ;;  %11679 = vmatpush1.bf16.msra.mxu1 %v11632_v32  ;;  %v11730_v58 = vpop.permute.xlu1 %11729  ;;  %v11728_v18 = vpop.permute.xlu0 %11727  ;;  %11787 = vmatprep.mubr.bf16.mxu0 %v15392_v0 }
 0x45d   : > { %v11736_v19 = vsel %vm11735_vm0, %v11726_v49, %v11728_v18  ;;  %v11737_v4 = vsel %vm11735_vm0, %v11728_v18, %v11730_v58  ;;  %v9215_v59 = vpop.f32.mrb[50].mxu0 }
 0x45e   : > { %v9252_v60 = vpop.f32.mrb[48].mxu1  ;;  %13148 = vrot.lane.b32.xlu1 %v18104_v54, %s15396_s7  ;;  %13022 = vrot.lane.b32.xlu0 %v17809_v1, %s15456_s21  ;;  %v11744_v61 = vsel %vm223_vm1, %v11736_v19, 0  ;;  %v9216_v2 = vpop.f32.mrb[51].mxu0  ;;  %v15042_v1 = vld [vmem:[%s18632_s1 + $0x188] sm:$0xf]  ;;  %s15459_s21 = smov [#allocation2]  }
 0x45f   : > { %v9261_v8 = vadd.f32 %v9252_v60, %v9143_v17  ;;  %v9254_v33 = vpop.f32.mrb[49].mxu1  ;;  %15041 = vmatmul.mubr.msk.bf16.vlgmr.msra.gmra.mrb[132].mxu1 %vm219_vm2, %v15037_v3  ;;  %15043 = vmatprep.subr.msk.bf16.mxu0 %vm223_vm1, %v11737_v4  ;;  %v15052_v4 = vld [vmem:[%s18632_s1 + $0x190] sm:$0xf]  ;;  %s15316_s23 = sshll.u32 %s15459_s21, 4  ;;  %s15317_s23 = int_to_ptr.vmem [resolvable:$false] %s15316_s23 }
 0x460   : > { %v9262_v9 = vadd.f32 %v9254_v33, %v9144_v48  ;;  %11756 = vmatpush1.bf16.msra.mxu0 %v11744_v61  ;;  %v11734_v10 = vpop.permute.xlu1 %11733  ;;  %v11732_v11 = vpop.permute.xlu0 %11731  ;;  %11828 = vmatprep.mubr.bf16.mxu1 %v15392_v0 }
 0x461   : > { %v11738_v12 = vsel %vm11735_vm0, %v11730_v58, %v11732_v11  ;;  %v11739_v13 = vsel %vm11735_vm0, %v11732_v11, %v11734_v10  ;;  %v9256_v14 = vpop.f32.mrb[50].mxu1  ;;  %vm18851_vm0 = vmmov %vm18849_vm14 }
 0x462   : > { %13152 = vrot.lane.b32.xlu1 %v18118_v62, %s15396_s7  ;;  %13150 = vrot.lane.b32.xlu0 %v18120_v63, %s15396_s7  ;;  %v11750_v15 = vsel %vm223_vm1, %v11738_v12, 0  ;;  %v9257_v5 = vpop.f32.mrb[51].mxu1 }
 0x463   : > { %15044 = vmatmul.mubr.msk.bf16.vlgmr.msra.gmra.mrb[136].mxu0 %vm219_vm2, %v15042_v1  ;;  %15045 = vmatprep.subr.msk.bf16.mxu1 %vm223_vm1, %v11739_v13 }
 0x464   : > { %11797 = vmatpush1.bf16.msra.mxu1 %v11750_v15  ;;  %v11846_v20 = vpop.permute.xlu1 %11845  ;;  %v11844_v21 = vpop.permute.xlu0 %11843  ;;  %11904 = vmatprep.mubr.bf16.mxu0 %v15392_v0 }
 0x465   : > { %v11853_v25 = vsel %vm18849_vm14, %v11844_v21, %v11846_v20  ;;  %vm18852_vm14 = vmmov %vm18851_vm0 }
 0x466   : > { %v9328_v22 = vpop.f32.mrb[52].mxu0  ;;  %13156 = vrot.lane.b32.xlu1 %v18136_v16, %s15396_s7  ;;  %13154 = vrot.lane.b32.xlu0 %v18138_v27, %s15396_s7  ;;  %v11861_v36 = vsel %vm223_vm1, %v11853_v25, 0 }
 0x467   : > { %v9376_v23 = vadd.f32 %v9328_v22, %v9259_v55  ;;  %v9330_v24 = vpop.f32.mrb[53].mxu0  ;;  %15046 = vmatmul.mubr.msk.bf16.vlgmr.msra.gmra.mrb[136].mxu1 %vm219_vm2, %v15042_v1 }
 0x468   : > { %v9377_v26 = vadd.f32 %v9330_v24, %v9260_v57  ;;  %v11850_v7 = vpop.permute.xlu1 %11849  ;;  %v11848_v28 = vpop.permute.xlu0 %11847  ;;  %11945 = vmatprep.mubr.bf16.mxu1 %v15392_v0 }
 0x469   : > { %v11854_v29 = vsel %vm18850_vm15, %v11846_v20, %v11848_v28  ;;  %v9332_v31 = vpop.f32.mrb[54].mxu0  ;;  %v11855_v39 = vsel %vm18851_vm0, %v11848_v28, %v11850_v7  ;;  %vm18853_vm15 = vcmask 171008  }
 0x46a   : > { %v9369_v34 = vpop.f32.mrb[52].mxu1  ;;  %13267 = vrot.lane.b32.xlu1 %v18120_v63, %s15397_s8  ;;  %13265 = vrot.lane.b32.xlu0 %v18104_v54, %s15397_s8  ;;  %v9333_v35 = vpop.f32.mrb[55].mxu0  ;;  %v11867_v49 = vsel %vm223_vm1, %v11855_v39, 0  ;;  %vm18854_vm0 = vmmov %vm18853_vm15  ;;  %v15057_v31 = vld [vmem:[%s18632_s1 + $0x194] sm:$0xf] }
 0x46b   : > { %v9378_v37 = vadd.f32 %v9369_v34, %v9261_v8  ;;  %v9371_v38 = vpop.f32.mrb[53].mxu1  ;;  %15048 = vmatprep.subr.msk.bf16.mxu0 %vm223_vm1, %v11854_v29 }
 0x46c   : > { %v9379_v40 = vadd.f32 %v9371_v38, %v9262_v9  ;;  %11873 = vmatpush1.bf16.msra.mxu0 %v11861_v36  ;;  %v11961_v41 = vpop.permute.xlu1 %11960  ;;  %v11852_v42 = vpop.permute.xlu0 %11851 }
 0x46d   : > { %v11856_v44 = vsel %vm18852_vm14, %v11850_v7, %v11852_v42  ;;  %v9373_v17 = vpop.f32.mrb[54].mxu1  ;;  %vm18855_vm14 = vmmov %vm18854_vm0 }
 0x46e   : > { %v9445_v45 = vpop.f32.mrb[56].mxu0  ;;  %13271 = vrot.lane.b32.xlu1 %v18138_v27, %s15397_s8  ;;  %13269 = vrot.lane.b32.xlu0 %v18118_v62, %s15397_s8  ;;  %v9374_v46 = vpop.f32.mrb[55].mxu1 }
 0x46f   : > { %v9493_v47 = vadd.f32 %v9445_v45, %v9376_v23  ;;  %v9447_v48 = vpop.f32.mrb[57].mxu0  ;;  %15049 = vmatmul.mubr.msk.bf16.vlgmr.msra.gmra.mrb[140].mxu0 %vm219_vm2, %v15047_v43  ;;  %15050 = vmatprep.subr.msk.bf16.mxu1 %vm223_vm1, %v11856_v44 }
 0x470   : > { %v9494_v50 = vadd.f32 %v9447_v48, %v9377_v26  ;;  %11914 = vmatpush1.bf16.msra.mxu1 %v11867_v49  ;;  %v11965_v3 = vpop.permute.xlu1 %11964  ;;  %v11963_v6 = vpop.permute.xlu0 %11962  ;;  %12021 = vmatprep.mubr.bf16.mxu0 %v15392_v0 }
 0x471   : > { %v11970_v51 = vsel %vm18853_vm15, %v11961_v41, %v11963_v6  ;;  %v11971_v52 = vsel %vm18854_vm0, %v11963_v6, %v11965_v3  ;;  %v9449_v53 = vpop.f32.mrb[58].mxu0  ;;  %vm18856_vm15 = vmmov %vm18854_vm0  ;;  %vm18857_vm0 = vcmask 162816  }
 0x472   : > { %v9486_v55 = vpop.f32.mrb[56].mxu1  ;;  %13382 = vrot.lane.b32.xlu1 %v18104_v54, %s15398_s9  ;;  %13273 = vrot.lane.b32.xlu0 %v18136_v16, %s15397_s8  ;;  %v11978_v30 = vsel %vm223_vm1, %v11970_v51, 0  ;;  %v9450_v32 = vpop.f32.mrb[59].mxu0 }
 0x473   : > { %v9495_v56 = vadd.f32 %v9486_v55, %v9378_v37  ;;  %v9488_v57 = vpop.f32.mrb[57].mxu1  ;;  %15051 = vmatmul.mubr.msk.bf16.vlgmr.msra.gmra.mrb[140].mxu1 %vm219_vm2, %v15047_v43  ;;  %15053 = vmatprep.subr.msk.bf16.mxu0 %vm223_vm1, %v11971_v52  ;;  %v15062_v52 = vld [vmem:[%s18632_s1 + $0x198] sm:$0xf] }
 0x474   : > { %v9496_v58 = vadd.f32 %v9488_v57, %v9379_v40  ;;  %11990 = vmatpush1.bf16.msra.mxu0 %v11978_v30  ;;  %v11969_v18 = vpop.permute.xlu1 %11968  ;;  %v11967_v19 = vpop.permute.xlu0 %11966  ;;  %12062 = vmatprep.mubr.bf16.mxu1 %v15392_v0 }
 0x475   : > { %v11972_v59 = vsel %vm18855_vm14, %v11965_v3, %v11967_v19  ;;  %v11973_v60 = vsel %vm18856_vm15, %v11967_v19, %v11969_v18  ;;  %v9490_v61 = vpop.f32.mrb[58].mxu1  ;;  %vm18858_vm14 = vmmov %vm18857_vm0 }
 0x476   : > { %13386 = vrot.lane.b32.xlu1 %v18118_v62, %s15398_s9  ;;  %13384 = vrot.lane.b32.xlu0 %v18120_v63, %s15398_s9  ;;  %v11984_v2 = vsel %vm223_vm1, %v11972_v59, 0  ;;  %v9491_v8 = vpop.f32.mrb[59].mxu1  ;;  %vm18859_vm15 = vmmov %vm18857_vm0 }
 0x477   : > { %15054 = vmatmul.mubr.msk.bf16.vlgmr.msra.gmra.mrb[144].mxu0 %vm219_vm2, %v15052_v4  ;;  %15055 = vmatprep.subr.msk.bf16.mxu1 %vm223_vm1, %v11973_v60 }
 0x478   : > { %12031 = vmatpush1.bf16.msra.mxu1 %v11984_v2  ;;  %v12080_v33 = vpop.permute.xlu1 %12079  ;;  %v12078_v9 = vpop.permute.xlu0 %12077  ;;  %12138 = vmatprep.mubr.bf16.mxu0 %v15392_v0 }
 0x479   : > { %v12087_v12 = vsel %vm18857_vm0, %v12078_v9, %v12080_v33 }
 0x47a   : > { %v9562_v10 = vpop.f32.mrb[60].mxu0  ;;  %13390 = vrot.lane.b32.xlu1 %v18136_v16, %s15398_s9  ;;  %13388 = vrot.lane.b32.xlu0 %v18138_v27, %s15398_s9  ;;  %v12095_v23 = vsel %vm223_vm1, %v12087_v12, 0 }
 0x47b   : > { %v9610_v11 = vadd.f32 %v9562_v10, %v9493_v47  ;;  %v9564_v1 = vpop.f32.mrb[61].mxu0  ;;  %15056 = vmatmul.mubr.msk.bf16.vlgmr.msra.gmra.mrb[144].mxu1 %vm219_vm2, %v15052_v4 }
 0x47c   : > { %v9611_v13 = vadd.f32 %v9564_v1, %v9494_v50  ;;  %v12084_v14 = vpop.permute.xlu1 %12083  ;;  %v12082_v15 = vpop.permute.xlu0 %12081  ;;  %12179 = vmatprep.mubr.bf16.mxu1 %v15392_v0 }
 0x47d   : > { %v12088_v5 = vsel %vm18858_vm14, %v12080_v33, %v12082_v15  ;;  %v9566_v20 = vpop.f32.mrb[62].mxu0  ;;  %v12089_v26 = vsel %vm18859_vm15, %v12082_v15, %v12084_v14  ;;  %vm18860_vm14 = vcmask 154624  }
 0x47e   : > { %v9603_v21 = vpop.f32.mrb[60].mxu1  ;;  %13501 = vrot.lane.b32.xlu1 %v18120_v63, %s15399_s10  ;;  %13499 = vrot.lane.b32.xlu0 %v18104_v54, %s15399_s10  ;;  %v9567_v22 = vpop.f32.mrb[63].mxu0  ;;  %v12101_v40 = vsel %vm223_vm1, %v12089_v26, 0  ;;  %vm18861_vm15 = vmmov %vm18860_vm14  ;;  %v15067_v20 = vld [vmem:[%s18632_s1 + $0x19c] sm:$0xf] }
 0x47f   : > { %v9612_v24 = vadd.f32 %v9603_v21, %v9495_v56  ;;  %v9605_v25 = vpop.f32.mrb[61].mxu1  ;;  %15058 = vmatprep.subr.msk.bf16.mxu0 %vm223_vm1, %v12088_v5 }
 0x480   : > { %v9613_v7 = vadd.f32 %v9605_v25, %v9496_v58  ;;  %12107 = vmatpush1.bf16.msra.mxu0 %v12095_v23  ;;  %v12195_v28 = vpop.permute.xlu1 %12194  ;;  %v12086_v29 = vpop.permute.xlu0 %12085 }
 0x481   : > { %v12090_v34 = vsel %vm18857_vm0, %v12084_v14, %v12086_v29  ;;  %v9607_v35 = vpop.f32.mrb[62].mxu1  ;;  %vm18862_vm0 = vmmov %vm18860_vm14 }
 0x482   : > { %v9679_v36 = vpop.f32.mrb[64].mxu0  ;;  %13505 = vrot.lane.b32.xlu1 %v18138_v27, %s15399_s10  ;;  %13503 = vrot.lane.b32.xlu0 %v18118_v62, %s15399_s10  ;;  %v9608_v37 = vpop.f32.mrb[63].mxu1 }
 0x483   : > { %v9727_v38 = vadd.f32 %v9679_v36, %v9610_v11  ;;  %v9681_v39 = vpop.f32.mrb[65].mxu0  ;;  %15059 = vmatmul.mubr.msk.bf16.vlgmr.msra.gmra.mrb[148].mxu0 %vm219_vm2, %v15057_v31  ;;  %15060 = vmatprep.subr.msk.bf16.mxu1 %vm223_vm1, %v12090_v34 }
 0x484   : > { %v9728_v41 = vadd.f32 %v9681_v39, %v9611_v13  ;;  %12148 = vmatpush1.bf16.msra.mxu1 %v12101_v40  ;;  %v12199_v42 = vpop.permute.xlu1 %12198  ;;  %v12197_v43 = vpop.permute.xlu0 %12196  ;;  %12255 = vmatprep.mubr.bf16.mxu0 %v15392_v0 }
 0x485   : > { %v12204_v44 = vsel %vm18860_vm14, %v12195_v28, %v12197_v43  ;;  %v12205_v17 = vsel %vm18861_vm15, %v12197_v43, %v12199_v42  ;;  %v9683_v45 = vpop.f32.mrb[66].mxu0  ;;  %vm18863_vm14 = vmmov %vm18862_vm0  ;;  %vm18864_vm15 = vcmask 146432  }
 0x486   : > { %v12212_v46 = vsel %vm223_vm1, %v12204_v44, 0  ;;  %v9720_v47 = vpop.f32.mrb[64].mxu1  ;;  %13616 = vrot.lane.b32.xlu1 %v18104_v54, %s15400_s11  ;;  %13507 = vrot.lane.b32.xlu0 %v18136_v16, %s15399_s10  ;;  %v9684_v48 = vpop.f32.mrb[67].mxu0  ;;  %s15318_s10 = scalar_lea.vmem %s15317_s23, 1024 }
 0x487   : > { %v9729_v49 = vadd.f32 %v9720_v47, %v9612_v24  ;;  %v9722_v50 = vpop.f32.mrb[65].mxu1  ;;  %15061 = vmatmul.mubr.msk.bf16.vlgmr.msra.gmra.mrb[148].mxu1 %vm219_vm2, %v15057_v31  ;;  %15063 = vmatprep.subr.msk.bf16.mxu0 %vm223_vm1, %v12205_v17  ;;  %v15072_v17 = vld [vmem:[%s18632_s1 + $0x1a0] sm:$0xf] }
 0x488   : > { %v9730_v3 = vadd.f32 %v9722_v50, %v9613_v7  ;;  %12224 = vmatpush1.bf16.msra.mxu0 %v12212_v46  ;;  %v12203_v6 = vpop.permute.xlu1 %12202  ;;  %v12201_v51 = vpop.permute.xlu0 %12200  ;;  %12296 = vmatprep.mubr.bf16.mxu1 %v15392_v0 }
 0x489   : > { %v12206_v53 = vsel %vm18862_vm0, %v12199_v42, %v12201_v51  ;;  %v12207_v55 = vsel %vm18863_vm14, %v12201_v51, %v12203_v6  ;;  %v9724_v30 = vpop.f32.mrb[66].mxu1  ;;  %vm18865_vm0 = vmmov %vm18864_vm15 }
 0x48a   : > { %v12218_v32 = vsel %vm223_vm1, %v12206_v53, 0  ;;  %13620 = vrot.lane.b32.xlu1 %v18118_v62, %s15400_s11  ;;  %13618 = vrot.lane.b32.xlu0 %v18120_v63, %s15400_s11  ;;  %v9725_v56 = vpop.f32.mrb[67].mxu1  ;;  %vm18866_vm14 = vmmov %vm18865_vm0 }
 0x48b   : > { %15064 = vmatmul.mubr.msk.bf16.vlgmr.msra.gmra.mrb[152].mxu0 %vm219_vm2, %v15062_v52  ;;  %15065 = vmatprep.subr.msk.bf16.mxu1 %vm223_vm1, %v12207_v55 }
 0x48c   : > { %12265 = vmatpush1.bf16.msra.mxu1 %v12218_v32  ;;  %v12314_v57 = vpop.permute.xlu1 %12313  ;;  %v12312_v58 = vpop.permute.xlu0 %12311  ;;  %12372 = vmatprep.mubr.bf16.mxu0 %v15392_v0 }
 0x48d   : > { %v12321_v59 = vsel %vm18864_vm15, %v12312_v58, %v12314_v57  ;;  %vm18867_vm15 = vmmov %vm18865_vm0 }
 0x48e   : > { %v9796_v18 = vpop.f32.mrb[68].mxu0  ;;  %13624 = vrot.lane.b32.xlu1 %v18136_v16, %s15400_s11  ;;  %13622 = vrot.lane.b32.xlu0 %v18138_v27, %s15400_s11  ;;  %v12329_v11 = vsel %vm223_vm1, %v12321_v59, 0 }
 0x48f   : > { %v9844_v19 = vadd.f32 %v9796_v18, %v9727_v38  ;;  %v9798_v4 = vpop.f32.mrb[69].mxu0  ;;  %15066 = vmatmul.mubr.msk.bf16.vlgmr.msra.gmra.mrb[152].mxu1 %vm219_vm2, %v15062_v52 }
 0x490   : > { %v9845_v60 = vadd.f32 %v9798_v4, %v9728_v41  ;;  %v12318_v61 = vpop.permute.xlu1 %12317  ;;  %v12316_v2 = vpop.permute.xlu0 %12315  ;;  %12413 = vmatprep.mubr.bf16.mxu1 %v15392_v0 }
 0x491   : > { %v12322_v8 = vsel %vm18865_vm0, %v12314_v57, %v12316_v2  ;;  %v9800_v33 = vpop.f32.mrb[70].mxu0  ;;  %v12323_v13 = vsel %vm18866_vm14, %v12316_v2, %v12318_v61  ;;  %vm18868_vm0 = vcmask 138240  }
 0x492   : > { %v9837_v9 = vpop.f32.mrb[68].mxu1  ;;  %13735 = vrot.lane.b32.xlu1 %v18120_v63, %s15401_s18  ;;  %13733 = vrot.lane.b32.xlu0 %v18104_v54, %s15401_s18  ;;  %v9801_v10 = vpop.f32.mrb[71].mxu0  ;;  %v12335_v25 = vsel %vm223_vm1, %v12323_v13, 0  ;;  %vm18869_vm14 = vmmov %vm18868_vm0  ;;  %v15077_v33 = vld [vmem:[%s18632_s1 + $0x1a4] sm:$0xf] }
 0x493   : > { %v9846_v1 = vadd.f32 %v9837_v9, %v9729_v49  ;;  %v9839_v12 = vpop.f32.mrb[69].mxu1  ;;  %15068 = vmatprep.subr.msk.bf16.mxu0 %vm223_vm1, %v12322_v8 }
 0x494   : > { %v9847_v14 = vadd.f32 %v9839_v12, %v9730_v3  ;;  %12341 = vmatpush1.bf16.msra.mxu0 %v12329_v11  ;;  %v12429_v15 = vpop.permute.xlu1 %12428  ;;  %v12320_v5 = vpop.permute.xlu0 %12319 }
 0x495   : > { %v12324_v21 = vsel %vm18867_vm15, %v12318_v61, %v12320_v5  ;;  %v9841_v22 = vpop.f32.mrb[70].mxu1  ;;  %vm18870_vm15 = vmmov %vm18868_vm0 }
 0x496   : > { %v9913_v23 = vpop.f32.mrb[72].mxu0  ;;  %13739 = vrot.lane.b32.xlu1 %v18138_v27, %s15401_s18  ;;  %13737 = vrot.lane.b32.xlu0 %v18118_v62, %s15401_s18  ;;  %v9842_v24 = vpop.f32.mrb[71].mxu1 }
 0x497   : > { %v9961_v26 = vadd.f32 %v9913_v23, %v9844_v19  ;;  %v9915_v7 = vpop.f32.mrb[73].mxu0  ;;  %15069 = vmatmul.mubr.msk.bf16.vlgmr.msra.gmra.mrb[156].mxu0 %vm219_vm2, %v15067_v20  ;;  %15070 = vmatprep.subr.msk.bf16.mxu1 %vm223_vm1, %v12324_v21 }
 0x498   : > { %v9962_v28 = vadd.f32 %v9915_v7, %v9845_v60  ;;  %12382 = vmatpush1.bf16.msra.mxu1 %v12335_v25  ;;  %v12433_v29 = vpop.permute.xlu1 %12432  ;;  %v12431_v31 = vpop.permute.xlu0 %12430  ;;  %12489 = vmatprep.mubr.bf16.mxu0 %v15392_v0 }
 0x499   : > { %v12438_v34 = vsel %vm18868_vm0, %v12429_v15, %v12431_v31  ;;  %v12439_v35 = vsel %vm18869_vm14, %v12431_v31, %v12433_v29  ;;  %v9917_v36 = vpop.f32.mrb[74].mxu0  ;;  %vm18871_vm14 = vcmask 130048  }
 0x49a   : > { %v12446_v37 = vsel %vm223_vm1, %v12438_v34, 0  ;;  %v9954_v38 = vpop.f32.mrb[72].mxu1  ;;  %13850 = vrot.lane.b32.xlu1 %v18104_v54, %s15402_s19  ;;  %13741 = vrot.lane.b32.xlu0 %v18136_v16, %s15401_s18  ;;  %v9918_v39 = vpop.f32.mrb[75].mxu0 }
 0x49b   : > { %v9963_v40 = vadd.f32 %v9954_v38, %v9846_v1  ;;  %v9956_v41 = vpop.f32.mrb[73].mxu1  ;;  %15071 = vmatmul.mubr.msk.bf16.vlgmr.msra.gmra.mrb[156].mxu1 %vm219_vm2, %v15067_v20  ;;  %15073 = vmatprep.subr.msk.bf16.mxu0 %vm223_vm1, %v12439_v35  ;;  %v15082_v35 = vld [vmem:[%s18632_s1 + $0x1a8] sm:$0xf] }
 0x49c   : > { %v9964_v42 = vadd.f32 %v9956_v41, %v9847_v14  ;;  %12458 = vmatpush1.bf16.msra.mxu0 %v12446_v37  ;;  %v12437_v43 = vpop.permute.xlu1 %12436  ;;  %v12435_v44 = vpop.permute.xlu0 %12434  ;;  %12530 = vmatprep.mubr.bf16.mxu1 %v15392_v0 }
 0x49d   : > { %v12440_v45 = vsel %vm18870_vm15, %v12433_v29, %v12435_v44  ;;  %v12441_v46 = vsel %vm18868_vm0, %v12435_v44, %v12437_v43  ;;  %v9958_v47 = vpop.f32.mrb[74].mxu1  ;;  %vm18872_vm15 = vmmov %vm18871_vm14 }
 0x49e   : > { %v12452_v48 = vsel %vm223_vm1, %v12440_v45, 0  ;;  %13854 = vrot.lane.b32.xlu1 %v18118_v62, %s15402_s19  ;;  %13852 = vrot.lane.b32.xlu0 %v18120_v63, %s15402_s19  ;;  %v9959_v49 = vpop.f32.mrb[75].mxu1  ;;  %vm18873_vm0 = vmmov %vm18871_vm14 }
 0x49f   : > { %15074 = vmatmul.mubr.msk.bf16.vlgmr.msra.gmra.mrb[160].mxu0 %vm219_vm2, %v15072_v17  ;;  %15075 = vmatprep.subr.msk.bf16.mxu1 %vm223_vm1, %v12441_v46 }
 0x4a0   : > { %12499 = vmatpush1.bf16.msra.mxu1 %v12452_v48  ;;  %v12548_v50 = vpop.permute.xlu1 %12547  ;;  %v12546_v3 = vpop.permute.xlu0 %12545  ;;  %12606 = vmatprep.mubr.bf16.mxu0 %v15392_v0 }
 0x4a1   : > { %v12555_v53 = vsel %vm18871_vm14, %v12546_v3, %v12548_v50  ;;  %vm18874_vm14 = vmmov %vm18873_vm0 }
 0x4a2   : > { %v10030_v6 = vpop.f32.mrb[76].mxu0  ;;  %13858 = vrot.lane.b32.xlu1 %v18136_v16, %s15402_s19  ;;  %13856 = vrot.lane.b32.xlu0 %v18138_v27, %s15402_s19  ;;  %v12563_v19 = vsel %vm223_vm1, %v12555_v53, 0 }
 0x4a3   : > { %v10078_v51 = vadd.f32 %v10030_v6, %v9961_v26  ;;  %v10032_v52 = vpop.f32.mrb[77].mxu0  ;;  %15076 = vmatmul.mubr.msk.bf16.vlgmr.msra.gmra.mrb[160].mxu1 %vm219_vm2, %v15072_v17 }
 0x4a4   : > { %v10079_v55 = vadd.f32 %v10032_v52, %v9962_v28  ;;  %v12552_v30 = vpop.permute.xlu1 %12551  ;;  %v12550_v32 = vpop.permute.xlu0 %12549  ;;  %12647 = vmatprep.mubr.bf16.mxu1 %v15392_v0 }
 0x4a5   : > { %v12556_v56 = vsel %vm18872_vm15, %v12548_v50, %v12550_v32  ;;  %v10034_v57 = vpop.f32.mrb[78].mxu0  ;;  %v12557_v60 = vsel %vm18873_vm0, %v12550_v32, %v12552_v30 }
 0x4a6   : > { %v10071_v58 = vpop.f32.mrb[76].mxu1  ;;  %13969 = vrot.lane.b32.xlu1 %v18120_v63, %s15447_s27  ;;  %13967 = vrot.lane.b32.xlu0 %v18104_v54, %s15447_s27  ;;  %v10035_v18 = vpop.f32.mrb[79].mxu0  ;;  %v12569_v12 = vsel %vm223_vm1, %v12557_v60, 0  ;;  %v15087_v57 = vld [vmem:[%s18632_s1 + $0x1ac] sm:$0xf] }
 0x4a7   : > { %v10080_v4 = vadd.f32 %v10071_v58, %v9963_v40  ;;  %v10073_v59 = vpop.f32.mrb[77].mxu1  ;;  %15078 = vmatprep.subr.msk.bf16.mxu0 %vm223_vm1, %v12556_v56 }
 0x4a8   : > { %v10081_v61 = vadd.f32 %v10073_v59, %v9964_v42  ;;  %12575 = vmatpush1.bf16.msra.mxu0 %v12563_v19  ;;  %v12663_v2 = vpop.permute.xlu1 %12662  ;;  %v12554_v8 = vpop.permute.xlu0 %12553 }
 0x4a9   : > { %v12558_v9 = vsel %vm18874_vm14, %v12552_v30, %v12554_v8  ;;  %v10075_v10 = vpop.f32.mrb[78].mxu1 }
 0x4aa   : > { %v10147_v11 = vpop.f32.mrb[80].mxu0  ;;  %13973 = vrot.lane.b32.xlu1 %v18138_v27, %s15447_s27  ;;  %13971 = vrot.lane.b32.xlu0 %v18118_v62, %s15447_s27  ;;  %v10076_v1 = vpop.f32.mrb[79].mxu1 }
 0x4ab   : > { %v10195_v13 = vadd.f32 %v10147_v11, %v10078_v51  ;;  %v10149_v14 = vpop.f32.mrb[81].mxu0  ;;  %15079 = vmatmul.mubr.msk.bf16.vlgmr.msra.gmra.mrb[164].mxu0 %vm219_vm2, %v15077_v33  ;;  %15080 = vmatprep.subr.msk.bf16.mxu1 %vm223_vm1, %v12558_v9 }
 0x4ac   : > { %v10196_v15 = vadd.f32 %v10149_v14, %v10079_v55  ;;  %12616 = vmatpush1.bf16.msra.mxu1 %v12569_v12  ;;  %v12667_v5 = vpop.permute.xlu1 %12666  ;;  %v12665_v20 = vpop.permute.xlu0 %12664  ;;  %12723 = vmatprep.mubr.bf16.mxu0 %v15392_v0 }
 0x4ad   : > { %v12672_v21 = vsel %vm6445_vm12, %v12663_v2, %v12665_v20  ;;  %v12673_v22 = vsel %vm6445_vm12, %v12665_v20, %v12667_v5  ;;  %v10151_v23 = vpop.f32.mrb[82].mxu0 }
 0x4ae   : > { %v12680_v24 = vsel %vm223_vm1, %v12672_v21, 0  ;;  %v10188_v25 = vpop.f32.mrb[80].mxu1  ;;  %14084 = vrot.lane.b32.xlu1 %v18104_v54, %s15448_s6  ;;  %13975 = vrot.lane.b32.xlu0 %v18136_v16, %s15447_s27  ;;  %v10152_v26 = vpop.f32.mrb[83].mxu0  ;;  %s15457_s27 = smov 115  }
 0x4af   : > { %v10197_v7 = vadd.f32 %v10188_v25, %v10080_v4  ;;  %v10190_v28 = vpop.f32.mrb[81].mxu1  ;;  %15081 = vmatmul.mubr.msk.bf16.vlgmr.msra.gmra.mrb[164].mxu1 %vm219_vm2, %v15077_v33  ;;  %15083 = vmatprep.subr.msk.bf16.mxu0 %vm223_vm1, %v12673_v22  ;;  %v15092_v22 = vld [vmem:[%s18632_s1 + $0x1b0] sm:$0xf] }
 0x4b0   : > { %v10198_v29 = vadd.f32 %v10190_v28, %v10081_v61  ;;  %12692 = vmatpush1.bf16.msra.mxu0 %v12680_v24  ;;  %v12671_v31 = vpop.permute.xlu1 %12670  ;;  %v12669_v34 = vpop.permute.xlu0 %12668  ;;  %12764 = vmatprep.mubr.bf16.mxu1 %v15392_v0 }
 0x4b1   : > { %v12674_v36 = vsel %vm6445_vm12, %v12667_v5, %v12669_v34  ;;  %v12675_v37 = vsel %vm6445_vm12, %v12669_v34, %v12671_v31  ;;  %v10192_v38 = vpop.f32.mrb[82].mxu1  ;;  %vm12906_vm12 = vcmask 105472  }
 0x4b2   : > { %v12686_v39 = vsel %vm223_vm1, %v12674_v36, 0  ;;  %14088 = vrot.lane.b32.xlu1 %v18118_v62, %s15448_s6  ;;  %14086 = vrot.lane.b32.xlu0 %v18120_v63, %s15448_s6  ;;  %v10193_v40 = vpop.f32.mrb[83].mxu1 }
 0x4b3   : > { %15084 = vmatmul.mubr.msk.bf16.vlgmr.msra.gmra.mrb[168].mxu0 %vm219_vm2, %v15082_v35  ;;  %15085 = vmatprep.subr.msk.bf16.mxu1 %vm223_vm1, %v12675_v37 }
 0x4b4   : > { %12733 = vmatpush1.bf16.msra.mxu1 %v12686_v39  ;;  %v12782_v41 = vpop.permute.xlu1 %12781  ;;  %v12780_v42 = vpop.permute.xlu0 %12779  ;;  %12840 = vmatprep.mubr.bf16.mxu0 %v15392_v0 }
 0x4b5   : > { %v12789_v45 = vsel %vm6563_vm13, %v12780_v42, %v12782_v41 }
 0x4b6   : > { %v10264_v43 = vpop.f32.mrb[84].mxu0  ;;  %14092 = vrot.lane.b32.xlu1 %v18136_v16, %s15448_s6  ;;  %14090 = vrot.lane.b32.xlu0 %v18138_v27, %s15448_s6  ;;  %v12797_v51 = vsel %vm223_vm1, %v12789_v45, 0  ;;  %s15167_s6 = sshll.u32 %s15382_s15, 9  ;;  %s14450_s15 = scalar_lea.sflag [#allocation3], %s175_s5 }
 0x4b7   : > { %v10312_v44 = vadd.f32 %v10264_v43, %v10195_v13  ;;  %v10266_v17 = vpop.f32.mrb[85].mxu0  ;;  %15086 = vmatmul.mubr.msk.bf16.vlgmr.msra.gmra.mrb[168].mxu1 %vm219_vm2, %v15082_v35  ;;  %v15097_v43 = vld [vmem:[%s18632_s1 + $0x1b4] sm:$0xf]  ;;  %s18582_s8 = scalar_lea.hbm %s18634_s3, %s15167_s6 }
 0x4b8   : > { %v10313_v46 = vadd.f32 %v10266_v17, %v10196_v15  ;;  %v12786_v47 = vpop.permute.xlu1 %12785  ;;  %v12784_v48 = vpop.permute.xlu0 %12783  ;;  %12881 = vmatprep.mubr.bf16.mxu1 %v15392_v0 }
 0x4b9   : > { %v12790_v49 = vsel %vm6563_vm13, %v12782_v41, %v12784_v48  ;;  %v10268_v50 = vpop.f32.mrb[86].mxu0  ;;  %v12791_v55 = vsel %vm6563_vm13, %v12784_v48, %v12786_v47 }
 0x4ba   : > { %v10305_v3 = vpop.f32.mrb[84].mxu1  ;;  %14203 = vrot.lane.b32.xlu1 %v18120_v63, %s15457_s27  ;;  %14201 = vrot.lane.b32.xlu0 %v18104_v54, %s15457_s27  ;;  %v10269_v6 = vpop.f32.mrb[87].mxu0  ;;  %v12803_v59 = vsel %vm223_vm1, %v12791_v55, 0 }
 0x4bb   : > { %v10314_v52 = vadd.f32 %v10305_v3, %v10197_v7  ;;  %v10307_v53 = vpop.f32.mrb[85].mxu1  ;;  %15088 = vmatprep.subr.msk.bf16.mxu0 %vm223_vm1, %v12790_v49 }
 0x4bc   : > { %v10315_v30 = vadd.f32 %v10307_v53, %v10198_v29  ;;  %12809 = vmatpush1.bf16.msra.mxu0 %v12797_v51  ;;  %v12897_v32 = vpop.permute.xlu1 %12896  ;;  %v12788_v56 = vpop.permute.xlu0 %12787 }
 0x4bd   : > { %v12792_v58 = vsel %vm6563_vm13, %v12786_v47, %v12788_v56  ;;  %v10309_v18 = vpop.f32.mrb[86].mxu1  ;;  %vm13024_vm13 = vcmask 97280  }
 0x4be   : > { %v10382_v19 = vpop.f32.mrb[88].mxu0  ;;  %14207 = vrot.lane.b32.xlu1 %v18138_v27, %s15457_s27  ;;  %14205 = vrot.lane.b32.xlu0 %v18118_v62, %s15457_s27  ;;  %v10310_v4 = vpop.f32.mrb[87].mxu1 }
 0x4bf   : > { %v10430_v60 = vadd.f32 %v10382_v19, %v10312_v44  ;;  %v10384_v61 = vpop.f32.mrb[89].mxu0  ;;  %15089 = vmatmul.mubr.msk.bf16.vlgmr.msra.gmra.mrb[172].mxu0 %vm219_vm2, %v15087_v57  ;;  %15090 = vmatprep.subr.msk.bf16.mxu1 %vm223_vm1, %v12792_v58  ;;  %v15102_v4 = vld [vmem:[%s18632_s1 + $0x1b8] sm:$0xf] }
 0x4c0   : > { %v10431_v2 = vadd.f32 %v10384_v61, %v10313_v46  ;;  %12850 = vmatpush1.bf16.msra.mxu1 %v12803_v59  ;;  %v12901_v8 = vpop.permute.xlu1 %12900  ;;  %v12899_v33 = vpop.permute.xlu0 %12898  ;;  %12958 = vmatprep.mubr.bf16.mxu0 %v15392_v0 }
 0x4c1   : > { %v12907_v9 = vsel %vm12906_vm12, %v12897_v32, %v12899_v33  ;;  %v12908_v10 = vsel %vm12906_vm12, %v12899_v33, %v12901_v8  ;;  %v10386_v11 = vpop.f32.mrb[90].mxu0 }
 0x4c2   : > { %v12915_v1 = vsel %vm223_vm1, %v12907_v9, 0  ;;  %v10423_v12 = vpop.f32.mrb[88].mxu1  ;;  %14319 = vrot.lane.b32.xlu1 %v18104_v54, %s15458_s26  ;;  %14209 = vrot.lane.b32.xlu0 %v18136_v16, %s15457_s27  ;;  %v10387_v13 = vpop.f32.mrb[91].mxu0  ;;  %s177_s27 = scalar_lea.vmem [#allocation2], %s14541_s30 }
 0x4c3   : > { %v10432_v14 = vadd.f32 %v10423_v12, %v10314_v52  ;;  %v10425_v15 = vpop.f32.mrb[89].mxu1  ;;  %15091 = vmatmul.mubr.msk.bf16.vlgmr.msra.gmra.mrb[172].mxu1 %vm219_vm2, %v15087_v57  ;;  %15093 = vmatprep.subr.msk.bf16.mxu0 %vm223_vm1, %v12908_v10  ;;  %s14466_s7 = sshll.u32 %s177_s27, 4  ;;  %s18584_s7 = int_to_ptr.vmem [resolvable:$true] %s14466_s7 }
 0x4c4   : > { %v10433_v5 = vadd.f32 %v10425_v15, %v10315_v30  ;;  %12927 = vmatpush1.bf16.msra.mxu0 %v12915_v1  ;;  %v12905_v20 = vpop.permute.xlu1 %12904  ;;  %v12903_v21 = vpop.permute.xlu0 %12902  ;;  %12999 = vmatprep.mubr.bf16.mxu1 %v15392_v0  ;;  %s15312_s9 = scalar_lea.vmem %s18584_s7, 512  ;;  %p15319_p1 = scmp.lt.s32.totalorder %s18584_s7, %s15317_s23 }
 0x4c5   : > { %v12909_v54 = vsel %vm12906_vm12, %v12901_v8, %v12903_v21  ;;  %v12910_v23 = vsel %vm12906_vm12, %v12903_v21, %v12905_v20  ;;  %v10427_v24 = vpop.f32.mrb[90].mxu1  ;;  %p15313_p12 = scmp.ne.s32.totalorder %s18584_s7, %s15312_s9  ;;  %p15320_p2 = scmp.lt.s32.totalorder %s15318_s10, %s15312_s9 }
 0x4c6   : > { %v12921_v25 = vsel %vm223_vm1, %v12909_v54, 0  ;;  %14323 = vrot.lane.b32.xlu1 %v18118_v62, %s15458_s26  ;;  %14321 = vrot.lane.b32.xlu0 %v18120_v63, %s15458_s26  ;;  %v10428_v26 = vpop.f32.mrb[91].mxu1 }
 0x4c7   : > { %15094 = vmatmul.mubr.msk.bf16.vlgmr.msra.gmra.mrb[176].mxu0 %vm219_vm2, %v15092_v22  ;;  %15095 = vmatprep.subr.msk.bf16.mxu1 %vm223_vm1, %v12910_v23  ;;  %p15314_p13 = pnand %p15313_p12, %p15520_p4  ;;  %p15321_p3 = por %p15320_p2, %p15319_p1 }
 0x4c8   : > { %12968 = vmatpush1.bf16.msra.mxu1 %v12921_v25  ;;  %v13017_v7 = vpop.permute.xlu1 %13016  ;;  %v13015_v28 = vpop.permute.xlu0 %13014  ;;  %13076 = vmatprep.mubr.bf16.mxu0 %v15392_v0 }
 0x4c9   : > { %v13025_v62 = vsel %vm13024_vm13, %v13015_v28, %v13017_v7  ;;  %p15315_p0 = pneg %p15314_p13 }
 0x4ca   : > { %v10500_v29 = vpop.f32.mrb[92].mxu0  ;;  %14327 = vrot.lane.b32.xlu1 %v18136_v16, %s15458_s26  ;;  %14325 = vrot.lane.b32.xlu0 %v18138_v27, %s15458_s26  ;;  %v13033_v39 = vsel %vm223_vm1, %v13025_v62, 0 }
 0x4cb   : > { %v10548_v31 = vadd.f32 %v10500_v29, %v10430_v60  ;;  %v10502_v63 = vpop.f32.mrb[93].mxu0  ;;  %15096 = vmatmul.mubr.msk.bf16.vlgmr.msra.gmra.mrb[176].mxu1 %vm219_vm2, %v15092_v22  ;;  %v15112_v29 = vld [vmem:[%s18632_s1 + $0x1bc] sm:$0xf]  ;;  %p15322_p5 = pnand %p15321_p3, %p15315_p0 }
 0x4cc   : > { %v10549_v34 = vadd.f32 %v10502_v63, %v10431_v2  ;;  %v13021_v35 = vpop.permute.xlu1 %13020  ;;  %v13019_v36 = vpop.permute.xlu0 %13018  ;;  %13117 = vmatprep.mubr.bf16.mxu1 %v15392_v0 }
 0x4cd   : > { %v13026_v37 = vsel %vm13024_vm13, %v13017_v7, %v13019_v36  ;;  %v10504_v38 = vpop.f32.mrb[94].mxu0  ;;  %v13027_v27 = vsel %vm13024_vm13, %v13019_v36, %v13021_v35 }
 0x4ce   : > { %v10541_v40 = vpop.f32.mrb[92].mxu1  ;;  %15098 = vmatprep.subr.msk.bf16.mxu0 %vm223_vm1, %v13026_v37  ;;  %v10505_v16 = vpop.f32.mrb[95].mxu0  ;;  %v13039_v48 = vsel %vm223_vm1, %v13027_v27, 0 }
 0x4cf   : > { %v10550_v41 = vadd.f32 %v10541_v40, %v10432_v14  ;;  %v10543_v42 = vpop.f32.mrb[93].mxu1  ;;  %13045 = vmatpush1.bf16.msra.mxu0 %v13033_v39 }
 0x4d0   : > { %v10551_v44 = vadd.f32 %v10543_v42, %v10433_v5  ;;  %v13149_v17 = vpop.permute.xlu1 %13148  ;;  %v13023_v45 = vpop.permute.xlu0 %13022 }
 0x4d1   : > { %v13028_v46 = vsel %vm13024_vm13, %v13021_v35, %v13023_v45  ;;  %v10545_v47 = vpop.f32.mrb[94].mxu1 }
 0x4d2   : > { %v10617_v49 = vpop.f32.mrb[96].mxu0  ;;  %15099 = vmatmul.mubr.msk.bf16.vlgmr.msra.gmra.mrb[180].mxu0 %vm219_vm2, %v15097_v43  ;;  %15100 = vmatprep.subr.msk.bf16.mxu1 %vm223_vm1, %v13028_v46  ;;  %v10546_v50 = vpop.f32.mrb[95].mxu1 }
 0x4d3   : > { %v10665_v3 = vadd.f32 %v10617_v49, %v10548_v31  ;;  %v10619_v6 = vpop.f32.mrb[97].mxu0  ;;  %13086 = vmatpush1.bf16.msra.mxu1 %v13039_v48  ;;  %13209 = vmatprep.mubr.bf16.mxu0 %v15392_v0  ;;  %v15117_v49 = vld [vmem:[%s18632_s1 + $0x1c0] sm:$0xf] }
 0x4d4   : > { %v10666_v51 = vadd.f32 %v10619_v6, %v10549_v34  ;;  %v13153_v52 = vpop.permute.xlu1 %13152  ;;  %v13151_v53 = vpop.permute.xlu0 %13150 }
 0x4d5   : > { %v13158_v55 = vsel %vm663_vm5, %v13149_v17, %v13151_v53  ;;  %v13159_v30 = vsel %vm663_vm5, %v13151_v53, %v13153_v52  ;;  %v10621_v32 = vpop.f32.mrb[98].mxu0 }
 0x4d6   : > { %v13166_v56 = vsel %vm223_vm1, %v13158_v55, 0  ;;  %v10658_v57 = vpop.f32.mrb[96].mxu1  ;;  %15101 = vmatmul.mubr.msk.bf16.vlgmr.msra.gmra.mrb[180].mxu1 %vm219_vm2, %v15097_v43  ;;  %15108 = vmatprep.subr.msk.bf16.mxu0 %vm223_vm1, %v13159_v30  ;;  %v10622_v58 = vpop.f32.mrb[99].mxu0 }
 0x4d7   : > { %v10667_v18 = vadd.f32 %v10658_v57, %v10550_v41  ;;  %v10660_v19 = vpop.f32.mrb[97].mxu1  ;;  %13178 = vmatpush1.bf16.msra.mxu0 %v13166_v56  ;;  %13250 = vmatprep.mubr.bf16.mxu1 %v15392_v0 }
 0x4d8   : > { %v10668_v59 = vadd.f32 %v10660_v19, %v10551_v44  ;;  %v13157_v60 = vpop.permute.xlu1 %13156  ;;  %v13155_v61 = vpop.permute.xlu0 %13154 }
 0x4d9   : > { %v13160_v2 = vsel %vm663_vm5, %v13153_v52, %v13155_v61  ;;  %v13161_v8 = vsel %vm663_vm5, %v13155_v61, %v13157_v60  ;;  %v10662_v33 = vpop.f32.mrb[98].mxu1  ;;  %vm14211_vm5 = vcmask 941056  }
 0x4da   : > { %v13172_v9 = vsel %vm223_vm1, %v13160_v2, 0  ;;  %15109 = vmatmul.mubr.msk.bf16.vlgmr.msra.gmra.mrb[184].mxu0 %vm219_vm2, %v15102_v4  ;;  %15110 = vmatprep.subr.msk.bf16.mxu1 %vm223_vm1, %v13161_v8  ;;  %v10663_v10 = vpop.f32.mrb[99].mxu1 }
 0x4db   : > { %13219 = vmatpush1.bf16.msra.mxu1 %v13172_v9  ;;  %13326 = vmatprep.mubr.bf16.mxu0 %v15392_v0 }
 0x4dc   : > { %v13268_v11 = vpop.permute.xlu1 %13267  ;;  %v13266_v1 = vpop.permute.xlu0 %13265 }
 0x4dd   : > { %v13275_v13 = vsel %vm781_vm6, %v13266_v1, %v13268_v11 }
 0x4de   : > { %v10734_v12 = vpop.f32.mrb[100].mxu0  ;;  %15111 = vmatmul.mubr.msk.bf16.vlgmr.msra.gmra.mrb[184].mxu1 %vm219_vm2, %v15102_v4  ;;  %v13283_v23 = vsel %vm223_vm1, %v13275_v13, 0 }
 0x4df   : > { %v10782_v14 = vadd.f32 %v10734_v12, %v10665_v3  ;;  %v10736_v15 = vpop.f32.mrb[101].mxu0  ;;  %13367 = vmatprep.mubr.bf16.mxu1 %v15392_v0  ;;  %v15122_v12 = vld [vmem:[%s18632_s1 + $0x1c4] sm:$0xf] }
 0x4e0   : > { %v10783_v5 = vadd.f32 %v10736_v15, %v10666_v51  ;;  %v13272_v20 = vpop.permute.xlu1 %13271  ;;  %v13270_v21 = vpop.permute.xlu0 %13269 }
 0x4e1   : > { %v13276_v22 = vsel %vm781_vm6, %v13268_v11, %v13270_v21  ;;  %v10738_v54 = vpop.f32.mrb[102].mxu0  ;;  %v13277_v26 = vsel %vm781_vm6, %v13270_v21, %v13272_v20 }
 0x4e2   : > { %v10775_v24 = vpop.f32.mrb[100].mxu1  ;;  %15113 = vmatprep.subr.msk.bf16.mxu0 %vm223_vm1, %v13276_v22  ;;  %v10739_v25 = vpop.f32.mrb[103].mxu0  ;;  %v13289_v36 = vsel %vm223_vm1, %v13277_v26, 0 }
 0x4e3   : > { %v10784_v7 = vadd.f32 %v10775_v24, %v10667_v18  ;;  %v10777_v28 = vpop.f32.mrb[101].mxu1  ;;  %13295 = vmatpush1.bf16.msra.mxu0 %v13283_v23 }
 0x4e4   : > { %v10785_v62 = vadd.f32 %v10777_v28, %v10668_v59  ;;  %v13383_v31 = vpop.permute.xlu1 %13382  ;;  %v13274_v63 = vpop.permute.xlu0 %13273 }
 0x4e5   : > { %v13278_v34 = vsel %vm781_vm6, %v13272_v20, %v13274_v63  ;;  %v10779_v35 = vpop.f32.mrb[102].mxu1  ;;  %vm14329_vm6 = vcmask 932864  }
 0x4e6   : > { %v10851_v37 = vpop.f32.mrb[104].mxu0  ;;  %15114 = vmatmul.mubr.msk.bf16.vlgmr.msra.gmra.mrb[188].mxu0 %vm219_vm2, %v15112_v29  ;;  %15115 = vmatprep.subr.msk.bf16.mxu1 %vm223_vm1, %v13278_v34  ;;  %v10780_v38 = vpop.f32.mrb[103].mxu1 }
 0x4e7   : > { %v10899_v39 = vadd.f32 %v10851_v37, %v10782_v14  ;;  %v10853_v40 = vpop.f32.mrb[105].mxu0  ;;  %13336 = vmatpush1.bf16.msra.mxu1 %v13289_v36  ;;  %13443 = vmatprep.mubr.bf16.mxu0 %v15392_v0  ;;  %v15127_v37 = vld [vmem:[%s18632_s1 + $0x1c8] sm:$0xf] }
 0x4e8   : > { %v10900_v16 = vadd.f32 %v10853_v40, %v10783_v5  ;;  %v13387_v27 = vpop.permute.xlu1 %13386  ;;  %v13385_v41 = vpop.permute.xlu0 %13384 }
 0x4e9   : > { %v13392_v42 = vsel %vm899_vm7, %v13383_v31, %v13385_v41  ;;  %v13393_v43 = vsel %vm899_vm7, %v13385_v41, %v13387_v27  ;;  %v10855_v44 = vpop.f32.mrb[106].mxu0 }
 0x4ea   : > { %v13400_v17 = vsel %vm223_vm1, %v13392_v42, 0  ;;  %v10892_v45 = vpop.f32.mrb[104].mxu1  ;;  %15116 = vmatmul.mubr.msk.bf16.vlgmr.msra.gmra.mrb[188].mxu1 %vm219_vm2, %v15112_v29  ;;  %15118 = vmatprep.subr.msk.bf16.mxu0 %vm223_vm1, %v13393_v43  ;;  %v10856_v46 = vpop.f32.mrb[107].mxu0 }
 0x4eb   : > { %v10901_v47 = vadd.f32 %v10892_v45, %v10784_v7  ;;  %v10894_v48 = vpop.f32.mrb[105].mxu1  ;;  %13412 = vmatpush1.bf16.msra.mxu0 %v13400_v17  ;;  %13484 = vmatprep.mubr.bf16.mxu1 %v15392_v0 }
 0x4ec   : > { %v10902_v50 = vadd.f32 %v10894_v48, %v10785_v62  ;;  %v13391_v3 = vpop.permute.xlu1 %13390  ;;  %v13389_v6 = vpop.permute.xlu0 %13388 }
 0x4ed   : > { %v13394_v51 = vsel %vm899_vm7, %v13387_v27, %v13389_v6  ;;  %v13395_v52 = vsel %vm899_vm7, %v13389_v6, %v13391_v3  ;;  %v10896_v53 = vpop.f32.mrb[106].mxu1 }
 0x4ee   : > { %v13406_v55 = vsel %vm223_vm1, %v13394_v51, 0  ;;  %15119 = vmatmul.mubr.msk.bf16.vlgmr.msra.gmra.mrb[192].mxu0 %vm219_vm2, %v15117_v49  ;;  %15120 = vmatprep.subr.msk.bf16.mxu1 %vm223_vm1, %v13395_v52  ;;  %v10897_v30 = vpop.f32.mrb[107].mxu1 }
 0x4ef   : > { %13453 = vmatpush1.bf16.msra.mxu1 %v13406_v55  ;;  %13560 = vmatprep.mubr.bf16.mxu0 %v15392_v0 }
 0x4f0   : > { %v13502_v32 = vpop.permute.xlu1 %13501  ;;  %v13500_v56 = vpop.permute.xlu0 %13499 }
 0x4f1   : > { %v13509_v58 = vsel %vm1017_vm8, %v13500_v56, %v13502_v32 }
 0x4f2   : > { %v10968_v57 = vpop.f32.mrb[108].mxu0  ;;  %15121 = vmatmul.mubr.msk.bf16.vlgmr.msra.gmra.mrb[192].mxu1 %vm219_vm2, %v15117_v49  ;;  %v13517_v8 = vsel %vm223_vm1, %v13509_v58, 0 }
 0x4f3   : > { %v11016_v18 = vadd.f32 %v10968_v57, %v10899_v39  ;;  %v10970_v19 = vpop.f32.mrb[109].mxu0  ;;  %13601 = vmatprep.mubr.bf16.mxu1 %v15392_v0  ;;  %v15132_v57 = vld [vmem:[%s18632_s1 + $0x1cc] sm:$0xf] }
 0x4f4   : > { %v11017_v4 = vadd.f32 %v10970_v19, %v10900_v16  ;;  %v13506_v59 = vpop.permute.xlu1 %13505  ;;  %v13504_v60 = vpop.permute.xlu0 %13503 }
 0x4f5   : > { %v13510_v61 = vsel %vm1017_vm8, %v13502_v32, %v13504_v60  ;;  %v10972_v2 = vpop.f32.mrb[110].mxu0  ;;  %v13511_v10 = vsel %vm1017_vm8, %v13504_v60, %v13506_v59 }
 0x4f6   : > { %v11009_v33 = vpop.f32.mrb[108].mxu1  ;;  %15123 = vmatprep.subr.msk.bf16.mxu0 %vm223_vm1, %v13510_v61  ;;  %v10973_v9 = vpop.f32.mrb[111].mxu0  ;;  %v13523_v21 = vsel %vm223_vm1, %v13511_v10, 0 }
 0x4f7   : > { %v11018_v11 = vadd.f32 %v11009_v33, %v10901_v47  ;;  %v11011_v1 = vpop.f32.mrb[109].mxu1  ;;  %13529 = vmatpush1.bf16.msra.mxu0 %v13517_v8 }
 0x4f8   : > { %v11019_v13 = vadd.f32 %v11011_v1, %v10902_v50  ;;  %v13617_v14 = vpop.permute.xlu1 %13616  ;;  %v13508_v15 = vpop.permute.xlu0 %13507 }
 0x4f9   : > { %v13512_v5 = vsel %vm1017_vm8, %v13506_v59, %v13508_v15  ;;  %v11013_v20 = vpop.f32.mrb[110].mxu1 }
 0x4fa   : > { %v11085_v22 = vpop.f32.mrb[112].mxu0  ;;  %15124 = vmatmul.mubr.msk.bf16.vlgmr.msra.gmra.mrb[196].mxu0 %vm219_vm2, %v15122_v12  ;;  %15125 = vmatprep.subr.msk.bf16.mxu1 %vm223_vm1, %v13512_v5  ;;  %v11014_v54 = vpop.f32.mrb[111].mxu1 }
 0x4fb   : > { %v11133_v23 = vadd.f32 %v11085_v22, %v11016_v18  ;;  %v11087_v24 = vpop.f32.mrb[113].mxu0  ;;  %13570 = vmatpush1.bf16.msra.mxu1 %v13523_v21  ;;  %13677 = vmatprep.mubr.bf16.mxu0 %v15392_v0  ;;  %v15137_v22 = vld [vmem:[%s18632_s1 + $0x1d0] sm:$0xf] }
 0x4fc   : > { %v11134_v25 = vadd.f32 %v11087_v24, %v11017_v4  ;;  %v13621_v26 = vpop.permute.xlu1 %13620  ;;  %v13619_v7 = vpop.permute.xlu0 %13618 }
 0x4fd   : > { %v13626_v28 = vsel %vm1135_vm9, %v13617_v14, %v13619_v7  ;;  %v13627_v29 = vsel %vm1135_vm9, %v13619_v7, %v13621_v26  ;;  %v11089_v62 = vpop.f32.mrb[114].mxu0 }
 0x4fe   : > { %v13634_v31 = vsel %vm223_vm1, %v13626_v28, 0  ;;  %v11126_v63 = vpop.f32.mrb[112].mxu1  ;;  %15126 = vmatmul.mubr.msk.bf16.vlgmr.msra.gmra.mrb[196].mxu1 %vm219_vm2, %v15122_v12  ;;  %15128 = vmatprep.subr.msk.bf16.mxu0 %vm223_vm1, %v13627_v29  ;;  %v11090_v34 = vpop.f32.mrb[115].mxu0 }
 0x4ff   : > { %v11135_v35 = vadd.f32 %v11126_v63, %v11018_v11  ;;  %v11128_v36 = vpop.f32.mrb[113].mxu1  ;;  %13646 = vmatpush1.bf16.msra.mxu0 %v13634_v31  ;;  %13718 = vmatprep.mubr.bf16.mxu1 %v15392_v0 }
 0x500   : > { %v11136_v38 = vadd.f32 %v11128_v36, %v11019_v13  ;;  %v13625_v39 = vpop.permute.xlu1 %13624  ;;  %v13623_v40 = vpop.permute.xlu0 %13622 }
 0x501   : > { %v13628_v16 = vsel %vm1135_vm9, %v13621_v26, %v13623_v40  ;;  %v13629_v27 = vsel %vm1135_vm9, %v13623_v40, %v13625_v39  ;;  %v11130_v41 = vpop.f32.mrb[114].mxu1 }
 0x502   : > { %v13640_v42 = vsel %vm223_vm1, %v13628_v16, 0  ;;  %15129 = vmatmul.mubr.msk.bf16.vlgmr.msra.gmra.mrb[200].mxu0 %vm219_vm2, %v15127_v37  ;;  %15130 = vmatprep.subr.msk.bf16.mxu1 %vm223_vm1, %v13629_v27  ;;  %v11131_v43 = vpop.f32.mrb[115].mxu1 }
 0x503   : > { %13687 = vmatpush1.bf16.msra.mxu1 %v13640_v42  ;;  %13794 = vmatprep.mubr.bf16.mxu0 %v15392_v0 }
 0x504   : > { %v13736_v44 = vpop.permute.xlu1 %13735  ;;  %v13734_v17 = vpop.permute.xlu0 %13733 }
 0x505   : > { %v13743_v46 = vsel %vm1253_vm10, %v13734_v17, %v13736_v44 }
 0x506   : > { %v11202_v45 = vpop.f32.mrb[116].mxu0  ;;  %15131 = vmatmul.mubr.msk.bf16.vlgmr.msra.gmra.mrb[200].mxu1 %vm219_vm2, %v15127_v37  ;;  %v13751_v52 = vsel %vm223_vm1, %v13743_v46, 0  ;;  %v15142_v46 = vld [vmem:[%s18632_s1 + $0x1d4] sm:$0xf] }
 0x507   : > { %v11250_v47 = vadd.f32 %v11202_v45, %v11133_v23  ;;  %v11204_v48 = vpop.f32.mrb[117].mxu0  ;;  %13835 = vmatprep.mubr.bf16.mxu1 %v15392_v0 }
 0x508   : > { %v11251_v49 = vadd.f32 %v11204_v48, %v11134_v25  ;;  %v13740_v50 = vpop.permute.xlu1 %13739  ;;  %v13738_v3 = vpop.permute.xlu0 %13737  ;;  %v14435_v25 = vld [vmem:[%s18633_s2] sm:$0xff] }
 0x509   : > { %v13744_v6 = vsel %vm1253_vm10, %v13736_v44, %v13738_v3  ;;  %v11206_v51 = vpop.f32.mrb[118].mxu0  ;;  %v13745_v30 = vsel %vm1253_vm10, %v13738_v3, %v13740_v50  ;;  %14438 = vperm.xlu0 %15291, %v14435_v25  }
 0x50a   : > { %v11243_v53 = vpop.f32.mrb[116].mxu1  ;;  %15133 = vmatprep.subr.msk.bf16.mxu0 %vm223_vm1, %v13744_v6  ;;  %v11207_v55 = vpop.f32.mrb[119].mxu0  ;;  %v13757_v60 = vsel %vm223_vm1, %v13745_v30, 0 }
 0x50b   : > { %v11252_v32 = vadd.f32 %v11243_v53, %v11135_v35  ;;  %v11245_v56 = vpop.f32.mrb[117].mxu1  ;;  %13763 = vmatpush1.bf16.msra.mxu0 %v13751_v52 }
 0x50c   : > { %v11253_v58 = vadd.f32 %v11245_v56, %v11136_v38  ;;  %v13851_v18 = vpop.permute.xlu1 %13850  ;;  %v13742_v19 = vpop.permute.xlu0 %13741 }
 0x50d   : > { %v13746_v4 = vsel %vm1253_vm10, %v13740_v50, %v13742_v19  ;;  %v11247_v59 = vpop.f32.mrb[118].mxu1 }
 0x50e   : > { %v11319_v61 = vpop.f32.mrb[120].mxu0  ;;  %15134 = vmatmul.mubr.msk.bf16.vlgmr.msra.gmra.mrb[204].mxu0 %vm219_vm2, %v15132_v57  ;;  %15135 = vmatprep.subr.msk.bf16.mxu1 %vm223_vm1, %v13746_v4  ;;  %v11248_v2 = vpop.f32.mrb[119].mxu1 }
 0x50f   : > { %v11367_v8 = vadd.f32 %v11319_v61, %v11250_v47  ;;  %v11321_v33 = vpop.f32.mrb[121].mxu0  ;;  %13804 = vmatpush1.bf16.msra.mxu1 %v13757_v60  ;;  %13911 = vmatprep.mubr.bf16.mxu0 %v15392_v0  ;;  %v15147_v2 = vld [vmem:[%s18632_s1 + $0x1d8] sm:$0xf] }
 0x510   : > { %v11368_v9 = vadd.f32 %v11321_v33, %v11251_v49  ;;  %v13855_v10 = vpop.permute.xlu1 %13854  ;;  %v13853_v11 = vpop.permute.xlu0 %13852 }
 0x511   : > { %v13860_v1 = vsel %vm1371_vm11, %v13851_v18, %v13853_v11  ;;  %v13861_v12 = vsel %vm1371_vm11, %v13853_v11, %v13855_v10  ;;  %v11323_v13 = vpop.f32.mrb[122].mxu0 }
 0x512   : > { %v13868_v14 = vsel %vm223_vm1, %v13860_v1, 0  ;;  %v11360_v15 = vpop.f32.mrb[120].mxu1  ;;  %15136 = vmatmul.mubr.msk.bf16.vlgmr.msra.gmra.mrb[204].mxu1 %vm219_vm2, %v15132_v57  ;;  %15138 = vmatprep.subr.msk.bf16.mxu0 %vm223_vm1, %v13861_v12  ;;  %v11324_v5 = vpop.f32.mrb[123].mxu0 }
 0x513   : > { %v11369_v20 = vadd.f32 %v11360_v15, %v11252_v32  ;;  %v11362_v21 = vpop.f32.mrb[121].mxu1  ;;  %13880 = vmatpush1.bf16.msra.mxu0 %v13868_v14  ;;  %13952 = vmatprep.mubr.bf16.mxu1 %v15392_v0 }
 0x514   : > { %v11370_v54 = vadd.f32 %v11362_v21, %v11253_v58  ;;  %v13859_v23 = vpop.permute.xlu1 %13858  ;;  %v13857_v24 = vpop.permute.xlu0 %13856 }
 0x515   : > { %v13862_v26 = vsel %vm1371_vm11, %v13855_v10, %v13857_v24  ;;  %v13863_v7 = vsel %vm1371_vm11, %v13857_v24, %v13859_v23  ;;  %v11364_v28 = vpop.f32.mrb[122].mxu1 }
 0x516   : > { %v13874_v29 = vsel %vm223_vm1, %v13862_v26, 0  ;;  %15139 = vmatmul.mubr.msk.bf16.vlgmr.msra.gmra.mrb[208].mxu0 %vm219_vm2, %v15137_v22  ;;  %15140 = vmatprep.subr.msk.bf16.mxu1 %vm223_vm1, %v13863_v7  ;;  %v11365_v62 = vpop.f32.mrb[123].mxu1 }
 0x517   : > { %13921 = vmatpush1.bf16.msra.mxu1 %v13874_v29  ;;  %14028 = vmatprep.mubr.bf16.mxu0 %v15392_v0 }
 0x518   : > { %v13970_v31 = vpop.permute.xlu1 %13969  ;;  %v13968_v63 = vpop.permute.xlu0 %13967 }
 0x519   : > { %v13977_v35 = vsel %vm7750_vm3, %v13968_v63, %v13970_v31 }
 0x51a   : > { %v11436_v34 = vpop.f32.mrb[124].mxu0  ;;  %15141 = vmatmul.mubr.msk.bf16.vlgmr.msra.gmra.mrb[208].mxu1 %vm219_vm2, %v15137_v22  ;;  %v13985_v41 = vsel %vm223_vm1, %v13977_v35, 0 }
 0x51b   : > { %v11484_v36 = vadd.f32 %v11436_v34, %v11367_v8  ;;  %v11438_v37 = vpop.f32.mrb[125].mxu0  ;;  %14069 = vmatprep.mubr.bf16.mxu1 %v15392_v0  ;;  %v15152_v34 = vld [vmem:[%s18632_s1 + $0x1dc] sm:$0xf] }
 0x51c   : > { %v11485_v38 = vadd.f32 %v11438_v37, %v11368_v9  ;;  %v13974_v39 = vpop.permute.xlu1 %13973  ;;  %v13972_v40 = vpop.permute.xlu0 %13971 }
 0x51d   : > { %v13978_v16 = vsel %vm7750_vm3, %v13970_v31, %v13972_v40  ;;  %v11440_v27 = vpop.f32.mrb[126].mxu0  ;;  %v13979_v44 = vsel %vm7750_vm3, %v13972_v40, %v13974_v39 }
 0x51e   : > { %v11477_v42 = vpop.f32.mrb[124].mxu1  ;;  %15143 = vmatprep.subr.msk.bf16.mxu0 %vm223_vm1, %v13978_v16  ;;  %v11441_v43 = vpop.f32.mrb[127].mxu0  ;;  %v13991_v6 = vsel %vm223_vm1, %v13979_v44, 0 }
 0x51f   : > { %v11486_v17 = vadd.f32 %v11477_v42, %v11369_v20  ;;  %v11479_v45 = vpop.f32.mrb[125].mxu1  ;;  %13997 = vmatpush1.bf16.msra.mxu0 %v13985_v41 }
 0x520   : > { %v11487_v47 = vadd.f32 %v11479_v45, %v11370_v54  ;;  %v14085_v48 = vpop.permute.xlu1 %14084  ;;  %v13976_v49 = vpop.permute.xlu0 %13975 }
 0x521   : > { %v13980_v50 = vsel %vm7750_vm3, %v13974_v39, %v13976_v49  ;;  %v11481_v3 = vpop.f32.mrb[126].mxu1 }
 0x522   : > { %v11553_v51 = vpop.f32.mrb[128].mxu0  ;;  %15144 = vmatmul.mubr.msk.bf16.vlgmr.msra.gmra.mrb[212].mxu0 %vm219_vm2, %v15142_v46  ;;  %15145 = vmatprep.subr.msk.bf16.mxu1 %vm223_vm1, %v13980_v50  ;;  %v11482_v52 = vpop.f32.mrb[127].mxu1 }
 0x523   : > { %v11601_v53 = vadd.f32 %v11553_v51, %v11484_v36  ;;  %v11555_v55 = vpop.f32.mrb[129].mxu0  ;;  %14038 = vmatpush1.bf16.msra.mxu1 %v13991_v6  ;;  %14145 = vmatprep.mubr.bf16.mxu0 %v15392_v0  ;;  %v15157_v51 = vld [vmem:[%s18632_s1 + $0x1e0] sm:$0xf] }
 0x524   : > { %v11602_v30 = vadd.f32 %v11555_v55, %v11485_v38  ;;  %v14089_v32 = vpop.permute.xlu1 %14088  ;;  %v14087_v56 = vpop.permute.xlu0 %14086 }
 0x525   : > { %v14094_v57 = vsel %vm7868_vm4, %v14085_v48, %v14087_v56  ;;  %v14095_v58 = vsel %vm7868_vm4, %v14087_v56, %v14089_v32  ;;  %v11557_v18 = vpop.f32.mrb[130].mxu0 }
 0x526   : > { %v14102_v19 = vsel %vm223_vm1, %v14094_v57, 0  ;;  %v11594_v4 = vpop.f32.mrb[128].mxu1  ;;  %15146 = vmatmul.mubr.msk.bf16.vlgmr.msra.gmra.mrb[212].mxu1 %vm219_vm2, %v15142_v46  ;;  %15148 = vmatprep.subr.msk.bf16.mxu0 %vm223_vm1, %v14095_v58  ;;  %v11558_v59 = vpop.f32.mrb[131].mxu0 }
 0x527   : > { %v11603_v60 = vadd.f32 %v11594_v4, %v11486_v17  ;;  %v11596_v61 = vpop.f32.mrb[129].mxu1  ;;  %14114 = vmatpush1.bf16.msra.mxu0 %v14102_v19  ;;  %14186 = vmatprep.mubr.bf16.mxu1 %v15392_v0 }
 0x528   : > { %v11604_v8 = vadd.f32 %v11596_v61, %v11487_v47  ;;  %v14093_v33 = vpop.permute.xlu1 %14092  ;;  %v14091_v9 = vpop.permute.xlu0 %14090 }
 0x529   : > { %v14096_v10 = vsel %vm7868_vm4, %v14089_v32, %v14091_v9  ;;  %v14097_v11 = vsel %vm7868_vm4, %v14091_v9, %v14093_v33  ;;  %v11598_v1 = vpop.f32.mrb[130].mxu1 }
 0x52a   : > { %v14108_v12 = vsel %vm223_vm1, %v14096_v10, 0  ;;  %15149 = vmatmul.mubr.msk.bf16.vlgmr.msra.gmra.mrb[216].mxu0 %vm219_vm2, %v15147_v2  ;;  %15150 = vmatprep.subr.msk.bf16.mxu1 %vm223_vm1, %v14097_v11  ;;  %v11599_v13 = vpop.f32.mrb[131].mxu1 }
 0x52b   : > { %14155 = vmatpush1.bf16.msra.mxu1 %v14108_v12  ;;  %14263 = vmatprep.mubr.bf16.mxu0 %v15392_v0 }
 0x52c   : > { %v14204_v14 = vpop.permute.xlu1 %14203  ;;  %v14202_v15 = vpop.permute.xlu0 %14201 }
 0x52d   : > { %v14212_v20 = vsel %vm14211_vm5, %v14202_v15, %v14204_v14 }
 0x52e   : > { %v11671_v5 = vpop.f32.mrb[132].mxu0  ;;  %15151 = vmatmul.mubr.msk.bf16.vlgmr.msra.gmra.mrb[216].mxu1 %vm219_vm2, %v15147_v2  ;;  %v14220_v7 = vsel %vm223_vm1, %v14212_v20, 0 }
 0x52f   : > { %v11719_v21 = vadd.f32 %v11671_v5, %v11601_v53  ;;  %v11673_v22 = vpop.f32.mrb[133].mxu0  ;;  %14304 = vmatprep.mubr.bf16.mxu1 %v15392_v0 }
 0x530   : > { %v11720_v54 = vadd.f32 %v11673_v22, %v11602_v30  ;;  %v14208_v23 = vpop.permute.xlu1 %14207  ;;  %v14206_v24 = vpop.permute.xlu0 %14205 }
 0x531   : > { %v14213_v25 = vsel %vm14211_vm5, %v14204_v14, %v14206_v24  ;;  %v11675_v26 = vpop.f32.mrb[134].mxu0  ;;  %v14214_v62 = vsel %vm14211_vm5, %v14206_v24, %v14208_v23 }
 0x532   : > { %v11712_v28 = vpop.f32.mrb[132].mxu1  ;;  %15153 = vmatprep.subr.msk.bf16.mxu0 %vm223_vm1, %v14213_v25  ;;  %v11676_v29 = vpop.f32.mrb[135].mxu0  ;;  %v14226_v40 = vsel %vm223_vm1, %v14214_v62, 0 }
 0x533   : > { %v11721_v31 = vadd.f32 %v11712_v28, %v11603_v60  ;;  %v11714_v63 = vpop.f32.mrb[133].mxu1  ;;  %14232 = vmatpush1.bf16.msra.mxu0 %v14220_v7 }
 0x534   : > { %v11722_v35 = vadd.f32 %v11714_v63, %v11604_v8  ;;  %v14320_v36 = vpop.permute.xlu1 %14319  ;;  %v14210_v37 = vpop.permute.xlu0 %14209 }
 0x535   : > { %v14215_v38 = vsel %vm14211_vm5, %v14208_v23, %v14210_v37  ;;  %v11716_v39 = vpop.f32.mrb[134].mxu1 }
 0x536   : > { %v11789_v16 = vpop.f32.mrb[136].mxu0  ;;  %15154 = vmatmul.mubr.msk.bf16.vlgmr.msra.gmra.mrb[220].mxu0 %vm219_vm2, %v15152_v34  ;;  %15155 = vmatprep.subr.msk.bf16.mxu1 %vm223_vm1, %v14215_v38  ;;  %v11717_v27 = vpop.f32.mrb[135].mxu1 }
 0x537   : > { %v11837_v41 = vadd.f32 %v11789_v16, %v11719_v21  ;;  %v11791_v42 = vpop.f32.mrb[137].mxu0  ;;  %14273 = vmatpush1.bf16.msra.mxu1 %v14226_v40  ;;  %14381 = vmatprep.mubr.bf16.mxu0 %v15392_v0 }
 0x538   : > { %v11838_v43 = vadd.f32 %v11791_v42, %v11720_v54  ;;  %v14324_v44 = vpop.permute.xlu1 %14323  ;;  %v14322_v17 = vpop.permute.xlu0 %14321 }
 0x539   : > { %v14330_v45 = vsel %vm14329_vm6, %v14320_v36, %v14322_v17  ;;  %v14331_v46 = vsel %vm14329_vm6, %v14322_v17, %v14324_v44  ;;  %v11793_v47 = vpop.f32.mrb[138].mxu0 }
 0x53a   : > { %v14338_v48 = vsel %vm223_vm1, %v14330_v45, 0  ;;  %v11830_v49 = vpop.f32.mrb[136].mxu1  ;;  %15156 = vmatmul.mubr.msk.bf16.vlgmr.msra.gmra.mrb[220].mxu1 %vm219_vm2, %v15152_v34  ;;  %15158 = vmatprep.subr.msk.bf16.mxu0 %vm223_vm1, %v14331_v46  ;;  %v11794_v50 = vpop.f32.mrb[139].mxu0 }
 0x53b   : > { %v11839_v3 = vadd.f32 %v11830_v49, %v11721_v31  ;;  %v11832_v6 = vpop.f32.mrb[137].mxu1  ;;  %14350 = vmatpush1.bf16.msra.mxu0 %v14338_v48  ;;  %14422 = vmatprep.mubr.bf16.mxu1 %v15392_v0 }
 0x53c   : > { %v11840_v52 = vadd.f32 %v11832_v6, %v11722_v35  ;;  %v14328_v53 = vpop.permute.xlu1 %14327  ;;  %v14326_v55 = vpop.permute.xlu0 %14325 }
 0x53d   : > { %v14332_v30 = vsel %vm14329_vm6, %v14324_v44, %v14326_v55  ;;  %v14333_v32 = vsel %vm14329_vm6, %v14326_v55, %v14328_v53  ;;  %v11834_v56 = vpop.f32.mrb[138].mxu1 }
 0x53e   : > { %v14344_v57 = vsel %vm223_vm1, %v14332_v30, 0  ;;  %15159 = vmatmul.mubr.msk.bf16.vlgmr.msra.gmra.mrb[224].mxu0 %vm219_vm2, %v15157_v51  ;;  %15160 = vmatprep.subr.msk.bf16.mxu1 %vm223_vm1, %v14333_v32  ;;  %v11835_v58 = vpop.f32.mrb[139].mxu1 }
 0x53f   : > { %14391 = vmatpush1.bf16.msra.mxu1 %v14344_v57 }
 0x542   : > { %v11906_v18 = vpop.f32.mrb[140].mxu0  ;;  %15161 = vmatmul.mubr.msk.bf16.vlgmr.msra.gmra.mrb[224].mxu1 %vm219_vm2, %v15157_v51 }
 0x543   : > { %v11954_v0 = vadd.f32 %v11906_v18, %v11837_v41  ;;  %v11908_v19 = vpop.f32.mrb[141].mxu0 }
 0x544   : > { %v11955_v4 = vadd.f32 %v11908_v19, %v11838_v43  ;;  %v11910_v59 = vpop.f32.mrb[142].mxu0 }
 0x545   : > { %v11911_v60 = vpop.f32.mrb[143].mxu0 }
 0x546   : > { %v11947_v61 = vpop.f32.mrb[140].mxu1 }
 0x547   : > { %v11956_v2 = vadd.f32 %v11947_v61, %v11839_v3  ;;  %v11949_v8 = vpop.f32.mrb[141].mxu1 }
 0x548   : > { %v11957_v33 = vadd.f32 %v11949_v8, %v11840_v52  ;;  %v11951_v9 = vpop.f32.mrb[142].mxu1 }
 0x549   : > { %v11952_v10 = vpop.f32.mrb[143].mxu1 }
 0x54a   : > { %v12023_v11 = vpop.f32.mrb[144].mxu0 }
 0x54b   : > { %v12071_v1 = vadd.f32 %v12023_v11, %v11954_v0  ;;  %v12025_v12 = vpop.f32.mrb[145].mxu0 }
 0x54c   : > { %v12072_v13 = vadd.f32 %v12025_v12, %v11955_v4  ;;  %v12027_v14 = vpop.f32.mrb[146].mxu0 }
 0x54d   : > { %v12028_v15 = vpop.f32.mrb[147].mxu0 }
 0x54e   : > { %v12064_v5 = vpop.f32.mrb[144].mxu1 }
 0x54f   : > { %v12073_v20 = vadd.f32 %v12064_v5, %v11956_v2  ;;  %v12066_v21 = vpop.f32.mrb[145].mxu1 }
 0x550   : > { %v12074_v22 = vadd.f32 %v12066_v21, %v11957_v33  ;;  %v12068_v54 = vpop.f32.mrb[146].mxu1 }
 0x551   : > { %v12069_v23 = vpop.f32.mrb[147].mxu1 }
 0x556   : > { %v12140_v24 = vpop.f32.mrb[148].mxu0 }
 0x557   : > { %v12188_v25 = vadd.f32 %v12140_v24, %v12071_v1  ;;  %v12142_v26 = vpop.f32.mrb[149].mxu0 }
 0x558   : > { %v12189_v7 = vadd.f32 %v12142_v26, %v12072_v13  ;;  %v12144_v28 = vpop.f32.mrb[150].mxu0 }
 0x559   : > { %v12145_v29 = vpop.f32.mrb[151].mxu0 }
 0x55a   : > { %v12181_v62 = vpop.f32.mrb[148].mxu1 }
 0x55b   : > { %v12190_v31 = vadd.f32 %v12181_v62, %v12073_v20  ;;  %v12183_v63 = vpop.f32.mrb[149].mxu1 }
 0x55c   : > { %v12191_v34 = vadd.f32 %v12183_v63, %v12074_v22  ;;  %v12185_v35 = vpop.f32.mrb[150].mxu1 }
 0x55d   : > { %v12186_v36 = vpop.f32.mrb[151].mxu1 }
 0x55e   : > { %v12257_v37 = vpop.f32.mrb[152].mxu0 }
 0x55f   : > { %v12305_v38 = vadd.f32 %v12257_v37, %v12188_v25  ;;  %v12259_v39 = vpop.f32.mrb[153].mxu0 }
 0x560   : > { %v12306_v40 = vadd.f32 %v12259_v39, %v12189_v7  ;;  %v12261_v16 = vpop.f32.mrb[154].mxu0 }
 0x561   : > { %v12262_v27 = vpop.f32.mrb[155].mxu0 }
 0x562   : > { %v12298_v41 = vpop.f32.mrb[152].mxu1 }
 0x563   : > { %v12307_v42 = vadd.f32 %v12298_v41, %v12190_v31  ;;  %v12300_v43 = vpop.f32.mrb[153].mxu1 }
 0x564   : > { %v12308_v44 = vadd.f32 %v12300_v43, %v12191_v34  ;;  %v12302_v17 = vpop.f32.mrb[154].mxu1 }
 0x565   : > { %v12303_v45 = vpop.f32.mrb[155].mxu1 }
 0x56a   : > { %v12374_v46 = vpop.f32.mrb[156].mxu0 }
 0x56b   : > { %v12422_v47 = vadd.f32 %v12374_v46, %v12305_v38  ;;  %v12376_v48 = vpop.f32.mrb[157].mxu0 }
 0x56c   : > { %v12423_v49 = vadd.f32 %v12376_v48, %v12306_v40  ;;  %v12378_v50 = vpop.f32.mrb[158].mxu0 }
 0x56d   : > { %v12379_v3 = vpop.f32.mrb[159].mxu0 }
 0x56e   : > { %v12415_v6 = vpop.f32.mrb[156].mxu1 }
 0x56f   : > { %v12424_v51 = vadd.f32 %v12415_v6, %v12307_v42  ;;  %v12417_v52 = vpop.f32.mrb[157].mxu1 }
 0x570   : > { %v12425_v53 = vadd.f32 %v12417_v52, %v12308_v44  ;;  %v12419_v55 = vpop.f32.mrb[158].mxu1 }
 0x571   : > { %v12420_v30 = vpop.f32.mrb[159].mxu1 }
 0x572   : > { %v12491_v32 = vpop.f32.mrb[160].mxu0 }
 0x573   : > { %v12539_v56 = vadd.f32 %v12491_v32, %v12422_v47  ;;  %v12493_v57 = vpop.f32.mrb[161].mxu0 }
 0x574   : > { %v12540_v58 = vadd.f32 %v12493_v57, %v12423_v49  ;;  %v12495_v18 = vpop.f32.mrb[162].mxu0 }
 0x575   : > { %v12496_v0 = vpop.f32.mrb[163].mxu0 }
 0x576   : > { %v12532_v19 = vpop.f32.mrb[160].mxu1 }
 0x577   : > { %v12541_v4 = vadd.f32 %v12532_v19, %v12424_v51  ;;  %v12534_v59 = vpop.f32.mrb[161].mxu1 }
 0x578   : > { %v12542_v60 = vadd.f32 %v12534_v59, %v12425_v53  ;;  %v12536_v61 = vpop.f32.mrb[162].mxu1 }
 0x579   : > { %v12537_v2 = vpop.f32.mrb[163].mxu1 }
 0x57e   : > { %v12608_v8 = vpop.f32.mrb[164].mxu0 }
 0x57f   : > { %v12656_v33 = vadd.f32 %v12608_v8, %v12539_v56  ;;  %v12610_v9 = vpop.f32.mrb[165].mxu0 }
 0x580   : > { %v12657_v10 = vadd.f32 %v12610_v9, %v12540_v58  ;;  %v12612_v11 = vpop.f32.mrb[166].mxu0 }
 0x581   : > { %v12613_v1 = vpop.f32.mrb[167].mxu0 }
 0x582   : > { %v12649_v12 = vpop.f32.mrb[164].mxu1 }
 0x583   : > { %v12658_v13 = vadd.f32 %v12649_v12, %v12541_v4  ;;  %v12651_v14 = vpop.f32.mrb[165].mxu1 }
 0x584   : > { %v12659_v15 = vadd.f32 %v12651_v14, %v12542_v60  ;;  %v12653_v5 = vpop.f32.mrb[166].mxu1 }
 0x585   : > { %v12654_v20 = vpop.f32.mrb[167].mxu1 }
 0x586   : > { %v12725_v21 = vpop.f32.mrb[168].mxu0 }
 0x587   : > { %v12773_v22 = vadd.f32 %v12725_v21, %v12656_v33  ;;  %v12727_v54 = vpop.f32.mrb[169].mxu0 }
 0x588   : > { %v12774_v23 = vadd.f32 %v12727_v54, %v12657_v10  ;;  %v12729_v24 = vpop.f32.mrb[170].mxu0 }
 0x589   : > { %v12730_v25 = vpop.f32.mrb[171].mxu0 }
 0x58a   : > { %v12766_v26 = vpop.f32.mrb[168].mxu1 }
 0x58b   : > { %v12775_v7 = vadd.f32 %v12766_v26, %v12658_v13  ;;  %v12768_v28 = vpop.f32.mrb[169].mxu1 }
 0x58c   : > { %v12776_v29 = vadd.f32 %v12768_v28, %v12659_v15  ;;  %v12770_v62 = vpop.f32.mrb[170].mxu1 }
 0x58d   : > { %v12771_v31 = vpop.f32.mrb[171].mxu1 }
 0x592   : > { %v12842_v63 = vpop.f32.mrb[172].mxu0 }
 0x593   : > { %v12890_v34 = vadd.f32 %v12842_v63, %v12773_v22  ;;  %v12844_v35 = vpop.f32.mrb[173].mxu0 }
 0x594   : > { %v12891_v36 = vadd.f32 %v12844_v35, %v12774_v23  ;;  %v12846_v37 = vpop.f32.mrb[174].mxu0 }
 0x595   : > { %v12847_v38 = vpop.f32.mrb[175].mxu0 }
 0x596   : > { %v12883_v39 = vpop.f32.mrb[172].mxu1 }
 0x597   : > { %v12892_v40 = vadd.f32 %v12883_v39, %v12775_v7  ;;  %v12885_v16 = vpop.f32.mrb[173].mxu1 }
 0x598   : > { %v12893_v27 = vadd.f32 %v12885_v16, %v12776_v29  ;;  %v12887_v41 = vpop.f32.mrb[174].mxu1 }
 0x599   : > { %v12888_v42 = vpop.f32.mrb[175].mxu1 }
 0x59a   : > { %v12960_v43 = vpop.f32.mrb[176].mxu0 }
 0x59b   : > { %v13008_v44 = vadd.f32 %v12960_v43, %v12890_v34  ;;  %v12962_v17 = vpop.f32.mrb[177].mxu0 }
 0x59c   : > { %v13009_v45 = vadd.f32 %v12962_v17, %v12891_v36  ;;  %v12964_v46 = vpop.f32.mrb[178].mxu0 }
 0x59d   : > { %v12965_v47 = vpop.f32.mrb[179].mxu0 }
 0x59e   : > { %v13001_v48 = vpop.f32.mrb[176].mxu1 }
 0x59f   : > { %v13010_v49 = vadd.f32 %v13001_v48, %v12892_v40  ;;  %v13003_v50 = vpop.f32.mrb[177].mxu1 }
 0x5a0   : > { %v13011_v3 = vadd.f32 %v13003_v50, %v12893_v27  ;;  %v13005_v6 = vpop.f32.mrb[178].mxu1 }
 0x5a1   : > { %v13006_v51 = vpop.f32.mrb[179].mxu1 }
 0x5a5   : > { %v13078_v52 = vpop.f32.mrb[180].mxu0 }
 0x5a6   : > { %v13126_v53 = vadd.f32 %v13078_v52, %v13008_v44  ;;  %v13080_v55 = vpop.f32.mrb[181].mxu0 }
 0x5a7   : > { %v13127_v30 = vadd.f32 %v13080_v55, %v13009_v45  ;;  %v13082_v32 = vpop.f32.mrb[182].mxu0 }
 0x5a8   : > { %v13083_v56 = vpop.f32.mrb[183].mxu0 }
 0x5a9   : > { %v13119_v57 = vpop.f32.mrb[180].mxu1 }
 0x5aa   : > { %v13128_v58 = vadd.f32 %v13119_v57, %v13010_v49  ;;  %v13121_v18 = vpop.f32.mrb[181].mxu1 }
 0x5ab   : > { %v13129_v0 = vadd.f32 %v13121_v18, %v13011_v3  ;;  %v13123_v19 = vpop.f32.mrb[182].mxu1 }
 0x5ac   : > { %v13124_v4 = vpop.f32.mrb[183].mxu1 }
 0x5ad   : > { %v13211_v59 = vpop.f32.mrb[184].mxu0 }
 0x5ae   : > { %v13259_v60 = vadd.f32 %v13211_v59, %v13126_v53  ;;  %v13213_v61 = vpop.f32.mrb[185].mxu0 }
 0x5af   : > { %v13260_v2 = vadd.f32 %v13213_v61, %v13127_v30  ;;  %v13215_v8 = vpop.f32.mrb[186].mxu0 }
 0x5b0   : > { %v13216_v33 = vpop.f32.mrb[187].mxu0 }
 0x5b1   : > { %v13252_v9 = vpop.f32.mrb[184].mxu1 }
 0x5b2   : > { %v13261_v10 = vadd.f32 %v13252_v9, %v13128_v58  ;;  %v13254_v11 = vpop.f32.mrb[185].mxu1 }
 0x5b3   : > { %v13262_v1 = vadd.f32 %v13254_v11, %v13129_v0  ;;  %v13256_v12 = vpop.f32.mrb[186].mxu1 }
 0x5b4   : > { %v13257_v13 = vpop.f32.mrb[187].mxu1 }
 0x5b9   : > { %v13328_v14 = vpop.f32.mrb[188].mxu0 }
 0x5ba   : > { %v13376_v15 = vadd.f32 %v13328_v14, %v13259_v60  ;;  %v13330_v5 = vpop.f32.mrb[189].mxu0 }
 0x5bb   : > { %v13377_v20 = vadd.f32 %v13330_v5, %v13260_v2  ;;  %v13332_v21 = vpop.f32.mrb[190].mxu0 }
 0x5bc   : > { %v13333_v22 = vpop.f32.mrb[191].mxu0 }
 0x5bd   : > { %v13369_v54 = vpop.f32.mrb[188].mxu1 }
 0x5be   : > { %v13378_v23 = vadd.f32 %v13369_v54, %v13261_v10  ;;  %v13371_v24 = vpop.f32.mrb[189].mxu1 }
 0x5bf   : > { %v13379_v25 = vadd.f32 %v13371_v24, %v13262_v1  ;;  %v13373_v26 = vpop.f32.mrb[190].mxu1 }
 0x5c0   : > { %v13374_v7 = vpop.f32.mrb[191].mxu1 }
 0x5c1   : > { %v13445_v28 = vpop.f32.mrb[192].mxu0 }
 0x5c2   : > { %v13493_v29 = vadd.f32 %v13445_v28, %v13376_v15  ;;  %v13447_v62 = vpop.f32.mrb[193].mxu0 }
 0x5c3   : > { %v13494_v31 = vadd.f32 %v13447_v62, %v13377_v20  ;;  %v13449_v63 = vpop.f32.mrb[194].mxu0 }
 0x5c4   : > { %v13450_v34 = vpop.f32.mrb[195].mxu0 }
 0x5c5   : > { %v13486_v35 = vpop.f32.mrb[192].mxu1 }
 0x5c6   : > { %v13495_v36 = vadd.f32 %v13486_v35, %v13378_v23  ;;  %v13488_v37 = vpop.f32.mrb[193].mxu1 }
 0x5c7   : > { %v13496_v38 = vadd.f32 %v13488_v37, %v13379_v25  ;;  %v13490_v39 = vpop.f32.mrb[194].mxu1 }
 0x5c8   : > { %v13491_v40 = vpop.f32.mrb[195].mxu1 }
 0x5cd   : > { %v13562_v16 = vpop.f32.mrb[196].mxu0 }
 0x5ce   : > { %v13610_v27 = vadd.f32 %v13562_v16, %v13493_v29  ;;  %v13564_v41 = vpop.f32.mrb[197].mxu0 }
 0x5cf   : > { %v13611_v42 = vadd.f32 %v13564_v41, %v13494_v31  ;;  %v13566_v43 = vpop.f32.mrb[198].mxu0 }
 0x5d0   : > { %v13567_v44 = vpop.f32.mrb[199].mxu0 }
 0x5d1   : > { %v13603_v17 = vpop.f32.mrb[196].mxu1 }
 0x5d2   : > { %v13612_v45 = vadd.f32 %v13603_v17, %v13495_v36  ;;  %v13605_v46 = vpop.f32.mrb[197].mxu1 }
 0x5d3   : > { %v13613_v47 = vadd.f32 %v13605_v46, %v13496_v38  ;;  %v13607_v48 = vpop.f32.mrb[198].mxu1 }
 0x5d4   : > { %v13608_v49 = vpop.f32.mrb[199].mxu1 }
 0x5d5   : > { %v13679_v50 = vpop.f32.mrb[200].mxu0 }
 0x5d6   : > { %v13727_v3 = vadd.f32 %v13679_v50, %v13610_v27  ;;  %v13681_v6 = vpop.f32.mrb[201].mxu0 }
 0x5d7   : > { %v13728_v51 = vadd.f32 %v13681_v6, %v13611_v42  ;;  %v13683_v52 = vpop.f32.mrb[202].mxu0 }
 0x5d8   : > { %v13684_v53 = vpop.f32.mrb[203].mxu0 }
 0x5d9   : > { %v13720_v55 = vpop.f32.mrb[200].mxu1 }
 0x5da   : > { %v13729_v30 = vadd.f32 %v13720_v55, %v13612_v45  ;;  %v13722_v32 = vpop.f32.mrb[201].mxu1 }
 0x5db   : > { %v13730_v56 = vadd.f32 %v13722_v32, %v13613_v47  ;;  %v13724_v57 = vpop.f32.mrb[202].mxu1 }
 0x5dc   : > { %v13725_v58 = vpop.f32.mrb[203].mxu1 }
 0x5e1   : > { %v13796_v18 = vpop.f32.mrb[204].mxu0 }
 0x5e2   : > { %v13844_v0 = vadd.f32 %v13796_v18, %v13727_v3  ;;  %v13798_v19 = vpop.f32.mrb[205].mxu0 }
 0x5e3   : > { %v13845_v4 = vadd.f32 %v13798_v19, %v13728_v51  ;;  %v13800_v59 = vpop.f32.mrb[206].mxu0 }
 0x5e4   : > { %v13801_v60 = vpop.f32.mrb[207].mxu0 }
 0x5e5   : > { %v13837_v61 = vpop.f32.mrb[204].mxu1 }
 0x5e6   : > { %v13846_v2 = vadd.f32 %v13837_v61, %v13729_v30  ;;  %v13839_v8 = vpop.f32.mrb[205].mxu1 }
 0x5e7   : > { %v13847_v33 = vadd.f32 %v13839_v8, %v13730_v56  ;;  %v13841_v9 = vpop.f32.mrb[206].mxu1  ;;  %v14439_v56 = vpop.permute.xlu0 %14438 }
 0x5e8   : > { %v13842_v10 = vpop.f32.mrb[207].mxu1 }
 0x5e9   : > { %v13913_v11 = vpop.f32.mrb[208].mxu0 }
 0x5ea   : > { %v13961_v1 = vadd.f32 %v13913_v11, %v13844_v0  ;;  %v13915_v12 = vpop.f32.mrb[209].mxu0 }
 0x5eb   : > { %v13962_v13 = vadd.f32 %v13915_v12, %v13845_v4  ;;  %v13917_v14 = vpop.f32.mrb[210].mxu0 }
 0x5ec   : > { %v13918_v15 = vpop.f32.mrb[211].mxu0 }
 0x5ed   : > { %v13954_v5 = vpop.f32.mrb[208].mxu1 }
 0x5ee   : > { %v13963_v20 = vadd.f32 %v13954_v5, %v13846_v2  ;;  %v13956_v21 = vpop.f32.mrb[209].mxu1 }
 0x5ef   : > { %v13964_v22 = vadd.f32 %v13956_v21, %v13847_v33  ;;  %v13958_v54 = vpop.f32.mrb[210].mxu1 }
 0x5f0   : > { %v13959_v23 = vpop.f32.mrb[211].mxu1 }
 0x5f5   : > { %v14030_v24 = vpop.f32.mrb[212].mxu0 }
 0x5f6   : > { %v14078_v25 = vadd.f32 %v14030_v24, %v13961_v1  ;;  %v14032_v26 = vpop.f32.mrb[213].mxu0 }
 0x5f7   : > { %v14079_v7 = vadd.f32 %v14032_v26, %v13962_v13  ;;  %v14034_v28 = vpop.f32.mrb[214].mxu0 }
 0x5f8   : > { %v14035_v29 = vpop.f32.mrb[215].mxu0 }
 0x5f9   : > { %v14071_v62 = vpop.f32.mrb[212].mxu1 }
 0x5fa   : > { %v14080_v31 = vadd.f32 %v14071_v62, %v13963_v20  ;;  %v14073_v63 = vpop.f32.mrb[213].mxu1 }
 0x5fb   : > { %v14081_v34 = vadd.f32 %v14073_v63, %v13964_v22  ;;  %v14075_v35 = vpop.f32.mrb[214].mxu1 }
 0x5fc   : > { %v14076_v36 = vpop.f32.mrb[215].mxu1 }
 0x5fd   : > { %v14147_v37 = vpop.f32.mrb[216].mxu0 }
 0x5fe   : > { %v14195_v38 = vadd.f32 %v14147_v37, %v14078_v25  ;;  %v14149_v39 = vpop.f32.mrb[217].mxu0 }
 0x5ff   : > { %v14196_v40 = vadd.f32 %v14149_v39, %v14079_v7  ;;  %v14151_v16 = vpop.f32.mrb[218].mxu0 }
 0x600   : > { %v14152_v27 = vpop.f32.mrb[219].mxu0 }
 0x601   : > { %v14188_v41 = vpop.f32.mrb[216].mxu1 }
 0x602   : > { %v14197_v42 = vadd.f32 %v14188_v41, %v14080_v31  ;;  %v14190_v43 = vpop.f32.mrb[217].mxu1 }
 0x603   : > { %v14198_v44 = vadd.f32 %v14190_v43, %v14081_v34  ;;  %v14192_v17 = vpop.f32.mrb[218].mxu1 }
 0x604   : > { %v14193_v45 = vpop.f32.mrb[219].mxu1 }
 0x609   : > { %v14265_v46 = vpop.f32.mrb[220].mxu0 }
 0x60a   : > { %v14313_v47 = vadd.f32 %v14265_v46, %v14195_v38  ;;  %v14267_v48 = vpop.f32.mrb[221].mxu0 }
 0x60b   : > { %v14314_v49 = vadd.f32 %v14267_v48, %v14196_v40  ;;  %v14269_v50 = vpop.f32.mrb[222].mxu0 }
 0x60c   : > { %v14270_v3 = vpop.f32.mrb[223].mxu0 }
 0x60d   : > { %v14306_v6 = vpop.f32.mrb[220].mxu1 }
 0x60e   : > { %v14315_v51 = vadd.f32 %v14306_v6, %v14197_v42  ;;  %v14308_v52 = vpop.f32.mrb[221].mxu1 }
 0x60f   : > { %v14316_v53 = vadd.f32 %v14308_v52, %v14198_v44  ;;  %v14310_v55 = vpop.f32.mrb[222].mxu1 }
 0x610   : > { %v14311_v30 = vpop.f32.mrb[223].mxu1 }
 0x611   : > { %v14383_v32 = vpop.f32.mrb[224].mxu0 }
 0x612   : > { %v14431_v57 = vadd.f32 %v14383_v32, %v14313_v47  ;;  %v14385_v58 = vpop.f32.mrb[225].mxu0 }
 0x613   : > { %v14432_v18 = vadd.f32 %v14385_v58, %v14314_v49  ;;  %v14387_v0 = vpop.f32.mrb[226].mxu0 }
 0x614   : > { %v14441_v19 = vadd.f32 %v14439_v56, %v14431_v57  ;;  %v14388_v4 = vpop.f32.mrb[227].mxu0 }
 0x615   : > { %v14442_v59 = vadd.f32 %v14439_v56, %v14432_v18  ;;  %v14424_v60 = vpop.f32.mrb[224].mxu1 }
 0x616   : > { %14445 = vst [vmem:[%s177_s27] sm:$0xff] %v14441_v19  ;;  %v14433_v61 = vadd.f32 %v14424_v60, %v14315_v51  ;;  %v14426_v2 = vpop.f32.mrb[225].mxu1 }
 0x617   : > { %14446 = vst [vmem:[%s177_s27 + $0x8] sm:$0xff] %v14442_v59  ;;  %v14434_v8 = vadd.f32 %v14426_v2, %v14316_v53  ;;  %v14428_v33 = vpop.f32.mrb[226].mxu1 }
 0x618   : > { %v14443_v9 = vadd.f32 %v14439_v56, %v14433_v61  ;;  %v14429_v10 = vpop.f32.mrb[227].mxu1 }
 0x619   : > { %v14444_v11 = vadd.f32 %v14439_v56, %v14434_v8 }
 0x61a   : > { %14447 = vst [vmem:[%s177_s27 + $0x10] sm:$0xff] %v14443_v9 }
 0x61b   : > { %14448 = vst [vmem:[%s177_s27 + $0x18] sm:$0xff] %v14444_v11 }
 0x61c   : > { %15325 = shalt.err (!%p15322_p5)
}
 0x61d   : > { %s15326_s11 = scalar_lea.hbm %s18582_s8, 512  ;;  %s15330_s18 = scalar_lea.hbm %s18634_s3, 1024 }
 0x61e   : > { %p15327_p6 = scmp.ne.s32.totalorder %s18582_s8, %s15326_s11  ;;  %p15331_p10 = scmp.lt.u32.totalorder %s18582_s8, %s18634_s3 }
 0x61f   : > { %p15332_p11 = scmp.lt.u32.totalorder %s15330_s18, %s15326_s11  ;;  %p15334_p13 = scmp.lt.u32.totalorder %s15326_s11, %s18582_s8 }
 0x620   : > { %p15328_p7 = pnand %p15327_p6, %p15520_p4 }
 0x621   : > { %p15333_p12 = por %p15332_p11, %p15331_p10 }
 0x622   : > { %p15329_p9 = pneg %p15328_p7 }
 0x623   : > { %p15335_p0 = por %p15334_p13, %p15333_p12 }
 0x625   : > { %p15336_p1 = pnand %p15335_p0, %p15329_p9 }
 0x627   : > { %15339 = shalt.err (!%p15336_p1)
}
 0x628   : > { %15169 = dma.vmem_to_hbm [thread:$0]  (%p15520_p4), %s18584_s7, 512, %s18582_s8, %s14450_s15  }
 0x629 PF: > { %p15175_p2 = scmp.ge.s32.totalorder %s15390_s17, 2  ;;  %s14478_s30 = sand.u32 1, %s15370_s12  }
 0x62a   : > { %s14479_s27 = scalar_lea.sflag [#allocation3], %s14478_s30 }
 0x62b   : > { %p15172_p3 = pnand %p15175_p2, %p15527_p8 }
 0x62d   : > { %15365 = dma.done.wait (!%p15172_p3), %s14479_s27, 512  }
 0x62e   : > { %15367 = vsyncadd (!%p15172_p3), %s14479_s27, 4294966784  ;;  %s16_s17 = sadd.s32 1, %s15390_s17   ;;  %s18875_s12 = smov %s15374_s13 }
 0x62f   : > { %p13_p5 = scmp.ge.s32.totalorder %s16_s17, 4   ;;  %s18876_s13 = smov %s15378_s14 }
 0x630   : > { %s18877_s14 = smov %s15533_s25  ;;  %s18878_s15 = smov %s15386_s16 }
 0x631   : > { %s18879_s16 = smov %s18881_s20  ;;  %15 = sbr.rel (!%p13_p5) target bundleno = 4 (0x4), region = 187 }
 0x638   :  { %14484 = vsyncpa [#allocation3], 1 }
 0x639   :  { %14486 = vsyncpa [#allocation3 + $0x1], 1 }

</bundles_post_ra>
